<compile_context>
chip_gen: v5e
topology: v5e:2x2
jax: 0.10.0
libtpu: 0.0.40
codegen_flags: <defaults>
</compile_context>

<pallas_src>
import functools

import jax
import jax.numpy as jnp
from jax.experimental import pallas as pl
from jax.experimental.pallas import tpu as pltpu


def _round_up(x, m):
    return (x + m - 1) // m * m


def _vmem_limit(block_bytes):
    # double-buffered blocks + headroom; floor at the default scoped limit (32 MiB), cap so it
    # stays legal on v7x (64 MiB physical VMEM).
    need = 2 * block_bytes + (8 << 20)
    return int(min(48 << 20, max(32 << 20, need)))


# ------------------------------------------------------------------
# Kernel 1: ConvTranspose2d(kernel=2, stride=2) == per-pixel matmul
#   out[n, 2i+a, 2j+b, co] = sum_ci x[n,i,j,ci] * W[ci,co,a,b] + bias[co]
# ------------------------------------------------------------------
def _matmul_bias_kernel(x_ref, w_ref, b_ref, o_ref):
    acc = jnp.dot(x_ref[...], w_ref[...], preferred_element_type=jnp.float32)
    o_ref[...] = (acc + b_ref[...]).astype(o_ref.dtype)


def conv_transpose_2x2_s2(x_nhwc, w_pt, b):
    # x_nhwc: (N,H,W,Cin); w_pt (torch layout): (Cin, Cup, 2, 2); b: (Cup,)
    N, H, W, Cin = x_nhwc.shape
    Cup = w_pt.shape[1]
    K4 = 4 * Cup
    # (Cin,Cup,2,2) -> (Cin,a,b,co) -> (Cin, 4*Cup); column order (a,b,co) matches bias tiling.
    w_flat = jnp.transpose(w_pt, (0, 2, 3, 1)).reshape(Cin, K4).astype(jnp.bfloat16)
    b_flat = jnp.tile(b, 4).reshape(1, K4).astype(jnp.float32)

    M = N * H * W
    x_flat = x_nhwc.reshape(M, Cin).astype(jnp.bfloat16)

    # Tile M: big tiles for pipelining, but keep >= 2 grid steps so v7x can use both cores.
    TM = max(8, min(512, _round_up(-(-M // 2), 8)))
    Mp = _round_up(M, TM)
    if Mp != M:
        x_flat = jnp.pad(x_flat, ((0, Mp - M), (0, 0)))

    block_bytes = TM * Cin * 2 + Cin * K4 * 2 + K4 * 4 + TM * K4 * 4
    cost = pl.CostEstimate(
        flops=2 * Mp * Cin * K4,
        transcendentals=0,
        bytes_accessed=Mp * Cin * 2 + Cin * K4 * 2 + Mp * K4 * 4,
    )
    y_flat = pl.pallas_call(
        _matmul_bias_kernel,
        out_shape=jax.ShapeDtypeStruct((Mp, K4), jnp.float32),
        grid=(Mp // TM,),
        in_specs=[
            pl.BlockSpec((TM, Cin), lambda i: (i, 0)),
            pl.BlockSpec((Cin, K4), lambda i: (0, 0)),
            pl.BlockSpec((1, K4), lambda i: (0, 0)),
        ],
        out_specs=pl.BlockSpec((TM, K4), lambda i: (i, 0)),
        compiler_params=pltpu.CompilerParams(
            dimension_semantics=("parallel",),
            vmem_limit_bytes=_vmem_limit(block_bytes),
        ),
        cost_estimate=cost,
    )(x_flat, w_flat, b_flat)

    # Sub-pixel scatter back to the upsampled image (wrapper-side layout op).
    y = y_flat[:M].reshape(N, H, W, 2, 2, Cup)
    return jnp.transpose(y, (0, 1, 3, 2, 4, 5)).reshape(N, 2 * H, 2 * W, Cup)


# ------------------------------------------------------------------
# Kernel 2: fused concat + conv3x3 + LeakyReLU + conv3x3 + LeakyReLU
# ------------------------------------------------------------------
def _conv3x3_mxu(xpad, w9, H, W):
    """3x3 'same' conv of a zero-padded (H+2, W+2, C) slab against w9: (9*C, Cout).

    Tap order (dy, dx), channel-minor — matches the wrapper's weight reshape.  When C is
    lane-aligned (multiple of 128) the taps are concatenated into one im2col matmul (K=9*C);
    otherwise fall back to 9 accumulated MXU dots (accumulator initialized by the first tap)
    to avoid unaligned minor-dim concatenation on small channel counts.
    """
    C = xpad.shape[-1]
    taps = [xpad[dy:dy + H, dx:dx + W, :] for dy in range(3) for dx in range(3)]
    if C % 128 == 0:
        patches = jnp.concatenate(taps, axis=-1).reshape(H * W, 9 * C)
        return jnp.dot(patches, w9, preferred_element_type=jnp.float32)
    acc = None
    for t, tap in enumerate(taps):
        part = jnp.dot(tap.reshape(H * W, C), w9[t * C:(t + 1) * C],
                       preferred_element_type=jnp.float32)
        acc = part if acc is None else acc + part
    return acc


def _fused_vgg_kernel(up_ref, br_ref, w1u_ref, w1b_ref, b1_ref, w2_ref, b2_ref,
                      o_ref, a1pad_ref, *, slope, H, W):
    # up_ref:  (1,H+2,W+2,Cup) bf16     br_ref: (1,H+2,W+2,Cb) bf16
    # w1u_ref: (9*Cup,Cmid) bf16        w1b_ref:(9*Cb,Cmid) bf16     b1_ref:(1,Cmid) f32
    # w2_ref:  (9*Cmid,Cout) bf16       b2_ref: (1,Cout) f32
    # o_ref:   (1, H*W, Cout) f32       a1pad_ref: VMEM (H+2,W+2,Cmid) bf16 scratch
    Cmid = a1pad_ref.shape[-1]

    # conv1 — the channel concat is fused away by splitting the weight (up-part + bridge-part).
    acc1 = _conv3x3_mxu(up_ref[0], w1u_ref[...], H, W)
    acc1 = acc1 + _conv3x3_mxu(br_ref[0], w1b_ref[...], H, W)
    acc1 = acc1 + b1_ref[...]                               # bias broadcast, added once
    a1 = jnp.where(acc1 >= 0, acc1, slope * acc1)           # LeakyReLU (VPU)

    # conv1 activation stays in VMEM, zero-padded here for conv2's padding=1 (never hits HBM).
    a1pad_ref[...] = jnp.zeros_like(a1pad_ref)
    a1pad_ref[1:H + 1, 1:W + 1, :] = a1.astype(a1pad_ref.dtype).reshape(H, W, Cmid)

    acc2 = _conv3x3_mxu(a1pad_ref[...], w2_ref[...], H, W) + b2_ref[...]
    acc2 = jnp.where(acc2 >= 0, acc2, slope * acc2)         # LeakyReLU
    o_ref[0] = acc2.astype(o_ref.dtype)                     # lane-flattened (H*W, Cout) slab


def fused_vgg_block(up_nhwc, crop_nhwc, w1_pt, b1, w2_pt, b2, slope=0.2):
    # up_nhwc: (N,H,W,Cup)   crop_nhwc: (N,H,W,Cb)
    # w1_pt: (Cmid, Cup+Cb, 3, 3)  b1: (Cmid,)   w2_pt: (Cout, Cmid, 3, 3)  b2: (Cout,)
    N, H, W, Cup = up_nhwc.shape
    Cb = crop_nhwc.shape[-1]
    Cmid, Cin_total = w1_pt.shape[0], w1_pt.shape[1]
    Cout = w2_pt.shape[0]
    assert Cin_total == Cup + Cb

    # Split conv1's weight so cat([up, crop], channel) never materializes.
    w1u = jnp.transpose(w1_pt[:, :Cup], (2, 3, 1, 0)).reshape(9 * Cup, Cmid).astype(jnp.bfloat16)
    w1b = jnp.transpose(w1_pt[:, Cup:], (2, 3, 1, 0)).reshape(9 * Cb, Cmid).astype(jnp.bfloat16)
    w2 = jnp.transpose(w2_pt, (2, 3, 1, 0)).reshape(9 * Cmid, Cout).astype(jnp.bfloat16)
    b1r = b1.reshape(1, Cmid).astype(jnp.float32)
    b2r = b2.reshape(1, Cout).astype(jnp.float32)

    up_pad = jnp.pad(up_nhwc, ((0, 0), (1, 1), (1, 1), (0, 0))).astype(jnp.bfloat16)
    br_pad = jnp.pad(crop_nhwc, ((0, 0), (1, 1), (1, 1), (0, 0))).astype(jnp.bfloat16)

    block_bytes = (
        (H + 2) * (W + 2) * (Cup + Cb) * 2                    # input tiles (bf16)
        + 9 * (Cup + Cb) * Cmid * 2 + 9 * Cmid * Cout * 2      # weights
        + (Cmid + Cout) * 4                                    # biases
        + H * W * Cout * 4                                     # output tile
        + (H + 2) * (W + 2) * Cmid * 2                         # scratch
        + H * W * 9 * (Cup + Cb + Cmid) * 4                    # im2col/accum upper bound
    )
    cost = pl.CostEstimate(
        flops=2 * N * H * W * 9 * ((Cup + Cb) * Cmid + Cmid * Cout),
        transcendentals=0,
        bytes_accessed=(up_pad.size + br_pad.size + w1u.size + w1b.size + w2.size) * 2
        + N * H * W * Cout * 4,
    )
    kernel = functools.partial(_fused_vgg_kernel, slope=slope, H=H, W=W)
    out_flat = pl.pallas_call(
        kernel,
        out_shape=jax.ShapeDtypeStruct((N, H * W, Cout), jnp.float32),
        grid=(N,),
        in_specs=[
            pl.BlockSpec((1, H + 2, W + 2, Cup), lambda n: (n, 0, 0, 0)),
            pl.BlockSpec((1, H + 2, W + 2, Cb), lambda n: (n, 0, 0, 0)),
            pl.BlockSpec((9 * Cup, Cmid), lambda n: (0, 0)),
            pl.BlockSpec((9 * Cb, Cmid), lambda n: (0, 0)),
            pl.BlockSpec((1, Cmid), lambda n: (0, 0)),
            pl.BlockSpec((9 * Cmid, Cout), lambda n: (0, 0)),
            pl.BlockSpec((1, Cout), lambda n: (0, 0)),
        ],
        out_specs=pl.BlockSpec((1, H * W, Cout), lambda n: (n, 0, 0)),
        scratch_shapes=[pltpu.VMEM((H + 2, W + 2, Cmid), jnp.bfloat16)],
        compiler_params=pltpu.CompilerParams(
            dimension_semantics=("parallel",),
            vmem_limit_bytes=_vmem_limit(block_bytes),
        ),
        cost_estimate=cost,
    )(up_pad, br_pad, w1u, w1b, b1r, w2, b2r)
    return out_flat.reshape(N, H, W, Cout)


# ------------------------------------------------------------------
# UNetUpBlock forward (NCHW in / NCHW out, matching the PyTorch module)
# ------------------------------------------------------------------
def unet_up_block(x_nchw, bridge_nchw, params, slope=0.2):
    x = jnp.transpose(x_nchw, (0, 2, 3, 1))
    bridge = jnp.transpose(bridge_nchw, (0, 2, 3, 1))

    up = conv_transpose_2x2_s2(x, params["up_w"], params["up_b"])

    # center_crop(bridge, up.shape[1:3]) — static slice, wrapper-side
    _, Hu, Wu, _ = up.shape
    _, Hb, Wb, _ = bridge.shape
    dy = (Hb - Hu) // 2
    dx = (Wb - Wu) // 2
    crop = bridge[:, dy:dy + Hu, dx:dx + Wu, :]

    out = fused_vgg_block(up, crop, params["c1_w"], params["c1_b"],
                          params["c2_w"], params["c2_b"], slope)
    return jnp.transpose(out, (0, 3, 1, 2))                  # back to NCHW


# ------------------------------------------------------------------
# Pure-jnp reference with matched bf16 quantization points (sanity check)
# ------------------------------------------------------------------
def _q(a):
    return a.astype(jnp.bfloat16).astype(jnp.float32)


def _conv3x3_ref(x, w_pt, b, slope):
    N, H, W, _ = x.shape
    w = _q(jnp.transpose(w_pt, (2, 3, 1, 0)))
    xp = _q(jnp.pad(x, ((0, 0), (1, 1), (1, 1), (0, 0))))
    acc = jnp.zeros((N, H, W, w_pt.shape[0]), jnp.float32)
    for dy in range(3):
        for dx in range(3):
            acc = acc + jnp.einsum("nhwi,io->nhwo", xp[:, dy:dy + H, dx:dx + W, :], w[dy, dx])
    acc = acc + b
    return jnp.where(acc >= 0, acc, slope * acc)


def _reference(x_nchw, bridge_nchw, p, slope=0.2):
    x = jnp.transpose(x_nchw, (0, 2, 3, 1))
    br = jnp.transpose(bridge_nchw, (0, 2, 3, 1))
    N, H, W, _ = x.shape
    Cup = p["up_w"].shape[1]
    up = jnp.einsum("nhwi,ioab->nhawbo", _q(x), _q(p["up_w"]))
    up = up.reshape(N, 2 * H, 2 * W, Cup) + p["up_b"]
    _, Hu, Wu, _ = up.shape
    _, Hb, Wb, _ = br.shape
    dy, dx = (Hb - Hu) // 2, (Wb - Wu) // 2
    out = jnp.concatenate([up, br[:, dy:dy + Hu, dx:dx + Wu, :]], axis=-1)
    out = _conv3x3_ref(out, p["c1_w"], p["c1_b"], slope)
    out = _conv3x3_ref(out, p["c2_w"], p["c2_b"], slope)
    return jnp.transpose(out, (0, 3, 1, 2))


if __name__ == "__main__":
    # UNetUpBlock(in_size=8, middle_size=8, out_size=4); bridge channels = in_size - out_size = 4
    in_size, middle_size, out_size = 8, 8, 4
    N, H, W = 2, 8, 8                      # x spatial; upsampled -> 16x16
    Hb, Wb = 18, 18                        # bridge slightly larger to exercise center_crop

    key = jax.random.PRNGKey(0)
    ks = jax.random.split(key, 8)
    params = {
        "up_w": jax.random.normal(ks[0], (in_size, out_size, 2, 2), jnp.float32) * 0.1,
        "up_b": jax.random.normal(ks[1], (out_size,), jnp.float32) * 0.1,
        "c1_w": jax.random.normal(ks[2], (middle_size, in_size, 3, 3), jnp.float32) * 0.1,
        "c1_b": jax.random.normal(ks[3], (middle_size,), jnp.float32) * 0.1,
        "c2_w": jax.random.normal(ks[4], (out_size, middle_size, 3, 3), jnp.float32) * 0.1,
        "c2_b": jax.random.normal(ks[5], (out_size,), jnp.float32) * 0.1,
    }
    x = jax.random.normal(ks[6], (N, in_size, H, W), jnp.float32)
    bridge = jax.random.normal(ks[7], (N, in_size - out_size, Hb, Wb), jnp.float32)

    out = jax.block_until_ready(jax.jit(unet_up_block)(x, bridge, params))
    ref = jax.block_until_ready(_reference(x, bridge, params))

    assert out.shape == (N, out_size, 2 * H, 2 * W), out.shape
    err = float(jnp.max(jnp.abs(out - ref)))
    assert jnp.allclose(out, ref, atol=2e-3, rtol=2e-3), err
    print("KERNEL_OK")
</pallas_src>

<mosaic_0001>
module attributes {stable_mosaic.version = 11 : i64} {
  func.func @_matmul_bias_kernel(%arg0: i32, %arg1: memref<64x8xbf16, #tpu.memory_space<vmem>>, %arg2: memref<8x16xbf16, #tpu.memory_space<vmem>>, %arg3: memref<1x16xf32, #tpu.memory_space<vmem>>, %arg4: memref<64x16xf32, #tpu.memory_space<vmem>>) attributes {dimension_semantics = [#tpu.dimension_semantics<parallel>], iteration_bounds = array<i64: 2>, scalar_prefetch = 0 : i64, scratch_operands = 0 : i64, tpu.core_type = #tpu.core_type<tc>, window_params = [{transform_indices = @transform_0, window_bounds = array<i64: 64, 8>}, {pipeline_mode = #tpu.pipeline_mode<synchronous>, transform_indices = @transform_1, window_bounds = array<i64: 8, 16>}, {pipeline_mode = #tpu.pipeline_mode<synchronous>, transform_indices = @transform_2, window_bounds = array<i64: 1, 16>}, {transform_indices = @transform_3, window_bounds = array<i64: 64, 16>}]} {
    %c0 = arith.constant 0 : index
    %c0_0 = arith.constant 0 : index
    %0 = vector.load %arg1[%c0, %c0_0] : memref<64x8xbf16, #tpu.memory_space<vmem>>, vector<64x8xbf16>
    %c0_1 = arith.constant 0 : index
    %c0_2 = arith.constant 0 : index
    %1 = vector.load %arg2[%c0_1, %c0_2] : memref<8x16xbf16, #tpu.memory_space<vmem>>, vector<8x16xbf16>
    %cst = arith.constant dense<0.000000e+00> : vector<64x16xf32>
    %2 = tpu.matmul %0, %1, %cst {dimension_numbers = #tpu.dot_dimension_numbers<[1], [0], [0], [1], [0, 0, 1, 1], [], []>} : vector<64x8xbf16>, vector<8x16xbf16>, vector<64x16xf32> -> vector<64x16xf32>
    %c0_3 = arith.constant 0 : index
    %c0_4 = arith.constant 0 : index
    %3 = vector.load %arg3[%c0_3, %c0_4] : memref<1x16xf32, #tpu.memory_space<vmem>>, vector<1x16xf32>
    %4 = vector.broadcast %3 : vector<1x16xf32> to vector<64x16xf32>
    %5 = arith.addf %2, %4 : vector<64x16xf32>
    %c0_5 = arith.constant 0 : index
    %c0_6 = arith.constant 0 : index
    %6 = vector.load %arg4[%c0_5, %c0_6] : memref<64x16xf32, #tpu.memory_space<vmem>>, vector<64x16xf32>
    tpu.vector_store %arg4[%c0_5, %c0_6], %5 {strides = array<i32>} : memref<64x16xf32, #tpu.memory_space<vmem>>, vector<64x16xf32>,
    return
  }
  func.func @transform_0(%arg0: i32) -> (i32, i32) {
    %c0_i32 = arith.constant 0 : i32
    %c0_i32_0 = arith.constant 0 : i32
    return %arg0, %c0_i32 : i32, i32
  }
  func.func @transform_1(%arg0: i32) -> (i32, i32) {
    %c0_i32 = arith.constant 0 : i32
    %c0_i32_0 = arith.constant 0 : i32
    %c0_i32_1 = arith.constant 0 : i32
    return %c0_i32, %c0_i32_0 : i32, i32
  }
  func.func @transform_2(%arg0: i32) -> (i32, i32) {
    %c0_i32 = arith.constant 0 : i32
    %c0_i32_0 = arith.constant 0 : i32
    %c0_i32_1 = arith.constant 0 : i32
    return %c0_i32, %c0_i32_0 : i32, i32
  }
  func.func @transform_3(%arg0: i32) -> (i32, i32) {
    %c0_i32 = arith.constant 0 : i32
    %c0_i32_0 = arith.constant 0 : i32
    return %arg0, %c0_i32 : i32, i32
  }
}

module attributes {stable_mosaic.version = 11 : i64} {
  func.func @_fused_vgg_kernel(%arg0: i32, %arg1: memref<1x18x18x4xbf16, #tpu.memory_space<vmem>>, %arg2: memref<1x18x18x4xbf16, #tpu.memory_space<vmem>>, %arg3: memref<36x8xbf16, #tpu.memory_space<vmem>>, %arg4: memref<36x8xbf16, #tpu.memory_space<vmem>>, %arg5: memref<1x8xf32, #tpu.memory_space<vmem>>, %arg6: memref<72x4xbf16, #tpu.memory_space<vmem>>, %arg7: memref<1x4xf32, #tpu.memory_space<vmem>>, %arg8: memref<1x256x4xf32, #tpu.memory_space<vmem>>, %arg9: memref<18x18x8xbf16, #tpu.memory_space<vmem>>) attributes {dimension_semantics = [#tpu.dimension_semantics<parallel>], iteration_bounds = array<i64: 2>, scalar_prefetch = 0 : i64, scratch_operands = 1 : i64, tpu.core_type = #tpu.core_type<tc>, window_params = [{transform_indices = @transform_0, window_bounds = array<i64: 1, 18, 18, 4>}, {transform_indices = @transform_1, window_bounds = array<i64: 1, 18, 18, 4>}, {pipeline_mode = #tpu.pipeline_mode<synchronous>, transform_indices = @transform_2, window_bounds = array<i64: 36, 8>}, {pipeline_mode = #tpu.pipeline_mode<synchronous>, transform_indices = @transform_3, window_bounds = array<i64: 36, 8>}, {pipeline_mode = #tpu.pipeline_mode<synchronous>, transform_indices = @transform_4, window_bounds = array<i64: 1, 8>}, {pipeline_mode = #tpu.pipeline_mode<synchronous>, transform_indices = @transform_5, window_bounds = array<i64: 72, 4>}, {pipeline_mode = #tpu.pipeline_mode<synchronous>, transform_indices = @transform_6, window_bounds = array<i64: 1, 4>}, {transform_indices = @transform_7, window_bounds = array<i64: 1, 256, 4>}]} {
    %c0 = arith.constant 0 : index
    %c0_0 = arith.constant 0 : index
    %c0_1 = arith.constant 0 : index
    %c0_2 = arith.constant 0 : index
    %0 = vector.load %arg1[%c0, %c0_0, %c0_1, %c0_2] : memref<1x18x18x4xbf16, #tpu.memory_space<vmem>>, vector<1x18x18x4xbf16>
    %1 = vector.shape_cast %0 : vector<1x18x18x4xbf16> to vector<18x18x4xbf16>
    %c0_3 = arith.constant 0 : index
    %c0_4 = arith.constant 0 : index
    %2 = vector.load %arg3[%c0_3, %c0_4] : memref<36x8xbf16, #tpu.memory_space<vmem>>, vector<36x8xbf16>
    %3 = vector.extract_strided_slice %1 {offsets = [0, 0, 0], sizes = [16, 16, 4], strides = [1, 1, 1]} : vector<18x18x4xbf16> to vector<16x16x4xbf16>
    %4 = vector.extract_strided_slice %1 {offsets = [0, 1, 0], sizes = [16, 16, 4], strides = [1, 1, 1]} : vector<18x18x4xbf16> to vector<16x16x4xbf16>
    %5 = vector.extract_strided_slice %1 {offsets = [0, 2, 0], sizes = [16, 16, 4], strides = [1, 1, 1]} : vector<18x18x4xbf16> to vector<16x16x4xbf16>
    %6 = vector.extract_strided_slice %1 {offsets = [1, 0, 0], sizes = [16, 16, 4], strides = [1, 1, 1]} : vector<18x18x4xbf16> to vector<16x16x4xbf16>
    %7 = vector.extract_strided_slice %1 {offsets = [1, 1, 0], sizes = [16, 16, 4], strides = [1, 1, 1]} : vector<18x18x4xbf16> to vector<16x16x4xbf16>
    %8 = vector.extract_strided_slice %1 {offsets = [1, 2, 0], sizes = [16, 16, 4], strides = [1, 1, 1]} : vector<18x18x4xbf16> to vector<16x16x4xbf16>
    %9 = vector.extract_strided_slice %1 {offsets = [2, 0, 0], sizes = [16, 16, 4], strides = [1, 1, 1]} : vector<18x18x4xbf16> to vector<16x16x4xbf16>
    %10 = vector.extract_strided_slice %1 {offsets = [2, 1, 0], sizes = [16, 16, 4], strides = [1, 1, 1]} : vector<18x18x4xbf16> to vector<16x16x4xbf16>
    %11 = vector.extract_strided_slice %1 {offsets = [2, 2, 0], sizes = [16, 16, 4], strides = [1, 1, 1]} : vector<18x18x4xbf16> to vector<16x16x4xbf16>
    %12 = vector.shape_cast %3 : vector<16x16x4xbf16> to vector<256x4xbf16>
    %13 = vector.extract_strided_slice %2 {offsets = [0, 0], sizes = [4, 8], strides = [1, 1]} : vector<36x8xbf16> to vector<4x8xbf16>
    %cst = arith.constant dense<0.000000e+00> : vector<256x8xf32>
    %14 = tpu.matmul %12, %13, %cst {dimension_numbers = #tpu.dot_dimension_numbers<[1], [0], [0], [1], [0, 0, 1, 1], [], []>} : vector<256x4xbf16>, vector<4x8xbf16>, vector<256x8xf32> -> vector<256x8xf32>
    %15 = vector.shape_cast %4 : vector<16x16x4xbf16> to vector<256x4xbf16>
    %16 = vector.extract_strided_slice %2 {offsets = [4, 0], sizes = [4, 8], strides = [1, 1]} : vector<36x8xbf16> to vector<4x8xbf16>
    %cst_5 = arith.constant dense<0.000000e+00> : vector<256x8xf32>
    %17 = tpu.matmul %15, %16, %cst_5 {dimension_numbers = #tpu.dot_dimension_numbers<[1], [0], [0], [1], [0, 0, 1, 1], [], []>} : vector<256x4xbf16>, vector<4x8xbf16>, vector<256x8xf32> -> vector<256x8xf32>
    %18 = arith.addf %14, %17 : vector<256x8xf32>
    %19 = vector.shape_cast %5 : vector<16x16x4xbf16> to vector<256x4xbf16>
    %20 = vector.extract_strided_slice %2 {offsets = [8, 0], sizes = [4, 8], strides = [1, 1]} : vector<36x8xbf16> to vector<4x8xbf16>
    %cst_6 = arith.constant dense<0.000000e+00> : vector<256x8xf32>
    %21 = tpu.matmul %19, %20, %cst_6 {dimension_numbers = #tpu.dot_dimension_numbers<[1], [0], [0], [1], [0, 0, 1, 1], [], []>} : vector<256x4xbf16>, vector<4x8xbf16>, vector<256x8xf32> -> vector<256x8xf32>
    %22 = arith.addf %18, %21 : vector<256x8xf32>
    %23 = vector.shape_cast %6 : vector<16x16x4xbf16> to vector<256x4xbf16>
    %24 = vector.extract_strided_slice %2 {offsets = [12, 0], sizes = [4, 8], strides = [1, 1]} : vector<36x8xbf16> to vector<4x8xbf16>
    %cst_7 = arith.constant dense<0.000000e+00> : vector<256x8xf32>
    %25 = tpu.matmul %23, %24, %cst_7 {dimension_numbers = #tpu.dot_dimension_numbers<[1], [0], [0], [1], [0, 0, 1, 1], [], []>} : vector<256x4xbf16>, vector<4x8xbf16>, vector<256x8xf32> -> vector<256x8xf32>
    %26 = arith.addf %22, %25 : vector<256x8xf32>
    %27 = vector.shape_cast %7 : vector<16x16x4xbf16> to vector<256x4xbf16>
    %28 = vector.extract_strided_slice %2 {offsets = [16, 0], sizes = [4, 8], strides = [1, 1]} : vector<36x8xbf16> to vector<4x8xbf16>
    %cst_8 = arith.constant dense<0.000000e+00> : vector<256x8xf32>
    %29 = tpu.matmul %27, %28, %cst_8 {dimension_numbers = #tpu.dot_dimension_numbers<[1], [0], [0], [1], [0, 0, 1, 1], [], []>} : vector<256x4xbf16>, vector<4x8xbf16>, vector<256x8xf32> -> vector<256x8xf32>
    %30 = arith.addf %26, %29 : vector<256x8xf32>
    %31 = vector.shape_cast %8 : vector<16x16x4xbf16> to vector<256x4xbf16>
    %32 = vector.extract_strided_slice %2 {offsets = [20, 0], sizes = [4, 8], strides = [1, 1]} : vector<36x8xbf16> to vector<4x8xbf16>
    %cst_9 = arith.constant dense<0.000000e+00> : vector<256x8xf32>
    %33 = tpu.matmul %31, %32, %cst_9 {dimension_numbers = #tpu.dot_dimension_numbers<[1], [0], [0], [1], [0, 0, 1, 1], [], []>} : vector<256x4xbf16>, vector<4x8xbf16>, vector<256x8xf32> -> vector<256x8xf32>
    %34 = arith.addf %30, %33 : vector<256x8xf32>
    %35 = vector.shape_cast %9 : vector<16x16x4xbf16> to vector<256x4xbf16>
    %36 = vector.extract_strided_slice %2 {offsets = [24, 0], sizes = [4, 8], strides = [1, 1]} : vector<36x8xbf16> to vector<4x8xbf16>
    %cst_10 = arith.constant dense<0.000000e+00> : vector<256x8xf32>
    %37 = tpu.matmul %35, %36, %cst_10 {dimension_numbers = #tpu.dot_dimension_numbers<[1], [0], [0], [1], [0, 0, 1, 1], [], []>} : vector<256x4xbf16>, vector<4x8xbf16>, vector<256x8xf32> -> vector<256x8xf32>
    %38 = arith.addf %34, %37 : vector<256x8xf32>
    %39 = vector.shape_cast %10 : vector<16x16x4xbf16> to vector<256x4xbf16>
    %40 = vector.extract_strided_slice %2 {offsets = [28, 0], sizes = [4, 8], strides = [1, 1]} : vector<36x8xbf16> to vector<4x8xbf16>
    %cst_11 = arith.constant dense<0.000000e+00> : vector<256x8xf32>
    %41 = tpu.matmul %39, %40, %cst_11 {dimension_numbers = #tpu.dot_dimension_numbers<[1], [0], [0], [1], [0, 0, 1, 1], [], []>} : vector<256x4xbf16>, vector<4x8xbf16>, vector<256x8xf32> -> vector<256x8xf32>
    %42 = arith.addf %38, %41 : vector<256x8xf32>
    %43 = vector.shape_cast %11 : vector<16x16x4xbf16> to vector<256x4xbf16>
    %44 = vector.extract_strided_slice %2 {offsets = [32, 0], sizes = [4, 8], strides = [1, 1]} : vector<36x8xbf16> to vector<4x8xbf16>
    %cst_12 = arith.constant dense<0.000000e+00> : vector<256x8xf32>
    %45 = tpu.matmul %43, %44, %cst_12 {dimension_numbers = #tpu.dot_dimension_numbers<[1], [0], [0], [1], [0, 0, 1, 1], [], []>} : vector<256x4xbf16>, vector<4x8xbf16>, vector<256x8xf32> -> vector<256x8xf32>
    %46 = arith.addf %42, %45 : vector<256x8xf32>
    %c0_13 = arith.constant 0 : index
    %c0_14 = arith.constant 0 : index
    %c0_15 = arith.constant 0 : index
    %c0_16 = arith.constant 0 : index
    %47 = vector.load %arg2[%c0_13, %c0_14, %c0_15, %c0_16] : memref<1x18x18x4xbf16, #tpu.memory_space<vmem>>, vector<1x18x18x4xbf16>
    %48 = vector.shape_cast %47 : vector<1x18x18x4xbf16> to vector<18x18x4xbf16>
    %c0_17 = arith.constant 0 : index
    %c0_18 = arith.constant 0 : index
    %49 = vector.load %arg4[%c0_17, %c0_18] : memref<36x8xbf16, #tpu.memory_space<vmem>>, vector<36x8xbf16>
    %50 = vector.extract_strided_slice %48 {offsets = [0, 0, 0], sizes = [16, 16, 4], strides = [1, 1, 1]} : vector<18x18x4xbf16> to vector<16x16x4xbf16>
    %51 = vector.extract_strided_slice %48 {offsets = [0, 1, 0], sizes = [16, 16, 4], strides = [1, 1, 1]} : vector<18x18x4xbf16> to vector<16x16x4xbf16>
    %52 = vector.extract_strided_slice %48 {offsets = [0, 2, 0], sizes = [16, 16, 4], strides = [1, 1, 1]} : vector<18x18x4xbf16> to vector<16x16x4xbf16>
    %53 = vector.extract_strided_slice %48 {offsets = [1, 0, 0], sizes = [16, 16, 4], strides = [1, 1, 1]} : vector<18x18x4xbf16> to vector<16x16x4xbf16>
    %54 = vector.extract_strided_slice %48 {offsets = [1, 1, 0], sizes = [16, 16, 4], strides = [1, 1, 1]} : vector<18x18x4xbf16> to vector<16x16x4xbf16>
    %55 = vector.extract_strided_slice %48 {offsets = [1, 2, 0], sizes = [16, 16, 4], strides = [1, 1, 1]} : vector<18x18x4xbf16> to vector<16x16x4xbf16>
    %56 = vector.extract_strided_slice %48 {offsets = [2, 0, 0], sizes = [16, 16, 4], strides = [1, 1, 1]} : vector<18x18x4xbf16> to vector<16x16x4xbf16>
    %57 = vector.extract_strided_slice %48 {offsets = [2, 1, 0], sizes = [16, 16, 4], strides = [1, 1, 1]} : vector<18x18x4xbf16> to vector<16x16x4xbf16>
    %58 = vector.extract_strided_slice %48 {offsets = [2, 2, 0], sizes = [16, 16, 4], strides = [1, 1, 1]} : vector<18x18x4xbf16> to vector<16x16x4xbf16>
    %59 = vector.shape_cast %50 : vector<16x16x4xbf16> to vector<256x4xbf16>
    %60 = vector.extract_strided_slice %49 {offsets = [0, 0], sizes = [4, 8], strides = [1, 1]} : vector<36x8xbf16> to vector<4x8xbf16>
    %cst_19 = arith.constant dense<0.000000e+00> : vector<256x8xf32>
    %61 = tpu.matmul %59, %60, %cst_19 {dimension_numbers = #tpu.dot_dimension_numbers<[1], [0], [0], [1], [0, 0, 1, 1], [], []>} : vector<256x4xbf16>, vector<4x8xbf16>, vector<256x8xf32> -> vector<256x8xf32>
    %62 = vector.shape_cast %51 : vector<16x16x4xbf16> to vector<256x4xbf16>
    %63 = vector.extract_strided_slice %49 {offsets = [4, 0], sizes = [4, 8], strides = [1, 1]} : vector<36x8xbf16> to vector<4x8xbf16>
    %cst_20 = arith.constant dense<0.000000e+00> : vector<256x8xf32>
    %64 = tpu.matmul %62, %63, %cst_20 {dimension_numbers = #tpu.dot_dimension_numbers<[1], [0], [0], [1], [0, 0, 1, 1], [], []>} : vector<256x4xbf16>, vector<4x8xbf16>, vector<256x8xf32> -> vector<256x8xf32>
    %65 = arith.addf %61, %64 : vector<256x8xf32>
    %66 = vector.shape_cast %52 : vector<16x16x4xbf16> to vector<256x4xbf16>
    %67 = vector.extract_strided_slice %49 {offsets = [8, 0], sizes = [4, 8], strides = [1, 1]} : vector<36x8xbf16> to vector<4x8xbf16>
    %cst_21 = arith.constant dense<0.000000e+00> : vector<256x8xf32>
    %68 = tpu.matmul %66, %67, %cst_21 {dimension_numbers = #tpu.dot_dimension_numbers<[1], [0], [0], [1], [0, 0, 1, 1], [], []>} : vector<256x4xbf16>, vector<4x8xbf16>, vector<256x8xf32> -> vector<256x8xf32>
    %69 = arith.addf %65, %68 : vector<256x8xf32>
    %70 = vector.shape_cast %53 : vector<16x16x4xbf16> to vector<256x4xbf16>
    %71 = vector.extract_strided_slice %49 {offsets = [12, 0], sizes = [4, 8], strides = [1, 1]} : vector<36x8xbf16> to vector<4x8xbf16>
    %cst_22 = arith.constant dense<0.000000e+00> : vector<256x8xf32>
    %72 = tpu.matmul %70, %71, %cst_22 {dimension_numbers = #tpu.dot_dimension_numbers<[1], [0], [0], [1], [0, 0, 1, 1], [], []>} : vector<256x4xbf16>, vector<4x8xbf16>, vector<256x8xf32> -> vector<256x8xf32>
    %73 = arith.addf %69, %72 : vector<256x8xf32>
    %74 = vector.shape_cast %54 : vector<16x16x4xbf16> to vector<256x4xbf16>
    %75 = vector.extract_strided_slice %49 {offsets = [16, 0], sizes = [4, 8], strides = [1, 1]} : vector<36x8xbf16> to vector<4x8xbf16>
    %cst_23 = arith.constant dense<0.000000e+00> : vector<256x8xf32>
    %76 = tpu.matmul %74, %75, %cst_23 {dimension_numbers = #tpu.dot_dimension_numbers<[1], [0], [0], [1], [0, 0, 1, 1], [], []>} : vector<256x4xbf16>, vector<4x8xbf16>, vector<256x8xf32> -> vector<256x8xf32>
    %77 = arith.addf %73, %76 : vector<256x8xf32>
    %78 = vector.shape_cast %55 : vector<16x16x4xbf16> to vector<256x4xbf16>
    %79 = vector.extract_strided_slice %49 {offsets = [20, 0], sizes = [4, 8], strides = [1, 1]} : vector<36x8xbf16> to vector<4x8xbf16>
    %cst_24 = arith.constant dense<0.000000e+00> : vector<256x8xf32>
    %80 = tpu.matmul %78, %79, %cst_24 {dimension_numbers = #tpu.dot_dimension_numbers<[1], [0], [0], [1], [0, 0, 1, 1], [], []>} : vector<256x4xbf16>, vector<4x8xbf16>, vector<256x8xf32> -> vector<256x8xf32>
    %81 = arith.addf %77, %80 : vector<256x8xf32>
    %82 = vector.shape_cast %56 : vector<16x16x4xbf16> to vector<256x4xbf16>
    %83 = vector.extract_strided_slice %49 {offsets = [24, 0], sizes = [4, 8], strides = [1, 1]} : vector<36x8xbf16> to vector<4x8xbf16>
    %cst_25 = arith.constant dense<0.000000e+00> : vector<256x8xf32>
    %84 = tpu.matmul %82, %83, %cst_25 {dimension_numbers = #tpu.dot_dimension_numbers<[1], [0], [0], [1], [0, 0, 1, 1], [], []>} : vector<256x4xbf16>, vector<4x8xbf16>, vector<256x8xf32> -> vector<256x8xf32>
    %85 = arith.addf %81, %84 : vector<256x8xf32>
    %86 = vector.shape_cast %57 : vector<16x16x4xbf16> to vector<256x4xbf16>
    %87 = vector.extract_strided_slice %49 {offsets = [28, 0], sizes = [4, 8], strides = [1, 1]} : vector<36x8xbf16> to vector<4x8xbf16>
    %cst_26 = arith.constant dense<0.000000e+00> : vector<256x8xf32>
    %88 = tpu.matmul %86, %87, %cst_26 {dimension_numbers = #tpu.dot_dimension_numbers<[1], [0], [0], [1], [0, 0, 1, 1], [], []>} : vector<256x4xbf16>, vector<4x8xbf16>, vector<256x8xf32> -> vector<256x8xf32>
    %89 = arith.addf %85, %88 : vector<256x8xf32>
    %90 = vector.shape_cast %58 : vector<16x16x4xbf16> to vector<256x4xbf16>
    %91 = vector.extract_strided_slice %49 {offsets = [32, 0], sizes = [4, 8], strides = [1, 1]} : vector<36x8xbf16> to vector<4x8xbf16>
    %cst_27 = arith.constant dense<0.000000e+00> : vector<256x8xf32>
    %92 = tpu.matmul %90, %91, %cst_27 {dimension_numbers = #tpu.dot_dimension_numbers<[1], [0], [0], [1], [0, 0, 1, 1], [], []>} : vector<256x4xbf16>, vector<4x8xbf16>, vector<256x8xf32> -> vector<256x8xf32>
    %93 = arith.addf %89, %92 : vector<256x8xf32>
    %94 = arith.addf %46, %93 : vector<256x8xf32>
    %c0_28 = arith.constant 0 : index
    %c0_29 = arith.constant 0 : index
    %95 = vector.load %arg5[%c0_28, %c0_29] : memref<1x8xf32, #tpu.memory_space<vmem>>, vector<1x8xf32>
    %96 = vector.broadcast %95 : vector<1x8xf32> to vector<256x8xf32>
    %97 = arith.addf %94, %96 : vector<256x8xf32>
    %cst_30 = arith.constant 0.000000e+00 : f32
    %98 = vector.broadcast %cst_30 : f32 to vector<256x8xf32>
    %99 = arith.cmpf oge, %97, %98 : vector<256x8xf32>
    %cst_31 = arith.constant 2.000000e-01 : f32
    %100 = vector.broadcast %cst_31 : f32 to vector<256x8xf32>
    %101 = arith.mulf %100, %97 : vector<256x8xf32>
    %102 = arith.select %99, %97, %101 : vector<256x8xi1>, vector<256x8xf32>
    %cst_32 = arith.constant 0.000000e+00 : bf16
    %103 = vector.broadcast %cst_32 : bf16 to vector<18x18x8xbf16>
    %c0_33 = arith.constant 0 : index
    %c0_34 = arith.constant 0 : index
    %c0_35 = arith.constant 0 : index
    %104 = vector.load %arg9[%c0_33, %c0_34, %c0_35] : memref<18x18x8xbf16, #tpu.memory_space<vmem>>, vector<18x18x8xbf16>
    tpu.vector_store %arg9[%c0_33, %c0_34, %c0_35], %103 {strides = array<i32>} : memref<18x18x8xbf16, #tpu.memory_space<vmem>>, vector<18x18x8xbf16>,
    %105 = arith.truncf %102 : vector<256x8xf32> to vector<256x8xbf16>
    %106 = vector.shape_cast %105 : vector<256x8xbf16> to vector<16x16x8xbf16>
    %c1 = arith.constant 1 : index
    %c1_36 = arith.constant 1 : index
    %c0_37 = arith.constant 0 : index
    %107 = vector.load %arg9[%c1, %c1_36, %c0_37] : memref<18x18x8xbf16, #tpu.memory_space<vmem>>, vector<16x16x8xbf16>
    tpu.vector_store %arg9[%c1, %c1_36, %c0_37], %106 {strides = array<i32>} : memref<18x18x8xbf16, #tpu.memory_space<vmem>>, vector<16x16x8xbf16>,
    %c0_38 = arith.constant 0 : index
    %c0_39 = arith.constant 0 : index
    %c0_40 = arith.constant 0 : index
    %108 = vector.load %arg9[%c0_38, %c0_39, %c0_40] : memref<18x18x8xbf16, #tpu.memory_space<vmem>>, vector<18x18x8xbf16>
    %c0_41 = arith.constant 0 : index
    %c0_42 = arith.constant 0 : index
    %109 = vector.load %arg6[%c0_41, %c0_42] : memref<72x4xbf16, #tpu.memory_space<vmem>>, vector<72x4xbf16>
    %110 = vector.extract_strided_slice %108 {offsets = [0, 0, 0], sizes = [16, 16, 8], strides = [1, 1, 1]} : vector<18x18x8xbf16> to vector<16x16x8xbf16>
    %111 = vector.extract_strided_slice %108 {offsets = [0, 1, 0], sizes = [16, 16, 8], strides = [1, 1, 1]} : vector<18x18x8xbf16> to vector<16x16x8xbf16>
    %112 = vector.extract_strided_slice %108 {offsets = [0, 2, 0], sizes = [16, 16, 8], strides = [1, 1, 1]} : vector<18x18x8xbf16> to vector<16x16x8xbf16>
    %113 = vector.extract_strided_slice %108 {offsets = [1, 0, 0], sizes = [16, 16, 8], strides = [1, 1, 1]} : vector<18x18x8xbf16> to vector<16x16x8xbf16>
    %114 = vector.extract_strided_slice %108 {offsets = [1, 1, 0], sizes = [16, 16, 8], strides = [1, 1, 1]} : vector<18x18x8xbf16> to vector<16x16x8xbf16>
    %115 = vector.extract_strided_slice %108 {offsets = [1, 2, 0], sizes = [16, 16, 8], strides = [1, 1, 1]} : vector<18x18x8xbf16> to vector<16x16x8xbf16>
    %116 = vector.extract_strided_slice %108 {offsets = [2, 0, 0], sizes = [16, 16, 8], strides = [1, 1, 1]} : vector<18x18x8xbf16> to vector<16x16x8xbf16>
    %117 = vector.extract_strided_slice %108 {offsets = [2, 1, 0], sizes = [16, 16, 8], strides = [1, 1, 1]} : vector<18x18x8xbf16> to vector<16x16x8xbf16>
    %118 = vector.extract_strided_slice %108 {offsets = [2, 2, 0], sizes = [16, 16, 8], strides = [1, 1, 1]} : vector<18x18x8xbf16> to vector<16x16x8xbf16>
    %119 = vector.shape_cast %110 : vector<16x16x8xbf16> to vector<256x8xbf16>
    %120 = vector.extract_strided_slice %109 {offsets = [0, 0], sizes = [8, 4], strides = [1, 1]} : vector<72x4xbf16> to vector<8x4xbf16>
    %cst_43 = arith.constant dense<0.000000e+00> : vector<256x4xf32>
    %121 = tpu.matmul %119, %120, %cst_43 {dimension_numbers = #tpu.dot_dimension_numbers<[1], [0], [0], [1], [0, 0, 1, 1], [], []>} : vector<256x8xbf16>, vector<8x4xbf16>, vector<256x4xf32> -> vector<256x4xf32>
    %122 = vector.shape_cast %111 : vector<16x16x8xbf16> to vector<256x8xbf16>
    %123 = vector.extract_strided_slice %109 {offsets = [8, 0], sizes = [8, 4], strides = [1, 1]} : vector<72x4xbf16> to vector<8x4xbf16>
    %cst_44 = arith.constant dense<0.000000e+00> : vector<256x4xf32>
    %124 = tpu.matmul %122, %123, %cst_44 {dimension_numbers = #tpu.dot_dimension_numbers<[1], [0], [0], [1], [0, 0, 1, 1], [], []>} : vector<256x8xbf16>, vector<8x4xbf16>, vector<256x4xf32> -> vector<256x4xf32>
    %125 = arith.addf %121, %124 : vector<256x4xf32>
    %126 = vector.shape_cast %112 : vector<16x16x8xbf16> to vector<256x8xbf16>
    %127 = vector.extract_strided_slice %109 {offsets = [16, 0], sizes = [8, 4], strides = [1, 1]} : vector<72x4xbf16> to vector<8x4xbf16>
    %cst_45 = arith.constant dense<0.000000e+00> : vector<256x4xf32>
    %128 = tpu.matmul %126, %127, %cst_45 {dimension_numbers = #tpu.dot_dimension_numbers<[1], [0], [0], [1], [0, 0, 1, 1], [], []>} : vector<256x8xbf16>, vector<8x4xbf16>, vector<256x4xf32> -> vector<256x4xf32>
    %129 = arith.addf %125, %128 : vector<256x4xf32>
    %130 = vector.shape_cast %113 : vector<16x16x8xbf16> to vector<256x8xbf16>
    %131 = vector.extract_strided_slice %109 {offsets = [24, 0], sizes = [8, 4], strides = [1, 1]} : vector<72x4xbf16> to vector<8x4xbf16>
    %cst_46 = arith.constant dense<0.000000e+00> : vector<256x4xf32>
    %132 = tpu.matmul %130, %131, %cst_46 {dimension_numbers = #tpu.dot_dimension_numbers<[1], [0], [0], [1], [0, 0, 1, 1], [], []>} : vector<256x8xbf16>, vector<8x4xbf16>, vector<256x4xf32> -> vector<256x4xf32>
    %133 = arith.addf %129, %132 : vector<256x4xf32>
    %134 = vector.shape_cast %114 : vector<16x16x8xbf16> to vector<256x8xbf16>
    %135 = vector.extract_strided_slice %109 {offsets = [32, 0], sizes = [8, 4], strides = [1, 1]} : vector<72x4xbf16> to vector<8x4xbf16>
    %cst_47 = arith.constant dense<0.000000e+00> : vector<256x4xf32>
    %136 = tpu.matmul %134, %135, %cst_47 {dimension_numbers = #tpu.dot_dimension_numbers<[1], [0], [0], [1], [0, 0, 1, 1], [], []>} : vector<256x8xbf16>, vector<8x4xbf16>, vector<256x4xf32> -> vector<256x4xf32>
    %137 = arith.addf %133, %136 : vector<256x4xf32>
    %138 = vector.shape_cast %115 : vector<16x16x8xbf16> to vector<256x8xbf16>
    %139 = vector.extract_strided_slice %109 {offsets = [40, 0], sizes = [8, 4], strides = [1, 1]} : vector<72x4xbf16> to vector<8x4xbf16>
    %cst_48 = arith.constant dense<0.000000e+00> : vector<256x4xf32>
    %140 = tpu.matmul %138, %139, %cst_48 {dimension_numbers = #tpu.dot_dimension_numbers<[1], [0], [0], [1], [0, 0, 1, 1], [], []>} : vector<256x8xbf16>, vector<8x4xbf16>, vector<256x4xf32> -> vector<256x4xf32>
    %141 = arith.addf %137, %140 : vector<256x4xf32>
    %142 = vector.shape_cast %116 : vector<16x16x8xbf16> to vector<256x8xbf16>
    %143 = vector.extract_strided_slice %109 {offsets = [48, 0], sizes = [8, 4], strides = [1, 1]} : vector<72x4xbf16> to vector<8x4xbf16>
    %cst_49 = arith.constant dense<0.000000e+00> : vector<256x4xf32>
    %144 = tpu.matmul %142, %143, %cst_49 {dimension_numbers = #tpu.dot_dimension_numbers<[1], [0], [0], [1], [0, 0, 1, 1], [], []>} : vector<256x8xbf16>, vector<8x4xbf16>, vector<256x4xf32> -> vector<256x4xf32>
    %145 = arith.addf %141, %144 : vector<256x4xf32>
    %146 = vector.shape_cast %117 : vector<16x16x8xbf16> to vector<256x8xbf16>
    %147 = vector.extract_strided_slice %109 {offsets = [56, 0], sizes = [8, 4], strides = [1, 1]} : vector<72x4xbf16> to vector<8x4xbf16>
    %cst_50 = arith.constant dense<0.000000e+00> : vector<256x4xf32>
    %148 = tpu.matmul %146, %147, %cst_50 {dimension_numbers = #tpu.dot_dimension_numbers<[1], [0], [0], [1], [0, 0, 1, 1], [], []>} : vector<256x8xbf16>, vector<8x4xbf16>, vector<256x4xf32> -> vector<256x4xf32>
    %149 = arith.addf %145, %148 : vector<256x4xf32>
    %150 = vector.shape_cast %118 : vector<16x16x8xbf16> to vector<256x8xbf16>
    %151 = vector.extract_strided_slice %109 {offsets = [64, 0], sizes = [8, 4], strides = [1, 1]} : vector<72x4xbf16> to vector<8x4xbf16>
    %cst_51 = arith.constant dense<0.000000e+00> : vector<256x4xf32>
    %152 = tpu.matmul %150, %151, %cst_51 {dimension_numbers = #tpu.dot_dimension_numbers<[1], [0], [0], [1], [0, 0, 1, 1], [], []>} : vector<256x8xbf16>, vector<8x4xbf16>, vector<256x4xf32> -> vector<256x4xf32>
    %153 = arith.addf %149, %152 : vector<256x4xf32>
    %c0_52 = arith.constant 0 : index
    %c0_53 = arith.constant 0 : index
    %154 = vector.load %arg7[%c0_52, %c0_53] : memref<1x4xf32, #tpu.memory_space<vmem>>, vector<1x4xf32>
    %155 = vector.broadcast %154 : vector<1x4xf32> to vector<256x4xf32>
    %156 = arith.addf %153, %155 : vector<256x4xf32>
    %cst_54 = arith.constant 0.000000e+00 : f32
    %157 = vector.broadcast %cst_54 : f32 to vector<256x4xf32>
    %158 = arith.cmpf oge, %156, %157 : vector<256x4xf32>
    %cst_55 = arith.constant 2.000000e-01 : f32
    %159 = vector.broadcast %cst_55 : f32 to vector<256x4xf32>
    %160 = arith.mulf %159, %156 : vector<256x4xf32>
    %161 = arith.select %158, %156, %160 : vector<256x4xi1>, vector<256x4xf32>
    %c0_56 = arith.constant 0 : index
    %c0_57 = arith.constant 0 : index
    %c0_58 = arith.constant 0 : index
    %162 = vector.load %arg8[%c0_56, %c0_57, %c0_58] : memref<1x256x4xf32, #tpu.memory_space<vmem>>, vector<1x256x4xf32>
    %163 = vector.shape_cast %162 : vector<1x256x4xf32> to vector<256x4xf32>
    %164 = vector.shape_cast %161 : vector<256x4xf32> to vector<1x256x4xf32>
    tpu.vector_store %arg8[%c0_56, %c0_57, %c0_58], %164 {strides = array<i32>} : memref<1x256x4xf32, #tpu.memory_space<vmem>>, vector<1x256x4xf32>,
    return
  }
  func.func @transform_0(%arg0: i32) -> (i32, i32, i32, i32) {
    %c0_i32 = arith.constant 0 : i32
    %c0_i32_0 = arith.constant 0 : i32
    %c0_i32_1 = arith.constant 0 : i32
    %c0_i32_2 = arith.constant 0 : i32
    return %arg0, %c0_i32, %c0_i32_0, %c0_i32_1 : i32, i32, i32, i32
  }
  func.func @transform_1(%arg0: i32) -> (i32, i32, i32, i32) {
    %c0_i32 = arith.constant 0 : i32
    %c0_i32_0 = arith.constant 0 : i32
    %c0_i32_1 = arith.constant 0 : i32
    %c0_i32_2 = arith.constant 0 : i32
    return %arg0, %c0_i32, %c0_i32_0, %c0_i32_1 : i32, i32, i32, i32
  }
  func.func @transform_2(%arg0: i32) -> (i32, i32) {
    %c0_i32 = arith.constant 0 : i32
    %c0_i32_0 = arith.constant 0 : i32
    %c0_i32_1 = arith.constant 0 : i32
    return %c0_i32, %c0_i32_0 : i32, i32
  }
  func.func @transform_3(%arg0: i32) -> (i32, i32) {
    %c0_i32 = arith.constant 0 : i32
    %c0_i32_0 = arith.constant 0 : i32
    %c0_i32_1 = arith.constant 0 : i32
    return %c0_i32, %c0_i32_0 : i32, i32
  }
  func.func @transform_4(%arg0: i32) -> (i32, i32) {
    %c0_i32 = arith.constant 0 : i32
    %c0_i32_0 = arith.constant 0 : i32
    %c0_i32_1 = arith.constant 0 : i32
    return %c0_i32, %c0_i32_0 : i32, i32
  }
  func.func @transform_5(%arg0: i32) -> (i32, i32) {
    %c0_i32 = arith.constant 0 : i32
    %c0_i32_0 = arith.constant 0 : i32
    %c0_i32_1 = arith.constant 0 : i32
    return %c0_i32, %c0_i32_0 : i32, i32
  }
  func.func @transform_6(%arg0: i32) -> (i32, i32) {
    %c0_i32 = arith.constant 0 : i32
    %c0_i32_0 = arith.constant 0 : i32
    %c0_i32_1 = arith.constant 0 : i32
    return %c0_i32, %c0_i32_0 : i32, i32
  }
  func.func @transform_7(%arg0: i32) -> (i32, i32, i32) {
    %c0_i32 = arith.constant 0 : i32
    %c0_i32_0 = arith.constant 0 : i32
    %c0_i32_1 = arith.constant 0 : i32
    return %arg0, %c0_i32, %c0_i32_0 : i32, i32, i32
  }
}

</mosaic_0001>

<bundles_post_ra>
// kernel: tile.9
= control target key start
LH: loop header
LB: loop body
LE: loop exit
PB: predicated region body
PF: predicated region fallthrough
CT: control target
= control target key end

     0   :  { %s37_s8 = smov 4   ;;  %s38_s9 = smov 8   ;;  %vm7_vm0 = vcmask 31744   ;;  %vm13_vm1 = vcmask 130144   ;;  %vm19_vm2 = vcmask 97344   ;;  %vm25_vm3 = vcmask 64544   ;;  %s55_s0 = inlined_call_operand.vmem [shape: f32[4,4], index: 0, kind: input, shape index: {}]   ;;  %s56_s1 = inlined_call_operand.vmem [shape: f32[1,16], index: 1, kind: output, shape index: {}]  }
   0x1   :  { %v4_v0 = vld [vmem:[%s55_s0] sm:$0xf]  ;;  %s36_s0 = smov 12  }
   0x2   :  { %5 = vst [vmem:[#allocation1] sm:$0xf] %v4_v0 }
   0x9   :  { %v10_v1 = vld [vmem:[#allocation1 + $0x3] sm:$0x1]   ;;  %v22_v2 = vld [vmem:[#allocation1 + $0x1] sm:$0x1]   ;;  %v16_v3 = vld [vmem:[#allocation1 + $0x2] sm:$0x1]  }
   0xa   :  { %11 = vrot.lane.b32.xlu0 %v10_v1, %s36_s0  ;;  %23 = vrot.lane.b32.xlu1 %v22_v2, %s37_s8  ;;  %v6_v4 = vld [vmem:[#allocation1] sm:$0x1]  }
   0xb   :  { %8 = vst.msk [vmem:[#allocation0] sm:$0x1] %vm7_vm0, %v6_v4  }
  0x12   :  { %17 = vrot.lane.b32.xlu0 %v16_v3, %s38_s9 }
  0x7c   :  { %v12_v5 = vpop.permute.xlu0 %11   ;;  %v24_v6 = vpop.permute.xlu1 %23  }
  0x7d   :  { %14 = vst.msk [vmem:[#allocation0] sm:$0x1] %vm13_vm1, %v12_v5  }
  0x84   :  { %v18_v7 = vpop.permute.xlu0 %17  }
  0x85   :  { %20 = vst.msk [vmem:[#allocation0] sm:$0x1] %vm19_vm2, %v18_v7  }
  0x86   :  { %26 = vst.msk [vmem:[#allocation0] sm:$0x1] %vm25_vm3, %v24_v6  }
  0x8d   :  { %v29_v8 = vld [vmem:[#allocation0] sm:$0x1] }
  0x8e   :  { %32 = vst [vmem:[%s56_s1] sm:$0x1] %v29_v8 }

// kernel: tile.8
= control target key start
LH: loop header
LB: loop body
LE: loop exit
PB: predicated region body
PF: predicated region fallthrough
CT: control target
= control target key end

     0   :  { %2 = vsyncpa [#allocation1], 0  ;;  %s48_s8 = smov [#allocation0]   ;;  %s65_s0 = inlined_call_operand.hbm [shape: f32[4], index: 0, kind: input, shape index: {}]   ;;  %s66_s1 = inlined_call_operand.vmem [shape: f32[4,4], index: 1, kind: output, shape index: {}]  }
   0x1   :  { %s8_s0 = sshll.u32 %s65_s0, 4  ;;  %s10_s9 = sshll.u32 %s48_s8, 4  ;;  %s9_s0 = int_to_ptr.hbm [resolvable:$true] %s8_s0  ;;  %s11_s9 = int_to_ptr.vmem [resolvable:$true] %s10_s9 }
   0x2   :  { %13 = dma.hbm_to_vmem [thread:$0]  %s9_s0, 16, %s11_s9, [#allocation1]  }
   0x3   :  { %46 = dma.done.wait [#allocation1], 16  }
   0x4   :  { %47 = vsyncadd [#allocation1], 4294967280  ;;  %v18_v0 = vld [vmem:[#allocation0] ss:$0 sm:$0xff] }
   0x5   :  { %19 = vst [vmem:[%s66_s1] sm:$0xf] %v18_v0 }
   0x6   :  { %20 = vsyncpa [#allocation1], 1 }

// kernel: unet_up_block.2
= control target key start
LH: loop header
LB: loop body
LE: loop exit
PB: predicated region body
PF: predicated region fallthrough
CT: control target
= control target key end

     0   :  { %s394_s12 = smov 0   ;;  %s425_s0 = inlined_call_operand.vmem [shape: bf16[128,8], index: 0, kind: input, shape index: {}]   ;;  %s426_s1 = inlined_call_operand.vmem [shape: bf16[8,16], index: 1, kind: input, shape index: {}]   ;;  %s427_s2 = inlined_call_operand.vmem [shape: f32[1,16], index: 2, kind: input, shape index: {}]   ;;  %s428_s3 = inlined_call_operand.vmem [shape: f32[128,16], index: 3, kind: output, shape index: {}]  }
   0x1 LB: > { %s319_s13 = sadd.s32 4294967295, %s372_s12   ;;  %p323_p0 = scmp.ge.s32.totalorder %s372_s12, 1  ;;  %s372_s12 = sphi %s394_s12, %s13_s12  }
   0x2   : > { %p138_p1 = scmp.lt.s32.totalorder %s372_s12, 3 }
   0x4   : > { %p139_p2 = pnand %p323_p0, %p138_p1 }
   0x5   : > { %s324_s16 = sshll.u32 (!%p139_p2), %s319_s13, 3 }
   0x6   : > { %142 = sbr.rel (%p139_p2) target bundleno = 161 (0xa1), region = 32  ;;  %p163_p3 = scmp.lt.s32.totalorder (!%p139_p2), %s324_s16, 15 }
   0xb   : > { %v183_v0 = vld [vmem:[%s426_s1] sm:$0xf]  ;;  %vm221_vm0 = vcmask 1043456   ;;  %s430_s16 = smov (!%p163_p3, %s324_s16), 15  ;;  %vm208_vm1 = vcmask 64512   ;;  %vm254_vm2 = vcmask 130048  }
   0xc   : > { %v223_v1 = vsel %vm221_vm0, %v183_v0, 0  ;;  %s325_s17 = sshll.u32 %s430_s16, 2  ;;  %s327_s21 = sshll.u32 %s430_s16, 3  ;;  %v365_v6 = vld [vmem:[%s427_s2] ss:$0 sm:$0xff] }
   0xd   : > { %232 = vmatpush.bf16.msra.mxu0 %v223_v1  ;;  %354 = vmatpush.bf16.msra.mxu1 %v223_v1  ;;  %s166_s20 = scalar_lea.vmem %s425_s0, %s325_s17  ;;  %s172_s26 = scalar_lea.vmem %s428_s3, %s327_s21 }
   0xe   : > { %355 = vmatpush.bf16.msra.mxu2 %v223_v1  ;;  %356 = vmatpush.bf16.msra.mxu3 %v223_v1  ;;  %v350_v2 = vld [vmem:[%s166_s20] sm:$0xff]  ;;  %v351_v3 = vld [vmem:[%s166_s20 + $0x8] sm:$0xff]  ;;  %v352_v4 = vld [vmem:[%s166_s20 + $0x10] sm:$0xff] }
   0xf   : > { %v353_v5 = vld [vmem:[%s166_s20 + $0x18] sm:$0xff] }
  0x10   : > { %344 = vmatmul.msk.bf16.vlgmr.msra.gmra.mxu0 %vm208_vm1, %v350_v2  ;;  %345 = vmatmul.msk.bf16.vlgmr.msra.gmra.mxu1 %vm208_vm1, %v351_v3 }
  0x11   : > { %346 = vmatmul.msk.bf16.vlgmr.msra.gmra.mxu2 %vm208_vm1, %v352_v4  ;;  %347 = vmatmul.msk.bf16.vlgmr.msra.gmra.mxu3 %vm208_vm1, %v353_v5 }
  0x8d   : > { %v234_v7 = vpop.f32.mrf.mxu0  ;;  %v239_v8 = vpop.f32.mrf.mxu1 }
  0x8e   : > { %v235_v9 = vadd.f32 %v365_v6, %v234_v7  ;;  %v240_v10 = vadd.f32 %v365_v6, %v239_v8 }
  0x90   : > { %255 = vst.msk [vmem:[%s172_s26] sm:$0xff] %vm254_vm2, %v235_v9 }
  0x91   : > { %257 = vst.msk [vmem:[%s172_s26 + $0x10] sm:$0xff] %vm254_vm2, %v240_v10 }
  0x94   : > { %v244_v11 = vpop.f32.mrf.mxu2  ;;  %v249_v12 = vpop.f32.mrf.mxu3 }
  0x95   : > { %v245_v13 = vadd.f32 %v365_v6, %v244_v11  ;;  %v250_v14 = vadd.f32 %v365_v6, %v249_v12  ;;  %v236_v15 = vpop.f32.mrf.mxu0  ;;  %v241_v16 = vpop.f32.mrf.mxu1 }
  0x96   : > { %v237_v17 = vadd.f32 %v365_v6, %v236_v15  ;;  %v242_v18 = vadd.f32 %v365_v6, %v241_v16 }
  0x97   : > { %259 = vst.msk [vmem:[%s172_s26 + $0x20] sm:$0xff] %vm254_vm2, %v245_v13 }
  0x98   : > { %261 = vst.msk [vmem:[%s172_s26 + $0x30] sm:$0xff] %vm254_vm2, %v250_v14 }
  0x99   : > { %256 = vst.msk [vmem:[%s172_s26 + $0x8] sm:$0xff] %vm254_vm2, %v237_v17 }
  0x9a   : > { %258 = vst.msk [vmem:[%s172_s26 + $0x18] sm:$0xff] %vm254_vm2, %v242_v18 }
  0x9c   : > { %v246_v19 = vpop.f32.mrf.mxu2  ;;  %v251_v20 = vpop.f32.mrf.mxu3 }
  0x9d   : > { %v247_v21 = vadd.f32 %v365_v6, %v246_v19  ;;  %v252_v22 = vadd.f32 %v365_v6, %v251_v20 }
  0x9f   : > { %260 = vst.msk [vmem:[%s172_s26 + $0x28] sm:$0xff] %vm254_vm2, %v247_v21 }
  0xa0   : > { %262 = vst.msk [vmem:[%s172_s26 + $0x38] sm:$0xff] %vm254_vm2, %v252_v22 }
  0xa1 PF: > { %s13_s12 = sadd.s32 1, %s372_s12  }
  0xa2   : > { %p10_p4 = scmp.ge.s32.totalorder %s13_s12, 4  }
  0xa4   :  { %12 = sbr.rel (!%p10_p4) target bundleno = 1 (0x1), region = 62 }

// kernel: unet_up_block.3
= control target key start
LH: loop header
LB: loop body
LE: loop exit
PB: predicated region body
PF: predicated region fallthrough
CT: control target
= control target key end

     0   :  { %s8320_s24 = smov 0   ;;  %s12206_s0 = inlined_call_operand.vmem [shape: bf16[2,18,18,4], index: 0, kind: input, shape index: {}]   ;;  %s12207_s1 = inlined_call_operand.vmem [shape: bf16[2,18,18,4], index: 1, kind: input, shape index: {}]   ;;  %s12208_s2 = inlined_call_operand.vmem [shape: bf16[36,8], index: 2, kind: input, shape index: {}]   ;;  %s12209_s3 = inlined_call_operand.vmem [shape: bf16[36,8], index: 3, kind: input, shape index: {}]   ;;  %s12210_s4 = inlined_call_operand.vmem [shape: f32[1,8], index: 4, kind: input, shape index: {}]   ;;  %s12211_s5 = inlined_call_operand.vmem [shape: bf16[72,4], index: 5, kind: input, shape index: {}]   ;;  %s12212_s6 = inlined_call_operand.vmem [shape: f32[1,4], index: 6, kind: input, shape index: {}]   ;;  %s12213_s7 = inlined_call_operand.vmem [shape: f32[2,256,4], index: 7, kind: output, shape index: {}]  }
   0x1 LB: > { %s7411_s25 = sadd.s32 4294967295, %s8277_s24   ;;  %p7415_p0 = scmp.ge.s32.totalorder %s8277_s24, 1  ;;  %s8277_s24 = sphi %s8320_s24, %s17_s24  }
   0x2   : > { %p247_p1 = scmp.lt.s32.totalorder %s8277_s24, 3 }
   0x4   : > { %p248_p2 = pnand %p7415_p0, %p247_p1 }
   0x6   : > { %251 = sbr.rel (%p248_p2) target bundleno = 2066 (0x812), region = 48 }
   0xb   : > { %v354_v0 = vld [vmem:[%s12208_s2] sm:$0xf]  ;;  %vm847_vm0 = vcmask 1041408   ;;  %p284_p3 = scmp.lt.s32.totalorder %s7411_s25, 1  ;;  %v8335_v3 = vld [vmem:[%s12208_s2 + $0x4] sm:$0xf] }
   0xc   : > { %v795_v1 = vunpack.c.l.b16 %v354_v0  ;;  %v1069_v2 = vsel %vm847_vm0, %v354_v0, 0  ;;  %v8341_v4 = vsel %vm847_vm0, %v8335_v3, 0  ;;  %v356_v5 = vld [vmem:[%s12208_s2 + $0x8] sm:$0xf]  ;;  %vm1176_vm1 = vcmask 1042432  }
   0xd   : > { %1078 = vmatpush.bf16.msra.mxu1 %v1069_v2  ;;  %s12698_s25 = smov (!%p284_p3, %s7411_s25), 1  ;;  %1397 = vmatpush.bf16.msra.mxu2 %v8341_v4  ;;  %vm1177_vm2 = vcmask 1046532   ;;  %v1813_v7 = vunpack.c.l.b16 %v356_v5  ;;  %vm798_vm3 = vcmask 31744   ;;  %v12321_v9 = vmov 0 }
   0xe   : > { %v796_v6 = vpack.c.b16 %v795_v1, %v795_v1  ;;  %s8182_s9 = smul.u32 216, %s12698_s25  ;;  %vm8355_vm4 = vmor %vm1176_vm1, %vm1177_vm2  ;;  %vm359_vm5 = vsmask.f32 3328  ;;  %vm360_vm6 = vsmask.f32 7440  ;;  %v1678_v10 = vsel %vm847_vm0, %v356_v5, 0 }
   0xf   : > { %v12322_v9 = vsel %vm8355_vm4, 4294967295, %v12321_v9  ;;  %v1814_v15 = vpack.c.b16 %v1813_v7, %v1813_v7  ;;  %vm8383_vm7 = vmor %vm359_vm5, %vm360_vm6  ;;  %vm5671_vm8 = vcmask 1043456   ;;  %vm4598_vm9 = vcmask 60416   ;;  %s8124_s14 = sshll.u32 %s12698_s25, 8 }
  0x10   : > { %v797_v8 = vrot.slane %v796_v6, 2  ;;  %s8353_s12 = scalar_lea.vmem %s12206_s0, %s8182_s9  ;;  %12323 = vst [vmem:[#allocation3_spill] sm:$0xff] %v12322_v9  ;;  %s9075_s21 = scalar_lea.vmem %s12207_s1, %s8182_s9  ;;  %vm4601_vm10 = vcmask 57344   ;;  %vm5011_vm12 = vsmask.f32 7938  ;;  %vm5622_vm6 = vcmask 64512  }
  0x11   : > { %v8125_v11 = vld [vmem:[%s8353_s12] sm:$0xff]  ;;  %v302_v16 = vld [vmem:[%s8353_s12 + $0x8] sm:$0x1]  ;;  %v8367_v25 = vld [vmem:[%s8353_s12 + $0x90] sm:$0xf]  ;;  %v1815_v63 = vrot.slane %v1814_v15, 2  ;;  %s12012_s17 = scalar_lea.vmem %s12213_s7, %s8124_s14 }
  0x12   : > { %v300_v12 = vld [vmem:[%s8353_s12] sm:$0xf]  ;;  %v301_v13 = vld [vmem:[%s8353_s12 + $0x4] sm:$0xf]  ;;  %v849_v14 = vsel %vm847_vm0, %v797_v8, 0  ;;  %7500 = vmatmul.msk.bf16.vlgmr.msra.gmra.mxu1 %vm798_vm3, %v8125_v11  ;;  %v1184_v21 = vrot.slane %v302_v16, 5  ;;  %vm10373_vm13 = vmand %vm4598_vm9, %vm5011_vm12 }
  0x13   : > { %v7516_v17 = vrot.slane %v300_v12, 9  ;;  %v1181_v18 = vrot.slane %v301_v13, 5  ;;  %858 = vmatpush.bf16.msra.mxu0 %v849_v14  ;;  %8179 = vmatpush.bf16.msra.mxu3 %v849_v14  ;;  %v363_v19 = vshrl.u32 %v300_v12, 16  ;;  %v366_v20 = vshll.u32 %v300_v12, 16  ;;  %v8372_v30 = vld [vmem:[%s8353_s12 + $0x94] sm:$0xf] }
  0x14   : > { %v372_v22 = vshll.u32 %v301_v13, 16  ;;  %v376_v23 = vshrl.u32 %v301_v13, 16  ;;  %v382_v24 = vshll.u32 %v302_v16, 16  ;;  %v8375_v35 = vld [vmem:[%s8353_s12 + $0x98] sm:$0x1]  ;;  %v651_v38 = vshrl.u32 %v8367_v25, 16 }
  0x15   : > { %v1182_v26 = vsel %vm8355_vm4, %v7516_v17, %v1181_v18  ;;  %v1183_v27 = vrot.slane %v1181_v18, 4  ;;  %v365_v28 = vrot.slane %v363_v19, 4  ;;  %v368_v29 = vrot.slane %v366_v20, 5  ;;  %v304_v55 = vld [vmem:[%s8353_s12 + $0x10] sm:$0xf] }
  0x16   : > { %v1291_v31 = vunpack.c.l.b16 %v1182_v26  ;;  %v374_v32 = vrot.slane %v372_v22, 5  ;;  %v378_v33 = vrot.slane %v376_v23, 4  ;;  %v384_v34 = vrot.slane %v382_v24, 5  ;;  %v305_v60 = vld [vmem:[%s8353_s12 + $0x14] sm:$0x1]  ;;  %v8126_v13 = vld [vmem:[%s8353_s12 + $0xc] sm:$0xff] }
  0x17   : > { %8180 = vmatpush.bf16.msrb.mxu3 %v1069_v2  ;;  %1687 = vmatpush.bf16.msrb.mxu0 %v1678_v10  ;;  %v1185_v36 = vsel %vm8355_vm4, %v1183_v27, %v1184_v21  ;;  %v369_v37 = vor.u32 %v368_v29, %v365_v28  ;;  %v654_v39 = vshll.u32 %v8367_v25, 16  ;;  %v660_v43 = vshll.u32 %v8372_v30, 16  ;;  %v303_v0 = vld [vmem:[%s8353_s12 + $0xc] sm:$0xf]  ;;  %v8408_v19 = vld [vmem:[%s8353_s12 + $0x9c] sm:$0xf] }
  0x18   : > { %v1292_v40 = vunpack.c.l.b16 %v1185_v36  ;;  %v379_v42 = vor.u32 %v378_v33, %v374_v32  ;;  %v664_v44 = vshrl.u32 %v8372_v30, 16  ;;  %v653_v46 = vrot.slane %v651_v38, 4  ;;  %v8413_v24 = vld [vmem:[%s8353_s12 + $0xa0] sm:$0xf] }
  0x19   : > { %v370_v45 = vrot.slane %v369_v37, 4  ;;  %v656_v47 = vrot.slane %v654_v39, 5  ;;  %v670_v48 = vshll.u32 %v8375_v35, 16  ;;  %v662_v51 = vrot.slane %v660_v43, 5 }
  0x1a   : > { %v1323_v49 = vpack.c.b16 %v1292_v40, %v1291_v31  ;;  %v380_v50 = vrot.slane %v379_v42, 4  ;;  %v666_v52 = vrot.slane %v664_v44, 4  ;;  %v7517_v2 = vrot.slane %v303_v0, 9  ;;  %v8418_v31 = vld [vmem:[%s8353_s12 + $0xa4] sm:$0x1] }
  0x1b   : > { %v375_v53 = vsel %vm8383_vm7, %v370_v45, %v374_v32  ;;  %v657_v54 = vor.u32 %v656_v47, %v653_v46  ;;  %v672_v59 = vrot.slane %v670_v48, 5  ;;  %v1188_v5 = vrot.slane %v304_v55, 5  ;;  %v307_v42 = vld [vmem:[%s8353_s12 + $0x1c] sm:$0xf]  ;;  %v306_v47 = vld [vmem:[%s8353_s12 + $0x18] sm:$0xf] }
  0x1c   : > { %7532 = vmatmul.msk.bf16.vlgmr.msra.gmra.mxu2 %vm798_vm3, %v1323_v49  ;;  %v385_v56 = vsel %vm8383_vm7, %v380_v50, %v384_v34  ;;  %v746_v57 = vunpack.c.l.b16 %v375_v53  ;;  %v667_v58 = vor.u32 %v666_v52, %v662_v51  ;;  %v1820_v8 = vsel %vm847_vm0, %v1815_v63, 0 }
  0x1d   : > { %v747_v61 = vunpack.c.l.b16 %v385_v56  ;;  %v658_v62 = vrot.slane %v657_v54, 4  ;;  %v1191_v10 = vrot.slane %v305_v60, 5  ;;  %1829 = vmatpush.bf16.msrb.mxu1 %v1820_v8  ;;  %v1189_v14 = vsel %vm8355_vm4, %v7517_v2, %v1188_v5 }
  0x1e   : > { %v668_v1 = vrot.slane %v667_v58, 4  ;;  %v1190_v15 = vrot.slane %v1188_v5, 4  ;;  %v387_v17 = vshrl.u32 %v303_v0, 16  ;;  %v390_v18 = vshll.u32 %v303_v0, 16 }
  0x1f   : > { %v778_v6 = vpack.c.b16 %v747_v61, %v746_v57  ;;  %v663_v7 = vsel %vm8383_vm7, %v658_v62, %v662_v51  ;;  %v396_v21 = vshll.u32 %v304_v55, 16  ;;  %v400_v22 = vshrl.u32 %v304_v55, 16  ;;  %v308_v51 = vld [vmem:[%s8353_s12 + $0x20] sm:$0x1] }
  0x20   : > { %v673_v11 = vsel %vm8383_vm7, %v668_v1, %v672_v59  ;;  %v770_v12 = vunpack.c.l.b16 %v663_v7  ;;  %v1192_v20 = vsel %vm8355_vm4, %v1190_v15, %v1191_v10  ;;  %v406_v23 = vshll.u32 %v305_v60, 16 }
  0x21   : > { %7420 = vmatmul.msk.bf16.vlgmr.msra.gmra.mxu0 %vm798_vm3, %v778_v6  ;;  %v771_v16 = vunpack.c.l.b16 %v673_v11  ;;  %v1293_v27 = vunpack.c.l.b16 %v1189_v14  ;;  %v389_v28 = vrot.slane %v387_v17, 4  ;;  %v392_v29 = vrot.slane %v390_v18, 5  ;;  %v8447_v14 = vld [vmem:[%s8353_s12 + $0xa8] sm:$0xf] }
  0x22   : > { %7501 = vmatmul.msk.bf16.gmra.mxu1 %vm798_vm3, %v8126_v13  ;;  %v1294_v32 = vunpack.c.l.b16 %v1192_v20  ;;  %v398_v33 = vrot.slane %v396_v21, 5  ;;  %v402_v34 = vrot.slane %v400_v22, 4  ;;  %v675_v36 = vshrl.u32 %v8408_v19, 16  ;;  %v8452_v20 = vld [vmem:[%s8353_s12 + $0xac] sm:$0xf] }
  0x23   : > { %v8415_v26 = vpack.c.b16 %v771_v16, %v770_v12  ;;  %v393_v37 = vor.u32 %v392_v29, %v389_v28  ;;  %v408_v38 = vrot.slane %v406_v23, 5  ;;  %v678_v39 = vshll.u32 %v8408_v19, 16  ;;  %v8455_v28 = vld [vmem:[%s8353_s12 + $0x18] sm:$0xff] }
  0x24   : > { %v684_v40 = vshll.u32 %v8413_v24, 16  ;;  %v403_v43 = vor.u32 %v402_v34, %v398_v33  ;;  %v677_v44 = vrot.slane %v675_v36, 4  ;;  %v688_v45 = vshrl.u32 %v8413_v24, 16 }
  0x25   : > { %12326 = vst [vmem:[#allocation4_spill] sm:$0xff] %v8415_v26  ;;  %7432 = vmatmul.msk.bf16.vlgmr.msra.gmra.mxu3 %vm798_vm3, %v8415_v26  ;;  %v694_v46 = vshll.u32 %v8418_v31, 16  ;;  %v394_v48 = vrot.slane %v393_v37, 4  ;;  %v680_v49 = vrot.slane %v678_v39, 5  ;;  %v7518_v52 = vrot.slane %v306_v47, 9 }
  0x26   : > { %8181 = vmatpush.bf16.msra.mxu3 %v8341_v4  ;;  %v686_v50 = vrot.slane %v684_v40, 5  ;;  %v8432_v53 = vpack.c.b16 %v1294_v32, %v1293_v27  ;;  %v404_v54 = vrot.slane %v403_v43, 4  ;;  %v690_v55 = vrot.slane %v688_v45, 4 }
  0x27   : > { %v1195_v56 = vrot.slane %v307_v42, 5  ;;  %v399_v57 = vsel %vm8383_vm7, %v394_v48, %v398_v33  ;;  %v681_v58 = vor.u32 %v680_v49, %v677_v44  ;;  %v696_v59 = vrot.slane %v694_v46, 5  ;;  %v8460_v33 = vld [vmem:[%s8353_s12 + $0xb0] sm:$0x1] }
  0x28   : > { %v411_v60 = vshrl.u32 %v306_v47, 16  ;;  %v409_v61 = vsel %vm8383_vm7, %v404_v54, %v408_v38  ;;  %v748_v4 = vunpack.c.l.b16 %v399_v57  ;;  %v691_v62 = vor.u32 %v690_v55, %v686_v50  ;;  %v310_v54 = vld [vmem:[%s8353_s12 + $0x28] sm:$0xf] }
  0x29   : > { %v1198_v63 = vrot.slane %v308_v51, 5  ;;  %v749_v0 = vunpack.c.l.b16 %v409_v61  ;;  %v682_v1 = vrot.slane %v681_v58, 4  ;;  %v1196_v2 = vsel %vm8355_vm4, %v7518_v52, %v1195_v56  ;;  %v309_v52 = vld [vmem:[%s8353_s12 + $0x24] sm:$0xf]  ;;  %v311_v61 = vld [vmem:[%s8353_s12 + $0x2c] sm:$0x1] }
  0x2a   : > { %v1197_v5 = vrot.slane %v1195_v56, 4  ;;  %v692_v6 = vrot.slane %v691_v62, 4  ;;  %v413_v7 = vrot.slane %v411_v60, 4  ;;  %v414_v8 = vshll.u32 %v306_v47, 16 }
  0x2b   : > { %v420_v10 = vshll.u32 %v307_v42, 16  ;;  %v8442_v11 = vpack.c.b16 %v749_v0, %v748_v4  ;;  %v687_v12 = vsel %vm8383_vm7, %v682_v1, %v686_v50  ;;  %v424_v13 = vshrl.u32 %v307_v42, 16 }
  0x2c   : > { %7533 = vmatmul.msk.bf16.gmra.mxu2 %vm798_vm3, %v8432_v53  ;;  %v697_v15 = vsel %vm8383_vm7, %v692_v6, %v696_v59  ;;  %v772_v16 = vunpack.c.l.b16 %v687_v12  ;;  %v1295_v17 = vunpack.c.l.b16 %v1196_v2  ;;  %v416_v18 = vrot.slane %v414_v8, 5  ;;  %v8487_v6 = vld [vmem:[%s8353_s12 + $0xb4] sm:$0xf] }
  0x2d   : > { %v773_v21 = vunpack.c.l.b16 %v697_v15  ;;  %v422_v22 = vrot.slane %v420_v10, 5  ;;  %v426_v23 = vrot.slane %v424_v13, 4  ;;  %v430_v27 = vshll.u32 %v308_v51, 16  ;;  %v8490_v13 = vld [vmem:[%s8353_s12 + $0xb8] sm:$0xf] }
  0x2e   : > { %v1199_v29 = vsel %vm8355_vm4, %v1197_v5, %v1198_v63  ;;  %v417_v32 = vor.u32 %v416_v18, %v413_v7  ;;  %v699_v34 = vshrl.u32 %v8447_v14, 16  ;;  %v702_v36 = vshll.u32 %v8447_v14, 16 }
  0x2f   : > { %v8466_v37 = vpack.c.b16 %v773_v21, %v772_v16  ;;  %v427_v38 = vor.u32 %v426_v23, %v422_v22  ;;  %v432_v39 = vrot.slane %v430_v27, 5  ;;  %v708_v40 = vshll.u32 %v8452_v20, 16 }
  0x30   : > { %v418_v42 = vrot.slane %v417_v32, 4  ;;  %v701_v43 = vrot.slane %v699_v34, 4  ;;  %v704_v44 = vrot.slane %v702_v36, 5  ;;  %v712_v45 = vshrl.u32 %v8452_v20, 16 }
  0x31   : > { %7421 = vmatmul.msk.bf16.gmra.mxu0 %vm798_vm3, %v8442_v11  ;;  %12327 = vst [vmem:[#allocation5_spill] sm:$0xff] %v8466_v37  ;;  %v1296_v46 = vunpack.c.l.b16 %v1199_v29  ;;  %v428_v47 = vrot.slane %v427_v38, 4  ;;  %v710_v48 = vrot.slane %v708_v40, 5  ;;  %v718_v49 = vshll.u32 %v8460_v33, 16 }
  0x32   : > { %7502 = vmatmul.msk.bf16.gmra.mxu1 %vm798_vm3, %v8455_v28  ;;  %v705_v50 = vor.u32 %v704_v44, %v701_v43  ;;  %v714_v51 = vrot.slane %v712_v45, 4  ;;  %v423_v55 = vsel %vm8383_vm7, %v418_v42, %v422_v22  ;;  %v1202_v4 = vrot.slane %v310_v54, 5  ;;  %v8502_v43 = vld [vmem:[%s8353_s12 + $0xbc] sm:$0x1] }
  0x33   : > { %v433_v56 = vsel %vm8383_vm7, %v428_v47, %v432_v39  ;;  %v720_v59 = vrot.slane %v718_v49, 5  ;;  %v8481_v60 = vpack.c.b16 %v1296_v46, %v1295_v17  ;;  %v435_v62 = vshrl.u32 %v309_v52, 16  ;;  %v8510_v49 = vld [vmem:[%s8353_s12 + $0x24] sm:$0xff] }
  0x34   : > { %v706_v57 = vrot.slane %v705_v50, 4  ;;  %v715_v58 = vor.u32 %v714_v51, %v710_v48  ;;  %v438_v63 = vshll.u32 %v309_v52, 16  ;;  %v7519_v2 = vrot.slane %v309_v52, 9 }
  0x35   : > { %7433 = vmatmul.msk.bf16.gmra.mxu3 %vm798_vm3, %v8466_v37  ;;  %v444_v5 = vshll.u32 %v310_v54, 16  ;;  %v750_v7 = vunpack.c.l.b16 %v423_v55  ;;  %v751_v8 = vunpack.c.l.b16 %v433_v56  ;;  %v437_v10 = vrot.slane %v435_v62, 4 }
  0x36   : > { %v711_v0 = vsel %vm8383_vm7, %v706_v57, %v710_v48  ;;  %v716_v1 = vrot.slane %v715_v58, 4  ;;  %v440_v12 = vrot.slane %v438_v63, 5  ;;  %v1205_v16 = vrot.slane %v311_v61, 5 }
  0x37   : > { %v446_v17 = vrot.slane %v444_v5, 5  ;;  %v448_v18 = vshrl.u32 %v310_v54, 16  ;;  %v774_v21 = vunpack.c.l.b16 %v711_v0  ;;  %v1204_v23 = vrot.slane %v1202_v4, 4 }
  0x38   : > { %v721_v15 = vsel %vm8383_vm7, %v716_v1, %v720_v59  ;;  %v723_v27 = vshrl.u32 %v8487_v6, 16  ;;  %v441_v29 = vor.u32 %v440_v12, %v437_v10  ;;  %v726_v34 = vshll.u32 %v8487_v6, 16  ;;  %v312_v59 = vld [vmem:[%s8353_s12 + $0x30] sm:$0xf] }
  0x39   : > { %v775_v22 = vunpack.c.l.b16 %v721_v15  ;;  %v450_v32 = vrot.slane %v448_v18, 4  ;;  %v732_v36 = vshll.u32 %v8490_v13, 16  ;;  %v8499_v38 = vpack.c.b16 %v751_v8, %v750_v7 }
  0x3a   : > { %v454_v39 = vshll.u32 %v311_v61, 16  ;;  %v725_v40 = vrot.slane %v723_v27, 4  ;;  %v728_v44 = vrot.slane %v726_v34, 5  ;;  %v736_v46 = vshrl.u32 %v8490_v13, 16  ;;  %v313_v61 = vld [vmem:[%s8353_s12 + $0x34] sm:$0xf] }
  0x3b   : > { %v451_v42 = vor.u32 %v450_v32, %v446_v17  ;;  %v734_v45 = vrot.slane %v732_v36, 5  ;;  %v1203_v47 = vsel %vm8355_vm4, %v7519_v2, %v1202_v4  ;;  %v8507_v48 = vpack.c.b16 %v775_v22, %v774_v21  ;;  %v314_v27 = vld [vmem:[%s8353_s12 + $0x38] sm:$0x1] }
  0x3c   : > { %7534 = vmatmul.msk.bf16.gmra.mxu2 %vm798_vm3, %v8481_v60  ;;  %v1206_v50 = vsel %vm8355_vm4, %v1204_v23, %v1205_v16  ;;  %v442_v51 = vrot.slane %v441_v29, 4  ;;  %v738_v52 = vrot.slane %v736_v46, 4  ;;  %v456_v55 = vrot.slane %v454_v39, 5 }
  0x3d   : > { %12328 = vst [vmem:[#allocation6_spill] sm:$0xff] %v8507_v48  ;;  %v452_v54 = vrot.slane %v451_v42, 4  ;;  %v729_v56 = vor.u32 %v728_v44, %v725_v40  ;;  %v742_v57 = vshll.u32 %v8502_v43, 16  ;;  %v1297_v4 = vunpack.c.l.b16 %v1203_v47 }
  0x3e   : > { %v739_v58 = vor.u32 %v738_v52, %v734_v45  ;;  %v1298_v62 = vunpack.c.l.b16 %v1206_v50  ;;  %v447_v63 = vsel %vm8383_vm7, %v442_v51, %v446_v17  ;;  %v459_v5 = vshrl.u32 %v312_v59, 16  ;;  %v8539_v51 = vld [vmem:[%s8353_s12 + $0x30] sm:$0xff] }
  0x3f   : > { %v457_v0 = vsel %vm8383_vm7, %v452_v54, %v456_v55  ;;  %v730_v1 = vrot.slane %v729_v56, 4  ;;  %v744_v2 = vrot.slane %v742_v57, 5  ;;  %v462_v8 = vshll.u32 %v312_v59, 16  ;;  %v315_v56 = vld [vmem:[%s8353_s12 + $0x3c] sm:$0xf] }
  0x40   : > { %v740_v7 = vrot.slane %v739_v58, 4  ;;  %v468_v10 = vshll.u32 %v313_v61, 16  ;;  %v472_v12 = vshrl.u32 %v313_v61, 16  ;;  %v8527_v15 = vpack.c.b16 %v1298_v62, %v1297_v4 }
  0x41   : > { %7422 = vmatmul.msk.bf16.gmra.mxu0 %vm798_vm3, %v8499_v38  ;;  %v1209_v16 = vrot.slane %v313_v61, 5  ;;  %v752_v18 = vunpack.c.l.b16 %v447_v63  ;;  %v753_v21 = vunpack.c.l.b16 %v457_v0  ;;  %v735_v17 = vsel %vm8383_vm7, %v730_v1, %v734_v45  ;;  %v316_v61 = vld [vmem:[%s8353_s12 + $0x40] sm:$0xf] }
  0x42   : > { %7503 = vmatmul.msk.bf16.gmra.mxu1 %vm798_vm3, %v8510_v49  ;;  %v461_v22 = vrot.slane %v459_v5, 4  ;;  %v745_v23 = vsel %vm8383_vm7, %v740_v7, %v744_v2  ;;  %v464_v29 = vrot.slane %v462_v8, 5  ;;  %v470_v32 = vrot.slane %v468_v10, 5 }
  0x43   : > { %v474_v34 = vrot.slane %v472_v12, 4  ;;  %v7520_v36 = vrot.slane %v312_v59, 9  ;;  %v1211_v39 = vrot.slane %v1209_v16, 4  ;;  %v8536_v40 = vpack.c.b16 %v753_v21, %v752_v18 }
  0x44   : > { %v776_v42 = vunpack.c.l.b16 %v735_v17  ;;  %v777_v44 = vunpack.c.l.b16 %v745_v23  ;;  %v1212_v45 = vrot.slane %v314_v27, 5  ;;  %v465_v46 = vor.u32 %v464_v29, %v461_v22  ;;  %v317_v17 = vld [vmem:[%s8353_s12 + $0x44] sm:$0x1] }
  0x45   : > { %7434 = vmatmul.msk.bf16.gmra.mxu3 %vm798_vm3, %v8507_v48  ;;  %v475_v47 = vor.u32 %v474_v34, %v470_v32  ;;  %v478_v50 = vshll.u32 %v314_v27, 16  ;;  %v1210_v54 = vsel %vm8355_vm4, %v7520_v36, %v1209_v16  ;;  %v483_v63 = vshrl.u32 %v315_v56, 16 }
  0x46   : > { %v8543_v52 = vpack.c.b16 %v777_v44, %v776_v42  ;;  %v1213_v55 = vsel %vm8355_vm4, %v1211_v39, %v1212_v45  ;;  %v466_v57 = vrot.slane %v465_v46, 4  ;;  %v1299_v4 = vunpack.c.l.b16 %v1210_v54  ;;  %v8567_v44 = vld [vmem:[%s8353_s12 + $0x3c] sm:$0xff]  ;;  %v8137_v46 = vld [vmem:[%s8353_s12 + $0x90] sm:$0xff] }
  0x47   : > { %v476_v58 = vrot.slane %v475_v47, 4  ;;  %v480_v59 = vrot.slane %v478_v50, 5  ;;  %v1300_v62 = vunpack.c.l.b16 %v1213_v55  ;;  %v486_v0 = vshll.u32 %v315_v56, 16 }
  0x48   : > { %12329 = vst [vmem:[#allocation7_spill] sm:$0xff] %v8543_v52  ;;  %v492_v1 = vshll.u32 %v316_v61, 16  ;;  %v496_v2 = vshrl.u32 %v316_v61, 16  ;;  %v471_v5 = vsel %vm8383_vm7, %v466_v57, %v470_v32  ;;  %v1216_v10 = vrot.slane %v316_v61, 5  ;;  %v319_v57 = vld [vmem:[%s8353_s12 + $0x4c] sm:$0xf] }
  0x49   : > { %v481_v7 = vsel %vm8383_vm7, %v476_v58, %v480_v59  ;;  %v8559_v8 = vpack.c.b16 %v1300_v62, %v1299_v4  ;;  %v485_v12 = vrot.slane %v483_v63, 4  ;;  %v488_v16 = vrot.slane %v486_v0, 5 }
  0x4a   : > { %v754_v18 = vunpack.c.l.b16 %v471_v5  ;;  %v755_v21 = vunpack.c.l.b16 %v481_v7  ;;  %v494_v22 = vrot.slane %v492_v1, 5  ;;  %v498_v23 = vrot.slane %v496_v2, 4 }
  0x4b   : > { %v7521_v27 = vrot.slane %v315_v56, 9  ;;  %v1218_v29 = vrot.slane %v1216_v10, 4  ;;  %v1219_v32 = vrot.slane %v317_v17, 5  ;;  %v489_v36 = vor.u32 %v488_v16, %v485_v12  ;;  %v318_v56 = vld [vmem:[%s8353_s12 + $0x48] sm:$0xf] }
  0x4c   : > { %7535 = vmatmul.msk.bf16.gmra.mxu2 %vm798_vm3, %v8527_v15  ;;  %v8564_v34 = vpack.c.b16 %v755_v21, %v754_v18  ;;  %v499_v39 = vor.u32 %v498_v23, %v494_v22  ;;  %v502_v42 = vshll.u32 %v317_v17, 16  ;;  %v507_v62 = vshrl.u32 %v318_v56, 16  ;;  %v320_v12 = vld [vmem:[%s8353_s12 + $0x50] sm:$0x1] }
  0x4d   : > { %v1217_v45 = vsel %vm8355_vm4, %v7521_v27, %v1216_v10  ;;  %v1220_v47 = vsel %vm8355_vm4, %v1218_v29, %v1219_v32  ;;  %v490_v50 = vrot.slane %v489_v36, 4  ;;  %v510_v63 = vshll.u32 %v318_v56, 16 }
  0x4e   : > { %v500_v54 = vrot.slane %v499_v39, 4  ;;  %v504_v55 = vrot.slane %v502_v42, 5  ;;  %v1301_v58 = vunpack.c.l.b16 %v1217_v45  ;;  %v1302_v59 = vunpack.c.l.b16 %v1220_v47  ;;  %v8593_v42 = vld [vmem:[%s8353_s12 + $0x48] sm:$0xff]  ;;  %v8598_v45 = vld [vmem:[%s8353_s12 + $0x9c] sm:$0xff] }
  0x4f   : > { %v495_v61 = vsel %vm8383_vm7, %v490_v50, %v494_v22  ;;  %v516_v0 = vshll.u32 %v319_v57, 16  ;;  %v520_v1 = vshrl.u32 %v319_v57, 16  ;;  %v1223_v10 = vrot.slane %v319_v57, 5  ;;  %12330 = vst [vmem:[#allocation8_spill] sm:$0xff] %v8598_v45  ;;  %v321_v50 = vld [vmem:[%s8353_s12 + $0x54] sm:$0xf] }
  0x50   : > { %v505_v4 = vsel %vm8383_vm7, %v500_v54, %v504_v55  ;;  %v8585_v2 = vpack.c.b16 %v1302_v59, %v1301_v58  ;;  %v756_v5 = vunpack.c.l.b16 %v495_v61  ;;  %v509_v16 = vrot.slane %v507_v62, 4  ;;  %v322_v57 = vld [vmem:[%s8353_s12 + $0x58] sm:$0xf] }
  0x51   : > { %7423 = vmatmul.msk.bf16.gmra.mxu0 %vm798_vm3, %v8536_v40  ;;  %v757_v7 = vunpack.c.l.b16 %v505_v4  ;;  %v512_v18 = vrot.slane %v510_v63, 5  ;;  %v518_v21 = vrot.slane %v516_v0, 5  ;;  %v522_v17 = vrot.slane %v520_v1, 4 }
  0x52   : > { %7504 = vmatmul.msk.bf16.gmra.mxu1 %vm798_vm3, %v8539_v51  ;;  %v7522_v23 = vrot.slane %v318_v56, 9  ;;  %v1225_v27 = vrot.slane %v1223_v10, 4  ;;  %v1226_v29 = vrot.slane %v320_v12, 5  ;;  %v526_v39 = vshll.u32 %v320_v12, 16 }
  0x53   : > { %v8590_v22 = vpack.c.b16 %v757_v7, %v756_v5  ;;  %v513_v32 = vor.u32 %v512_v18, %v509_v16  ;;  %v523_v36 = vor.u32 %v522_v17, %v518_v21  ;;  %v531_v61 = vshrl.u32 %v321_v50, 16 }
  0x54   : > { %v1227_v47 = vsel %vm8355_vm4, %v1225_v27, %v1226_v29  ;;  %v528_v56 = vrot.slane %v526_v39, 5  ;;  %v534_v4 = vshll.u32 %v321_v50, 16  ;;  %v540_v62 = vshll.u32 %v322_v57, 16  ;;  %v323_v27 = vld [vmem:[%s8353_s12 + $0x5c] sm:$0x1] }
  0x55   : > { %7435 = vmatmul.msk.bf16.gmra.mxu3 %vm798_vm3, %v8543_v52  ;;  %v514_v54 = vrot.slane %v513_v32, 4  ;;  %v524_v55 = vrot.slane %v523_v36, 4  ;;  %v1304_v59 = vunpack.c.l.b16 %v1227_v47  ;;  %v544_v63 = vshrl.u32 %v322_v57, 16 }
  0x56   : > { %v1517_v5 = vunpack.c.l.b16 %v8335_v3  ;;  %v1265_v7 = vrot.slane %v8372_v30, 5  ;;  %v1230_v12 = vrot.slane %v322_v57, 5  ;;  %v533_v16 = vrot.slane %v531_v61, 4 }
  0x57   : > { %v519_v0 = vsel %vm8383_vm7, %v514_v54, %v518_v21  ;;  %v529_v1 = vsel %vm8383_vm7, %v524_v55, %v528_v56  ;;  %v536_v18 = vrot.slane %v534_v4, 5  ;;  %v542_v29 = vrot.slane %v540_v62, 5  ;;  %v8639_v62 = vld [vmem:[%s8353_s12 + $0xa8] sm:$0xff] }
  0x58   : > { %v758_v17 = vunpack.c.l.b16 %v519_v0  ;;  %v546_v32 = vrot.slane %v544_v63, 4  ;;  %v1518_v36 = vpack.c.b16 %v1517_v5, %v1517_v5  ;;  %v7528_v21 = vrot.slane %v8367_v25, 9  ;;  %12332 = vst [vmem:[#allocation10_spill] sm:$0xff] %v8639_v62 }
  0x59   : > { %v1268_v39 = vrot.slane %v8375_v35, 5  ;;  %v1267_v3 = vrot.slane %v1265_v7, 4  ;;  %v1232_v30 = vrot.slane %v1230_v12, 4  ;;  %v1233_v47 = vrot.slane %v323_v27, 5  ;;  %v8628_v35 = vld [vmem:[%s8353_s12 + $0x54] sm:$0xff] }
  0x5a   : > { %v537_v54 = vor.u32 %v536_v18, %v533_v16  ;;  %v547_v56 = vor.u32 %v546_v32, %v542_v29  ;;  %v550_v57 = vshll.u32 %v323_v27, 16  ;;  %v1266_v61 = vsel %vm8355_vm4, %v7528_v21, %v1265_v7  ;;  %v325_v16 = vld [vmem:[%s8353_s12 + $0x64] sm:$0xf] }
  0x5b   : > { %v1269_v4 = vsel %vm8355_vm4, %v1267_v3, %v1268_v39  ;;  %v564_v39 = vshll.u32 %v325_v16, 16  ;;  %vm4686_vm15 = vsmask.f32 256 }
  0x5c   : > { %7536 = vmatmul.msk.bf16.gmra.mxu2 %vm798_vm3, %v8559_v8  ;;  %v548_v63 = vrot.slane %v547_v56, 4  ;;  %v552_v0 = vrot.slane %v550_v57, 5  ;;  %v1316_v5 = vunpack.c.l.b16 %v1269_v4  ;;  %v326_v56 = vld [vmem:[%s8353_s12 + $0x68] sm:$0x1]  ;;  %vm10425_vm2 = vmand %vm4601_vm10, %vm4686_vm15 }
  0x5d   : > { %v1240_v4 = vrot.slane %v326_v56, 5 }
  0x5e   : > { %v553_v27 = vsel %vm8383_vm7, %v548_v63, %v552_v0 }
  0x61   : > { %7424 = vmatmul.msk.bf16.gmra.mxu0 %vm798_vm3, %v8564_v34 }
  0x62   : > { %7505 = vmatmul.msk.bf16.gmra.mxu1 %vm798_vm3, %v8567_v44 }
  0x65   : > { %7512 = vmatmul.msk.bf16.vlgmr.msrb.gmra.mxu3 %vm798_vm3, %v8137_v46  ;;  %v1224_v46 = vsel %vm8355_vm4, %v7522_v23, %v1223_v10  ;;  %v759_v23 = vunpack.c.l.b16 %v529_v1  ;;  %v1315_v1 = vunpack.c.l.b16 %v1266_v61 }
  0x66   : > { %v1303_v58 = vunpack.c.l.b16 %v1224_v46  ;;  %v7523_v46 = vrot.slane %v321_v50, 9  ;;  %v1234_v50 = vsel %vm8355_vm4, %v1232_v30, %v1233_v47  ;;  %v761_v47 = vunpack.c.l.b16 %v553_v27 }
  0x67   : > { %v8623_v55 = vpack.c.b16 %v759_v23, %v758_v17  ;;  %v8643_v18 = vpack.c.b16 %v1316_v5, %v1315_v1  ;;  %v1306_v17 = vunpack.c.l.b16 %v1234_v50  ;;  %v574_v1 = vshll.u32 %v326_v56, 16  ;;  %v8662_v5 = vld [vmem:[%s8353_s12 + $0x60] sm:$0xff] }
  0x68   : > { %v8616_v10 = vpack.c.b16 %v1304_v59, %v1303_v58  ;;  %v1519_v58 = vrot.slane %v1518_v36, 2  ;;  %v1231_v25 = vsel %vm8355_vm4, %v7523_v46, %v1230_v12  ;;  %v538_v59 = vrot.slane %v537_v54, 4  ;;  %v324_v12 = vld [vmem:[%s8353_s12 + $0x60] sm:$0xf] }
  0x69   : > { %12333 = vst [vmem:[#allocation11_spill] sm:$0xff] %v8643_v18  ;;  %v1305_v7 = vunpack.c.l.b16 %v1231_v25  ;;  %v555_v36 = vshrl.u32 %v324_v12, 16  ;;  %v558_v21 = vshll.u32 %v324_v12, 16  ;;  %v568_v46 = vshrl.u32 %v325_v16, 16 }
  0x6a   : > { %12331 = vst [vmem:[#allocation9_spill] sm:$0xff] %v8616_v10  ;;  %v543_v23 = vsel %vm8383_vm7, %v538_v59, %v542_v29  ;;  %v1524_v32 = vsel %vm847_vm0, %v1519_v58, 0  ;;  %v1237_v54 = vrot.slane %v325_v16, 5  ;;  %v566_v25 = vrot.slane %v564_v39, 5  ;;  %v8667_v16 = vld [vmem:[%s8353_s12 + $0xb4] sm:$0xff] }
  0x6b   : > { %1533 = vmatpush.bf16.msrb.mxu3 %v1524_v32  ;;  %v8654_v3 = vpack.c.b16 %v1306_v17, %v1305_v7  ;;  %v760_v30 = vunpack.c.l.b16 %v543_v23  ;;  %v557_v57 = vrot.slane %v555_v36, 4  ;;  %v560_v29 = vrot.slane %v558_v21, 5  ;;  %12335 = vst [vmem:[#allocation13_spill] sm:$0xff] %v8667_v16  ;;  %v327_v23 = vld [vmem:[%s8353_s12 + $0x6c] sm:$0xf] }
  0x6c   : > { %7537 = vmatmul.msk.bf16.gmra.mxu2 %vm798_vm3, %v8585_v2  ;;  %v570_v50 = vrot.slane %v568_v46, 4  ;;  %v7524_v59 = vrot.slane %v324_v12, 9  ;;  %v1239_v61 = vrot.slane %v1237_v54, 4  ;;  %v576_v36 = vrot.slane %v574_v1, 5  ;;  %v328_v21 = vld [vmem:[%s8353_s12 + $0x70] sm:$0xf] }
  0x6d   : > { %12334 = vst [vmem:[#allocation12_spill] sm:$0xff] %v8654_v3  ;;  %v8659_v58 = vpack.c.b16 %v761_v47, %v760_v30  ;;  %v561_v63 = vor.u32 %v560_v29, %v557_v57  ;;  %v579_v30 = vshrl.u32 %v327_v23, 16  ;;  %v582_v47 = vshll.u32 %v327_v23, 16 }
  0x6e   : > { %v571_v0 = vor.u32 %v570_v50, %v566_v25  ;;  %v1238_v17 = vsel %vm8355_vm4, %v7524_v59, %v1237_v54  ;;  %v1241_v12 = vsel %vm8355_vm4, %v1239_v61, %v1240_v4  ;;  %v588_v54 = vshll.u32 %v328_v21, 16 }
  0x6f   : > { %v562_v27 = vrot.slane %v561_v63, 4  ;;  %v1307_v39 = vunpack.c.l.b16 %v1238_v17  ;;  %v1308_v46 = vunpack.c.l.b16 %v1241_v12  ;;  %v592_v56 = vshrl.u32 %v328_v21, 16  ;;  %v329_v17 = vld [vmem:[%s8353_s12 + $0x74] sm:$0x1] }
  0x70   : > { %v572_v32 = vrot.slane %v571_v0, 4  ;;  %v1244_v59 = vrot.slane %v328_v21, 5  ;;  %v581_v61 = vrot.slane %v579_v30, 4  ;;  %v584_v4 = vrot.slane %v582_v47, 5 }
  0x71   : > { %7425 = vmatmul.msk.bf16.gmra.mxu0 %vm798_vm3, %v8590_v22  ;;  %v567_v57 = vsel %vm8383_vm7, %v562_v27, %v566_v25  ;;  %v8683_v50 = vpack.c.b16 %v1308_v46, %v1307_v39  ;;  %v590_v12 = vrot.slane %v588_v54, 5  ;;  %v594_v52 = vrot.slane %v592_v56, 4  ;;  %v8694_v54 = vld [vmem:[%s8353_s12 + $0x6c] sm:$0xff] }
  0x72   : > { %7506 = vmatmul.msk.bf16.gmra.mxu1 %vm798_vm3, %v8593_v42  ;;  %v577_v29 = vsel %vm8383_vm7, %v572_v32, %v576_v36  ;;  %v762_v0 = vunpack.c.l.b16 %v567_v57  ;;  %v7525_v48 = vrot.slane %v327_v23, 9  ;;  %v1246_v25 = vrot.slane %v1244_v59, 4 }
  0x73   : > { %12336 = vst [vmem:[#allocation14_spill] sm:$0xff] %v8683_v50  ;;  %v763_v1 = vunpack.c.l.b16 %v577_v29  ;;  %v1247_v27 = vrot.slane %v329_v17, 5  ;;  %v595_v36 = vor.u32 %v594_v52, %v590_v12  ;;  %v598_v21 = vshll.u32 %v329_v17, 16 }
  0x74   : > { %v1245_v47 = vsel %vm8355_vm4, %v7525_v48, %v1244_v59  ;;  %v1272_v23 = vrot.slane %v8413_v24, 5  ;;  %v7529_v24 = vrot.slane %v8408_v19, 9  ;;  %v1275_v17 = vrot.slane %v8418_v31, 5 }
  0x75   : > { %7513 = vmatmul.msk.bf16.gmra.mxu3 %vm798_vm3, %v8598_v45  ;;  %v8688_v32 = vpack.c.b16 %v763_v1, %v762_v0  ;;  %v1248_v56 = vsel %vm8355_vm4, %v1246_v25, %v1247_v27  ;;  %v1309_v0 = vunpack.c.l.b16 %v1245_v47  ;;  %v331_v1 = vld [vmem:[%s8353_s12 + $0x7c] sm:$0xf] }
  0x76   : > { %v1310_v48 = vunpack.c.l.b16 %v1248_v56  ;;  %v1274_v59 = vrot.slane %v1272_v23, 4  ;;  %v616_v19 = vshrl.u32 %v331_v1, 16  ;;  %v1273_v47 = vsel %vm8355_vm4, %v7529_v24, %v1272_v23  ;;  %v8728_v23 = vld [vmem:[%s12208_s2 + $0xc] sm:$0xf] }
  0x77   : > { %12337 = vst [vmem:[#allocation15_spill] sm:$0xff] %v8688_v32  ;;  %v1317_v24 = vunpack.c.l.b16 %v1273_v47 }
  0x7c   : > { %7538 = vmatmul.msk.bf16.gmra.mxu2 %vm798_vm3, %v8616_v10 }
  0x81   : > { %7426 = vmatmul.msk.bf16.gmra.mxu0 %vm798_vm3, %v8623_v55 }
  0x82   : > { %7507 = vmatmul.msk.bf16.gmra.mxu1 %vm798_vm3, %v8628_v35 }
  0x85   : > { %7514 = vmatmul.msk.bf16.gmra.mxu3 %vm798_vm3, %v8639_v62  ;;  %v332_v62 = vld [vmem:[%s8353_s12 + $0x80] sm:$0x1] }
  0x8c   : > { %7539 = vmatmul.msk.bf16.gmra.mxu2 %vm798_vm3, %v8654_v3 }
  0x8f   : > { %v1080_v7 = vpop.f32.mrf.mxu1 }
  0x91   : > { %7427 = vmatmul.msk.bf16.gmra.mxu0 %vm798_vm3, %v8659_v58 }
  0x92   : > { %7508 = vmatmul.msk.bf16.gmra.mxu1 %vm798_vm3, %v8662_v5 }
  0x95   : > { %7515 = vmatmul.msk.bf16.gmra.mxu3 %vm798_vm3, %v8667_v16  ;;  %v585_v16 = vor.u32 %v584_v4, %v581_v61  ;;  %v596_v61 = vrot.slane %v595_v36, 4  ;;  %v330_v4 = vld [vmem:[%s8353_s12 + $0x78] sm:$0xf] }
  0x96   : > { %v603_v25 = vshrl.u32 %v330_v4, 16  ;;  %v606_v36 = vshll.u32 %v330_v4, 16 }
  0x97   : > { %v1082_v63 = vpop.f32.mrf.mxu1  ;;  %v586_v57 = vrot.slane %v585_v16, 4 }
  0x99   : > { %v591_v16 = vsel %vm8383_vm7, %v586_v57, %v590_v12  ;;  %v1276_v12 = vsel %vm8355_vm4, %v1274_v59, %v1275_v17  ;;  %v7526_v59 = vrot.slane %v330_v4, 9 }
  0x9a   : > { %v764_v57 = vunpack.c.l.b16 %v591_v16  ;;  %v1254_v16 = vrot.slane %v332_v62, 5 }
  0x9c   : > { %7540 = vmatmul.msk.bf16.gmra.mxu2 %vm798_vm3, %v8683_v50 }
  0x9e   : > { %v860_v39 = vpop.f32.mrf.mxu0 }
  0x9f   : > { %v1081_v46 = vadd.f32 %v1080_v7, %v860_v39  ;;  %v1399_v30 = vpop.f32.mrf.mxu2  ;;  %v1085_v52 = vpop.f32.mrf.mxu1  ;;  %v600_v7 = vrot.slane %v598_v21, 5  ;;  %v612_v21 = vshll.u32 %v331_v1, 16 }
  0xa1   : > { %v8698_v29 = vadd.f32 %v1399_v30, %v1081_v46  ;;  %7428 = vmatmul.msk.bf16.gmra.mxu0 %vm798_vm3, %v8688_v32  ;;  %v601_v27 = vsel %vm8383_vm7, %v596_v61, %v600_v7  ;;  %v8714_v30 = vpack.c.b16 %v1310_v48, %v1309_v0  ;;  %v1251_v61 = vrot.slane %v331_v1, 5 }
  0xa2   : > { %7509 = vmatmul.msk.bf16.gmra.mxu1 %vm798_vm3, %v8694_v54  ;;  %v765_v37 = vunpack.c.l.b16 %v601_v27  ;;  %v605_v7 = vrot.slane %v603_v25, 4  ;;  %v618_v0 = vrot.slane %v616_v19, 4  ;;  %v1952_v48 = vsel %vm847_vm0, %v8728_v23, 0 }
  0xa3   : > { %12338 = vst [vmem:[#allocation16_spill] sm:$0xff] %v8698_v29  ;;  %1961 = vmatpush.bf16.msrb.mxu2 %v1952_v48  ;;  %v1318_v1 = vunpack.c.l.b16 %v1276_v12  ;;  %v1253_v17 = vrot.slane %v1251_v61, 4  ;;  %v1252_v4 = vsel %vm8355_vm4, %v7526_v59, %v1251_v61  ;;  %v1279_v12 = vrot.slane %v8452_v20, 5 }
  0xa4   : > { %12339 = vst [vmem:[#allocation17_spill] sm:$0xff] %v8714_v30  ;;  %v8734_v25 = vpack.c.b16 %v765_v37, %v764_v57  ;;  %v1311_v61 = vunpack.c.l.b16 %v1252_v4  ;;  %v7530_v59 = vrot.slane %v8447_v14, 9 }
  0xa5   : > { %7544 = vmatmul.msk.bf16.vlgmr.msra.gmra.mxu3 %vm798_vm3, %v8643_v18  ;;  %v8738_v48 = vpack.c.b16 %v1318_v1, %v1317_v24  ;;  %v8741_v18 = vld [vmem:[%s8353_s12 + $0x78] sm:$0xff]  ;;  %v1255_v37 = vsel %vm8355_vm4, %v1253_v17, %v1254_v16  ;;  %v334_v24 = vld [vmem:[%s8353_s12 + $0x88] sm:$0xf]  ;;  %v1281_v16 = vrot.slane %v1279_v12, 4 }
  0xa6   : > { %v862_v39 = vpop.f32.mrf.mxu0  ;;  %12341 = vst [vmem:[#allocation19_spill] sm:$0xff] %v8734_v25  ;;  %v1312_v1 = vunpack.c.l.b16 %v1255_v37  ;;  %v1258_v29 = vrot.slane %v334_v24, 5 }
  0xa7   : > { %v1083_v46 = vadd.f32 %v1082_v63, %v862_v39  ;;  %v1401_v31 = vpop.f32.mrf.mxu2  ;;  %v1087_v45 = vpop.f32.mrf.mxu1  ;;  %v608_v63 = vrot.slane %v606_v36, 5  ;;  %v614_v39 = vrot.slane %v612_v21, 5  ;;  %v622_v21 = vshll.u32 %v332_v62, 16  ;;  %12342 = vst [vmem:[#allocation20_spill] sm:$0xff] %v8738_v48 }
  0xa8   : > { %v8720_v56 = vpop.f32.mrf.mxu3  ;;  %12343 = vst [vmem:[#allocation21_spill] sm:$0xff] %v8741_v18 }
  0xa9   : > { %v8723_v26 = vadd.f32 %v1401_v31, %v1083_v46  ;;  %v609_v27 = vor.u32 %v608_v63, %v605_v7  ;;  %v619_v36 = vor.u32 %v618_v0, %v614_v39  ;;  %v624_v63 = vrot.slane %v622_v21, 5  ;;  %v333_v0 = vld [vmem:[%s8353_s12 + $0x84] sm:$0xf] }
  0xaa   : > { %v627_v21 = vshrl.u32 %v333_v0, 16 }
  0xab   : > { %12340 = vst [vmem:[#allocation18_spill] sm:$0xff] %v8723_v26  ;;  %v610_v57 = vrot.slane %v609_v27, 4  ;;  %v620_v7 = vrot.slane %v619_v36, 4  ;;  %v1282_v27 = vrot.slane %v8460_v33, 5  ;;  %v2103_v26 = vunpack.c.l.b16 %v8728_v23 }
  0xac   : > { %7541 = vmatmul.msk.bf16.gmra.mxu2 %vm798_vm3, %v8714_v30 }
  0xad   : > { %v615_v20 = vsel %vm8383_vm7, %v610_v57, %v614_v39  ;;  %v625_v17 = vsel %vm8383_vm7, %v620_v7, %v624_v63  ;;  %v1280_v57 = vsel %vm8355_vm4, %v7530_v59, %v1279_v12  ;;  %v1283_v63 = vsel %vm8355_vm4, %v1281_v16, %v1282_v27 }
  0xae   : > { %v865_v19 = vpop.f32.mrf.mxu0  ;;  %v767_v39 = vunpack.c.l.b16 %v625_v17  ;;  %v1319_v12 = vunpack.c.l.b16 %v1280_v57  ;;  %v1320_v59 = vunpack.c.l.b16 %v1283_v63  ;;  %v7527_v17 = vrot.slane %v333_v0, 9 }
  0xaf   : > { %v1086_v46 = vadd.f32 %v1085_v52, %v865_v19  ;;  %v1404_v31 = vpop.f32.mrf.mxu2  ;;  %v1090_v52 = vpop.f32.mrf.mxu1  ;;  %v630_v19 = vshll.u32 %v333_v0, 16 }
  0xb0   : > { %v8736_v47 = vpop.f32.mrf.mxu3 }
  0xb1   : > { %v8748_v62 = vadd.f32 %v1404_v31, %v1086_v46  ;;  %7429 = vmatmul.msk.bf16.gmra.mxu0 %vm798_vm3, %v8734_v25  ;;  %v636_v46 = vshll.u32 %v334_v24, 16  ;;  %v640_v31 = vshrl.u32 %v334_v24, 16  ;;  %v632_v25 = vrot.slane %v630_v19, 5 }
  0xb2   : > { %7510 = vmatmul.msk.bf16.gmra.mxu1 %vm798_vm3, %v8741_v18 }
  0xb3   : > { %12344 = vst [vmem:[#allocation22_spill] sm:$0xff] %v8748_v62  ;;  %v766_v62 = vunpack.c.l.b16 %v615_v20  ;;  %v638_v18 = vrot.slane %v636_v46, 5  ;;  %v2104_v20 = vpack.c.b16 %v2103_v26, %v2103_v26 }
  0xb5   : > { %7545 = vmatmul.msk.bf16.gmra.mxu3 %vm798_vm3, %v8738_v48  ;;  %v8766_v48 = vpack.c.b16 %v1312_v1, %v1311_v61  ;;  %v642_v61 = vrot.slane %v640_v31, 4  ;;  %v8778_v1 = vpack.c.b16 %v767_v39, %v766_v62  ;;  %v8782_v31 = vpack.c.b16 %v1320_v59, %v1319_v12 }
  0xb6   : > { %v867_v36 = vpop.f32.mrf.mxu0  ;;  %v2105_v0 = vrot.slane %v2104_v20, 2  ;;  %v7531_v12 = vrot.slane %v8487_v6, 9 }
  0xb7   : > { %v1088_v4 = vadd.f32 %v1087_v45, %v867_v36  ;;  %v1406_v14 = vpop.f32.mrf.mxu2  ;;  %12345 = vst [vmem:[#allocation23_spill] sm:$0xff] %v8766_v48  ;;  %v1092_v33 = vpop.f32.mrf.mxu1  ;;  %v335_v45 = vld [vmem:[%s8353_s12 + $0x8c] sm:$0x1]  ;;  %v629_v36 = vrot.slane %v627_v21, 4  ;;  %v643_v24 = vor.u32 %v642_v61, %v638_v18 }
  0xb8   : > { %v8764_v37 = vpop.f32.mrf.mxu3  ;;  %12347 = vst [vmem:[#allocation25_spill] sm:$0xff] %v8778_v1  ;;  %v1261_v16 = vrot.slane %v335_v45, 5 }
  0xb9   : > { %v8770_v7 = vadd.f32 %v1406_v14, %v1088_v4  ;;  %v1260_v4 = vrot.slane %v1258_v29, 4  ;;  %v633_v23 = vor.u32 %v632_v25, %v629_v36  ;;  %v646_v14 = vshll.u32 %v335_v45, 16  ;;  %12348 = vst [vmem:[#allocation26_spill] sm:$0xff] %v8782_v31 }
  0xba   : > { %v1259_v25 = vsel %vm8355_vm4, %v7527_v17, %v1258_v29  ;;  %v644_v57 = vrot.slane %v643_v24, 4  ;;  %v1286_v45 = vrot.slane %v8490_v13, 5  ;;  %v2110_v29 = vsel %vm847_vm0, %v2105_v0, 0 }
  0xbb   : > { %12346 = vst [vmem:[#allocation24_spill] sm:$0xff] %v8770_v7  ;;  %v8785_v7 = vld [vmem:[%s8353_s12 + $0x84] sm:$0xff]  ;;  %v634_v39 = vrot.slane %v633_v23, 4  ;;  %v648_v63 = vrot.slane %v646_v14, 5  ;;  %v1313_v36 = vunpack.c.l.b16 %v1259_v25  ;;  %2119 = vmatpush.bf16.msra.mxu3 %v2110_v29 }
  0xbc   : > { %7542 = vmatmul.msk.bf16.gmra.mxu2 %vm798_vm3, %v8766_v48  ;;  %v1288_v13 = vrot.slane %v1286_v45, 4 }
  0xbd   : > { %v639_v20 = vsel %vm8383_vm7, %v634_v39, %v638_v18  ;;  %v649_v17 = vsel %vm8383_vm7, %v644_v57, %v648_v63  ;;  %v358_v18 = vld [vmem:[%s12208_s2 + $0x10] sm:$0x3] }
  0xbe   : > { %v870_v27 = vpop.f32.mrf.mxu0  ;;  %v2248_v25 = vsel %vm847_vm0, %v358_v18, 0 }
  0xbf   : > { %v1091_v21 = vadd.f32 %v1090_v52, %v870_v27  ;;  %v1409_v19 = vpop.f32.mrf.mxu2  ;;  %v1095_v26 = vpop.f32.mrf.mxu1  ;;  %v1262_v52 = vsel %vm8355_vm4, %v1260_v4, %v1261_v16  ;;  %v1289_v4 = vrot.slane %v8502_v43, 5  ;;  %v8819_v43 = vld [vmem:[%s12209_s3] sm:$0xf]  ;;  %2257 = vmatpush.bf16.msra.mxu0 %v2248_v25 }
  0xc0   : > { %v8780_v46 = vpop.f32.mrf.mxu3  ;;  %v1314_v61 = vunpack.c.l.b16 %v1262_v52  ;;  %v2863_v52 = vunpack.c.l.b16 %v8819_v43 }
  0xc1   : > { %v8787_v62 = vadd.f32 %v1409_v19, %v1091_v21  ;;  %7430 = vmatmul.msk.bf16.gmra.mxu0 %vm798_vm3, %v8778_v1  ;;  %v768_v21 = vunpack.c.l.b16 %v639_v20  ;;  %v769_v19 = vunpack.c.l.b16 %v649_v17  ;;  %v1290_v0 = vsel %vm8355_vm4, %v1288_v13, %v1289_v4 }
  0xc2   : > { %7511 = vmatmul.msk.bf16.gmra.mxu1 %vm798_vm3, %v8785_v7  ;;  %v8809_v24 = vpack.c.b16 %v1314_v61, %v1313_v36  ;;  %v2864_v39 = vpack.c.b16 %v2863_v52, %v2863_v52  ;;  %v1322_v36 = vunpack.c.l.b16 %v1290_v0 }
  0xc3   : > { %v8829_v57 = vpack.c.b16 %v769_v19, %v768_v21 }
  0xc4   : > { %12349 = vst [vmem:[#allocation27_spill] sm:$0xff] %v8809_v24  ;;  %v2865_v29 = vrot.slane %v2864_v39, 2  ;;  %v8194_v39 = vld [vmem:[%s8353_s12 + $0xc] sm:$0xff] }
  0xc5   : > { %7546 = vmatmul.msk.bf16.gmra.mxu3 %vm798_vm3, %v8782_v31  ;;  %12350 = vst [vmem:[#allocation28_spill] sm:$0xff] %v8829_v57 }
  0xc6   : > { %v872_v59 = vpop.f32.mrf.mxu0  ;;  %v2915_v20 = vsel %vm847_vm0, %v2865_v29, 0 }
  0xc7   : > { %v1093_v16 = vadd.f32 %v1092_v33, %v872_v59  ;;  %v1411_v27 = vpop.f32.mrf.mxu2  ;;  %v1097_v14 = vpop.f32.mrf.mxu1  ;;  %v1287_v33 = vsel %vm8355_vm4, %v7531_v12, %v1286_v45  ;;  %2924 = vmatpush.bf16.msra.mxu1 %v2915_v20 }
  0xc8   : > { %v8807_v23 = vpop.f32.mrf.mxu3  ;;  %v1321_v63 = vunpack.c.l.b16 %v1287_v33 }
  0xc9   : > { %v8811_v6 = vadd.f32 %v1411_v27, %v1093_v16 }
  0xca   : > { %v8838_v13 = vpack.c.b16 %v1322_v36, %v1321_v63 }
  0xcc   : > { %7543 = vmatmul.msk.bf16.gmra.mxu2 %vm798_vm3, %v8809_v24  ;;  %12351 = vst [vmem:[#allocation29_spill] sm:$0xff] %v8838_v13 }
  0xce   : > { %v875_v61 = vpop.f32.mrf.mxu0 }
  0xcf   : > { %v1096_v59 = vadd.f32 %v1095_v26, %v875_v61  ;;  %v1414_v45 = vpop.f32.mrf.mxu2  ;;  %v1100_v4 = vpop.f32.mrf.mxu1 }
  0xd0   : > { %v8831_v12 = vpop.f32.mrf.mxu3 }
  0xd1   : > { %v8834_v17 = vadd.f32 %v1414_v45, %v1096_v59  ;;  %7431 = vmatmul.msk.bf16.gmra.mxu0 %vm798_vm3, %v8829_v57 }
  0xd2   : > { %7585 = vmatmul.msk.bf16.vlgmr.msrb.gmra.mxu1 %vm798_vm3, %v8432_v53 }
  0xd5   : > { %7547 = vmatmul.msk.bf16.gmra.mxu3 %vm798_vm3, %v8838_v13 }
  0xd6   : > { %v877_v26 = vpop.f32.mrf.mxu0 }
  0xd7   : > { %v1098_v16 = vadd.f32 %v1097_v14, %v877_v26  ;;  %v1416_v27 = vpop.f32.mrf.mxu2  ;;  %v1102_v18 = vpop.f32.mrf.mxu1 }
  0xd8   : > { %v8844_v21 = vpop.f32.mrf.mxu3 }
  0xd9   : > { %v8846_v19 = vadd.f32 %v1416_v27, %v1098_v16 }
  0xdc   : > { %7605 = vmatmul.msk.bf16.vlgmr.msrb.gmra.mxu2 %vm798_vm3, %v8455_v28 }
  0xde   : > { %v880_v33 = vpop.f32.mrf.mxu0 }
  0xdf   : > { %v1101_v0 = vadd.f32 %v1100_v4, %v880_v33  ;;  %v1419_v25 = vpop.f32.mrf.mxu2  ;;  %v1105_v14 = vpop.f32.mrf.mxu1 }
  0xe0   : > { %v8850_v52 = vpop.f32.mrf.mxu3 }
  0xe1   : > { %v8852_v53 = vadd.f32 %v1419_v25, %v1101_v0  ;;  %7568 = vmatmul.msk.bf16.vlgmr.msrb.gmra.mxu0 %vm798_vm3, %v8442_v11 }
  0xe2   : > { %7586 = vmatmul.msk.bf16.gmra.mxu1 %vm798_vm3, %v8481_v60 }
  0xe5   : > { %7552 = vmatmul.msk.bf16.vlgmr.msrb.gmra.mxu3 %vm798_vm3, %v8194_v39 }
  0xe6   : > { %v882_v63 = vpop.f32.mrf.mxu0 }
  0xe7   : > { %v1103_v36 = vadd.f32 %v1102_v18, %v882_v63  ;;  %v1421_v28 = vpop.f32.mrf.mxu2  ;;  %v1107_v45 = vpop.f32.mrf.mxu1  ;;  %v8195_v18 = vld [vmem:[%s8353_s12 + $0x18] sm:$0xff] }
  0xe8   : > { %v1140_v61 = vpop.f32.mrf.mxu3 }
  0xe9   : > { %v8861_v29 = vadd.f32 %v1140_v61, %v8720_v56  ;;  %v8863_v59 = vadd.f32 %v1421_v28, %v1103_v36 }
  0xec   : > { %7606 = vmatmul.msk.bf16.gmra.mxu2 %vm798_vm3, %v8510_v49 }
  0xee   : > { %v885_v11 = vpop.f32.mrf.mxu0 }
  0xef   : > { %v1106_v20 = vadd.f32 %v1105_v14, %v885_v11  ;;  %v1424_v4 = vpop.f32.mrf.mxu2  ;;  %v1110_v56 = vpop.f32.mrf.mxu1 }
  0xf0   : > { %v1142_v26 = vpop.f32.mrf.mxu3 }
  0xf1   : > { %v8868_v16 = vadd.f32 %v1142_v26, %v8736_v47  ;;  %v8870_v27 = vadd.f32 %v1424_v4, %v1106_v20  ;;  %7569 = vmatmul.msk.bf16.gmra.mxu0 %vm798_vm3, %v8499_v38 }
  0xf2   : > { %7587 = vmatmul.msk.bf16.gmra.mxu1 %vm798_vm3, %v8527_v15 }
  0xf5   : > { %7553 = vmatmul.msk.bf16.gmra.mxu3 %vm798_vm3, %v8195_v18 }
  0xf6   : > { %v887_v33 = vpop.f32.mrf.mxu0 }
  0xf7   : > { %v1108_v0 = vadd.f32 %v1107_v45, %v887_v33  ;;  %v1426_v25 = vpop.f32.mrf.mxu2  ;;  %v1112_v63 = vpop.f32.mrf.mxu1 }
  0xf8   : > { %v1145_v14 = vpop.f32.mrf.mxu3 }
  0xf9   : > { %v8879_v39 = vadd.f32 %v1145_v14, %v8764_v37  ;;  %v8881_v47 = vadd.f32 %v1426_v25, %v1108_v0 }
  0xfc   : > { %7607 = vmatmul.msk.bf16.gmra.mxu2 %vm798_vm3, %v8539_v51 }
  0xfe   : > { %v890_v36 = vpop.f32.mrf.mxu0 }
  0xff   : > { %v1111_v28 = vadd.f32 %v1110_v56, %v890_v36  ;;  %v1429_v61 = vpop.f32.mrf.mxu2  ;;  %v1115_v37 = vpop.f32.mrf.mxu1 }
 0x100   : > { %v1147_v11 = vpop.f32.mrf.mxu3 }
 0x101   : > { %v8886_v20 = vadd.f32 %v1147_v11, %v8780_v46  ;;  %v8888_v4 = vadd.f32 %v1429_v61, %v1111_v28  ;;  %7570 = vmatmul.msk.bf16.gmra.mxu0 %vm798_vm3, %v8536_v40 }
 0x102   : > { %7588 = vmatmul.msk.bf16.gmra.mxu1 %vm798_vm3, %v8559_v8 }
 0x105   : > { %7554 = vmatmul.msk.bf16.gmra.mxu3 %vm798_vm3, %v8510_v49 }
 0x106   : > { %v892_v45 = vpop.f32.mrf.mxu0 }
 0x107   : > { %v1113_v26 = vadd.f32 %v1112_v63, %v892_v45  ;;  %v1431_v56 = vpop.f32.mrf.mxu2  ;;  %v1117_v0 = vpop.f32.mrf.mxu1 }
 0x108   : > { %v1150_v18 = vpop.f32.mrf.mxu3 }
 0x109   : > { %v8897_v33 = vadd.f32 %v1150_v18, %v8807_v23  ;;  %v8899_v46 = vadd.f32 %v1431_v56, %v1113_v26 }
 0x10c   : > { %7608 = vmatmul.msk.bf16.gmra.mxu2 %vm798_vm3, %v8567_v44 }
 0x10e   : > { %v895_v25 = vpop.f32.mrf.mxu0 }
 0x10f   : > { %v1116_v14 = vadd.f32 %v1115_v37, %v895_v25  ;;  %v1434_v36 = vpop.f32.mrf.mxu2  ;;  %v1120_v23 = vpop.f32.mrf.mxu1 }
 0x110   : > { %v1152_v28 = vpop.f32.mrf.mxu3 }
 0x111   : > { %v8904_v61 = vadd.f32 %v1152_v28, %v8831_v12  ;;  %v8906_v49 = vadd.f32 %v1434_v36, %v1116_v14  ;;  %7571 = vmatmul.msk.bf16.gmra.mxu0 %vm798_vm3, %v8564_v34 }
 0x112   : > { %7589 = vmatmul.msk.bf16.gmra.mxu1 %vm798_vm3, %v8585_v2 }
 0x115   : > { %7555 = vmatmul.msk.bf16.gmra.mxu3 %vm798_vm3, %v8539_v51 }
 0x116   : > { %v897_v63 = vpop.f32.mrf.mxu0 }
 0x117   : > { %v1118_v11 = vadd.f32 %v1117_v0, %v897_v63  ;;  %v1436_v37 = vpop.f32.mrf.mxu2  ;;  %v1122_v56 = vpop.f32.mrf.mxu1 }
 0x118   : > { %v1155_v45 = vpop.f32.mrf.mxu3 }
 0x119   : > { %v8915_v26 = vadd.f32 %v1155_v45, %v8844_v21  ;;  %v8917_v12 = vadd.f32 %v1436_v37, %v1118_v11 }
 0x11c   : > { %7609 = vmatmul.msk.bf16.gmra.mxu2 %vm798_vm3, %v8593_v42 }
 0x11e   : > { %v900_v18 = vpop.f32.mrf.mxu0 }
 0x11f   : > { %v1121_v25 = vadd.f32 %v1120_v23, %v900_v18  ;;  %v1439_v14 = vpop.f32.mrf.mxu2  ;;  %v1125_v21 = vpop.f32.mrf.mxu1 }
 0x120   : > { %v1157_v36 = vpop.f32.mrf.mxu3 }
 0x121   : > { %v8922_v28 = vadd.f32 %v1157_v36, %v8850_v52  ;;  %v8924_v51 = vadd.f32 %v1439_v14, %v1121_v25  ;;  %7572 = vmatmul.msk.bf16.gmra.mxu0 %vm798_vm3, %v8590_v22 }
 0x122   : > { %7590 = vmatmul.msk.bf16.gmra.mxu1 %vm798_vm3, %v8616_v10 }
 0x125   : > { %7556 = vmatmul.msk.bf16.gmra.mxu3 %vm798_vm3, %v8567_v44 }
 0x126   : > { %v902_v0 = vpop.f32.mrf.mxu0 }
 0x127   : > { %v1123_v63 = vadd.f32 %v1122_v56, %v902_v0  ;;  %v1441_v23 = vpop.f32.mrf.mxu2  ;;  %v1127_v45 = vpop.f32.mrf.mxu1 }
 0x128   : > { %v1459_v11 = vpop.f32.mrf.mxu3 }
 0x129   : > { %v8933_v37 = vadd.f32 %v1459_v11, %v8861_v29  ;;  %v8935_v52 = vadd.f32 %v1441_v23, %v1123_v63 }
 0x12c   : > { %7610 = vmatmul.msk.bf16.gmra.mxu2 %vm798_vm3, %v8628_v35 }
 0x12e   : > { %v905_v18 = vpop.f32.mrf.mxu0 }
 0x12f   : > { %v1126_v25 = vadd.f32 %v1125_v21, %v905_v18  ;;  %v1444_v14 = vpop.f32.mrf.mxu2  ;;  %v1130_v29 = vpop.f32.mrf.mxu1 }
 0x130   : > { %v1461_v36 = vpop.f32.mrf.mxu3 }
 0x131   : > { %v8940_v10 = vadd.f32 %v1461_v36, %v8868_v16  ;;  %v8942_v44 = vadd.f32 %v1444_v14, %v1126_v25  ;;  %7573 = vmatmul.msk.bf16.gmra.mxu0 %vm798_vm3, %v8623_v55 }
 0x132   : > { %7591 = vmatmul.msk.bf16.gmra.mxu1 %vm798_vm3, %v8654_v3 }
 0x135   : > { %7557 = vmatmul.msk.bf16.gmra.mxu3 %vm798_vm3, %v8593_v42 }
 0x136   : > { %v907_v56 = vpop.f32.mrf.mxu0 }
 0x137   : > { %v1128_v0 = vadd.f32 %v1127_v45, %v907_v56  ;;  %v1446_v21 = vpop.f32.mrf.mxu2  ;;  %v1132_v11 = vpop.f32.mrf.mxu1 }
 0x138   : > { %v1464_v63 = vpop.f32.mrf.mxu3 }
 0x139   : > { %v8951_v23 = vadd.f32 %v1464_v63, %v8879_v39  ;;  %v8953_v16 = vadd.f32 %v1446_v21, %v1128_v0 }
 0x13b   : > { %12352 = vst [vmem:[#allocation30_spill] sm:$0xff] %v8951_v23 }
 0x13c   : > { %7611 = vmatmul.msk.bf16.gmra.mxu2 %vm798_vm3, %v8662_v5 }
 0x13e   : > { %v910_v18 = vpop.f32.mrf.mxu0 }
 0x13f   : > { %v1131_v25 = vadd.f32 %v1130_v29, %v910_v18  ;;  %v1449_v14 = vpop.f32.mrf.mxu2  ;;  %v1135_v39 = vpop.f32.mrf.mxu1 }
 0x140   : > { %v1466_v36 = vpop.f32.mrf.mxu3 }
 0x141   : > { %v8958_v3 = vadd.f32 %v1466_v36, %v8886_v20  ;;  %v8960_v42 = vadd.f32 %v1449_v14, %v1131_v25  ;;  %7574 = vmatmul.msk.bf16.gmra.mxu0 %vm798_vm3, %v8659_v58 }
 0x142   : > { %7592 = vmatmul.msk.bf16.gmra.mxu1 %vm798_vm3, %v8683_v50 }
 0x143   : > { %12353 = vst [vmem:[#allocation31_spill] sm:$0xff] %v8958_v3  ;;  %v2373_v3 = vld [vmem:[%s9075_s21 + $0x8] sm:$0x1] }
 0x145   : > { %7558 = vmatmul.msk.bf16.gmra.mxu3 %vm798_vm3, %v8628_v35 }
 0x146   : > { %v912_v45 = vpop.f32.mrf.mxu0 }
 0x147   : > { %v1133_v56 = vadd.f32 %v1132_v11, %v912_v45  ;;  %v1451_v29 = vpop.f32.mrf.mxu2  ;;  %v1137_v63 = vpop.f32.mrf.mxu1 }
 0x148   : > { %v1469_v0 = vpop.f32.mrf.mxu3 }
 0x149   : > { %v8969_v21 = vadd.f32 %v1469_v0, %v8897_v33  ;;  %v8971_v20 = vadd.f32 %v1451_v29, %v1133_v56 }
 0x14b   : > { %12354 = vst [vmem:[#allocation32_spill] sm:$0xff] %v8969_v21  ;;  %v12362_v21 = vld [vmem:[#allocation18_spill] sm:$0xff] }
 0x14c   : > { %7612 = vmatmul.msk.bf16.gmra.mxu2 %vm798_vm3, %v8694_v54 }
 0x14e   : > { %v915_v18 = vpop.f32.mrf.mxu0 }
 0x14f   : > { %v1136_v25 = vadd.f32 %v1135_v39, %v915_v18  ;;  %v1454_v14 = vpop.f32.mrf.mxu2  ;;  %v1831_v33 = vpop.f32.mrf.mxu1  ;;  %v12357_v18 = vld [vmem:[#allocation21_spill] sm:$0xff] }
 0x150   : > { %v1471_v36 = vpop.f32.mrf.mxu3 }
 0x151   : > { %v8976_v50 = vadd.f32 %v1471_v36, %v8904_v61  ;;  %v8978_v35 = vadd.f32 %v1454_v14, %v1136_v25  ;;  %7575 = vmatmul.msk.bf16.gmra.mxu0 %vm798_vm3, %v8688_v32 }
 0x152   : > { %7593 = vmatmul.msk.bf16.gmra.mxu1 %vm798_vm3, %v8714_v30 }
 0x153   : > { %12355 = vst [vmem:[#allocation33_spill] sm:$0xff] %v8976_v50 }
 0x155   : > { %7559 = vmatmul.msk.bf16.gmra.mxu3 %vm798_vm3, %v8662_v5  ;;  %v12359_v5 = vld [vmem:[#allocation19_spill] sm:$0xff] }
 0x156   : > { %v917_v11 = vpop.f32.mrf.mxu0 }
 0x157   : > { %v1138_v45 = vadd.f32 %v1137_v63, %v917_v11  ;;  %v1456_v39 = vpop.f32.mrf.mxu2  ;;  %v1833_v0 = vpop.f32.mrf.mxu1 }
 0x158   : > { %v1474_v56 = vpop.f32.mrf.mxu3 }
 0x159   : > { %v8987_v29 = vadd.f32 %v1474_v56, %v8915_v26  ;;  %v8989_v61 = vadd.f32 %v1456_v39, %v1138_v45  ;;  %v12360_v39 = vld [vmem:[#allocation16_spill] sm:$0xff] }
 0x15b   : > { %12356 = vst [vmem:[#allocation34_spill] sm:$0xff] %v8987_v29 }
 0x15c   : > { %7613 = vmatmul.msk.bf16.gmra.mxu2 %vm798_vm3, %v12357_v18 }
 0x15e   : > { %v1689_v25 = vpop.f32.mrf.mxu0 }
 0x15f   : > { %v1963_v14 = vpop.f32.mrf.mxu2  ;;  %v1836_v63 = vpop.f32.mrf.mxu1 }
 0x160   : > { %v1476_v36 = vpop.f32.mrf.mxu3 }
 0x161   : > { %v8994_v30 = vadd.f32 %v1476_v36, %v8922_v28  ;;  %7576 = vmatmul.msk.bf16.gmra.mxu0 %vm798_vm3, %v12359_v5  ;;  %v3135_v28 = vsel %vm847_vm0, %v8819_v43, 0 }
 0x162   : > { %7594 = vmatmul.msk.bf16.gmra.mxu1 %vm798_vm3, %v8766_v48  ;;  %3144 = vmatpush.bf16.msra.mxu2 %v3135_v28 }
 0x163   : > { %12358 = vst [vmem:[#allocation21_spill] sm:$0xff] %v8994_v30 }
 0x165   : > { %7560 = vmatmul.msk.bf16.gmra.mxu3 %vm798_vm3, %v8694_v54 }
 0x166   : > { %v1691_v26 = vpop.f32.mrf.mxu0 }
 0x167   : > { %v1965_v11 = vpop.f32.mrf.mxu2  ;;  %v1838_v29 = vpop.f32.mrf.mxu1 }
 0x168   : > { %v1535_v45 = vpop.f32.mrf.mxu3 }
 0x169   : > { %v1615_v56 = vadd.f32 %v1535_v45, %v12360_v39 }
 0x16b   : > { %v1769_v50 = vadd.f32 %v1689_v25, %v1615_v56  ;;  %v12364_v56 = vld [vmem:[#allocation22_spill] sm:$0xff] }
 0x16c   : > { %7614 = vmatmul.msk.bf16.gmra.mxu2 %vm798_vm3, %v8785_v7 }
 0x16d   : > { %v1911_v36 = vadd.f32 %v1831_v33, %v1769_v50 }
 0x16e   : > { %v1694_v30 = vpop.f32.mrf.mxu0 }
 0x16f   : > { %v1968_v48 = vpop.f32.mrf.mxu2  ;;  %v9007_v5 = vadd.f32 %v1963_v14, %v1911_v36  ;;  %v1841_v25 = vpop.f32.mrf.mxu1 }
 0x170   : > { %v1537_v54 = vpop.f32.mrf.mxu3 }
 0x171   : > { %12361 = vst [vmem:[#allocation16_spill] sm:$0xff] %v9007_v5  ;;  %v1616_v32 = vadd.f32 %v1537_v54, %v12362_v21  ;;  %7577 = vmatmul.msk.bf16.gmra.mxu0 %vm798_vm3, %v8778_v1  ;;  %v8196_v54 = vld [vmem:[%s8353_s12 + $0x90] sm:$0xff] }
 0x172   : > { %7595 = vmatmul.msk.bf16.gmra.mxu1 %vm798_vm3, %v8809_v24 }
 0x173   : > { %v1770_v45 = vadd.f32 %v1691_v26, %v1616_v32 }
 0x175   : > { %7561 = vmatmul.msk.bf16.gmra.mxu3 %vm798_vm3, %v12357_v18  ;;  %v1912_v50 = vadd.f32 %v1833_v0, %v1770_v45  ;;  %v12366_v18 = vld [vmem:[#allocation24_spill] sm:$0xff] }
 0x176   : > { %v1696_v43 = vpop.f32.mrf.mxu0 }
 0x177   : > { %v1970_v33 = vpop.f32.mrf.mxu2  ;;  %v9016_v14 = vadd.f32 %v1965_v11, %v1912_v50  ;;  %v1843_v21 = vpop.f32.mrf.mxu1  ;;  %v12367_v50 = vld [vmem:[#allocation11_spill] sm:$0xff] }
 0x178   : > { %v1540_v39 = vpop.f32.mrf.mxu3 }
 0x179   : > { %12363 = vst [vmem:[#allocation18_spill] sm:$0xff] %v9016_v14  ;;  %v1617_v28 = vadd.f32 %v1540_v39, %v12364_v56 }
 0x17b   : > { %v1771_v36 = vadd.f32 %v1694_v30, %v1617_v28 }
 0x17c   : > { %7615 = vmatmul.msk.bf16.gmra.mxu2 %vm798_vm3, %v8196_v54 }
 0x17d   : > { %v1913_v32 = vadd.f32 %v1836_v63, %v1771_v36 }
 0x17e   : > { %v1699_v26 = vpop.f32.mrf.mxu0 }
 0x17f   : > { %v1973_v5 = vpop.f32.mrf.mxu2  ;;  %v9021_v24 = vadd.f32 %v1968_v48, %v1913_v32  ;;  %v1846_v11 = vpop.f32.mrf.mxu1  ;;  %v12369_v32 = vld [vmem:[#allocation8_spill] sm:$0xff] }
 0x180   : > { %v1542_v1 = vpop.f32.mrf.mxu3 }
 0x181   : > { %12365 = vst [vmem:[#allocation22_spill] sm:$0xff] %v9021_v24  ;;  %v1618_v0 = vadd.f32 %v1542_v1, %v12366_v18  ;;  %7578 = vmatmul.msk.bf16.gmra.mxu0 %vm798_vm3, %v8829_v57 }
 0x182   : > { %7596 = vmatmul.msk.bf16.gmra.mxu1 %vm798_vm3, %v12367_v50 }
 0x183   : > { %v1772_v45 = vadd.f32 %v1696_v43, %v1618_v0 }
 0x185   : > { %7562 = vmatmul.msk.bf16.gmra.mxu3 %vm798_vm3, %v8785_v7  ;;  %v1914_v30 = vadd.f32 %v1838_v29, %v1772_v45  ;;  %v12371_v29 = vld [vmem:[#allocation4_spill] sm:$0xff] }
 0x186   : > { %v1701_v63 = vpop.f32.mrf.mxu0 }
 0x187   : > { %v1975_v39 = vpop.f32.mrf.mxu2  ;;  %v9030_v56 = vadd.f32 %v1970_v33, %v1914_v30  ;;  %v1848_v1 = vpop.f32.mrf.mxu1  ;;  %v12372_v30 = vld [vmem:[#allocation20_spill] sm:$0xff] }
 0x188   : > { %v1545_v48 = vpop.f32.mrf.mxu3 }
 0x189   : > { %12368 = vst [vmem:[#allocation24_spill] sm:$0xff] %v9030_v56  ;;  %v1619_v28 = vadd.f32 %v1545_v48, %v8787_v62 }
 0x18b   : > { %v1773_v36 = vadd.f32 %v1699_v26, %v1619_v28 }
 0x18c   : > { %7616 = vmatmul.msk.bf16.gmra.mxu2 %vm798_vm3, %v12369_v32 }
 0x18d   : > { %v1915_v43 = vadd.f32 %v1841_v25, %v1773_v36  ;;  %v12374_v36 = vld [vmem:[#allocation10_spill] sm:$0xff] }
 0x18e   : > { %v1704_v18 = vpop.f32.mrf.mxu0 }
 0x18f   : > { %v1978_v0 = vpop.f32.mrf.mxu2  ;;  %v9035_v50 = vadd.f32 %v1973_v5, %v1915_v43  ;;  %v1851_v33 = vpop.f32.mrf.mxu1 }
 0x190   : > { %v1547_v24 = vpop.f32.mrf.mxu3 }
 0x191   : > { %12370 = vst [vmem:[#allocation8_spill] sm:$0xff] %v9035_v50  ;;  %v1620_v7 = vadd.f32 %v1547_v24, %v8811_v6  ;;  %7579 = vmatmul.msk.bf16.gmra.mxu0 %vm798_vm3, %v12371_v29  ;;  %v9094_v50 = vld [vmem:[%s8353_s12 + $0xc0] sm:$0xff] }
 0x192   : > { %7597 = vmatmul.msk.bf16.gmra.mxu1 %vm798_vm3, %v12372_v30 }
 0x193   : > { %v1774_v45 = vadd.f32 %v1701_v63, %v1620_v7 }
 0x195   : > { %7563 = vmatmul.msk.bf16.gmra.mxu3 %vm798_vm3, %v8196_v54  ;;  %v1916_v62 = vadd.f32 %v1843_v21, %v1774_v45  ;;  %v12376_v45 = vld [vmem:[#allocation5_spill] sm:$0xff] }
 0x196   : > { %v1706_v26 = vpop.f32.mrf.mxu0 }
 0x197   : > { %v1980_v25 = vpop.f32.mrf.mxu2  ;;  %v9043_v48 = vadd.f32 %v1975_v39, %v1916_v62  ;;  %v1853_v24 = vpop.f32.mrf.mxu1 }
 0x198   : > { %v1550_v5 = vpop.f32.mrf.mxu3 }
 0x199   : > { %12373 = vst [vmem:[#allocation35_spill] sm:$0xff] %v9043_v48  ;;  %v1621_v28 = vadd.f32 %v1550_v5, %v8834_v17 }
 0x19b   : > { %v1775_v6 = vadd.f32 %v1704_v18, %v1621_v28  ;;  %v8197_v18 = vld [vmem:[%s8353_s12 + $0x9c] sm:$0xff] }
 0x19c   : > { %7617 = vmatmul.msk.bf16.gmra.mxu2 %vm798_vm3, %v12374_v36  ;;  %v12378_v36 = vld [vmem:[#allocation13_spill] sm:$0xff] }
 0x19d   : > { %v1917_v63 = vadd.f32 %v1846_v11, %v1775_v6 }
 0x19e   : > { %v1709_v32 = vpop.f32.mrf.mxu0 }
 0x19f   : > { %v1983_v43 = vpop.f32.mrf.mxu2  ;;  %v9048_v7 = vadd.f32 %v1978_v0, %v1917_v63  ;;  %v9053_v39 = vpop.f32.mrf.mxu1 }
 0x1a0   : > { %v1552_v54 = vpop.f32.mrf.mxu3 }
 0x1a1   : > { %12375 = vst [vmem:[#allocation10_spill] sm:$0xff] %v9048_v7  ;;  %v1622_v21 = vadd.f32 %v1552_v54, %v8846_v19  ;;  %7580 = vmatmul.msk.bf16.gmra.mxu0 %vm798_vm3, %v12376_v45 }
 0x1a2   : > { %7598 = vmatmul.msk.bf16.gmra.mxu1 %vm798_vm3, %v8782_v31  ;;  %v2372_v31 = vld [vmem:[%s9075_s21 + $0x4] sm:$0xf] }
 0x1a3   : > { %v1776_v17 = vadd.f32 %v1706_v26, %v1622_v21  ;;  %v349_v21 = vld [vmem:[%s8353_s12 + $0xc4] sm:$0xf]  ;;  %v2440_v56 = vshll.u32 %v2372_v31, 16  ;;  %v2444_v57 = vshrl.u32 %v2372_v31, 16 }
 0x1a4   : > { %v1657_v7 = vshll.u32 %v349_v21, 16  ;;  %v1661_v45 = vshrl.u32 %v349_v21, 16 }
 0x1a5   : > { %7564 = vmatmul.msk.bf16.gmra.mxu3 %vm798_vm3, %v8197_v18  ;;  %v1918_v11 = vadd.f32 %v1848_v1, %v1776_v17  ;;  %v2442_v14 = vrot.slane %v2440_v56, 5  ;;  %v2446_v31 = vrot.slane %v2444_v57, 4  ;;  %v2450_v56 = vshll.u32 %v2373_v3, 16 }
 0x1a6   : > { %v1711_v0 = vpop.f32.mrf.mxu0 }
 0x1a7   : > { %v1985_v62 = vpop.f32.mrf.mxu2  ;;  %v9059_v5 = vadd.f32 %v1980_v25, %v1918_v11  ;;  %v9062_v6 = vpop.f32.mrf.mxu1  ;;  %v348_v25 = vld [vmem:[%s8353_s12 + $0xc0] sm:$0xf]  ;;  %v1804_v11 = vrot.slane %v349_v21, 5  ;;  %v2452_v3 = vrot.slane %v2450_v56, 5 }
 0x1a8   : > { %v1555_v19 = vpop.f32.mrf.mxu3 }
 0x1a9   : > { %12377 = vst [vmem:[#allocation36_spill] sm:$0xff] %v9059_v5  ;;  %v1623_v28 = vadd.f32 %v1555_v19, %v8852_v53 }
 0x1ab   : > { %v1777_v26 = vadd.f32 %v1709_v32, %v1623_v28  ;;  %v12380_v32 = vld [vmem:[#allocation6_spill] sm:$0xff]  ;;  %v7584_v28 = vrot.slane %v348_v25, 9 }
 0x1ac   : > { %7618 = vmatmul.msk.bf16.gmra.mxu2 %vm798_vm3, %v12378_v36  ;;  %v1651_v36 = vshll.u32 %v348_v25, 16 }
 0x1ad   : > { %v1919_v63 = vadd.f32 %v1851_v33, %v1777_v26  ;;  %v1648_v26 = vshrl.u32 %v348_v25, 16 }
 0x1ae   : > { %v1714_v54 = vpop.f32.mrf.mxu0 }
 0x1af   : > { %v1988_v18 = vpop.f32.mrf.mxu2  ;;  %v9067_v1 = vadd.f32 %v1983_v43, %v1919_v63  ;;  %v9080_v33 = vpop.f32.mrf.mxu1  ;;  %v350_v43 = vld [vmem:[%s8353_s12 + $0xc8] sm:$0x1]  ;;  %v2371_v63 = vld [vmem:[%s9075_s21] sm:$0xf]  ;;  %v1650_v29 = vrot.slane %v1648_v26, 4 }
 0x1b0   : > { %v1557_v17 = vpop.f32.mrf.mxu3  ;;  %v1667_v9 = vshll.u32 %v350_v43, 16 }
 0x1b1   : > { %12379 = vst [vmem:[#allocation13_spill] sm:$0xff] %v9067_v1  ;;  %v1624_v53 = vadd.f32 %v1557_v17, %v8863_v59  ;;  %7581 = vmatmul.msk.bf16.gmra.mxu0 %vm798_vm3, %v12380_v32  ;;  %v8198_v1 = vld [vmem:[%s8353_s12 + $0xa8] sm:$0xff]  ;;  %v1806_v59 = vrot.slane %v1804_v11, 4  ;;  %v1807_v17 = vrot.slane %v350_v43, 5 }
 0x1b2   : > { %7599 = vmatmul.msk.bf16.gmra.mxu1 %vm798_vm3, %v8838_v13  ;;  %v2434_v13 = vshll.u32 %v2371_v63, 16 }
 0x1b3   : > { %v1778_v19 = vadd.f32 %v1711_v0, %v1624_v53  ;;  %v1805_v0 = vsel %vm8355_vm4, %v7584_v28, %v1804_v11  ;;  %v2431_v53 = vshrl.u32 %v2371_v63, 16  ;;  %v1808_v21 = vsel %vm8355_vm4, %v1806_v59, %v1807_v17 }
 0x1b4   : > { %v1659_v11 = vrot.slane %v1657_v7, 5  ;;  %v1663_v28 = vrot.slane %v1661_v45, 4  ;;  %v1810_v26 = vunpack.c.l.b16 %v1808_v21  ;;  %v2374_v21 = vld [vmem:[%s9075_s21 + $0xc] sm:$0xf] }
 0x1b5   : > { %7565 = vmatmul.msk.bf16.gmra.mxu3 %vm798_vm3, %v8198_v1  ;;  %v1920_v32 = vadd.f32 %v1853_v24, %v1778_v19  ;;  %v1653_v1 = vrot.slane %v1651_v36, 5 }
 0x1b6   : > { %v1716_v5 = vpop.f32.mrf.mxu0  ;;  %v1664_v23 = vor.u32 %v1663_v28, %v1659_v11 }
 0x1b7   : > { %v1990_v30 = vpop.f32.mrf.mxu2  ;;  %v9091_v48 = vadd.f32 %v1985_v62, %v1920_v32  ;;  %v9097_v19 = vpop.f32.mrf.mxu1  ;;  %v1809_v62 = vunpack.c.l.b16 %v1805_v0  ;;  %v2433_v32 = vrot.slane %v2431_v53, 4  ;;  %v1654_v36 = vor.u32 %v1653_v1, %v1650_v29  ;;  %v12382_v29 = vld [vmem:[#allocation7_spill] sm:$0xff] }
 0x1b8   : > { %v1560_v25 = vpop.f32.mrf.mxu3  ;;  %v2447_v0 = vor.u32 %v2446_v31, %v2442_v14  ;;  %v1665_v43 = vrot.slane %v1664_v23, 4  ;;  %v2426_v23 = vld [vmem:[%s12209_s3 + $0x4] sm:$0xf] }
 0x1b9   : > { %12381 = vst [vmem:[#allocation37_spill] sm:$0xff] %v9091_v48  ;;  %v1625_v24 = vadd.f32 %v1560_v25, %v8870_v27  ;;  %v2436_v48 = vrot.slane %v2434_v13, 5  ;;  %v9109_v13 = vpack.c.b16 %v1810_v26, %v1809_v62  ;;  %v1655_v17 = vrot.slane %v1654_v36, 4 }
 0x1bb   : > { %v1779_v63 = vadd.f32 %v1714_v54, %v1625_v24  ;;  %v2437_v7 = vor.u32 %v2436_v48, %v2433_v32  ;;  %v1669_v48 = vrot.slane %v1667_v9, 5  ;;  %v1660_v1 = vsel %vm8383_vm7, %v1655_v17, %v1659_v11  ;;  %v2375_v11 = vld [vmem:[%s9075_s21 + $0x10] sm:$0xf] }
 0x1bc   : > { %7619 = vmatmul.msk.bf16.gmra.mxu2 %vm798_vm3, %v9094_v50  ;;  %v2448_v24 = vrot.slane %v2447_v0, 4  ;;  %v1671_v32 = vunpack.c.l.b16 %v1660_v1  ;;  %v2458_v17 = vshll.u32 %v2374_v21, 16 }
 0x1bd   : > { %v1921_v27 = vadd.f32 %v9053_v39, %v1779_v63  ;;  %v2438_v53 = vrot.slane %v2437_v7, 4  ;;  %v1670_v28 = vsel %vm8383_vm7, %v1665_v43, %v1669_v48  ;;  %v3451_v63 = vsel %vm847_vm0, %v2426_v23, 0 }
 0x1be   : > { %v1719_v25 = vpop.f32.mrf.mxu0  ;;  %3460 = vmatpush.bf16.msrb.mxu3 %v3451_v63  ;;  %v3580_v7 = vunpack.c.l.b16 %v2426_v23  ;;  %v2464_v43 = vshll.u32 %v2375_v11, 16  ;;  %v2468_v48 = vshrl.u32 %v2375_v11, 16 }
 0x1bf   : > { %v9105_v59 = vpop.f32.mrf.mxu2  ;;  %v9107_v45 = vadd.f32 %v1988_v18, %v1921_v27  ;;  %v9114_v39 = vpop.f32.mrf.mxu1  ;;  %v2443_v26 = vsel %vm8383_vm7, %v2438_v53, %v2442_v14  ;;  %v8142_v27 = vld [vmem:[%s8353_s12 + $0xcc] sm:$0xff]  ;;  %v9144_v53 = vld [vmem:[%s12209_s3 + $0x8] sm:$0xf] }
 0x1c0   : > { %v1562_v54 = vpop.f32.mrf.mxu3  ;;  %v2466_v23 = vrot.slane %v2464_v43, 5 }
 0x1c1   : > { %v1626_v57 = vadd.f32 %v1562_v54, %v8881_v47  ;;  %7582 = vmatmul.msk.bf16.gmra.mxu0 %vm798_vm3, %v12382_v29  ;;  %v8199_v47 = vld [vmem:[%s8353_s12 + $0xb4] sm:$0xff]  ;;  %v2455_v54 = vshrl.u32 %v2374_v21, 16  ;;  %v2470_v21 = vrot.slane %v2468_v48, 4 }
 0x1c2   : > { %7600 = vmatmul.msk.bf16.gmra.mxu1 %vm798_vm3, %v9109_v13  ;;  %v2377_v48 = vld [vmem:[%s9075_s21 + $0x18] sm:$0xf] }
 0x1c3   : > { %v1780_v18 = vadd.f32 %v1716_v5, %v1626_v57  ;;  %v1672_v57 = vunpack.c.l.b16 %v1670_v28  ;;  %v2457_v1 = vrot.slane %v2455_v54, 4 }
 0x1c5   : > { %7566 = vmatmul.msk.bf16.gmra.mxu3 %vm798_vm3, %v8199_v47  ;;  %v1922_v9 = vadd.f32 %v9062_v6, %v1780_v18  ;;  %v2453_v6 = vsel %vm8383_vm7, %v2448_v24, %v2452_v3  ;;  %v2814_v18 = vunpack.c.l.b16 %v2443_v26  ;;  %v2460_v24 = vrot.slane %v2458_v17, 5 }
 0x1c6   : > { %v1721_v5 = vpop.f32.mrf.mxu0  ;;  %v3581_v3 = vpack.c.b16 %v3580_v7, %v3580_v7  ;;  %v9149_v47 = vpack.c.b16 %v1672_v57, %v1671_v32  ;;  %v2471_v17 = vor.u32 %v2470_v21, %v2466_v23  ;;  %v2482_v21 = vshll.u32 %v2377_v48, 16 }
 0x1c7   : > { %v1995_v62 = vpop.f32.mrf.mxu2  ;;  %v9133_v36 = vadd.f32 %v1990_v30, %v1922_v9  ;;  %v9139_v56 = vpop.f32.mrf.mxu1  ;;  %v2815_v30 = vunpack.c.l.b16 %v2453_v6  ;;  %v2376_v9 = vld [vmem:[%s9075_s21 + $0x14] sm:$0x1] }
 0x1c8   : > { %v1565_v31 = vpop.f32.mrf.mxu3  ;;  %v3582_v28 = vrot.slane %v3581_v3, 2  ;;  %v8143_v3 = vld [vmem:[%s9075_s21] sm:$0xff] }
 0x1c9   : > { %v1627_v0 = vadd.f32 %v1565_v31, %v8888_v4  ;;  %v3741_v4 = vsel %vm847_vm0, %v9144_v53, 0  ;;  %v2846_v31 = vpack.c.b16 %v2815_v30, %v2814_v18  ;;  %v2378_v18 = vld [vmem:[%s9075_s21 + $0x1c] sm:$0xf] }
 0x1ca   : > { %3750 = vmatpush.bf16.msrb.mxu1 %v3741_v4  ;;  %v3587_v6 = vsel %vm847_vm0, %v3582_v28, 0  ;;  %v2479_v4 = vshrl.u32 %v2377_v48, 16  ;;  %v2488_v28 = vshll.u32 %v2378_v18, 16 }
 0x1cb   : > { %v1781_v14 = vadd.f32 %v1719_v25, %v1627_v0  ;;  %3596 = vmatpush.bf16.msrb.mxu0 %v3587_v6  ;;  %v2484_v6 = vrot.slane %v2482_v21, 5 }
 0x1cc   : > { %7620 = vmatmul.msk.bf16.gmra.mxu2 %vm798_vm3, %v8142_v27  ;;  %v2461_v27 = vor.u32 %v2460_v24, %v2457_v1 }
 0x1cd   : > { %v1923_v63 = vadd.f32 %v9080_v33, %v1781_v14  ;;  %v2474_v33 = vshll.u32 %v2376_v9, 16 }
 0x1ce   : > { %v1724_v25 = vpop.f32.mrf.mxu0  ;;  %v2462_v57 = vrot.slane %v2461_v27, 4  ;;  %v2481_v27 = vrot.slane %v2479_v4, 4  ;;  %v2380_v4 = vld [vmem:[%s9075_s21 + $0x24] sm:$0xf] }
 0x1cf   : > { %v1998_v11 = vpop.f32.mrf.mxu2  ;;  %v9155_v7 = vadd.f32 %v9105_v59, %v1923_v63  ;;  %v9160_v54 = vpop.f32.mrf.mxu1  ;;  %v2472_v59 = vrot.slane %v2471_v17, 4  ;;  %v2476_v43 = vrot.slane %v2474_v33, 5  ;;  %v2492_v63 = vshrl.u32 %v2378_v18, 16 }
 0x1d0   : > { %v1567_v26 = vpop.f32.mrf.mxu3 }
 0x1d1   : > { %v1628_v32 = vadd.f32 %v1567_v26, %v8899_v46  ;;  %7583 = vmatmul.msk.bf16.gmra.mxu0 %vm798_vm3, %v9149_v47 }
 0x1d2   : > { %7654 = vmatmul.msk.bf16.vlgmr.msra.gmra.mxu1 %vm798_vm3, %v2846_v31 }
 0x1d3   : > { %v1782_v0 = vadd.f32 %v1721_v5, %v1628_v32  ;;  %v2467_v5 = vsel %vm8383_vm7, %v2462_v57, %v2466_v23  ;;  %v2490_v23 = vrot.slane %v2488_v28, 5  ;;  %v2494_v32 = vrot.slane %v2492_v63, 4  ;;  %v8144_v63 = vld [vmem:[%s9075_s21 + $0xc] sm:$0xff] }
 0x1d5   : > { %7567 = vmatmul.msk.bf16.gmra.mxu3 %vm798_vm3, %v9094_v50  ;;  %v1924_v46 = vadd.f32 %v9097_v19, %v1782_v0  ;;  %v2477_v19 = vsel %vm8383_vm7, %v2472_v59, %v2476_v43 }
 0x1d6   : > { %v1726_v14 = vpop.f32.mrf.mxu0  ;;  %v2817_v31 = vunpack.c.l.b16 %v2477_v19 }
 0x1d7   : > { %v2000_v30 = vpop.f32.mrf.mxu2  ;;  %v9168_v1 = vadd.f32 %v1995_v62, %v1924_v46  ;;  %v9174_v9 = vpop.f32.mrf.mxu1  ;;  %v2816_v62 = vunpack.c.l.b16 %v2467_v5 }
 0x1d8   : > { %v1570_v24 = vpop.f32.mrf.mxu3 }
 0x1d9   : > { %v1629_v50 = vadd.f32 %v1570_v24, %v8906_v49  ;;  %v2379_v49 = vld [vmem:[%s9075_s21 + $0x20] sm:$0x1]  ;;  %v9183_v43 = vpack.c.b16 %v2817_v31, %v2816_v62  ;;  %v2506_v62 = vshll.u32 %v2380_v4, 16 }
 0x1da   : > { %v2498_v18 = vshll.u32 %v2379_v49, 16 }
 0x1db   : > { %v1783_v26 = vadd.f32 %v1724_v25, %v1629_v50  ;;  %v2485_v25 = vor.u32 %v2484_v6, %v2481_v27 }
 0x1dc   : > { %7734 = vmatmul.msk.bf16.vlgmr.msra.gmra.mxu2 %vm798_vm3, %v8143_v3  ;;  %v2500_v5 = vrot.slane %v2498_v18, 5 }
 0x1dd   : > { %v1925_v17 = vadd.f32 %v9114_v39, %v1783_v26  ;;  %v2495_v39 = vor.u32 %v2494_v32, %v2490_v23  ;;  %v2503_v26 = vshrl.u32 %v2380_v4, 16 }
 0x1de   : > { %v1729_v33 = vpop.f32.mrf.mxu0 }
 0x1df   : > { %v2003_v0 = vpop.f32.mrf.mxu2  ;;  %v9181_v57 = vadd.f32 %v1998_v11, %v1925_v17  ;;  %v9188_v46 = vpop.f32.mrf.mxu1  ;;  %v2486_v11 = vrot.slane %v2485_v25, 4  ;;  %v2496_v3 = vrot.slane %v2495_v39, 4  ;;  %v2505_v49 = vrot.slane %v2503_v26, 4 }
 0x1e0   : > { %v1572_v59 = vpop.f32.mrf.mxu3 }
 0x1e1   : > { %v1630_v48 = vadd.f32 %v1572_v59, %v8917_v12  ;;  %7638 = vmatmul.msk.bf16.vlgmr.msra.gmra.mxu0 %vm798_vm3, %v8481_v60  ;;  %v2381_v60 = vld [vmem:[%s9075_s21 + $0x28] sm:$0xf]  ;;  %v2508_v59 = vrot.slane %v2506_v62, 5 }
 0x1e2   : > { %7655 = vmatmul.msk.bf16.gmra.mxu1 %vm798_vm3, %v9183_v43  ;;  %v2512_v27 = vshll.u32 %v2381_v60, 16  ;;  %v2516_v6 = vshrl.u32 %v2381_v60, 16 }
 0x1e3   : > { %v1784_v24 = vadd.f32 %v1726_v14, %v1630_v48  ;;  %v2491_v14 = vsel %vm8383_vm7, %v2486_v11, %v2490_v23 }
 0x1e4   : > { %v2514_v23 = vrot.slane %v2512_v27, 5  ;;  %v2518_v25 = vrot.slane %v2516_v6, 4  ;;  %v8145_v27 = vld [vmem:[%s9075_s21 + $0x18] sm:$0xff] }
 0x1e5   : > { %7621 = vmatmul.msk.bf16.vlgmr.msra.gmra.mxu3 %vm798_vm3, %v8499_v38  ;;  %v1926_v12 = vadd.f32 %v9139_v56, %v1784_v24  ;;  %v2501_v56 = vsel %vm8383_vm7, %v2496_v3, %v2500_v5 }
 0x1e6   : > { %v1731_v21 = vpop.f32.mrf.mxu0  ;;  %v2819_v17 = vunpack.c.l.b16 %v2501_v56 }
 0x1e7   : > { %v2005_v50 = vpop.f32.mrf.mxu2  ;;  %v9197_v19 = vadd.f32 %v2000_v30, %v1926_v12  ;;  %v9203_v31 = vpop.f32.mrf.mxu1  ;;  %v2818_v30 = vunpack.c.l.b16 %v2491_v14  ;;  %v2383_v14 = vld [vmem:[%s9075_s21 + $0x30] sm:$0xf] }
 0x1e8   : > { %v1575_v28 = vpop.f32.mrf.mxu3  ;;  %v2527_v6 = vshrl.u32 %v2383_v14, 16 }
 0x1e9   : > { %v1631_v38 = vadd.f32 %v1575_v28, %v8924_v51  ;;  %v2382_v51 = vld [vmem:[%s9075_s21 + $0x2c] sm:$0x1]  ;;  %v9212_v3 = vpack.c.b16 %v2819_v17, %v2818_v30 }
 0x1ea   : > { %v2522_v12 = vshll.u32 %v2382_v51, 16 }
 0x1eb   : > { %v1785_v32 = vadd.f32 %v1729_v33, %v1631_v38  ;;  %v2509_v33 = vor.u32 %v2508_v59, %v2505_v49 }
 0x1ec   : > { %7735 = vmatmul.msk.bf16.gmra.mxu2 %vm798_vm3, %v8144_v63  ;;  %v2524_v63 = vrot.slane %v2522_v12, 5 }
 0x1ed   : > { %v1927_v48 = vadd.f32 %v9160_v54, %v1785_v32  ;;  %v2519_v54 = vor.u32 %v2518_v25, %v2514_v23  ;;  %v2530_v32 = vshll.u32 %v2383_v14, 16 }
 0x1ee   : > { %v1734_v39 = vpop.f32.mrf.mxu0 }
 0x1ef   : > { %v2008_v18 = vpop.f32.mrf.mxu2  ;;  %v9210_v24 = vadd.f32 %v2003_v0, %v1927_v48  ;;  %v9217_v4 = vpop.f32.mrf.mxu1  ;;  %v2510_v0 = vrot.slane %v2509_v33, 4  ;;  %v2520_v28 = vrot.slane %v2519_v54, 4  ;;  %v2529_v48 = vrot.slane %v2527_v6, 4 }
 0x1f0   : > { %v1577_v11 = vpop.f32.mrf.mxu3  ;;  %v2532_v51 = vrot.slane %v2530_v32, 5 }
 0x1f1   : > { %v1632_v5 = vadd.f32 %v1577_v11, %v8935_v52  ;;  %7639 = vmatmul.msk.bf16.gmra.mxu0 %vm798_vm3, %v8527_v15  ;;  %v2384_v15 = vld [vmem:[%s9075_s21 + $0x34] sm:$0xf] }
 0x1f2   : > { %7656 = vmatmul.msk.bf16.gmra.mxu1 %vm798_vm3, %v9212_v3  ;;  %v2536_v17 = vshll.u32 %v2384_v15, 16  ;;  %v2540_v49 = vshrl.u32 %v2384_v15, 16 }
 0x1f3   : > { %v1786_v60 = vadd.f32 %v1731_v21, %v1632_v5  ;;  %v2515_v21 = vsel %vm8383_vm7, %v2510_v0, %v2514_v23 }
 0x1f4   : > { %v2538_v23 = vrot.slane %v2536_v17, 5  ;;  %v2542_v11 = vrot.slane %v2540_v49, 4 }
 0x1f5   : > { %7622 = vmatmul.msk.bf16.gmra.mxu3 %vm798_vm3, %v8536_v40  ;;  %v1928_v52 = vadd.f32 %v9174_v9, %v1786_v60  ;;  %v2525_v9 = vsel %vm8383_vm7, %v2520_v28, %v2524_v63 }
 0x1f6   : > { %v1736_v26 = vpop.f32.mrf.mxu0  ;;  %v2821_v25 = vunpack.c.l.b16 %v2525_v9  ;;  %v8146_v9 = vld [vmem:[%s9075_s21 + $0x24] sm:$0xff] }
 0x1f7   : > { %v2010_v62 = vpop.f32.mrf.mxu2  ;;  %v9226_v38 = vadd.f32 %v2005_v50, %v1928_v52  ;;  %v9232_v30 = vpop.f32.mrf.mxu1  ;;  %v2820_v50 = vunpack.c.l.b16 %v2515_v21 }
 0x1f8   : > { %v1580_v56 = vpop.f32.mrf.mxu3 }
 0x1f9   : > { %v1633_v40 = vadd.f32 %v1580_v56, %v8942_v44  ;;  %v2385_v44 = vld [vmem:[%s9075_s21 + $0x38] sm:$0x1]  ;;  %v9241_v0 = vpack.c.b16 %v2821_v25, %v2820_v50 }
 0x1fa   : > { %v2546_v14 = vshll.u32 %v2385_v44, 16 }
 0x1fb   : > { %v1787_v59 = vadd.f32 %v1734_v39, %v1633_v40  ;;  %v2533_v39 = vor.u32 %v2532_v51, %v2529_v48 }
 0x1fc   : > { %7736 = vmatmul.msk.bf16.gmra.mxu2 %vm798_vm3, %v8145_v27  ;;  %v2548_v56 = vrot.slane %v2546_v14, 5  ;;  %v2386_v27 = vld [vmem:[%s9075_s21 + $0x3c] sm:$0xf] }
 0x1fd   : > { %v1929_v33 = vadd.f32 %v9188_v46, %v1787_v59  ;;  %v2543_v46 = vor.u32 %v2542_v11, %v2538_v23  ;;  %v2551_v17 = vshrl.u32 %v2386_v27, 16  ;;  %v2554_v49 = vshll.u32 %v2386_v27, 16 }
 0x1fe   : > { %v1739_v5 = vpop.f32.mrf.mxu0 }
 0x1ff   : > { %v2013_v54 = vpop.f32.mrf.mxu2  ;;  %v9239_v12 = vadd.f32 %v2008_v18, %v1929_v33  ;;  %v9246_v63 = vpop.f32.mrf.mxu1  ;;  %v2534_v18 = vrot.slane %v2533_v39, 4  ;;  %v2544_v15 = vrot.slane %v2543_v46, 4  ;;  %v2553_v11 = vrot.slane %v2551_v17, 4 }
 0x200   : > { %v1582_v60 = vpop.f32.mrf.mxu3  ;;  %v2556_v33 = vrot.slane %v2554_v49, 5 }
 0x201   : > { %v1634_v28 = vadd.f32 %v1582_v60, %v8953_v16  ;;  %7640 = vmatmul.msk.bf16.gmra.mxu0 %vm798_vm3, %v8559_v8  ;;  %v2387_v8 = vld [vmem:[%s9075_s21 + $0x40] sm:$0xf] }
 0x202   : > { %7657 = vmatmul.msk.bf16.gmra.mxu1 %vm798_vm3, %v9241_v0  ;;  %v2560_v50 = vshll.u32 %v2387_v8, 16  ;;  %v2564_v25 = vshrl.u32 %v2387_v8, 16 }
 0x203   : > { %v1788_v52 = vadd.f32 %v1736_v26, %v1634_v28  ;;  %v2539_v26 = vsel %vm8383_vm7, %v2534_v18, %v2538_v23 }
 0x204   : > { %v2562_v23 = vrot.slane %v2560_v50, 5  ;;  %v2566_v44 = vrot.slane %v2564_v25, 4 }
 0x205   : > { %7623 = vmatmul.msk.bf16.gmra.mxu3 %vm798_vm3, %v8564_v34  ;;  %v1930_v16 = vadd.f32 %v9203_v31, %v1788_v52  ;;  %v2549_v31 = vsel %vm8383_vm7, %v2544_v15, %v2548_v56 }
 0x206   : > { %v1741_v21 = vpop.f32.mrf.mxu0  ;;  %v2823_v51 = vunpack.c.l.b16 %v2549_v31 }
 0x207   : > { %v2015_v6 = vpop.f32.mrf.mxu2  ;;  %v9255_v32 = vadd.f32 %v2010_v62, %v1930_v16  ;;  %v9261_v59 = vpop.f32.mrf.mxu1  ;;  %v2822_v62 = vunpack.c.l.b16 %v2539_v26 }
 0x208   : > { %v1585_v40 = vpop.f32.mrf.mxu3 }
 0x209   : > { %v1635_v34 = vadd.f32 %v1585_v40, %v8960_v42  ;;  %v2388_v42 = vld [vmem:[%s9075_s21 + $0x44] sm:$0x1]  ;;  %v9270_v52 = vpack.c.b16 %v2823_v51, %v2822_v62  ;;  %v2389_v40 = vld [vmem:[%s9075_s21 + $0x48] sm:$0xf] }
 0x20a   : > { %v2570_v56 = vshll.u32 %v2388_v42, 16  ;;  %v2575_v31 = vshrl.u32 %v2389_v40, 16  ;;  %v2578_v50 = vshll.u32 %v2389_v40, 16 }
 0x20b   : > { %v1789_v48 = vadd.f32 %v1739_v5, %v1635_v34  ;;  %v2557_v5 = vor.u32 %v2556_v33, %v2553_v11  ;;  %v8147_v34 = vld [vmem:[%s9075_s21 + $0x30] sm:$0xff] }
 0x20c   : > { %7737 = vmatmul.msk.bf16.gmra.mxu2 %vm798_vm3, %v8146_v9  ;;  %v2572_v8 = vrot.slane %v2570_v56, 5  ;;  %v2577_v33 = vrot.slane %v2575_v31, 4 }
 0x20d   : > { %v1931_v60 = vadd.f32 %v9217_v4, %v1789_v48  ;;  %v2567_v4 = vor.u32 %v2566_v44, %v2562_v23  ;;  %v2580_v44 = vrot.slane %v2578_v50, 5 }
 0x20e   : > { %v1744_v39 = vpop.f32.mrf.mxu0 }
 0x20f   : > { %v2018_v28 = vpop.f32.mrf.mxu2  ;;  %v9268_v46 = vadd.f32 %v2013_v54, %v1931_v60  ;;  %v9275_v15 = vpop.f32.mrf.mxu1  ;;  %v2558_v54 = vrot.slane %v2557_v5, 4  ;;  %v2568_v16 = vrot.slane %v2567_v4, 4 }
 0x210   : > { %v1587_v14 = vpop.f32.mrf.mxu3 }
 0x211   : > { %v1636_v18 = vadd.f32 %v1587_v14, %v8971_v20  ;;  %7641 = vmatmul.msk.bf16.gmra.mxu0 %vm798_vm3, %v8585_v2  ;;  %v2390_v2 = vld [vmem:[%s9075_s21 + $0x4c] sm:$0xf] }
 0x212   : > { %7658 = vmatmul.msk.bf16.gmra.mxu1 %vm798_vm3, %v9270_v52  ;;  %v2584_v48 = vshll.u32 %v2390_v2, 16  ;;  %v2588_v62 = vshrl.u32 %v2390_v2, 16 }
 0x213   : > { %v1790_v27 = vadd.f32 %v1741_v21, %v1636_v18  ;;  %v2563_v21 = vsel %vm8383_vm7, %v2558_v54, %v2562_v23  ;;  %v12383_v54 = vld [vmem:[#allocation9_spill] sm:$0xff] }
 0x214   : > { %v2586_v23 = vrot.slane %v2584_v48, 5  ;;  %v2590_v60 = vrot.slane %v2588_v62, 4 }
 0x215   : > { %7624 = vmatmul.msk.bf16.gmra.mxu3 %vm798_vm3, %v8590_v22  ;;  %v1932_v20 = vadd.f32 %v9232_v30, %v1790_v27  ;;  %v2573_v30 = vsel %vm8383_vm7, %v2568_v16, %v2572_v8 }
 0x216   : > { %v1746_v9 = vpop.f32.mrf.mxu0  ;;  %v2825_v11 = vunpack.c.l.b16 %v2573_v30  ;;  %v8148_v30 = vld [vmem:[%s9075_s21 + $0x3c] sm:$0xff] }
 0x217   : > { %v2020_v26 = vpop.f32.mrf.mxu2  ;;  %v9284_v17 = vadd.f32 %v2015_v6, %v1932_v20  ;;  %v9290_v25 = vpop.f32.mrf.mxu1  ;;  %v2824_v6 = vunpack.c.l.b16 %v2563_v21  ;;  %v2393_v21 = vld [vmem:[%s9075_s21 + $0x58] sm:$0xf] }
 0x218   : > { %v1590_v49 = vpop.f32.mrf.mxu3 }
 0x219   : > { %v1637_v22 = vadd.f32 %v1590_v49, %v8978_v35  ;;  %v2391_v35 = vld [vmem:[%s9075_s21 + $0x50] sm:$0x1]  ;;  %v9299_v56 = vpack.c.b16 %v2825_v11, %v2824_v6  ;;  %v2392_v49 = vld [vmem:[%s9075_s21 + $0x54] sm:$0xf]  ;;  %v2608_v6 = vshll.u32 %v2393_v21, 16  ;;  %v2612_v11 = vshrl.u32 %v2393_v21, 16 }
 0x21a   : > { %v2594_v8 = vshll.u32 %v2391_v35, 16  ;;  %v2599_v48 = vshrl.u32 %v2392_v49, 16  ;;  %v2602_v62 = vshll.u32 %v2392_v49, 16 }
 0x21b   : > { %v1791_v51 = vadd.f32 %v1744_v39, %v1637_v22  ;;  %v2581_v39 = vor.u32 %v2580_v44, %v2577_v33  ;;  %v2614_v35 = vrot.slane %v2612_v11, 4 }
 0x21c   : > { %7738 = vmatmul.msk.bf16.gmra.mxu2 %vm798_vm3, %v8147_v34  ;;  %v2596_v2 = vrot.slane %v2594_v8, 5 }
 0x21d   : > { %v1933_v42 = vadd.f32 %v9246_v63, %v1791_v51  ;;  %v2591_v63 = vor.u32 %v2590_v60, %v2586_v23  ;;  %v2601_v60 = vrot.slane %v2599_v48, 4 }
 0x21e   : > { %v1749_v14 = vpop.f32.mrf.mxu0 }
 0x21f   : > { %v2023_v5 = vpop.f32.mrf.mxu2  ;;  %v9297_v18 = vadd.f32 %v2018_v28, %v1933_v42  ;;  %v9304_v16 = vpop.f32.mrf.mxu1  ;;  %v2582_v28 = vrot.slane %v2581_v39, 4  ;;  %v2592_v20 = vrot.slane %v2591_v63, 4  ;;  %v2604_v42 = vrot.slane %v2602_v62, 5 }
 0x220   : > { %v1592_v4 = vpop.f32.mrf.mxu3 }
 0x221   : > { %v1638_v27 = vadd.f32 %v1592_v4, %v8989_v61  ;;  %7642 = vmatmul.msk.bf16.gmra.mxu0 %vm798_vm3, %v12383_v54 }
 0x222   : > { %7659 = vmatmul.msk.bf16.gmra.mxu1 %vm798_vm3, %v9299_v56 }
 0x223   : > { %v1792_v40 = vadd.f32 %v1746_v9, %v1638_v27  ;;  %v2587_v9 = vsel %vm8383_vm7, %v2582_v28, %v2586_v23  ;;  %v2610_v23 = vrot.slane %v2608_v6, 5  ;;  %v12385_v28 = vld [vmem:[#allocation12_spill] sm:$0xff] }
 0x225   : > { %7625 = vmatmul.msk.bf16.gmra.mxu3 %vm798_vm3, %v8623_v55  ;;  %v1934_v61 = vadd.f32 %v9261_v59, %v1792_v40  ;;  %v2597_v59 = vsel %vm8383_vm7, %v2592_v20, %v2596_v2 }
 0x226   : > { %v1751_v34 = vpop.f32.mrf.mxu0  ;;  %v2827_v44 = vunpack.c.l.b16 %v2597_v59  ;;  %v8149_v59 = vld [vmem:[%s9075_s21 + $0x48] sm:$0xff] }
 0x227   : > { %v2025_v31 = vpop.f32.mrf.mxu2  ;;  %v9313_v50 = vadd.f32 %v2020_v26, %v1934_v61  ;;  %v9319_v51 = vpop.f32.mrf.mxu1  ;;  %v2826_v26 = vunpack.c.l.b16 %v2587_v9  ;;  %v2396_v9 = vld [vmem:[%s9075_s21 + $0x64] sm:$0xf] }
 0x228   : > { %v1595_v22 = vpop.f32.mrf.mxu3 }
 0x229   : > { %v1639_v55 = vadd.f32 %v1595_v22, %v8933_v37  ;;  %v2394_v37 = vld [vmem:[%s9075_s21 + $0x5c] sm:$0x1]  ;;  %v9328_v8 = vpack.c.b16 %v2827_v44, %v2826_v26  ;;  %v2395_v22 = vld [vmem:[%s9075_s21 + $0x60] sm:$0xf]  ;;  %v2632_v44 = vshll.u32 %v2396_v9, 16 }
 0x22a   : > { %v2618_v2 = vshll.u32 %v2394_v37, 16  ;;  %v2623_v6 = vshrl.u32 %v2395_v22, 16  ;;  %v2626_v11 = vshll.u32 %v2395_v22, 16  ;;  %v12389_v22 = vld [vmem:[#allocation14_spill] sm:$0xff] }
 0x22b   : > { %v1793_v33 = vadd.f32 %v1749_v14, %v1639_v55  ;;  %12384 = vst [vmem:[#allocation7_spill] sm:$0xff] %v9328_v8  ;;  %v2605_v14 = vor.u32 %v2604_v42, %v2601_v60  ;;  %v2636_v60 = vshrl.u32 %v2396_v9, 16 }
 0x22c   : > { %7739 = vmatmul.msk.bf16.gmra.mxu2 %vm798_vm3, %v8148_v30  ;;  %v2620_v21 = vrot.slane %v2618_v2, 5  ;;  %v2628_v37 = vrot.slane %v2626_v11, 5  ;;  %v2398_v11 = vld [vmem:[%s9075_s21 + $0x6c] sm:$0xf] }
 0x22d   : > { %v1935_v4 = vadd.f32 %v9275_v15, %v1793_v33  ;;  %v2615_v15 = vor.u32 %v2614_v35, %v2610_v23  ;;  %v12386_v33 = vld [vmem:[#allocation30_spill] sm:$0xff] }
 0x22e   : > { %v1754_v39 = vpop.f32.mrf.mxu0 }
 0x22f   : > { %v2028_v27 = vpop.f32.mrf.mxu2  ;;  %v9326_v54 = vadd.f32 %v2023_v5, %v1935_v4  ;;  %v9333_v20 = vpop.f32.mrf.mxu1  ;;  %v2606_v5 = vrot.slane %v2605_v14, 4  ;;  %v2616_v61 = vrot.slane %v2615_v15, 4  ;;  %v2625_v4 = vrot.slane %v2623_v6, 4 }
 0x230   : > { %v1597_v63 = vpop.f32.mrf.mxu3 }
 0x231   : > { %v1640_v40 = vadd.f32 %v1597_v63, %v8940_v10  ;;  %7643 = vmatmul.msk.bf16.gmra.mxu0 %vm798_vm3, %v12385_v28  ;;  %v2638_v63 = vrot.slane %v2636_v60, 4  ;;  %v2397_v28 = vld [vmem:[%s9075_s21 + $0x68] sm:$0x1] }
 0x232   : > { %7660 = vmatmul.msk.bf16.gmra.mxu1 %vm798_vm3, %v9328_v8  ;;  %v2642_v9 = vshll.u32 %v2397_v28, 16 }
 0x233   : > { %v1794_v49 = vadd.f32 %v1751_v34, %v1640_v40  ;;  %v2611_v34 = vsel %vm8383_vm7, %v2606_v5, %v2610_v23  ;;  %v2634_v23 = vrot.slane %v2632_v44, 5 }
 0x234   : > { %v2644_v6 = vrot.slane %v2642_v9, 5 }
 0x235   : > { %7626 = vmatmul.msk.bf16.gmra.mxu3 %vm798_vm3, %v8659_v58  ;;  %v1936_v10 = vadd.f32 %v9290_v25, %v1794_v49  ;;  %v2621_v25 = vsel %vm8383_vm7, %v2616_v61, %v2620_v21  ;;  %v12388_v61 = vld [vmem:[#allocation31_spill] sm:$0xff] }
 0x236   : > { %v1756_v30 = vpop.f32.mrf.mxu0  ;;  %v2829_v35 = vunpack.c.l.b16 %v2621_v25  ;;  %v2399_v25 = vld [vmem:[%s9075_s21 + $0x70] sm:$0xf] }
 0x237   : > { %v2030_v48 = vpop.f32.mrf.mxu2  ;;  %v9342_v62 = vadd.f32 %v2025_v31, %v1936_v10  ;;  %v9348_v26 = vpop.f32.mrf.mxu1  ;;  %v2828_v31 = vunpack.c.l.b16 %v2611_v34  ;;  %v2656_v28 = vshll.u32 %v2399_v25, 16 }
 0x238   : > { %v1600_v55 = vpop.f32.mrf.mxu3 }
 0x239   : > { %v1641_v58 = vadd.f32 %v1600_v55, %v12386_v33  ;;  %v9357_v5 = vpack.c.b16 %v2829_v35, %v2828_v31  ;;  %v8150_v31 = vld [vmem:[%s9075_s21 + $0x54] sm:$0xff]  ;;  %v2647_v35 = vshrl.u32 %v2398_v11, 16 }
 0x23b   : > { %v1795_v42 = vadd.f32 %v1754_v39, %v1641_v58  ;;  %12387 = vst [vmem:[#allocation9_spill] sm:$0xff] %v9357_v5  ;;  %v2629_v39 = vor.u32 %v2628_v37, %v2625_v4  ;;  %v2650_v4 = vshll.u32 %v2398_v11, 16  ;;  %v12391_v37 = vld [vmem:[#allocation32_spill] sm:$0xff] }
 0x23c   : > { %7740 = vmatmul.msk.bf16.gmra.mxu2 %vm798_vm3, %v8149_v59  ;;  %v12390_v59 = vld [vmem:[#allocation15_spill] sm:$0xff] }
 0x23d   : > { %v1937_v14 = vadd.f32 %v9304_v16, %v1795_v42  ;;  %v2639_v16 = vor.u32 %v2638_v63, %v2634_v23 }
 0x23e   : > { %v1759_v40 = vpop.f32.mrf.mxu0 }
 0x23f   : > { %v2033_v15 = vpop.f32.mrf.mxu2  ;;  %v9355_v2 = vadd.f32 %v2028_v27, %v1937_v14  ;;  %v9362_v10 = vpop.f32.mrf.mxu1  ;;  %v2630_v27 = vrot.slane %v2629_v39, 4  ;;  %v2640_v34 = vrot.slane %v2639_v16, 4 }
 0x240   : > { %v1602_v49 = vpop.f32.mrf.mxu3 }
 0x241   : > { %v1642_v21 = vadd.f32 %v1602_v49, %v12388_v61  ;;  %7644 = vmatmul.msk.bf16.gmra.mxu0 %vm798_vm3, %v12389_v22  ;;  %v2660_v49 = vshrl.u32 %v2399_v25, 16  ;;  %v2652_v22 = vrot.slane %v2650_v4, 5  ;;  %v12395_v4 = vld [vmem:[#allocation19_spill] sm:$0xff] }
 0x242   : > { %7661 = vmatmul.msk.bf16.gmra.mxu1 %vm798_vm3, %v9357_v5 }
 0x243   : > { %v1796_v55 = vadd.f32 %v1756_v30, %v1642_v21  ;;  %v2635_v30 = vsel %vm8383_vm7, %v2630_v27, %v2634_v23  ;;  %v2649_v21 = vrot.slane %v2647_v35, 4  ;;  %v2658_v23 = vrot.slane %v2656_v28, 5  ;;  %v2400_v27 = vld [vmem:[%s9075_s21 + $0x74] sm:$0x1] }
 0x244   : > { %v2662_v16 = vrot.slane %v2660_v49, 4 }
 0x245   : > { %7627 = vmatmul.msk.bf16.gmra.mxu3 %vm798_vm3, %v12390_v59  ;;  %v1938_v33 = vadd.f32 %v9319_v51, %v1796_v55  ;;  %v2645_v51 = vsel %vm8383_vm7, %v2640_v34, %v2644_v6 }
 0x246   : > { %v1761_v58 = vpop.f32.mrf.mxu0  ;;  %v2831_v61 = vunpack.c.l.b16 %v2645_v51  ;;  %v2401_v51 = vld [vmem:[%s9075_s21 + $0x78] sm:$0xf] }
 0x247   : > { %v2035_v44 = vpop.f32.mrf.mxu2  ;;  %v9371_v60 = vadd.f32 %v2030_v48, %v1938_v33  ;;  %v9377_v14 = vpop.f32.mrf.mxu1  ;;  %v2830_v48 = vunpack.c.l.b16 %v2635_v30  ;;  %v12393_v33 = vld [vmem:[#allocation33_spill] sm:$0xff]  ;;  %v2663_v30 = vor.u32 %v2662_v16, %v2658_v23  ;;  %v2671_v16 = vshrl.u32 %v2401_v51, 16 }
 0x248   : > { %v1605_v42 = vpop.f32.mrf.mxu3 }
 0x249   : > { %v1643_v63 = vadd.f32 %v1605_v42, %v12391_v37  ;;  %v9386_v6 = vpack.c.b16 %v2831_v61, %v2830_v48  ;;  %v12394_v42 = vld [vmem:[#allocation17_spill] sm:$0xff]  ;;  %v2664_v37 = vrot.slane %v2663_v30, 4 }
 0x24b   : > { %v1797_v39 = vadd.f32 %v1759_v40, %v1643_v63  ;;  %12392 = vst [vmem:[#allocation12_spill] sm:$0xff] %v9386_v6  ;;  %v2653_v40 = vor.u32 %v2652_v22, %v2649_v21  ;;  %v8151_v22 = vld [vmem:[%s9075_s21 + $0x60] sm:$0xff] }
 0x24c   : > { %7741 = vmatmul.msk.bf16.gmra.mxu2 %vm798_vm3, %v8150_v31 }
 0x24d   : > { %v1939_v9 = vadd.f32 %v9333_v20, %v1797_v39  ;;  %v2666_v20 = vshll.u32 %v2400_v27, 16  ;;  %v2402_v39 = vld [vmem:[%s9075_s21 + $0x7c] sm:$0xf]  ;;  %v12396_v27 = vld [vmem:[#allocation34_spill] sm:$0xff] }
 0x24e   : > { %v1764_v55 = vpop.f32.mrf.mxu0 }
 0x24f   : > { %v2038_v59 = vpop.f32.mrf.mxu2  ;;  %v9384_v11 = vadd.f32 %v2033_v15, %v1939_v9  ;;  %v2926_v31 = vpop.f32.mrf.mxu1  ;;  %v2654_v15 = vrot.slane %v2653_v40, 4  ;;  %v2668_v63 = vrot.slane %v2666_v20, 5  ;;  %v2674_v9 = vshll.u32 %v2401_v51, 16 }
 0x250   : > { %v1607_v34 = vpop.f32.mrf.mxu3  ;;  %v2673_v20 = vrot.slane %v2671_v16, 4  ;;  %v12400_v16 = vld [vmem:[#allocation23_spill] sm:$0xff] }
 0x251   : > { %v1644_v25 = vadd.f32 %v1607_v34, %v12393_v33  ;;  %7645 = vmatmul.msk.bf16.gmra.mxu0 %vm798_vm3, %v12394_v42  ;;  %v2669_v33 = vsel %vm8383_vm7, %v2664_v37, %v2668_v63 }
 0x252   : > { %7662 = vmatmul.msk.bf16.gmra.mxu1 %vm798_vm3, %v9386_v6  ;;  %v2833_v30 = vunpack.c.l.b16 %v2669_v33 }
 0x253   : > { %v1798_v35 = vadd.f32 %v1761_v58, %v1644_v25  ;;  %v2659_v58 = vsel %vm8383_vm7, %v2654_v15, %v2658_v23  ;;  %v2684_v25 = vshrl.u32 %v2402_v39, 16 }
 0x255   : > { %7628 = vmatmul.msk.bf16.gmra.mxu3 %vm798_vm3, %v12395_v4  ;;  %v1940_v28 = vadd.f32 %v9348_v26, %v1798_v35  ;;  %v2680_v26 = vshll.u32 %v2402_v39, 16  ;;  %v2676_v35 = vrot.slane %v2674_v9, 5  ;;  %v2686_v23 = vrot.slane %v2684_v25, 4 }
 0x256   : > { %v1766_v49 = vpop.f32.mrf.mxu0 }
 0x257   : > { %v2040_v48 = vpop.f32.mrf.mxu2  ;;  %v9398_v61 = vadd.f32 %v2035_v44, %v1940_v28  ;;  %v2928_v40 = vpop.f32.mrf.mxu1  ;;  %v2832_v44 = vunpack.c.l.b16 %v2659_v58  ;;  %v2682_v4 = vrot.slane %v2680_v26, 5  ;;  %v2403_v28 = vld [vmem:[%s9075_s21 + $0x80] sm:$0x1]  ;;  %v2677_v39 = vor.u32 %v2676_v35, %v2673_v20  ;;  %v2405_v20 = vld [vmem:[%s9075_s21 + $0x88] sm:$0xf] }
 0x258   : > { %v1610_v21 = vpop.f32.mrf.mxu3  ;;  %v3876_v35 = vunpack.c.l.b16 %v9144_v53  ;;  %v2704_v53 = vshll.u32 %v2405_v20, 16 }
 0x259   : > { %v1645_v34 = vadd.f32 %v1610_v21, %v12396_v27 }
 0x25b   : > { %v1799_v42 = vadd.f32 %v1764_v55, %v1645_v34  ;;  %v9413_v55 = vpack.c.b16 %v2833_v30, %v2832_v44  ;;  %v2690_v34 = vshll.u32 %v2403_v28, 16 }
 0x25c   : > { %7742 = vmatmul.msk.bf16.gmra.mxu2 %vm798_vm3, %v8151_v22  ;;  %v12399_v22 = vld [vmem:[#allocation21_spill] sm:$0xff] }
 0x25d   : > { %v1941_v15 = vadd.f32 %v9362_v10, %v1799_v42  ;;  %12398 = vst [vmem:[#allocation31_spill] sm:$0xff] %v9413_v55  ;;  %v2687_v10 = vor.u32 %v2686_v23, %v2682_v4  ;;  %v2692_v25 = vrot.slane %v2690_v34, 5  ;;  %v2404_v42 = vld [vmem:[%s9075_s21 + $0x84] sm:$0xf]  ;;  %v2708_v34 = vshrl.u32 %v2405_v20, 16 }
 0x25e   : > { %v2259_v51 = vpop.f32.mrf.mxu0 }
 0x25f   : > { %v3146_v21 = vpop.f32.mrf.mxu2  ;;  %v9409_v27 = vadd.f32 %v2038_v59, %v1941_v15  ;;  %v2931_v9 = vpop.f32.mrf.mxu1  ;;  %v2678_v59 = vrot.slane %v2677_v39, 4  ;;  %v2688_v26 = vrot.slane %v2687_v10, 4  ;;  %v2695_v39 = vshrl.u32 %v2404_v42, 16 }
 0x260   : > { %v1612_v37 = vpop.f32.mrf.mxu3  ;;  %v9411_v63 = vadd.f32 %v3146_v21, %v2926_v31  ;;  %v12401_v31 = vld [vmem:[#allocation25_spill] sm:$0xff] }
 0x261   : > { %v1646_v58 = vadd.f32 %v1612_v37, %v12399_v22  ;;  %7646 = vmatmul.msk.bf16.gmra.mxu0 %vm798_vm3, %v12400_v16  ;;  %v8152_v21 = vld [vmem:[%s9075_s21 + $0x6c] sm:$0xff]  ;;  %v2683_v37 = vsel %vm8383_vm7, %v2678_v59, %v2682_v4  ;;  %v2698_v22 = vshll.u32 %v2404_v42, 16  ;;  %v2693_v10 = vsel %vm8383_vm7, %v2688_v26, %v2692_v25 }
 0x262   : > { %12397 = vst [vmem:[#allocation30_spill] sm:$0xff] %v9411_v63  ;;  %7663 = vmatmul.msk.bf16.gmra.mxu1 %vm798_vm3, %v9413_v55  ;;  %v2706_v59 = vrot.slane %v2704_v53, 5  ;;  %v2710_v42 = vrot.slane %v2708_v34, 4  ;;  %v2407_v34 = vld [vmem:[%s9075_s21 + $0x90] sm:$0xf] }
 0x263   : > { %v1800_v33 = vadd.f32 %v1766_v49, %v1646_v58  ;;  %v12403_v58 = vld [vmem:[#allocation16_spill] sm:$0xff]  ;;  %v2700_v4 = vrot.slane %v2698_v22, 5 }
 0x264   : > { %v2711_v22 = vor.u32 %v2710_v42, %v2706_v59  ;;  %v8153_v42 = vld [vmem:[%s9075_s21 + $0x78] sm:$0xff] }
 0x265   : > { %7629 = vmatmul.msk.bf16.gmra.mxu3 %vm798_vm3, %v12401_v31  ;;  %v1942_v44 = vadd.f32 %v9377_v14, %v1800_v33  ;;  %v3877_v33 = vpack.c.b16 %v3876_v35, %v3876_v35  ;;  %v2835_v31 = vunpack.c.l.b16 %v2693_v10  ;;  %v12407_v35 = vld [vmem:[#allocation18_spill] sm:$0xff] }
 0x266   : > { %v2261_v30 = vpop.f32.mrf.mxu0  ;;  %v2712_v53 = vrot.slane %v2711_v22, 4 }
 0x267   : > { %v3148_v23 = vpop.f32.mrf.mxu2  ;;  %v9426_v15 = vadd.f32 %v2040_v48, %v1942_v44  ;;  %v2933_v14 = vpop.f32.mrf.mxu1  ;;  %v2697_v44 = vrot.slane %v2695_v39, 4 }
 0x268   : > { %v2121_v49 = vpop.f32.mrf.mxu3  ;;  %v9428_v28 = vadd.f32 %v3148_v23, %v2928_v40  ;;  %v2834_v40 = vunpack.c.l.b16 %v2683_v37  ;;  %v3878_v23 = vrot.slane %v3877_v33, 2  ;;  %v12408_v37 = vld [vmem:[#allocation27_spill] sm:$0xff] }
 0x269   : > { %v2201_v16 = vadd.f32 %v2121_v49, %v12403_v58  ;;  %v2406_v58 = vld [vmem:[%s9075_s21 + $0x8c] sm:$0x1]  ;;  %v2701_v20 = vor.u32 %v2700_v4, %v2697_v44 }
 0x26a   : > { %12402 = vst [vmem:[#allocation14_spill] sm:$0xff] %v9428_v28  ;;  %v3883_v63 = vsel %vm847_vm0, %v3878_v23, 0  ;;  %v2719_v23 = vshrl.u32 %v2407_v34, 16 }
 0x26b   : > { %v9436_v48 = vadd.f32 %v2259_v51, %v2201_v16  ;;  %v9443_v51 = vpack.c.b16 %v2835_v31, %v2834_v40  ;;  %3892 = vmatpush.bf16.msrb.mxu2 %v3883_v63  ;;  %v2714_v16 = vshll.u32 %v2406_v58, 16  ;;  %v2408_v40 = vld [vmem:[%s9075_s21 + $0x94] sm:$0xf]  ;;  %v2722_v58 = vshll.u32 %v2407_v34, 16  ;;  %v2409_v34 = vld [vmem:[%s9075_s21 + $0x98] sm:$0x1] }
 0x26c   : > { %7743 = vmatmul.msk.bf16.gmra.mxu2 %vm798_vm3, %v8152_v21  ;;  %v2732_v22 = vshrl.u32 %v2408_v40, 16 }
 0x26d   : > { %12404 = vst [vmem:[#allocation15_spill] sm:$0xff] %v9436_v48  ;;  %v2716_v63 = vrot.slane %v2714_v16, 5 }
 0x26e   : > { %v2264_v49 = vpop.f32.mrf.mxu0  ;;  %12406 = vst [vmem:[#allocation33_spill] sm:$0xff] %v9443_v51 }
 0x26f   : > { %v3151_v28 = vpop.f32.mrf.mxu2  ;;  %v2936_v39 = vpop.f32.mrf.mxu1 }
 0x270   : > { %v2123_v26 = vpop.f32.mrf.mxu3  ;;  %v9441_v25 = vadd.f32 %v3151_v28, %v2931_v9  ;;  %v2702_v9 = vrot.slane %v2701_v20, 4  ;;  %v12410_v28 = vld [vmem:[#allocation28_spill] sm:$0xff] }
 0x271   : > { %v2202_v21 = vadd.f32 %v2123_v26, %v12407_v35  ;;  %7647 = vmatmul.msk.bf16.gmra.mxu0 %vm798_vm3, %v12408_v37  ;;  %v12412_v26 = vld [vmem:[#allocation22_spill] sm:$0xff]  ;;  %v2728_v37 = vshll.u32 %v2408_v40, 16 }
 0x272   : > { %12405 = vst [vmem:[#allocation32_spill] sm:$0xff] %v9441_v25  ;;  %7664 = vmatmul.msk.bf16.gmra.mxu1 %vm798_vm3, %v9443_v51 }
 0x273   : > { %v9448_v10 = vadd.f32 %v2261_v30, %v2202_v21  ;;  %v2707_v30 = vsel %vm8383_vm7, %v2702_v9, %v2706_v59  ;;  %v2717_v21 = vsel %vm8383_vm7, %v2712_v53, %v2716_v63  ;;  %v2730_v59 = vrot.slane %v2728_v37, 5  ;;  %v12416_v63 = vld [vmem:[#allocation24_spill] sm:$0xff]  ;;  %v2410_v37 = vld [vmem:[%s9075_s21 + $0x9c] sm:$0xf] }
 0x274   : > { %v2734_v9 = vrot.slane %v2732_v22, 4 }
 0x275   : > { %12409 = vst [vmem:[#allocation17_spill] sm:$0xff] %v9448_v10  ;;  %7630 = vmatmul.msk.bf16.gmra.mxu3 %vm798_vm3, %v12410_v28  ;;  %v2837_v28 = vunpack.c.l.b16 %v2717_v21  ;;  %v2724_v10 = vrot.slane %v2722_v58, 5  ;;  %v2738_v58 = vshll.u32 %v2409_v34, 16  ;;  %v2743_v34 = vshrl.u32 %v2410_v37, 16 }
 0x276   : > { %v2266_v33 = vpop.f32.mrf.mxu0 }
 0x277   : > { %v3153_v31 = vpop.f32.mrf.mxu2  ;;  %v2938_v35 = vpop.f32.mrf.mxu1 }
 0x278   : > { %v2126_v44 = vpop.f32.mrf.mxu3  ;;  %v9456_v4 = vadd.f32 %v3153_v31, %v2933_v14  ;;  %v2836_v14 = vunpack.c.l.b16 %v2707_v30  ;;  %v2721_v31 = vrot.slane %v2719_v23, 4  ;;  %v2735_v23 = vor.u32 %v2734_v9, %v2730_v59  ;;  %v8154_v9 = vld [vmem:[%s9075_s21 + $0x84] sm:$0xff] }
 0x279   : > { %v2203_v20 = vadd.f32 %v2126_v44, %v12412_v26 }
 0x27a   : > { %12411 = vst [vmem:[#allocation19_spill] sm:$0xff] %v9456_v4  ;;  %v9470_v53 = vpack.c.b16 %v2837_v28, %v2836_v14  ;;  %v2736_v21 = vrot.slane %v2735_v23, 4  ;;  %v2411_v14 = vld [vmem:[%s9075_s21 + $0xa0] sm:$0xf] }
 0x27b   : > { %v9464_v16 = vadd.f32 %v2264_v49, %v2203_v20  ;;  %v2725_v49 = vor.u32 %v2724_v10, %v2721_v31  ;;  %v2740_v10 = vrot.slane %v2738_v58, 5  ;;  %v2752_v58 = vshll.u32 %v2411_v14, 16 }
 0x27c   : > { %7744 = vmatmul.msk.bf16.gmra.mxu2 %vm798_vm3, %v8153_v42  ;;  %12415 = vst [vmem:[#allocation23_spill] sm:$0xff] %v9470_v53  ;;  %v12417_v42 = vld [vmem:[#allocation11_spill] sm:$0xff] }
 0x27d   : > { %12413 = vst [vmem:[#allocation34_spill] sm:$0xff] %v9464_v16  ;;  %v2741_v23 = vsel %vm8383_vm7, %v2736_v21, %v2740_v10  ;;  %v2745_v16 = vrot.slane %v2743_v34, 4  ;;  %v12425_v10 = vld [vmem:[#allocation35_spill] sm:$0xff] }
 0x27e   : > { %v2269_v48 = vpop.f32.mrf.mxu0 }
 0x27f   : > { %v3156_v4 = vpop.f32.mrf.mxu2  ;;  %v2941_v30 = vpop.f32.mrf.mxu1 }
 0x280   : > { %v2128_v44 = vpop.f32.mrf.mxu3  ;;  %v9468_v26 = vadd.f32 %v3156_v4, %v2936_v39  ;;  %v2726_v39 = vrot.slane %v2725_v49, 4  ;;  %v12419_v4 = vld [vmem:[#allocation4_spill] sm:$0xff] }
 0x281   : > { %v2204_v40 = vadd.f32 %v2128_v44, %v12416_v63  ;;  %7648 = vmatmul.msk.bf16.gmra.mxu0 %vm798_vm3, %v12417_v42  ;;  %v2746_v63 = vshll.u32 %v2410_v37, 16  ;;  %v12421_v49 = vld [vmem:[#allocation8_spill] sm:$0xff] }
 0x282   : > { %12414 = vst [vmem:[#allocation21_spill] sm:$0xff] %v9468_v26  ;;  %7665 = vmatmul.msk.bf16.gmra.mxu1 %vm798_vm3, %v9470_v53  ;;  %v2412_v37 = vld [vmem:[%s9075_s21 + $0xa4] sm:$0x1]  ;;  %v8202_v53 = vld [vmem:[%s9075_s21 + $0x14] sm:$0x1] }
 0x283   : > { %v9475_v20 = vadd.f32 %v2266_v33, %v2204_v40  ;;  %v2731_v33 = vsel %vm8383_vm7, %v2726_v39, %v2730_v59  ;;  %v2754_v59 = vrot.slane %v2752_v58, 5 }
 0x285   : > { %12418 = vst [vmem:[#allocation25_spill] sm:$0xff] %v9475_v20  ;;  %7631 = vmatmul.msk.bf16.gmra.mxu3 %vm798_vm3, %v12419_v4  ;;  %v2756_v4 = vshrl.u32 %v2411_v14, 16 }
 0x286   : > { %v2271_v22 = vpop.f32.mrf.mxu0 }
 0x287   : > { %v3158_v28 = vpop.f32.mrf.mxu2  ;;  %v2943_v42 = vpop.f32.mrf.mxu1  ;;  %v2758_v39 = vrot.slane %v2756_v4, 4  ;;  %v2414_v4 = vld [vmem:[%s9075_s21 + $0xac] sm:$0xf] }
 0x288   : > { %v2131_v31 = vpop.f32.mrf.mxu3  ;;  %v9483_v44 = vadd.f32 %v3158_v28, %v2938_v35  ;;  %v2838_v35 = vunpack.c.l.b16 %v2731_v33  ;;  %v2839_v28 = vunpack.c.l.b16 %v2741_v23 }
 0x289   : > { %v2205_v40 = vadd.f32 %v2131_v31, %v12421_v49  ;;  %v2759_v34 = vor.u32 %v2758_v39, %v2754_v59  ;;  %v9513_v39 = vld [vmem:[%s9075_s21 + $0x90] sm:$0xff] }
 0x28a   : > { %12420 = vst [vmem:[#allocation16_spill] sm:$0xff] %v9483_v44  ;;  %v2748_v44 = vrot.slane %v2746_v63, 5  ;;  %v9497_v21 = vpack.c.b16 %v2839_v28, %v2838_v35  ;;  %v2762_v63 = vshll.u32 %v2412_v37, 16 }
 0x28b   : > { %v9491_v20 = vadd.f32 %v2269_v48, %v2205_v40  ;;  %v2760_v23 = vrot.slane %v2759_v34, 4  ;;  %12430 = vst [vmem:[#allocation11_spill] sm:$0xff] %v9513_v39 }
 0x28c   : > { %7745 = vmatmul.msk.bf16.gmra.mxu2 %vm798_vm3, %v8154_v9  ;;  %12424 = vst [vmem:[#allocation28_spill] sm:$0xff] %v9497_v21  ;;  %v2749_v48 = vor.u32 %v2748_v44, %v2745_v16  ;;  %v12426_v9 = vld [vmem:[#allocation20_spill] sm:$0xff]  ;;  %v2764_v16 = vrot.slane %v2762_v63, 5  ;;  %v2413_v44 = vld [vmem:[%s9075_s21 + $0xa8] sm:$0xf]  ;;  %v2776_v63 = vshll.u32 %v2414_v4, 16 }
 0x28d   : > { %12422 = vst [vmem:[#allocation18_spill] sm:$0xff] %v9491_v20  ;;  %v2767_v37 = vshrl.u32 %v2413_v44, 16 }
 0x28e   : > { %v2274_v26 = vpop.f32.mrf.mxu0  ;;  %v2765_v34 = vsel %vm8383_vm7, %v2760_v23, %v2764_v16 }
 0x28f   : > { %v3161_v25 = vpop.f32.mrf.mxu2  ;;  %v2946_v33 = vpop.f32.mrf.mxu1  ;;  %v2769_v20 = vrot.slane %v2767_v37, 4 }
 0x290   : > { %v2133_v31 = vpop.f32.mrf.mxu3  ;;  %v9495_v49 = vadd.f32 %v3161_v25, %v2941_v30  ;;  %v2750_v25 = vrot.slane %v2749_v48, 4  ;;  %v12428_v30 = vld [vmem:[#allocation5_spill] sm:$0xff]  ;;  %v2770_v48 = vshll.u32 %v2413_v44, 16 }
 0x291   : > { %v2206_v14 = vadd.f32 %v2133_v31, %v12425_v10  ;;  %7649 = vmatmul.msk.bf16.gmra.mxu0 %vm798_vm3, %v12426_v9  ;;  %v12431_v10 = vld [vmem:[#allocation10_spill] sm:$0xff] }
 0x292   : > { %12423 = vst [vmem:[#allocation27_spill] sm:$0xff] %v9495_v49  ;;  %7666 = vmatmul.msk.bf16.gmra.mxu1 %vm798_vm3, %v9497_v21  ;;  %v9525_v49 = vld [vmem:[%s9075_s21 + $0xb0] sm:$0x1] }
 0x293   : > { %v9502_v40 = vadd.f32 %v2271_v22, %v2206_v14  ;;  %v2755_v22 = vsel %vm8383_vm7, %v2750_v25, %v2754_v59  ;;  %v2772_v59 = vrot.slane %v2770_v48, 5  ;;  %v2778_v25 = vrot.slane %v2776_v63, 5  ;;  %12433 = vst [vmem:[#allocation8_spill] sm:$0xff] %v9525_v49 }
 0x295   : > { %12427 = vst [vmem:[#allocation22_spill] sm:$0xff] %v9502_v40  ;;  %7632 = vmatmul.msk.bf16.gmra.mxu3 %vm798_vm3, %v12428_v30  ;;  %v2780_v30 = vshrl.u32 %v2414_v4, 16  ;;  %v2773_v16 = vor.u32 %v2772_v59, %v2769_v20  ;;  %v12436_v4 = vld [vmem:[#allocation36_spill] sm:$0xff] }
 0x296   : > { %v2276_v58 = vpop.f32.mrf.mxu0 }
 0x297   : > { %v3163_v35 = vpop.f32.mrf.mxu2  ;;  %v2948_v9 = vpop.f32.mrf.mxu1 }
 0x298   : > { %v2136_v28 = vpop.f32.mrf.mxu3  ;;  %v9510_v31 = vadd.f32 %v3163_v35, %v2943_v42  ;;  %v2840_v42 = vunpack.c.l.b16 %v2755_v22  ;;  %v2841_v35 = vunpack.c.l.b16 %v2765_v34  ;;  %v12437_v22 = vld [vmem:[#allocation26_spill] sm:$0xff]  ;;  %v2786_v34 = vshll.u32 %v9525_v49, 16 }
 0x299   : > { %v2207_v14 = vadd.f32 %v2136_v28, %v12431_v10 }
 0x29a   : > { %12429 = vst [vmem:[#allocation24_spill] sm:$0xff] %v9510_v31  ;;  %v2782_v31 = vrot.slane %v2780_v30, 4  ;;  %v12439_v30 = vld [vmem:[#allocation6_spill] sm:$0xff] }
 0x29b   : > { %v9520_v40 = vadd.f32 %v2274_v26, %v2207_v14  ;;  %v9529_v26 = vpack.c.b16 %v2841_v35, %v2840_v42  ;;  %v2788_v42 = vrot.slane %v2786_v34, 5  ;;  %v2416_v35 = vld [vmem:[%s9075_s21 + $0xb4] sm:$0xf] }
 0x29c   : > { %7746 = vmatmul.msk.bf16.gmra.mxu2 %vm798_vm3, %v9513_v39  ;;  %v2783_v48 = vor.u32 %v2782_v31, %v2778_v25  ;;  %v9546_v31 = vld [vmem:[%s9075_s21 + $0x9c] sm:$0xff] }
 0x29d   : > { %12432 = vst [vmem:[#allocation4_spill] sm:$0xff] %v9520_v40  ;;  %v9558_v39 = vld [vmem:[%s9075_s21 + $0xbc] sm:$0x1] }
 0x29e   : > { %v2279_v44 = vpop.f32.mrf.mxu0  ;;  %12435 = vst [vmem:[#allocation20_spill] sm:$0xff] %v9529_v26  ;;  %v2784_v20 = vrot.slane %v2783_v48, 4 }
 0x29f   : > { %v3166_v28 = vpop.f32.mrf.mxu2  ;;  %v2951_v37 = vpop.f32.mrf.mxu1  ;;  %12441 = vst [vmem:[#allocation36_spill] sm:$0xff] %v9546_v31 }
 0x2a0   : > { %v2138_v10 = vpop.f32.mrf.mxu3  ;;  %v9527_v23 = vadd.f32 %v3166_v28, %v2946_v33  ;;  %v2774_v33 = vrot.slane %v2773_v16, 4  ;;  %v2417_v28 = vld [vmem:[%s9075_s21 + $0xb8] sm:$0xf]  ;;  %v2794_v16 = vshll.u32 %v2416_v35, 16  ;;  %v2789_v48 = vsel %vm8383_vm7, %v2784_v20, %v2788_v42  ;;  %12444 = vst [vmem:[#allocation6_spill] sm:$0xff] %v9558_v39 }
 0x2a1   : > { %v2208_v14 = vadd.f32 %v2138_v10, %v12436_v4  ;;  %7650 = vmatmul.msk.bf16.gmra.mxu0 %vm798_vm3, %v12437_v22  ;;  %v2800_v34 = vshll.u32 %v2417_v28, 16 }
 0x2a2   : > { %12434 = vst [vmem:[#allocation35_spill] sm:$0xff] %v9527_v23  ;;  %7667 = vmatmul.msk.bf16.gmra.mxu1 %vm798_vm3, %v9529_v26  ;;  %v2804_v23 = vshrl.u32 %v2417_v28, 16 }
 0x2a3   : > { %v9535_v63 = vadd.f32 %v2276_v58, %v2208_v14  ;;  %v2779_v58 = vsel %vm8383_vm7, %v2774_v33, %v2778_v25  ;;  %v2791_v14 = vshrl.u32 %v2416_v35, 16  ;;  %v2796_v25 = vrot.slane %v2794_v16, 5 }
 0x2a4   : > { %v2802_v33 = vrot.slane %v2800_v34, 5  ;;  %v2806_v26 = vrot.slane %v2804_v23, 4  ;;  %v2810_v16 = vshll.u32 %v9558_v39, 16 }
 0x2a5   : > { %12438 = vst [vmem:[#allocation5_spill] sm:$0xff] %v9535_v63  ;;  %7633 = vmatmul.msk.bf16.gmra.mxu3 %vm798_vm3, %v12439_v30  ;;  %v12442_v63 = vld [vmem:[#allocation13_spill] sm:$0xff] }
 0x2a6   : > { %v2281_v59 = vpop.f32.mrf.mxu0  ;;  %v2807_v23 = vor.u32 %v2806_v26, %v2802_v33  ;;  %v2812_v34 = vrot.slane %v2810_v16, 5  ;;  %v9579_v26 = vld [vmem:[%s9075_s21 + $0xa8] sm:$0xff] }
 0x2a7   : > { %v3168_v10 = vpop.f32.mrf.mxu2  ;;  %v2953_v30 = vpop.f32.mrf.mxu1  ;;  %12451 = vst [vmem:[#allocation39_spill] sm:$0xff] %v9579_v26 }
 0x2a8   : > { %v2141_v4 = vpop.f32.mrf.mxu3  ;;  %v9543_v22 = vadd.f32 %v3168_v10, %v2948_v9  ;;  %v2842_v9 = vunpack.c.l.b16 %v2779_v58  ;;  %v2843_v10 = vunpack.c.l.b16 %v2789_v48  ;;  %v12448_v58 = vld [vmem:[#allocation29_spill] sm:$0xff] }
 0x2a9   : > { %v2209_v40 = vadd.f32 %v2141_v4, %v12442_v63 }
 0x2aa   : > { %12440 = vst [vmem:[#allocation10_spill] sm:$0xff] %v9543_v22  ;;  %v2793_v22 = vrot.slane %v2791_v14, 4  ;;  %v9562_v42 = vpack.c.b16 %v2843_v10, %v2842_v9  ;;  %v351_v10 = vld [vmem:[%s8353_s12 + $0xcc] sm:$0xf] }
 0x2ab   : > { %v9553_v49 = vadd.f32 %v2279_v44, %v2209_v40  ;;  %v12447_v44 = vld [vmem:[#allocation37_spill] sm:$0xff] }
 0x2ac   : > { %7747 = vmatmul.msk.bf16.gmra.mxu2 %vm798_vm3, %v9546_v31  ;;  %12446 = vst [vmem:[#allocation38_spill] sm:$0xff] %v9562_v42  ;;  %v2797_v40 = vor.u32 %v2796_v25, %v2793_v22  ;;  %v2808_v22 = vrot.slane %v2807_v23, 4  ;;  %v2079_v23 = vshll.u32 %v351_v10, 16 }
 0x2ad   : > { %12443 = vst [vmem:[#allocation26_spill] sm:$0xff] %v9553_v49 }
 0x2ae   : > { %v2284_v35 = vpop.f32.mrf.mxu0 }
 0x2af   : > { %v3171_v63 = vpop.f32.mrf.mxu2  ;;  %v2956_v14 = vpop.f32.mrf.mxu1 }
 0x2b0   : > { %v2143_v4 = vpop.f32.mrf.mxu3  ;;  %v9560_v20 = vadd.f32 %v3171_v63, %v2951_v37  ;;  %v2798_v37 = vrot.slane %v2797_v40, 4  ;;  %v352_v63 = vld [vmem:[%s8353_s12 + $0xd0] sm:$0xf] }
 0x2b1   : > { %v2210_v28 = vadd.f32 %v2143_v4, %v12447_v44  ;;  %7651 = vmatmul.msk.bf16.gmra.mxu0 %vm798_vm3, %v12448_v58  ;;  %v2076_v58 = vshrl.u32 %v351_v10, 16  ;;  %v2085_v16 = vshll.u32 %v352_v63, 16  ;;  %v2236_v39 = vrot.slane %v352_v63, 5 }
 0x2b2   : > { %12445 = vst [vmem:[#allocation13_spill] sm:$0xff] %v9560_v20  ;;  %7668 = vmatmul.msk.bf16.gmra.mxu1 %vm798_vm3, %v9562_v42 }
 0x2b3   : > { %v9568_v48 = vadd.f32 %v2281_v59, %v2210_v28  ;;  %v2803_v59 = vsel %vm8383_vm7, %v2798_v37, %v2802_v33  ;;  %v2081_v33 = vrot.slane %v2079_v23, 5 }
 0x2b5   : > { %12449 = vst [vmem:[#allocation37_spill] sm:$0xff] %v9568_v48  ;;  %7634 = vmatmul.msk.bf16.gmra.mxu3 %vm798_vm3, %v12382_v29  ;;  %v2813_v29 = vsel %vm8383_vm7, %v2808_v22, %v2812_v34  ;;  %v2089_v48 = vshrl.u32 %v352_v63, 16  ;;  %v8200_v22 = vld [vmem:[%s9075_s21 + $0x10] sm:$0xf]  ;;  %v7637_v63 = vrot.slane %v351_v10, 9 }
 0x2b6   : > { %v2286_v9 = vpop.f32.mrf.mxu0  ;;  %v3251_v34 = vrot.slane %v8200_v22, 5  ;;  %v8201_v22 = vld [vmem:[%s9075_s21 + $0xc] sm:$0xf] }
 0x2b7   : > { %v3173_v25 = vpop.f32.mrf.mxu2  ;;  %v2958_v28 = vpop.f32.mrf.mxu1  ;;  %v2091_v20 = vrot.slane %v2089_v48, 4 }
 0x2b8   : > { %v2146_v4 = vpop.f32.mrf.mxu3  ;;  %v9576_v44 = vadd.f32 %v3173_v25, %v2953_v30  ;;  %v2844_v30 = vunpack.c.l.b16 %v2803_v59  ;;  %v2845_v25 = vunpack.c.l.b16 %v2813_v29  ;;  %v3253_v21 = vrot.slane %v3251_v34, 4 }
 0x2b9   : > { %v2211_v40 = vadd.f32 %v2146_v4, %v9107_v45  ;;  %v353_v45 = vld [vmem:[%s8353_s12 + $0xd4] sm:$0x1]  ;;  %v2087_v4 = vrot.slane %v2085_v16, 5  ;;  %v2238_v16 = vrot.slane %v2236_v39, 4 }
 0x2ba   : > { %12450 = vst [vmem:[#allocation29_spill] sm:$0xff] %v9576_v44  ;;  %v2078_v44 = vrot.slane %v2076_v58, 4  ;;  %v2095_v23 = vshll.u32 %v353_v45, 16 }
 0x2bb   : > { %v9586_v49 = vadd.f32 %v2284_v35, %v2211_v40  ;;  %v9594_v40 = vpack.c.b16 %v2845_v25, %v2844_v30  ;;  %v2092_v48 = vor.u32 %v2091_v20, %v2087_v4 }
 0x2bc   : > { %7748 = vmatmul.msk.bf16.gmra.mxu2 %vm798_vm3, %v9579_v26  ;;  %v2082_v58 = vor.u32 %v2081_v33, %v2078_v44  ;;  %v7751_v26 = vrot.slane %v8201_v22, 9 }
 0x2bd   : > { %12452 = vst [vmem:[#allocation40_spill] sm:$0xff] %v9586_v49  ;;  %v2239_v49 = vrot.slane %v353_v45, 5  ;;  %v2093_v10 = vrot.slane %v2092_v48, 4 }
 0x2be   : > { %v2289_v37 = vpop.f32.mrf.mxu0  ;;  %v3252_v33 = vsel %vm8355_vm4, %v7751_v26, %v3251_v34 }
 0x2bf   : > { %v3176_v42 = vpop.f32.mrf.mxu2  ;;  %v2961_v29 = vpop.f32.mrf.mxu1 }
 0x2c0   : > { %v2148_v31 = vpop.f32.mrf.mxu3  ;;  %v9592_v35 = vadd.f32 %v3176_v42, %v2956_v14  ;;  %v3254_v42 = vrot.slane %v8202_v53, 5  ;;  %v2237_v53 = vsel %vm8355_vm4, %v7637_v63, %v2236_v39  ;;  %v3356_v39 = vunpack.c.l.b16 %v3252_v33 }
 0x2c1   : > { %v2212_v59 = vadd.f32 %v2148_v31, %v9133_v36  ;;  %7652 = vmatmul.msk.bf16.gmra.mxu0 %vm798_vm3, %v9109_v13  ;;  %v2083_v13 = vrot.slane %v2082_v58, 4  ;;  %v2097_v36 = vrot.slane %v2095_v23, 5  ;;  %v2428_v31 = vld [vmem:[%s12209_s3 + $0xc] sm:$0xf]  ;;  %v9622_v23 = vld [vmem:[%s9075_s21 + $0xb4] sm:$0xff] }
 0x2c2   : > { %7669 = vmatmul.msk.bf16.gmra.mxu1 %vm798_vm3, %v9594_v40  ;;  %v4015_v30 = vsel %vm847_vm0, %v2428_v31, 0  ;;  %v3255_v45 = vsel %vm8355_vm4, %v3253_v21, %v3254_v42  ;;  %v2429_v42 = vld [vmem:[%s12209_s3 + $0x10] sm:$0x3] }
 0x2c3   : > { %v9601_v14 = vadd.f32 %v2286_v9, %v2212_v59  ;;  %v2240_v9 = vsel %vm8355_vm4, %v2238_v16, %v2239_v49  ;;  %4024 = vmatpush.bf16.msra.mxu3 %v4015_v30  ;;  %v3357_v48 = vunpack.c.l.b16 %v3255_v45  ;;  %v2241_v16 = vunpack.c.l.b16 %v2237_v53 }
 0x2c4   : > { %v2242_v22 = vunpack.c.l.b16 %v2240_v9  ;;  %v2098_v26 = vsel %vm8383_vm7, %v2093_v10, %v2097_v36 }
 0x2c5   : > { %12453 = vst [vmem:[#allocation41_spill] sm:$0xff] %v9601_v14  ;;  %7635 = vmatmul.msk.bf16.gmra.mxu3 %vm798_vm3, %v9149_v47  ;;  %v4166_v47 = vunpack.c.l.b16 %v2428_v31  ;;  %v2088_v31 = vsel %vm8383_vm7, %v2083_v13, %v2087_v4  ;;  %v9629_v34 = vpack.c.b16 %v3357_v48, %v3356_v39  ;;  %v2100_v4 = vunpack.c.l.b16 %v2098_v26 }
 0x2c6   : > { %v2291_v20 = vpop.f32.mrf.mxu0  ;;  %v2099_v53 = vunpack.c.l.b16 %v2088_v31  ;;  %v2243_v13 = vpack.c.b16 %v2242_v22, %v2241_v16 }
 0x2c7   : > { %v3178_v25 = vpop.f32.mrf.mxu2  ;;  %v2963_v63 = vpop.f32.mrf.mxu1 }
 0x2c8   : > { %v2151_v59 = vpop.f32.mrf.mxu3  ;;  %v9619_v58 = vadd.f32 %v3178_v25, %v2958_v28  ;;  %v4167_v28 = vpack.c.b16 %v4166_v47, %v4166_v47  ;;  %v2101_v33 = vpack.c.b16 %v2100_v4, %v2099_v53  ;;  %v8206_v53 = vld [vmem:[%s9075_s21 + $0x1c] sm:$0xf] }
 0x2c9   : > { %v2213_v49 = vadd.f32 %v2151_v59, %v9155_v7  ;;  %v4311_v7 = vsel %vm847_vm0, %v2429_v42, 0  ;;  %v8203_v59 = vld [vmem:[%s9075_s21 + $0x4] sm:$0xf]  ;;  %v3258_v4 = vrot.slane %v8206_v53, 5 }
 0x2ca   : > { %v4168_v9 = vrot.slane %v4167_v28, 2  ;;  %4320 = vmatpush.bf16.msra.mxu1 %v4311_v7  ;;  %v3244_v39 = vrot.slane %v8203_v59, 5 }
 0x2cb   : > { %v9631_v21 = vadd.f32 %v2289_v37, %v2213_v49  ;;  %v8204_v49 = vld [vmem:[%s9075_s21] sm:$0xf] }
 0x2cc   : > { %7749 = vmatmul.msk.bf16.gmra.mxu2 %vm798_vm3, %v9622_v23  ;;  %v4173_v10 = vsel %vm847_vm0, %v4168_v9, 0  ;;  %v3246_v22 = vrot.slane %v3244_v39, 4  ;;  %vm4687_vm0 = vsmask.f32 4368 }
 0x2cd   : > { %12455 = vst [vmem:[#allocation42_spill] sm:$0xff] %v9631_v21  ;;  %4182 = vmatpush.bf16.msra.mxu0 %v4173_v10  ;;  %v8207_v10 = vld [vmem:[%s9075_s21 + $0x18] sm:$0xf]  ;;  %v8232_v21 = vld [vmem:[%s9075_s21 + $0x68] sm:$0x1]  ;;  %vm10416_vm1 = vmor %vm4686_vm15, %vm4687_vm0 }
 0x2ce   : > { %v2294_v36 = vpop.f32.mrf.mxu0  ;;  %v3303_v14 = vrot.slane %v8232_v21, 5 }
 0x2cf   : > { %v3181_v37 = vpop.f32.mrf.mxu2  ;;  %v2966_v45 = vpop.f32.mrf.mxu1 }
 0x2d0   : > { %v2153_v30 = vpop.f32.mrf.mxu3  ;;  %v9640_v25 = vadd.f32 %v3181_v37, %v2961_v29  ;;  %v7750_v29 = vrot.slane %v8204_v49, 9 }
 0x2d1   : > { %v2214_v47 = vadd.f32 %v2153_v30, %v9168_v1  ;;  %7653 = vmatmul.msk.bf16.gmra.mxu0 %vm798_vm3, %v2243_v13  ;;  %v8205_v1 = vld [vmem:[%s9075_s21 + $0x8] sm:$0x1]  ;;  %v7752_v30 = vrot.slane %v8207_v10, 9 }
 0x2d2   : > { %7802 = vmatmul.msk.bf16.vlgmr.msrb.gmra.mxu1 %vm798_vm3, %v9183_v43  ;;  %v3247_v31 = vrot.slane %v8205_v1, 5  ;;  %v3245_v43 = vsel %vm8355_vm4, %v7750_v29, %v3244_v39  ;;  %v8210_v10 = vld [vmem:[%s9075_s21 + $0x28] sm:$0xf] }
 0x2d3   : > { %v9645_v48 = vadd.f32 %v2291_v20, %v2214_v47  ;;  %v3354_v37 = vunpack.c.l.b16 %v3245_v43  ;;  %v8208_v47 = vld [vmem:[%s9075_s21 + $0x20] sm:$0x1] }
 0x2d4   : > { %v3248_v13 = vsel %vm8355_vm4, %v3246_v22, %v3247_v31 }
 0x2d5   : > { %12456 = vst [vmem:[#allocation43_spill] sm:$0xff] %v9645_v48  ;;  %7636 = vmatmul.msk.bf16.gmra.mxu3 %vm798_vm3, %v2101_v33  ;;  %v3261_v33 = vrot.slane %v8208_v47, 5  ;;  %v8211_v47 = vld [vmem:[%s9075_s21 + $0x24] sm:$0xf] }
 0x2d6   : > { %v2296_v16 = vpop.f32.mrf.mxu0 }
 0x2d7   : > { %v3183_v26 = vpop.f32.mrf.mxu2  ;;  %v2968_v7 = vpop.f32.mrf.mxu1 }
 0x2d8   : > { %v2156_v28 = vpop.f32.mrf.mxu3  ;;  %v9652_v42 = vadd.f32 %v3183_v26, %v2963_v63  ;;  %v3355_v63 = vunpack.c.l.b16 %v3248_v13  ;;  %v3259_v26 = vsel %vm8355_vm4, %v7752_v30, %v3258_v4  ;;  %v3265_v30 = vrot.slane %v8210_v10, 5 }
 0x2d9   : > { %v2215_v20 = vadd.f32 %v2156_v28, %v9181_v57  ;;  %v3260_v57 = vrot.slane %v3258_v4, 4 }
 0x2da   : > { %v3386_v1 = vpack.c.b16 %v3355_v63, %v3354_v37 }
 0x2db   : > { %v9660_v9 = vadd.f32 %v2294_v36, %v2215_v20  ;;  %v8209_v36 = vld [vmem:[%s9075_s21 + $0xc] sm:$0xff]  ;;  %v3262_v28 = vsel %vm8355_vm4, %v3260_v57, %v3261_v33  ;;  %v7753_v33 = vrot.slane %v8211_v47, 9 }
 0x2dc   : > { %7819 = vmatmul.msk.bf16.vlgmr.msrb.gmra.mxu2 %vm798_vm3, %v9629_v34 }
 0x2dd   : > { %12457 = vst [vmem:[#allocation44_spill] sm:$0xff] %v9660_v9  ;;  %v8228_v9 = vld [vmem:[%s9075_s21 + $0x5c] sm:$0x1] }
 0x2de   : > { %v2299_v59 = vpop.f32.mrf.mxu0  ;;  %v3296_v48 = vrot.slane %v8228_v9, 5 }
 0x2df   : > { %v3186_v39 = vpop.f32.mrf.mxu2  ;;  %v2971_v31 = vpop.f32.mrf.mxu1 }
 0x2e0   : > { %v2158_v49 = vpop.f32.mrf.mxu3  ;;  %v9666_v29 = vadd.f32 %v3186_v39, %v2966_v45  ;;  %v3358_v45 = vunpack.c.l.b16 %v3259_v26  ;;  %v3267_v39 = vrot.slane %v3265_v30, 4 }
 0x2e1   : > { %v2216_v22 = vadd.f32 %v2158_v49, %v9197_v19  ;;  %7786 = vmatmul.msk.bf16.vlgmr.msrb.gmra.mxu0 %vm798_vm3, %v8209_v36  ;;  %v3359_v19 = vunpack.c.l.b16 %v3262_v28  ;;  %v8212_v49 = vld [vmem:[%s9075_s21 + $0x2c] sm:$0x1]  ;;  %v9696_v28 = vld [vmem:[%s9075_s21 + $0x18] sm:$0xff] }
 0x2e2   : > { %7803 = vmatmul.msk.bf16.gmra.mxu1 %vm798_vm3, %v9212_v3 }
 0x2e3   : > { %v9675_v20 = vadd.f32 %v2296_v16, %v2216_v22  ;;  %v9682_v4 = vpack.c.b16 %v3359_v19, %v3358_v45  ;;  %v3268_v22 = vrot.slane %v8212_v49, 5  ;;  %v3266_v45 = vsel %vm8355_vm4, %v7753_v33, %v3265_v30 }
 0x2e5   : > { %12458 = vst [vmem:[#allocation45_spill] sm:$0xff] %v9675_v20  ;;  %7766 = vmatmul.msk.bf16.vlgmr.msrb.gmra.mxu3 %vm798_vm3, %v3386_v1  ;;  %v3269_v19 = vsel %vm8355_vm4, %v3267_v39, %v3268_v22  ;;  %v8214_v39 = vld [vmem:[%s9075_s21 + $0x34] sm:$0xf] }
 0x2e6   : > { %v2301_v43 = vpop.f32.mrf.mxu0  ;;  %v3272_v49 = vrot.slane %v8214_v39, 5 }
 0x2e7   : > { %v3188_v53 = vpop.f32.mrf.mxu2  ;;  %v2973_v16 = vpop.f32.mrf.mxu1 }
 0x2e8   : > { %v2161_v13 = vpop.f32.mrf.mxu3  ;;  %v9680_v37 = vadd.f32 %v3188_v53, %v2968_v7 }
 0x2e9   : > { %v2217_v63 = vadd.f32 %v2161_v13, %v9210_v24 }
 0x2eb   : > { %v9686_v57 = vadd.f32 %v2299_v59, %v2217_v63 }
 0x2ec   : > { %7820 = vmatmul.msk.bf16.gmra.mxu2 %vm798_vm3, %v9682_v4 }
 0x2ed   : > { %12459 = vst [vmem:[#allocation46_spill] sm:$0xff] %v9686_v57  ;;  %v8224_v57 = vld [vmem:[%s9075_s21 + $0x50] sm:$0x1] }
 0x2ee   : > { %v2304_v7 = vpop.f32.mrf.mxu0  ;;  %v3289_v20 = vrot.slane %v8224_v57, 5 }
 0x2ef   : > { %v3191_v1 = vpop.f32.mrf.mxu2  ;;  %v2976_v59 = vpop.f32.mrf.mxu1 }
 0x2f0   : > { %v2163_v36 = vpop.f32.mrf.mxu3  ;;  %v9692_v26 = vadd.f32 %v3191_v1, %v2971_v31  ;;  %v3361_v31 = vunpack.c.l.b16 %v3269_v19  ;;  %v8215_v1 = vld [vmem:[%s9075_s21 + $0x30] sm:$0xf] }
 0x2f1   : > { %v2218_v24 = vadd.f32 %v2163_v36, %v9226_v38  ;;  %7787 = vmatmul.msk.bf16.gmra.mxu0 %vm798_vm3, %v9696_v28  ;;  %v3360_v38 = vunpack.c.l.b16 %v3266_v45  ;;  %v3274_v36 = vrot.slane %v3272_v49, 4 }
 0x2f2   : > { %7804 = vmatmul.msk.bf16.gmra.mxu1 %vm798_vm3, %v9241_v0 }
 0x2f3   : > { %v9704_v53 = vadd.f32 %v2301_v43, %v2218_v24  ;;  %v9712_v30 = vpack.c.b16 %v3361_v31, %v3360_v38  ;;  %v8216_v24 = vld [vmem:[%s9075_s21 + $0x38] sm:$0x1] }
 0x2f4   : > { %v3275_v45 = vrot.slane %v8216_v24, 5 }
 0x2f5   : > { %12460 = vst [vmem:[#allocation47_spill] sm:$0xff] %v9704_v53  ;;  %7767 = vmatmul.msk.bf16.gmra.mxu3 %vm798_vm3, %v9629_v34  ;;  %v7754_v34 = vrot.slane %v8215_v1, 9 }
 0x2f6   : > { %v2306_v13 = vpop.f32.mrf.mxu0 }
 0x2f7   : > { %v3193_v63 = vpop.f32.mrf.mxu2  ;;  %v2978_v33 = vpop.f32.mrf.mxu1 }
 0x2f8   : > { %v2166_v10 = vpop.f32.mrf.mxu3  ;;  %v9710_v47 = vadd.f32 %v3193_v63, %v2973_v16  ;;  %v9726_v63 = vld [vmem:[%s9075_s21 + $0x24] sm:$0xff] }
 0x2f9   : > { %v2219_v43 = vadd.f32 %v2166_v10, %v9239_v12  ;;  %v3273_v10 = vsel %vm8355_vm4, %v7754_v34, %v3272_v49 }
 0x2fb   : > { %v9716_v22 = vadd.f32 %v2304_v7, %v2219_v43  ;;  %v3276_v43 = vsel %vm8355_vm4, %v3274_v36, %v3275_v45  ;;  %v8218_v36 = vld [vmem:[%s9075_s21 + $0x40] sm:$0xf] }
 0x2fc   : > { %7821 = vmatmul.msk.bf16.gmra.mxu2 %vm798_vm3, %v9712_v30  ;;  %v3279_v45 = vrot.slane %v8218_v36, 5 }
 0x2fd   : > { %12461 = vst [vmem:[#allocation48_spill] sm:$0xff] %v9716_v22  ;;  %v8220_v22 = vld [vmem:[%s9075_s21 + $0x44] sm:$0x1] }
 0x2fe   : > { %v2309_v16 = vpop.f32.mrf.mxu0  ;;  %v3282_v53 = vrot.slane %v8220_v22, 5 }
 0x2ff   : > { %v3196_v19 = vpop.f32.mrf.mxu2  ;;  %v2981_v7 = vpop.f32.mrf.mxu1 }
 0x300   : > { %v2168_v38 = vpop.f32.mrf.mxu3  ;;  %v9722_v31 = vadd.f32 %v3196_v19, %v2976_v59  ;;  %v3363_v59 = vunpack.c.l.b16 %v3276_v43 }
 0x301   : > { %v2220_v12 = vadd.f32 %v2168_v38, %v9255_v32  ;;  %7788 = vmatmul.msk.bf16.gmra.mxu0 %vm798_vm3, %v9726_v63  ;;  %v3362_v32 = vunpack.c.l.b16 %v3273_v10  ;;  %v8219_v10 = vld [vmem:[%s9075_s21 + $0x3c] sm:$0xf] }
 0x302   : > { %7805 = vmatmul.msk.bf16.gmra.mxu1 %vm798_vm3, %v9270_v52  ;;  %v7755_v43 = vrot.slane %v8219_v10, 9 }
 0x303   : > { %v9734_v39 = vadd.f32 %v2306_v13, %v2220_v12  ;;  %v9742_v49 = vpack.c.b16 %v3363_v59, %v3362_v32 }
 0x305   : > { %12462 = vst [vmem:[#allocation49_spill] sm:$0xff] %v9734_v39  ;;  %7768 = vmatmul.msk.bf16.gmra.mxu3 %vm798_vm3, %v9682_v4  ;;  %v3281_v39 = vrot.slane %v3279_v45, 4 }
 0x306   : > { %v2311_v1 = vpop.f32.mrf.mxu0 }
 0x307   : > { %v3198_v24 = vpop.f32.mrf.mxu2  ;;  %v2983_v34 = vpop.f32.mrf.mxu1  ;;  %v3283_v22 = vsel %vm8355_vm4, %v3281_v39, %v3282_v53 }
 0x308   : > { %v2171_v19 = vpop.f32.mrf.mxu3  ;;  %v9740_v38 = vadd.f32 %v3198_v24, %v2978_v33 }
 0x309   : > { %v2221_v13 = vadd.f32 %v2171_v19, %v9268_v46  ;;  %v9756_v19 = vld [vmem:[%s9075_s21 + $0x30] sm:$0xff] }
 0x30b   : > { %v9746_v12 = vadd.f32 %v2309_v16, %v2221_v13  ;;  %v3280_v13 = vsel %vm8355_vm4, %v7755_v43, %v3279_v45 }
 0x30c   : > { %7822 = vmatmul.msk.bf16.gmra.mxu2 %vm798_vm3, %v9742_v49 }
 0x30d   : > { %12463 = vst [vmem:[#allocation50_spill] sm:$0xff] %v9746_v12 }
 0x30e   : > { %v2314_v33 = vpop.f32.mrf.mxu0 }
 0x30f   : > { %v3201_v24 = vpop.f32.mrf.mxu2  ;;  %v2986_v16 = vpop.f32.mrf.mxu1 }
 0x310   : > { %v2173_v32 = vpop.f32.mrf.mxu3  ;;  %v9752_v59 = vadd.f32 %v3201_v24, %v2981_v7  ;;  %v3365_v7 = vunpack.c.l.b16 %v3283_v22 }
 0x311   : > { %v2222_v46 = vadd.f32 %v2173_v32, %v9284_v17  ;;  %7789 = vmatmul.msk.bf16.gmra.mxu0 %vm798_vm3, %v9756_v19  ;;  %v3364_v17 = vunpack.c.l.b16 %v3280_v13  ;;  %v8223_v13 = vld [vmem:[%s9075_s21 + $0x48] sm:$0xf] }
 0x312   : > { %7806 = vmatmul.msk.bf16.gmra.mxu1 %vm798_vm3, %v9299_v56  ;;  %v7756_v22 = vrot.slane %v8223_v13, 9 }
 0x313   : > { %v9764_v36 = vadd.f32 %v2311_v1, %v2222_v46  ;;  %v9772_v45 = vpack.c.b16 %v3365_v7, %v3364_v17  ;;  %v8222_v1 = vld [vmem:[%s9075_s21 + $0x4c] sm:$0xf] }
 0x314   : > { %v3286_v43 = vrot.slane %v8222_v1, 5 }
 0x315   : > { %12464 = vst [vmem:[#allocation51_spill] sm:$0xff] %v9764_v36  ;;  %7769 = vmatmul.msk.bf16.gmra.mxu3 %vm798_vm3, %v9712_v30 }
 0x316   : > { %v2316_v10 = vpop.f32.mrf.mxu0  ;;  %v3288_v36 = vrot.slane %v3286_v43, 4 }
 0x317   : > { %v3203_v24 = vpop.f32.mrf.mxu2  ;;  %v2988_v39 = vpop.f32.mrf.mxu1 }
 0x318   : > { %v2176_v32 = vpop.f32.mrf.mxu3  ;;  %v9770_v12 = vadd.f32 %v3203_v24, %v2983_v34  ;;  %v3290_v57 = vsel %vm8355_vm4, %v3288_v36, %v3289_v20 }
 0x319   : > { %v2223_v53 = vadd.f32 %v2176_v32, %v9297_v18  ;;  %v9786_v32 = vld [vmem:[%s9075_s21 + $0x3c] sm:$0xff] }
 0x31b   : > { %v9776_v46 = vadd.f32 %v2314_v33, %v2223_v53  ;;  %v3287_v53 = vsel %vm8355_vm4, %v7756_v22, %v3286_v43 }
 0x31c   : > { %7823 = vmatmul.msk.bf16.gmra.mxu2 %vm798_vm3, %v9772_v45 }
 0x31d   : > { %12465 = vst [vmem:[#allocation52_spill] sm:$0xff] %v9776_v46 }
 0x31e   : > { %v2319_v34 = vpop.f32.mrf.mxu0 }
 0x31f   : > { %v3206_v24 = vpop.f32.mrf.mxu2  ;;  %v2991_v33 = vpop.f32.mrf.mxu1 }
 0x320   : > { %v2178_v17 = vpop.f32.mrf.mxu3  ;;  %v9782_v7 = vadd.f32 %v3206_v24, %v2986_v16  ;;  %v3367_v16 = vunpack.c.l.b16 %v3290_v57 }
 0x321   : > { %v2224_v18 = vadd.f32 %v2178_v17, %v9313_v50  ;;  %7790 = vmatmul.msk.bf16.gmra.mxu0 %vm798_vm3, %v9786_v32  ;;  %v3366_v50 = vunpack.c.l.b16 %v3287_v53  ;;  %v8227_v53 = vld [vmem:[%s9075_s21 + $0x54] sm:$0xf] }
 0x322   : > { %12466 = vst [vmem:[#allocation53_spill] sm:$0xff] %v9782_v7  ;;  %7807 = vmatmul.msk.bf16.gmra.mxu1 %vm798_vm3, %v9328_v8  ;;  %v7757_v57 = vrot.slane %v8227_v53, 9 }
 0x323   : > { %v9794_v1 = vadd.f32 %v2316_v10, %v2224_v18  ;;  %v9802_v43 = vpack.c.b16 %v3367_v16, %v3366_v50  ;;  %v8226_v10 = vld [vmem:[%s9075_s21 + $0x58] sm:$0xf] }
 0x324   : > { %v3293_v22 = vrot.slane %v8226_v10, 5 }
 0x325   : > { %12467 = vst [vmem:[#allocation54_spill] sm:$0xff] %v9794_v1  ;;  %7770 = vmatmul.msk.bf16.gmra.mxu3 %vm798_vm3, %v9742_v49 }
 0x326   : > { %v2321_v13 = vpop.f32.mrf.mxu0  ;;  %v3295_v1 = vrot.slane %v3293_v22, 4 }
 0x327   : > { %v3208_v24 = vpop.f32.mrf.mxu2  ;;  %v2993_v36 = vpop.f32.mrf.mxu1 }
 0x328   : > { %v2181_v17 = vpop.f32.mrf.mxu3  ;;  %v9800_v46 = vadd.f32 %v3208_v24, %v2988_v39  ;;  %v3297_v9 = vsel %vm8355_vm4, %v3295_v1, %v3296_v48 }
 0x329   : > { %v2225_v20 = vadd.f32 %v2181_v17, %v9326_v54  ;;  %v9816_v17 = vld [vmem:[%s9075_s21 + $0x48] sm:$0xff] }
 0x32a   : > { %12468 = vst [vmem:[#allocation55_spill] sm:$0xff] %v9800_v46  ;;  %v12520_v46 = vld [vmem:[#allocation6_spill] sm:$0xff] }
 0x32b   : > { %v9806_v18 = vadd.f32 %v2319_v34, %v2225_v20  ;;  %12471 = vst [vmem:[#allocation58_spill] sm:$0xff] %v9816_v17  ;;  %v3294_v20 = vsel %vm8355_vm4, %v7757_v57, %v3293_v22  ;;  %v3352_v7 = vrot.slane %v12520_v46, 5 }
 0x32c   : > { %7824 = vmatmul.msk.bf16.gmra.mxu2 %vm798_vm3, %v9802_v43 }
 0x32d   : > { %12469 = vst [vmem:[#allocation56_spill] sm:$0xff] %v9806_v18 }
 0x32e   : > { %v2324_v39 = vpop.f32.mrf.mxu0 }
 0x32f   : > { %v3211_v24 = vpop.f32.mrf.mxu2  ;;  %v2996_v34 = vpop.f32.mrf.mxu1 }
 0x330   : > { %v2183_v50 = vpop.f32.mrf.mxu3  ;;  %v9812_v16 = vadd.f32 %v3211_v24, %v2991_v33  ;;  %v3369_v33 = vunpack.c.l.b16 %v3297_v9 }
 0x331   : > { %v2226_v54 = vadd.f32 %v2183_v50, %v9342_v62  ;;  %7791 = vmatmul.msk.bf16.gmra.mxu0 %vm798_vm3, %v9816_v17  ;;  %v3368_v62 = vunpack.c.l.b16 %v3294_v20  ;;  %v8231_v20 = vld [vmem:[%s9075_s21 + $0x60] sm:$0xf] }
 0x332   : > { %12470 = vst [vmem:[#allocation57_spill] sm:$0xff] %v9812_v16  ;;  %7808 = vmatmul.msk.bf16.gmra.mxu1 %vm798_vm3, %v9357_v5  ;;  %v7758_v9 = vrot.slane %v8231_v20, 9  ;;  %v9962_v16 = vld [vmem:[%s9075_s21 + $0x84] sm:$0xff] }
 0x333   : > { %v9824_v10 = vadd.f32 %v2321_v13, %v2226_v54  ;;  %v9832_v22 = vpack.c.b16 %v3369_v33, %v3368_v62  ;;  %v8230_v13 = vld [vmem:[%s9075_s21 + $0x64] sm:$0xf] }
 0x334   : > { %v3300_v57 = vrot.slane %v8230_v13, 5 }
 0x335   : > { %12472 = vst [vmem:[#allocation59_spill] sm:$0xff] %v9824_v10  ;;  %7771 = vmatmul.msk.bf16.gmra.mxu3 %vm798_vm3, %v9772_v45 }
 0x336   : > { %v2326_v53 = vpop.f32.mrf.mxu0  ;;  %12474 = vst [vmem:[#allocation61_spill] sm:$0xff] %v9832_v22  ;;  %v3302_v10 = vrot.slane %v3300_v57, 4 }
 0x337   : > { %v3213_v24 = vpop.f32.mrf.mxu2  ;;  %v2998_v1 = vpop.f32.mrf.mxu1 }
 0x338   : > { %v2186_v50 = vpop.f32.mrf.mxu3  ;;  %v9830_v18 = vadd.f32 %v3213_v24, %v2993_v36  ;;  %v3304_v21 = vsel %vm8355_vm4, %v3302_v10, %v3303_v14 }
 0x339   : > { %v2227_v48 = vadd.f32 %v2186_v50, %v9355_v2  ;;  %v9846_v50 = vld [vmem:[%s9075_s21 + $0x54] sm:$0xff] }
 0x33a   : > { %12473 = vst [vmem:[#allocation60_spill] sm:$0xff] %v9830_v18  ;;  %v9936_v18 = vld [vmem:[%s9075_s21 + $0x78] sm:$0xff] }
 0x33b   : > { %v9836_v54 = vadd.f32 %v2324_v39, %v2227_v48  ;;  %12477 = vst [vmem:[#allocation64_spill] sm:$0xff] %v9846_v50  ;;  %v3301_v48 = vsel %vm8355_vm4, %v7758_v9, %v3300_v57 }
 0x33c   : > { %7825 = vmatmul.msk.bf16.gmra.mxu2 %vm798_vm3, %v9832_v22 }
 0x33d   : > { %12475 = vst [vmem:[#allocation62_spill] sm:$0xff] %v9836_v54 }
 0x33e   : > { %v2329_v36 = vpop.f32.mrf.mxu0 }
 0x33f   : > { %v3216_v24 = vpop.f32.mrf.mxu2  ;;  %v3001_v39 = vpop.f32.mrf.mxu1 }
 0x340   : > { %v2188_v62 = vpop.f32.mrf.mxu3  ;;  %v9842_v33 = vadd.f32 %v3216_v24, %v2996_v34  ;;  %v3371_v34 = vunpack.c.l.b16 %v3304_v21 }
 0x341   : > { %v2228_v2 = vadd.f32 %v2188_v62, %v9371_v60  ;;  %7792 = vmatmul.msk.bf16.gmra.mxu0 %vm798_vm3, %v9846_v50  ;;  %v3370_v60 = vunpack.c.l.b16 %v3301_v48  ;;  %v8235_v48 = vld [vmem:[%s9075_s21 + $0x6c] sm:$0xf]  ;;  %v8256_v50 = vld [vmem:[%s9075_s21 + $0xb4] sm:$0xf] }
 0x342   : > { %12476 = vst [vmem:[#allocation63_spill] sm:$0xff] %v9842_v33  ;;  %7809 = vmatmul.msk.bf16.gmra.mxu1 %vm798_vm3, %v9386_v6  ;;  %v7759_v21 = vrot.slane %v8235_v48, 9  ;;  %v8236_v33 = vld [vmem:[%s9075_s21 + $0x74] sm:$0x1] }
 0x343   : > { %v9854_v13 = vadd.f32 %v2326_v53, %v2228_v2  ;;  %v9862_v57 = vpack.c.b16 %v3371_v34, %v3370_v60  ;;  %v8234_v53 = vld [vmem:[%s9075_s21 + $0x70] sm:$0xf]  ;;  %v3310_v6 = vrot.slane %v8236_v33, 5 }
 0x344   : > { %v3307_v9 = vrot.slane %v8234_v53, 5 }
 0x345   : > { %12478 = vst [vmem:[#allocation65_spill] sm:$0xff] %v9854_v13  ;;  %7772 = vmatmul.msk.bf16.gmra.mxu3 %vm798_vm3, %v9802_v43 }
 0x346   : > { %v2331_v20 = vpop.f32.mrf.mxu0  ;;  %12480 = vst [vmem:[#allocation67_spill] sm:$0xff] %v9862_v57  ;;  %v3309_v13 = vrot.slane %v3307_v9, 4 }
 0x347   : > { %v3218_v24 = vpop.f32.mrf.mxu2  ;;  %v3003_v10 = vpop.f32.mrf.mxu1 }
 0x348   : > { %v2191_v62 = vpop.f32.mrf.mxu3  ;;  %v9860_v54 = vadd.f32 %v3218_v24, %v2998_v1  ;;  %v3311_v33 = vsel %vm8355_vm4, %v3309_v13, %v3310_v6 }
 0x349   : > { %v2229_v14 = vadd.f32 %v2191_v62, %v9384_v11  ;;  %v9876_v62 = vld [vmem:[%s9075_s21 + $0x60] sm:$0xff] }
 0x34a   : > { %12479 = vst [vmem:[#allocation66_spill] sm:$0xff] %v9860_v54  ;;  %v12493_v54 = vld [vmem:[#allocation14_spill] sm:$0xff] }
 0x34b   : > { %v9866_v2 = vadd.f32 %v2329_v36, %v2229_v14  ;;  %12483 = vst [vmem:[#allocation70_spill] sm:$0xff] %v9876_v62  ;;  %v3308_v14 = vsel %vm8355_vm4, %v7759_v21, %v3307_v9 }
 0x34c   : > { %7826 = vmatmul.msk.bf16.gmra.mxu2 %vm798_vm3, %v9862_v57  ;;  %12494 = vst [vmem:[#allocation14_spill] sm:$0xff] %v9936_v18 }
 0x34d   : > { %12481 = vst [vmem:[#allocation68_spill] sm:$0xff] %v9866_v2 }
 0x34e   : > { %v2334_v1 = vpop.f32.mrf.mxu0 }
 0x34f   : > { %v3221_v24 = vpop.f32.mrf.mxu2  ;;  %v3752_v36 = vpop.f32.mrf.mxu1 }
 0x350   : > { %v2193_v60 = vpop.f32.mrf.mxu3  ;;  %v9872_v34 = vadd.f32 %v3221_v24, %v3001_v39  ;;  %v3373_v39 = vunpack.c.l.b16 %v3311_v33 }
 0x351   : > { %v2230_v11 = vadd.f32 %v2193_v60, %v9398_v61  ;;  %7793 = vmatmul.msk.bf16.gmra.mxu0 %vm798_vm3, %v9876_v62  ;;  %v3372_v61 = vunpack.c.l.b16 %v3308_v14  ;;  %v8239_v14 = vld [vmem:[%s9075_s21 + $0x78] sm:$0xf] }
 0x352   : > { %12482 = vst [vmem:[#allocation69_spill] sm:$0xff] %v9872_v34  ;;  %7810 = vmatmul.msk.bf16.gmra.mxu1 %vm798_vm3, %v9413_v55  ;;  %v7760_v33 = vrot.slane %v8239_v14, 9  ;;  %v8240_v34 = vld [vmem:[%s9075_s21 + $0x80] sm:$0x1] }
 0x353   : > { %v9884_v53 = vadd.f32 %v2331_v20, %v2230_v11  ;;  %v9892_v9 = vpack.c.b16 %v3373_v39, %v3372_v61  ;;  %v8238_v20 = vld [vmem:[%s9075_s21 + $0x7c] sm:$0xf]  ;;  %v3317_v55 = vrot.slane %v8240_v34, 5 }
 0x354   : > { %v3314_v21 = vrot.slane %v8238_v20, 5 }
 0x355   : > { %12484 = vst [vmem:[#allocation71_spill] sm:$0xff] %v9884_v53  ;;  %7773 = vmatmul.msk.bf16.gmra.mxu3 %vm798_vm3, %v9832_v22  ;;  %v12521_v22 = vld [vmem:[#allocation10_spill] sm:$0xff] }
 0x356   : > { %v2336_v48 = vpop.f32.mrf.mxu0  ;;  %12486 = vst [vmem:[#allocation73_spill] sm:$0xff] %v9892_v9  ;;  %v3316_v53 = vrot.slane %v3314_v21, 4 }
 0x357   : > { %v3223_v24 = vpop.f32.mrf.mxu2  ;;  %v3754_v13 = vpop.f32.mrf.mxu1 }
 0x358   : > { %v2196_v60 = vpop.f32.mrf.mxu3  ;;  %v9890_v2 = vadd.f32 %v3223_v24, %v3003_v10 }
 0x359   : > { %v2231_v6 = vadd.f32 %v2196_v60, %v9409_v27  ;;  %v3318_v60 = vsel %vm8355_vm4, %v3316_v53, %v3317_v55  ;;  %v8242_v53 = vld [vmem:[%s9075_s21 + $0x88] sm:$0xf] }
 0x35a   : > { %12485 = vst [vmem:[#allocation72_spill] sm:$0xff] %v9890_v2  ;;  %v9904_v2 = vld [vmem:[%s9075_s21 + $0x6c] sm:$0xff] }
 0x35b   : > { %v9896_v11 = vadd.f32 %v2334_v1, %v2231_v6  ;;  %12488 = vst [vmem:[#allocation75_spill] sm:$0xff] %v9904_v2  ;;  %v3315_v1 = vsel %vm8355_vm4, %v7760_v33, %v3314_v21  ;;  %v12491_v21 = vld [vmem:[#allocation30_spill] sm:$0xff] }
 0x35c   : > { %7827 = vmatmul.msk.bf16.gmra.mxu2 %vm798_vm3, %v9892_v9  ;;  %v3374_v34 = vunpack.c.l.b16 %v3315_v1  ;;  %v5182_v1 = vld [vmem:[%s12211_s5 + $0x4] sm:$0xf] }
 0x35d   : > { %12487 = vst [vmem:[#allocation74_spill] sm:$0xff] %v9896_v11 }
 0x35e   : > { %v3598_v10 = vpop.f32.mrf.mxu0 }
 0x35f   : > { %v3894_v24 = vpop.f32.mrf.mxu2  ;;  %v3757_v27 = vpop.f32.mrf.mxu1 }
 0x360   : > { %v2198_v61 = vpop.f32.mrf.mxu3 }
 0x361   : > { %v2232_v39 = vadd.f32 %v2198_v61, %v9426_v15  ;;  %7794 = vmatmul.msk.bf16.gmra.mxu0 %vm798_vm3, %v9904_v2  ;;  %v3375_v15 = vunpack.c.l.b16 %v3318_v60  ;;  %v5673_v60 = vsel %vm5671_vm8, %v5182_v1, 0 }
 0x362   : > { %7811 = vmatmul.msk.bf16.gmra.mxu1 %vm798_vm3, %v9443_v51  ;;  %5682 = vmatpush.bf16.msra.mxu2 %v5673_v60 }
 0x363   : > { %v9912_v6 = vadd.f32 %v2336_v48, %v2232_v39  ;;  %v9918_v11 = vpack.c.b16 %v3375_v15, %v3374_v34  ;;  %v3321_v48 = vrot.slane %v8242_v53, 5  ;;  %v8243_v15 = vld [vmem:[%s9075_s21 + $0x84] sm:$0xf] }
 0x365   : > { %12489 = vst [vmem:[#allocation76_spill] sm:$0xff] %v9912_v6  ;;  %7774 = vmatmul.msk.bf16.gmra.mxu3 %vm798_vm3, %v9862_v57  ;;  %v7761_v6 = vrot.slane %v8243_v15, 9  ;;  %v7765_v57 = vrot.slane %v8256_v50, 9 }
 0x366   : > { %v3600_v20 = vpop.f32.mrf.mxu0  ;;  %12490 = vst [vmem:[#allocation77_spill] sm:$0xff] %v9918_v11 }
 0x367   : > { %v3896_v14 = vpop.f32.mrf.mxu2  ;;  %v9921_v55 = vpop.f32.mrf.mxu1 }
 0x368   : > { %v3462_v61 = vpop.f32.mrf.mxu3 }
 0x369   : > { %v3542_v33 = vadd.f32 %v3462_v61, %v12491_v21  ;;  %v3323_v61 = vrot.slane %v3321_v48, 4  ;;  %v8244_v21 = vld [vmem:[%s9075_s21 + $0x8c] sm:$0x1] }
 0x36a   : > { %v3324_v51 = vrot.slane %v8244_v21, 5 }
 0x36b   : > { %v3678_v39 = vadd.f32 %v3598_v10, %v3542_v33 }
 0x36c   : > { %7828 = vmatmul.msk.bf16.gmra.mxu2 %vm798_vm3, %v9918_v11 }
 0x36d   : > { %v3832_v34 = vadd.f32 %v3752_v36, %v3678_v39  ;;  %v3322_v36 = vsel %vm8355_vm4, %v7761_v6, %v3321_v48  ;;  %v3325_v39 = vsel %vm8355_vm4, %v3323_v61, %v3324_v51  ;;  %v12498_v51 = vld [vmem:[#allocation32_spill] sm:$0xff]  ;;  %v8246_v61 = vld [vmem:[%s9075_s21 + $0x94] sm:$0xf] }
 0x36e   : > { %v3603_v53 = vpop.f32.mrf.mxu0 }
 0x36f   : > { %v9932_v10 = vadd.f32 %v3894_v24, %v3832_v34  ;;  %v3899_v33 = vpop.f32.mrf.mxu2  ;;  %v3762_v1 = vpop.f32.mrf.mxu1  ;;  %v12495_v24 = vld [vmem:[#allocation23_spill] sm:$0xff]  ;;  %v3376_v34 = vunpack.c.l.b16 %v3322_v36  ;;  %v3328_v36 = vrot.slane %v8246_v61, 5 }
 0x370   : > { %v3464_v2 = vpop.f32.mrf.mxu3 }
 0x371   : > { %12492 = vst [vmem:[#allocation30_spill] sm:$0xff] %v9932_v10  ;;  %v3543_v62 = vadd.f32 %v3464_v2, %v12493_v54  ;;  %7795 = vmatmul.msk.bf16.gmra.mxu0 %vm798_vm3, %v9936_v18  ;;  %v3377_v54 = vunpack.c.l.b16 %v3325_v39  ;;  %v3330_v18 = vrot.slane %v3328_v36, 4 }
 0x372   : > { %7812 = vmatmul.msk.bf16.gmra.mxu1 %vm798_vm3, %v12495_v24 }
 0x373   : > { %v3679_v60 = vadd.f32 %v3600_v20, %v3543_v62  ;;  %v9950_v48 = vpack.c.b16 %v3377_v54, %v3376_v34 }
 0x375   : > { %7775 = vmatmul.msk.bf16.gmra.mxu3 %vm798_vm3, %v9892_v9  ;;  %v3833_v2 = vadd.f32 %v3754_v13, %v3679_v60  ;;  %12497 = vst [vmem:[#allocation79_spill] sm:$0xff] %v9950_v48  ;;  %v8247_v13 = vld [vmem:[%s9075_s21 + $0x90] sm:$0xf] }
 0x376   : > { %v3605_v15 = vpop.f32.mrf.mxu0  ;;  %v7762_v60 = vrot.slane %v8247_v13, 9 }
 0x377   : > { %v9948_v21 = vadd.f32 %v3896_v14, %v3833_v2  ;;  %v3901_v10 = vpop.f32.mrf.mxu2  ;;  %v3764_v20 = vpop.f32.mrf.mxu1  ;;  %v8248_v14 = vld [vmem:[%s9075_s21 + $0x98] sm:$0x1] }
 0x378   : > { %v3467_v6 = vpop.f32.mrf.mxu3  ;;  %v3331_v2 = vrot.slane %v8248_v14, 5 }
 0x379   : > { %12496 = vst [vmem:[#allocation78_spill] sm:$0xff] %v9948_v21  ;;  %v3544_v62 = vadd.f32 %v3467_v6, %v12498_v51  ;;  %v12500_v6 = vld [vmem:[#allocation19_spill] sm:$0xff] }
 0x37a   : > { %12501 = vst [vmem:[#allocation19_spill] sm:$0xff] %v9962_v16 }
 0x37b   : > { %v3680_v24 = vadd.f32 %v3603_v53, %v3544_v62 }
 0x37c   : > { %7829 = vmatmul.msk.bf16.gmra.mxu2 %vm798_vm3, %v9950_v48 }
 0x37d   : > { %v3834_v39 = vadd.f32 %v3757_v27, %v3680_v24  ;;  %v3329_v27 = vsel %vm8355_vm4, %v7762_v60, %v3328_v36  ;;  %v3332_v24 = vsel %vm8355_vm4, %v3330_v18, %v3331_v2  ;;  %v12505_v18 = vld [vmem:[#allocation21_spill] sm:$0xff] }
 0x37e   : > { %v3608_v21 = vpop.f32.mrf.mxu0  ;;  %v3378_v61 = vunpack.c.l.b16 %v3329_v27 }
 0x37f   : > { %v9958_v9 = vadd.f32 %v3899_v33, %v3834_v39  ;;  %v3904_v34 = vpop.f32.mrf.mxu2  ;;  %v3767_v53 = vpop.f32.mrf.mxu1  ;;  %v12502_v33 = vld [vmem:[#allocation28_spill] sm:$0xff]  ;;  %v3379_v39 = vunpack.c.l.b16 %v3332_v24 }
 0x380   : > { %v3469_v54 = vpop.f32.mrf.mxu3 }
 0x381   : > { %12499 = vst [vmem:[#allocation32_spill] sm:$0xff] %v9958_v9  ;;  %v3545_v51 = vadd.f32 %v3469_v54, %v12500_v6  ;;  %7796 = vmatmul.msk.bf16.gmra.mxu0 %vm798_vm3, %v9962_v16  ;;  %v9977_v6 = vpack.c.b16 %v3379_v39, %v3378_v61  ;;  %v8251_v9 = vld [vmem:[%s9075_s21 + $0x9c] sm:$0xf]  ;;  %v8252_v16 = vld [vmem:[%s9075_s21 + $0xa4] sm:$0x1] }
 0x382   : > { %7813 = vmatmul.msk.bf16.gmra.mxu1 %vm798_vm3, %v12502_v33 }
 0x383   : > { %v3681_v62 = vadd.f32 %v3605_v15, %v3545_v51  ;;  %12504 = vst [vmem:[#allocation81_spill] sm:$0xff] %v9977_v6  ;;  %v8250_v51 = vld [vmem:[%s9075_s21 + $0xa0] sm:$0xf] }
 0x384   : > { %v3335_v27 = vrot.slane %v8250_v51, 5 }
 0x385   : > { %7776 = vmatmul.msk.bf16.gmra.mxu3 %vm798_vm3, %v9918_v11  ;;  %v3835_v13 = vadd.f32 %v9921_v55, %v3681_v62  ;;  %v7763_v55 = vrot.slane %v8251_v9, 9  ;;  %v12507_v11 = vld [vmem:[#allocation16_spill] sm:$0xff] }
 0x386   : > { %v3610_v14 = vpop.f32.mrf.mxu0  ;;  %v3337_v62 = vrot.slane %v3335_v27, 4 }
 0x387   : > { %v9975_v54 = vadd.f32 %v3901_v10, %v3835_v13  ;;  %v3906_v36 = vpop.f32.mrf.mxu2  ;;  %v3769_v2 = vpop.f32.mrf.mxu1  ;;  %v3338_v10 = vrot.slane %v8252_v16, 5  ;;  %v12509_v16 = vld [vmem:[#allocation20_spill] sm:$0xff] }
 0x388   : > { %v3472_v60 = vpop.f32.mrf.mxu3 }
 0x389   : > { %12503 = vst [vmem:[#allocation80_spill] sm:$0xff] %v9975_v54  ;;  %v3546_v15 = vadd.f32 %v3472_v60, %v12505_v18  ;;  %v12508_v18 = vld [vmem:[#allocation11_spill] sm:$0xff]  ;;  %v3339_v9 = vsel %vm8355_vm4, %v3337_v62, %v3338_v10 }
 0x38b   : > { %v3682_v33 = vadd.f32 %v3608_v21, %v3546_v15  ;;  %v3381_v15 = vunpack.c.l.b16 %v3339_v9 }
 0x38c   : > { %7830 = vmatmul.msk.bf16.gmra.mxu2 %vm798_vm3, %v9977_v6 }
 0x38d   : > { %v3836_v24 = vadd.f32 %v3762_v1, %v3682_v33  ;;  %v3336_v1 = vsel %vm8355_vm4, %v7763_v55, %v3335_v27  ;;  %v8253_v55 = vld [vmem:[%s9075_s21 + $0xac] sm:$0xf] }
 0x38e   : > { %v3613_v13 = vpop.f32.mrf.mxu0  ;;  %v3342_v62 = vrot.slane %v8253_v55, 5 }
 0x38f   : > { %v9985_v54 = vadd.f32 %v3904_v34, %v3836_v24  ;;  %v3909_v61 = vpop.f32.mrf.mxu2  ;;  %v3772_v21 = vpop.f32.mrf.mxu1  ;;  %v3380_v34 = vunpack.c.l.b16 %v3336_v1  ;;  %v8254_v1 = vld [vmem:[%s9075_s21 + $0xa8] sm:$0xf] }
 0x390   : > { %v3474_v39 = vpop.f32.mrf.mxu3  ;;  %v7764_v9 = vrot.slane %v8254_v1, 9  ;;  %v12515_v1 = vld [vmem:[#allocation36_spill] sm:$0xff] }
 0x391   : > { %12506 = vst [vmem:[#allocation21_spill] sm:$0xff] %v9985_v54  ;;  %v3547_v60 = vadd.f32 %v3474_v39, %v12507_v11  ;;  %7797 = vmatmul.msk.bf16.gmra.mxu0 %vm798_vm3, %v12508_v18  ;;  %v10000_v27 = vpack.c.b16 %v3381_v15, %v3380_v34 }
 0x392   : > { %7814 = vmatmul.msk.bf16.gmra.mxu1 %vm798_vm3, %v12509_v16 }
 0x393   : > { %v3683_v33 = vadd.f32 %v3610_v14, %v3547_v60  ;;  %v12511_v14 = vld [vmem:[#allocation27_spill] sm:$0xff] }
 0x395   : > { %7777 = vmatmul.msk.bf16.gmra.mxu3 %vm798_vm3, %v9950_v48  ;;  %v3837_v11 = vadd.f32 %v3764_v20, %v3683_v33  ;;  %v3344_v20 = vrot.slane %v3342_v62, 4  ;;  %v12512_v33 = vld [vmem:[#allocation8_spill] sm:$0xff]  ;;  %v2421_v48 = vld [vmem:[%s9075_s21 + $0xc8] sm:$0x1] }
 0x396   : > { %v3615_v51 = vpop.f32.mrf.mxu0 }
 0x397   : > { %v9998_v24 = vadd.f32 %v3906_v36, %v3837_v11  ;;  %v3911_v39 = vpop.f32.mrf.mxu2  ;;  %v10004_v60 = vpop.f32.mrf.mxu1  ;;  %v3345_v36 = vrot.slane %v12512_v33, 5 }
 0x398   : > { %v3477_v18 = vpop.f32.mrf.mxu3 }
 0x399   : > { %12510 = vst [vmem:[#allocation16_spill] sm:$0xff] %v9998_v24  ;;  %v3548_v10 = vadd.f32 %v3477_v18, %v12511_v14  ;;  %v3343_v18 = vsel %vm8355_vm4, %v7764_v9, %v3342_v62  ;;  %v12514_v14 = vld [vmem:[#allocation24_spill] sm:$0xff] }
 0x39a   : > { %v10026_v9 = vld [vmem:[%s9075_s21 + $0xc0] sm:$0xf] }
 0x39b   : > { %v3684_v16 = vadd.f32 %v3613_v13, %v3548_v10  ;;  %v3346_v13 = vsel %vm8355_vm4, %v3344_v20, %v3345_v36  ;;  %v10029_v20 = vld [vmem:[%s9075_s21 + $0xc4] sm:$0xf] }
 0x39c   : > { %7831 = vmatmul.msk.bf16.gmra.mxu2 %vm798_vm3, %v10000_v27  ;;  %v3383_v54 = vunpack.c.l.b16 %v3346_v13  ;;  %v3711_v13 = vshrl.u32 %v10026_v9, 16 }
 0x39d   : > { %v3838_v11 = vadd.f32 %v3767_v53, %v3684_v16  ;;  %v3382_v16 = vunpack.c.l.b16 %v3343_v18 }
 0x39e   : > { %v3618_v24 = vpop.f32.mrf.mxu0 }
 0x39f   : > { %v10010_v34 = vadd.f32 %v3909_v61, %v3838_v11  ;;  %v3914_v15 = vpop.f32.mrf.mxu2  ;;  %v10019_v33 = vpop.f32.mrf.mxu1  ;;  %v12516_v61 = vld [vmem:[#allocation38_spill] sm:$0xff] }
 0x3a0   : > { %v3479_v55 = vpop.f32.mrf.mxu3 }
 0x3a1   : > { %12513 = vst [vmem:[#allocation11_spill] sm:$0xff] %v10010_v34  ;;  %v3549_v10 = vadd.f32 %v3479_v55, %v12514_v14  ;;  %7798 = vmatmul.msk.bf16.gmra.mxu0 %vm798_vm3, %v12515_v1  ;;  %v3714_v14 = vshll.u32 %v10026_v9, 16  ;;  %v12519_v1 = vld [vmem:[#allocation35_spill] sm:$0xff] }
 0x3a2   : > { %7815 = vmatmul.msk.bf16.gmra.mxu1 %vm798_vm3, %v12516_v61 }
 0x3a3   : > { %v3685_v53 = vadd.f32 %v3615_v51, %v3549_v10  ;;  %v10035_v51 = vpack.c.b16 %v3383_v54, %v3382_v16  ;;  %v3724_v10 = vshrl.u32 %v10029_v20, 16  ;;  %v3713_v54 = vrot.slane %v3711_v13, 4  ;;  %v12522_v13 = vld [vmem:[#allocation39_spill] sm:$0xff] }
 0x3a4   : > { %v3716_v16 = vrot.slane %v3714_v14, 5 }
 0x3a5   : > { %7778 = vmatmul.msk.bf16.gmra.mxu3 %vm798_vm3, %v9977_v6  ;;  %v3839_v62 = vadd.f32 %v3769_v2, %v3685_v53  ;;  %v3720_v2 = vshll.u32 %v10029_v20, 16  ;;  %v3726_v34 = vrot.slane %v3724_v10, 4 }
 0x3a6   : > { %v3620_v36 = vpop.f32.mrf.mxu0 }
 0x3a7   : > { %v10031_v11 = vadd.f32 %v3911_v39, %v3839_v62  ;;  %v10033_v55 = vpop.f32.mrf.mxu2  ;;  %v10042_v61 = vpop.f32.mrf.mxu1  ;;  %v8255_v39 = vld [vmem:[%s9075_s21 + $0xb8] sm:$0xf] }
 0x3a8   : > { %12518 = vst [vmem:[#allocation8_spill] sm:$0xff] %v10033_v55  ;;  %v3482_v18 = vpop.f32.mrf.mxu3  ;;  %v3349_v62 = vrot.slane %v8255_v39, 5  ;;  %v3722_v55 = vrot.slane %v3720_v2, 5 }
 0x3a9   : > { %12517 = vst [vmem:[#allocation27_spill] sm:$0xff] %v10031_v11  ;;  %v3550_v53 = vadd.f32 %v3482_v18, %v12519_v1 }
 0x3aa   : > { %v3351_v5 = vrot.slane %v3349_v62, 4  ;;  %v3350_v50 = vsel %vm8355_vm4, %v7765_v57, %v3349_v62 }
 0x3ab   : > { %v3686_v11 = vadd.f32 %v3618_v24, %v3550_v53  ;;  %v3717_v24 = vor.u32 %v3716_v16, %v3713_v54  ;;  %v3730_v53 = vshll.u32 %v2421_v48, 16 }
 0x3ac   : > { %7832 = vmatmul.msk.bf16.gmra.mxu2 %vm798_vm3, %v10035_v51  ;;  %v3353_v46 = vsel %vm8355_vm4, %v3351_v5, %v3352_v7 }
 0x3ad   : > { %v3840_v6 = vadd.f32 %v3772_v21, %v3686_v11  ;;  %v3727_v21 = vor.u32 %v3726_v34, %v3722_v55  ;;  %v3718_v2 = vrot.slane %v3717_v24, 4  ;;  %v3732_v10 = vrot.slane %v3730_v53, 5 }
 0x3ae   : > { %v3623_v18 = vpop.f32.mrf.mxu0 }
 0x3af   : > { %v10050_v1 = vadd.f32 %v3914_v15, %v3840_v6  ;;  %v3919_v17 = vpop.f32.mrf.mxu2  ;;  %v3782_v14 = vpop.f32.mrf.mxu1  ;;  %v3384_v6 = vunpack.c.l.b16 %v3350_v50  ;;  %v3385_v15 = vunpack.c.l.b16 %v3353_v46  ;;  %v3728_v34 = vrot.slane %v3727_v21, 4 }
 0x3b0   : > { %v3484_v39 = vpop.f32.mrf.mxu3  ;;  %v3723_v16 = vsel %vm8383_vm7, %v3718_v2, %v3722_v55  ;;  %v7818_v50 = vrot.slane %v10026_v9, 9 }
 0x3b1   : > { %v3551_v8 = vadd.f32 %v3484_v39, %v12521_v22  ;;  %7799 = vmatmul.msk.bf16.gmra.mxu0 %vm798_vm3, %v12522_v13  ;;  %v10068_v5 = vpack.c.b16 %v3385_v15, %v3384_v6  ;;  %v3733_v39 = vsel %vm8383_vm7, %v3728_v34, %v3732_v10  ;;  %v3734_v13 = vunpack.c.l.b16 %v3723_v16 }
 0x3b2   : > { %7816 = vmatmul.msk.bf16.gmra.mxu1 %vm798_vm3, %v9594_v40  ;;  %v3735_v53 = vunpack.c.l.b16 %v3733_v39 }
 0x3b3   : > { %v3687_v11 = vadd.f32 %v3620_v36, %v3551_v8  ;;  %v12523_v8 = vld [vmem:[#allocation13_spill] sm:$0xff] }
 0x3b4   : > { %v10082_v34 = vpack.c.b16 %v3735_v53, %v3734_v13  ;;  %v8159_v53 = vld [vmem:[%s9075_s21 + $0xc0] sm:$0xff] }
 0x3b5   : > { %7779 = vmatmul.msk.bf16.gmra.mxu3 %vm798_vm3, %v10000_v27  ;;  %v10064_v22 = vadd.f32 %v10004_v60, %v3687_v11  ;;  %v3867_v60 = vrot.slane %v10029_v20, 5  ;;  %v3870_v11 = vrot.slane %v2421_v48, 5  ;;  %v12524_v20 = vld [vmem:[#allocation29_spill] sm:$0xff] }
 0x3b6   : > { %v3625_v54 = vpop.f32.mrf.mxu0 }
 0x3b7   : > { %v10066_v57 = vpop.f32.mrf.mxu2  ;;  %v3784_v36 = vpop.f32.mrf.mxu1  ;;  %v3869_v46 = vrot.slane %v3867_v60, 4 }
 0x3b8   : > { %v3487_v62 = vpop.f32.mrf.mxu3 }
 0x3b9   : > { %v3552_v7 = vadd.f32 %v3487_v62, %v12523_v8  ;;  %v3871_v9 = vsel %vm8355_vm4, %v3869_v46, %v3870_v11 }
 0x3ba   : > { %v3873_v62 = vunpack.c.l.b16 %v3871_v9 }
 0x3bb   : > { %v3688_v24 = vadd.f32 %v3623_v18, %v3552_v7 }
 0x3bc   : > { %7833 = vmatmul.msk.bf16.gmra.mxu2 %vm798_vm3, %v10068_v5 }
 0x3bd   : > { %v3842_v21 = vadd.f32 %v10019_v33, %v3688_v24  ;;  %v3868_v33 = vsel %vm8355_vm4, %v7818_v50, %v3867_v60 }
 0x3be   : > { %v3628_v6 = vpop.f32.mrf.mxu0 }
 0x3bf   : > { %v10080_v15 = vadd.f32 %v3919_v17, %v3842_v21  ;;  %v3924_v55 = vpop.f32.mrf.mxu2  ;;  %v3787_v10 = vpop.f32.mrf.mxu1  ;;  %v3872_v17 = vunpack.c.l.b16 %v3868_v33 }
 0x3c0   : > { %v3489_v2 = vpop.f32.mrf.mxu3 }
 0x3c1   : > { %v3553_v18 = vadd.f32 %v3489_v2, %v12524_v20  ;;  %7800 = vmatmul.msk.bf16.gmra.mxu0 %vm798_vm3, %v9622_v23  ;;  %v10100_v39 = vpack.c.b16 %v3873_v62, %v3872_v17 }
 0x3c2   : > { %7817 = vmatmul.msk.bf16.gmra.mxu1 %vm798_vm3, %v10082_v34 }
 0x3c3   : > { %v3689_v48 = vadd.f32 %v3625_v54, %v3553_v18 }
 0x3c5   : > { %7780 = vmatmul.msk.bf16.gmra.mxu3 %vm798_vm3, %v10035_v51  ;;  %v10096_v8 = vadd.f32 %v10042_v61, %v3689_v48 }
 0x3c6   : > { %v3630_v23 = vpop.f32.mrf.mxu0 }
 0x3c7   : > { %v10098_v7 = vpop.f32.mrf.mxu2  ;;  %v3789_v54 = vpop.f32.mrf.mxu1 }
 0x3c8   : > { %v3492_v16 = vpop.f32.mrf.mxu3 }
 0x3c9   : > { %v3554_v60 = vadd.f32 %v3492_v16, %v9592_v35 }
 0x3cb   : > { %v3690_v24 = vadd.f32 %v3628_v6, %v3554_v60 }
 0x3cc   : > { %7834 = vmatmul.msk.bf16.gmra.mxu2 %vm798_vm3, %v10100_v39 }
 0x3cd   : > { %v3844_v13 = vadd.f32 %v3782_v14, %v3690_v24 }
 0x3ce   : > { %v3633_v21 = vpop.f32.mrf.mxu0 }
 0x3cf   : > { %v10106_v50 = vadd.f32 %v3924_v55, %v3844_v13  ;;  %v3929_v61 = vpop.f32.mrf.mxu2  ;;  %v3792_v2 = vpop.f32.mrf.mxu1 }
 0x3d0   : > { %v3494_v46 = vpop.f32.mrf.mxu3 }
 0x3d1   : > { %v3555_v11 = vadd.f32 %v3494_v46, %v9619_v58  ;;  %7801 = vmatmul.msk.bf16.gmra.mxu0 %vm798_vm3, %v8159_v53 }
 0x3d2   : > { %7872 = vmatmul.msk.bf16.vlgmr.msra.gmra.mxu1 %vm798_vm3, %v9682_v4 }
 0x3d3   : > { %v3691_v20 = vadd.f32 %v3630_v23, %v3555_v11 }
 0x3d5   : > { %7781 = vmatmul.msk.bf16.gmra.mxu3 %vm798_vm3, %v10068_v5  ;;  %v10114_v35 = vadd.f32 %v3784_v36, %v3691_v20 }
 0x3d6   : > { %v3635_v14 = vpop.f32.mrf.mxu0 }
 0x3d7   : > { %v10116_v6 = vpop.f32.mrf.mxu2  ;;  %v3794_v33 = vpop.f32.mrf.mxu1 }
 0x3d8   : > { %v3497_v55 = vpop.f32.mrf.mxu3 }
 0x3d9   : > { %v3556_v18 = vadd.f32 %v3497_v55, %v9640_v25 }
 0x3db   : > { %v3692_v58 = vadd.f32 %v3633_v21, %v3556_v18 }
 0x3dd   : > { %v3846_v9 = vadd.f32 %v3787_v10, %v3692_v58 }
 0x3de   : > { %v3638_v48 = vpop.f32.mrf.mxu0 }
 0x3df   : > { %v10119_v17 = vadd.f32 %v3929_v61, %v3846_v9  ;;  %v3934_v62 = vpop.f32.mrf.mxu2  ;;  %v3797_v36 = vpop.f32.mrf.mxu1 }
 0x3e0   : > { %v3499_v23 = vpop.f32.mrf.mxu3 }
 0x3e1   : > { %v3557_v4 = vadd.f32 %v3499_v23, %v9652_v42  ;;  %7855 = vmatmul.msk.bf16.vlgmr.msra.gmra.mxu0 %vm798_vm3, %v9212_v3 }
 0x3e2   : > { %7873 = vmatmul.msk.bf16.gmra.mxu1 %vm798_vm3, %v9712_v30 }
 0x3e3   : > { %v3693_v16 = vadd.f32 %v3635_v14, %v3557_v4 }
 0x3e5   : > { %7839 = vmatmul.msk.bf16.vlgmr.msra.gmra.mxu3 %vm798_vm3, %v9696_v28  ;;  %v10128_v25 = vadd.f32 %v3789_v54, %v3693_v16 }
 0x3e6   : > { %v3640_v10 = vpop.f32.mrf.mxu0 }
 0x3e7   : > { %v10130_v60 = vpop.f32.mrf.mxu2  ;;  %v3799_v42 = vpop.f32.mrf.mxu1 }
 0x3e8   : > { %v3502_v24 = vpop.f32.mrf.mxu3 }
 0x3e9   : > { %v3558_v13 = vadd.f32 %v3502_v24, %v9666_v29 }
 0x3eb   : > { %v3694_v53 = vadd.f32 %v3638_v48, %v3558_v13 }
 0x3ed   : > { %v3848_v21 = vadd.f32 %v3792_v2, %v3694_v53 }
 0x3ee   : > { %v3643_v3 = vpop.f32.mrf.mxu0 }
 0x3ef   : > { %v10133_v61 = vadd.f32 %v3934_v62, %v3848_v21  ;;  %v3939_v46 = vpop.f32.mrf.mxu2  ;;  %v3802_v28 = vpop.f32.mrf.mxu1 }
 0x3f0   : > { %v3504_v11 = vpop.f32.mrf.mxu3 }
 0x3f1   : > { %v3559_v30 = vadd.f32 %v3504_v11, %v9680_v37  ;;  %7856 = vmatmul.msk.bf16.gmra.mxu0 %vm798_vm3, %v9241_v0 }
 0x3f2   : > { %7874 = vmatmul.msk.bf16.gmra.mxu1 %vm798_vm3, %v9742_v49 }
 0x3f3   : > { %v3695_v54 = vadd.f32 %v3640_v10, %v3559_v30 }
 0x3f5   : > { %7840 = vmatmul.msk.bf16.gmra.mxu3 %vm798_vm3, %v9726_v63  ;;  %v10142_v29 = vadd.f32 %v3794_v33, %v3695_v54 }
 0x3f6   : > { %v3645_v2 = vpop.f32.mrf.mxu0 }
 0x3f7   : > { %v10144_v20 = vpop.f32.mrf.mxu2  ;;  %v3804_v37 = vpop.f32.mrf.mxu1 }
 0x3f8   : > { %v3507_v14 = vpop.f32.mrf.mxu3 }
 0x3f9   : > { %v3560_v55 = vadd.f32 %v3507_v14, %v9692_v26 }
 0x3fb   : > { %v3696_v18 = vadd.f32 %v3643_v3, %v3560_v55 }
 0x3fd   : > { %v3850_v58 = vadd.f32 %v3797_v36, %v3696_v18  ;;  %v12530_v18 = vld [vmem:[#allocation7_spill] sm:$0xff] }
 0x3fe   : > { %v3648_v0 = vpop.f32.mrf.mxu0 }
 0x3ff   : > { %v10147_v9 = vadd.f32 %v3939_v46, %v3850_v58  ;;  %v3944_v48 = vpop.f32.mrf.mxu2  ;;  %v3807_v63 = vpop.f32.mrf.mxu1  ;;  %v12531_v58 = vld [vmem:[#allocation61_spill] sm:$0xff] }
 0x400   : > { %v3509_v62 = vpop.f32.mrf.mxu3 }
 0x401   : > { %v3561_v49 = vadd.f32 %v3509_v62, %v9710_v47  ;;  %7857 = vmatmul.msk.bf16.gmra.mxu0 %vm798_vm3, %v9270_v52 }
 0x402   : > { %7875 = vmatmul.msk.bf16.gmra.mxu1 %vm798_vm3, %v9772_v45 }
 0x403   : > { %v3697_v33 = vadd.f32 %v3645_v2, %v3561_v49  ;;  %v12534_v49 = vld [vmem:[#allocation53_spill] sm:$0xff] }
 0x405   : > { %7841 = vmatmul.msk.bf16.gmra.mxu3 %vm798_vm3, %v9756_v19  ;;  %v10156_v26 = vadd.f32 %v3799_v42, %v3697_v33 }
 0x406   : > { %v3650_v23 = vpop.f32.mrf.mxu0 }
 0x407   : > { %v10158_v4 = vpop.f32.mrf.mxu2  ;;  %v3809_v47 = vpop.f32.mrf.mxu1 }
 0x408   : > { %12525 = vst [vmem:[#allocation24_spill] sm:$0xff] %v10158_v4  ;;  %v3512_v36 = vpop.f32.mrf.mxu3  ;;  %v8258_v4 = vld [vmem:[%s9075_s21 + $0x9c] sm:$0xff] }
 0x409   : > { %v3562_v16 = vadd.f32 %v3512_v36, %v9722_v31 }
 0x40b   : > { %v3698_v10 = vadd.f32 %v3648_v0, %v3562_v16  ;;  %v12532_v0 = vld [vmem:[#allocation58_spill] sm:$0xff] }
 0x40d   : > { %v3852_v24 = vadd.f32 %v3802_v28, %v3698_v10 }
 0x40e   : > { %v3653_v52 = vpop.f32.mrf.mxu0 }
 0x40f   : > { %v10161_v13 = vadd.f32 %v3944_v48, %v3852_v24  ;;  %v3949_v53 = vpop.f32.mrf.mxu2  ;;  %v3812_v19 = vpop.f32.mrf.mxu1 }
 0x410   : > { %v3514_v21 = vpop.f32.mrf.mxu3 }
 0x411   : > { %12526 = vst [vmem:[#allocation36_spill] sm:$0xff] %v10161_v13  ;;  %v3563_v45 = vadd.f32 %v3514_v21, %v9740_v38  ;;  %7858 = vmatmul.msk.bf16.gmra.mxu0 %vm798_vm3, %v9299_v56  ;;  %v12538_v21 = vld [vmem:[#allocation9_spill] sm:$0xff] }
 0x412   : > { %7876 = vmatmul.msk.bf16.gmra.mxu1 %vm798_vm3, %v9802_v43 }
 0x413   : > { %v3699_v42 = vadd.f32 %v3650_v23, %v3563_v45 }
 0x415   : > { %7842 = vmatmul.msk.bf16.gmra.mxu3 %vm798_vm3, %v9786_v32  ;;  %v10170_v31 = vadd.f32 %v3804_v37, %v3699_v42  ;;  %v12539_v42 = vld [vmem:[#allocation67_spill] sm:$0xff] }
 0x416   : > { %v3655_v3 = vpop.f32.mrf.mxu0 }
 0x417   : > { %12527 = vst [vmem:[#allocation35_spill] sm:$0xff] %v10170_v31  ;;  %v10172_v46 = vpop.f32.mrf.mxu2  ;;  %v3814_v38 = vpop.f32.mrf.mxu1 }
 0x418   : > { %12528 = vst [vmem:[#allocation6_spill] sm:$0xff] %v10172_v46  ;;  %v3517_v11 = vpop.f32.mrf.mxu3 }
 0x419   : > { %v3564_v30 = vadd.f32 %v3517_v11, %v9752_v59  ;;  %v12540_v11 = vld [vmem:[#allocation64_spill] sm:$0xff] }
 0x41b   : > { %v3700_v28 = vadd.f32 %v3653_v52, %v3564_v30  ;;  %v12537_v52 = vld [vmem:[#allocation55_spill] sm:$0xff] }
 0x41d   : > { %v3854_v54 = vadd.f32 %v3807_v63, %v3700_v28 }
 0x41e   : > { %v3658_v56 = vpop.f32.mrf.mxu0 }
 0x41f   : > { %v10175_v2 = vadd.f32 %v3949_v53, %v3854_v54  ;;  %v3954_v55 = vpop.f32.mrf.mxu2  ;;  %v3817_v32 = vpop.f32.mrf.mxu1  ;;  %v12542_v54 = vld [vmem:[#allocation57_spill] sm:$0xff] }
 0x420   : > { %v3519_v14 = vpop.f32.mrf.mxu3 }
 0x421   : > { %12529 = vst [vmem:[#allocation10_spill] sm:$0xff] %v10175_v2  ;;  %v3565_v43 = vadd.f32 %v3519_v14, %v9770_v12  ;;  %7859 = vmatmul.msk.bf16.gmra.mxu0 %vm798_vm3, %v12530_v18 }
 0x422   : > { %7877 = vmatmul.msk.bf16.gmra.mxu1 %vm798_vm3, %v12531_v58 }
 0x423   : > { %v3701_v37 = vadd.f32 %v3655_v3, %v3565_v43 }
 0x425   : > { %7843 = vmatmul.msk.bf16.gmra.mxu3 %vm798_vm3, %v12532_v0  ;;  %v10184_v59 = vadd.f32 %v3809_v47, %v3701_v37 }
 0x426   : > { %v3660_v48 = vpop.f32.mrf.mxu0 }
 0x427   : > { %12533 = vst [vmem:[#allocation39_spill] sm:$0xff] %v10184_v59  ;;  %v3819_v33 = vpop.f32.mrf.mxu1  ;;  %v10187_v23 = vpop.f32.mrf.mxu2 }
 0x428   : > { %v3522_v62 = vpop.f32.mrf.mxu3  ;;  %12535 = vst [vmem:[#allocation13_spill] sm:$0xff] %v10187_v23 }
 0x429   : > { %v3566_v63 = vadd.f32 %v3522_v62, %v12534_v49  ;;  %v12546_v49 = vld [vmem:[#allocation12_spill] sm:$0xff] }
 0x42b   : > { %v3702_v12 = vadd.f32 %v3658_v56, %v3566_v63 }
 0x42d   : > { %v3856_v36 = vadd.f32 %v3812_v19, %v3702_v12  ;;  %v12547_v12 = vld [vmem:[#allocation73_spill] sm:$0xff] }
 0x42e   : > { %v3663_v16 = vpop.f32.mrf.mxu0 }
 0x42f   : > { %v10189_v10 = vadd.f32 %v3954_v55, %v3856_v36  ;;  %v3822_v47 = vpop.f32.mrf.mxu1  ;;  %v3959_v3 = vpop.f32.mrf.mxu2  ;;  %v12548_v36 = vld [vmem:[#allocation70_spill] sm:$0xff] }
 0x430   : > { %v3524_v24 = vpop.f32.mrf.mxu3 }
 0x431   : > { %12536 = vst [vmem:[#allocation29_spill] sm:$0xff] %v10189_v10  ;;  %v3567_v53 = vadd.f32 %v3524_v24, %v12537_v52  ;;  %7860 = vmatmul.msk.bf16.gmra.mxu0 %vm798_vm3, %v12538_v21 }
 0x432   : > { %7878 = vmatmul.msk.bf16.gmra.mxu1 %vm798_vm3, %v12539_v42 }
 0x433   : > { %v3703_v45 = vadd.f32 %v3660_v48, %v3567_v53  ;;  %v12545_v48 = vld [vmem:[#allocation60_spill] sm:$0xff]  ;;  %v12550_v53 = vld [vmem:[#allocation63_spill] sm:$0xff] }
 0x435   : > { %7844 = vmatmul.msk.bf16.gmra.mxu3 %vm798_vm3, %v12540_v11  ;;  %v10198_v30 = vadd.f32 %v3814_v38, %v3703_v45 }
 0x436   : > { %v3665_v19 = vpop.f32.mrf.mxu0 }
 0x437   : > { %12541 = vst [vmem:[#allocation7_spill] sm:$0xff] %v10198_v30  ;;  %v3824_v14 = vpop.f32.mrf.mxu1  ;;  %v10201_v37 = vpop.f32.mrf.mxu2 }
 0x438   : > { %v3527_v28 = vpop.f32.mrf.mxu3  ;;  %12543 = vst [vmem:[#allocation61_spill] sm:$0xff] %v10201_v37 }
 0x439   : > { %v3568_v56 = vadd.f32 %v3527_v28, %v12542_v54  ;;  %v8279_v54 = vmov 0  }
 0x43a   : > { %4603 = vst.msk [vmem:[#allocation2 + $0xc] sm:$0xf] %vm4598_vm9, %v8279_v54 }
 0x43b   : > { %v3704_v55 = vadd.f32 %v3663_v16, %v3568_v56  ;;  %v12552_v56 = vld [vmem:[#allocation66_spill] sm:$0xff]  ;;  %4599 = vst.msk [vmem:[#allocation2] sm:$0xf] %vm4598_vm9, %v8279_v54 }
 0x43c   : > { %4600 = vst.msk [vmem:[#allocation2 + $0x4] sm:$0xf] %vm4598_vm9, %v8279_v54 }
 0x43d   : > { %v3858_v43 = vadd.f32 %v3817_v32, %v3704_v55  ;;  %v12553_v55 = vld [vmem:[#allocation31_spill] sm:$0xff]  ;;  %4604 = vst.msk [vmem:[#allocation2 + $0x10] sm:$0xf] %vm4598_vm9, %v8279_v54 }
 0x43e   : > { %v3668_v18 = vpop.f32.mrf.mxu0  ;;  %4606 = vst.msk [vmem:[#allocation2 + $0x18] sm:$0xf] %vm4598_vm9, %v8279_v54 }
 0x43f   : > { %v10203_v58 = vadd.f32 %v3959_v3, %v3858_v43  ;;  %v3827_v38 = vpop.f32.mrf.mxu1  ;;  %v3964_v52 = vpop.f32.mrf.mxu2  ;;  %4607 = vst.msk [vmem:[#allocation2 + $0x1c] sm:$0xf] %vm4598_vm9, %v8279_v54 }
 0x440   : > { %v3529_v0 = vpop.f32.mrf.mxu3  ;;  %4609 = vst.msk [vmem:[#allocation2 + $0x24] sm:$0xf] %vm4598_vm9, %v8279_v54 }
 0x441   : > { %12544 = vst [vmem:[#allocation58_spill] sm:$0xff] %v10203_v58  ;;  %v3569_v62 = vadd.f32 %v3529_v0, %v12545_v48  ;;  %7861 = vmatmul.msk.bf16.gmra.mxu0 %vm798_vm3, %v12546_v49  ;;  %v12555_v0 = vld [vmem:[#allocation77_spill] sm:$0xff]  ;;  %v12556_v48 = vld [vmem:[#allocation75_spill] sm:$0xff] }
 0x442   : > { %7879 = vmatmul.msk.bf16.gmra.mxu1 %vm798_vm3, %v12547_v12  ;;  %4610 = vst.msk [vmem:[#allocation2 + $0x28] sm:$0xf] %vm4598_vm9, %v8279_v54  ;;  %v12558_v12 = vld [vmem:[#allocation69_spill] sm:$0xff] }
 0x443   : > { %v3705_v63 = vadd.f32 %v3665_v19, %v3569_v62  ;;  %4612 = vst.msk [vmem:[#allocation2 + $0x30] sm:$0xf] %vm4598_vm9, %v8279_v54 }
 0x444   : > { %4613 = vst.msk [vmem:[#allocation2 + $0x34] sm:$0xf] %vm4598_vm9, %v8279_v54 }
 0x445   : > { %7845 = vmatmul.msk.bf16.gmra.mxu3 %vm798_vm3, %v12548_v36  ;;  %v10212_v32 = vadd.f32 %v3819_v33, %v3705_v63  ;;  %4615 = vst.msk [vmem:[#allocation2 + $0x3c] sm:$0xf] %vm4598_vm9, %v8279_v54 }
 0x446   : > { %v3670_v16 = vpop.f32.mrf.mxu0  ;;  %4616 = vst.msk [vmem:[#allocation2 + $0x40] sm:$0xf] %vm4598_vm9, %v8279_v54 }
 0x447   : > { %12549 = vst [vmem:[#allocation53_spill] sm:$0xff] %v10212_v32  ;;  %v3829_v45 = vpop.f32.mrf.mxu1 }
 0x448   : > { %v3532_v24 = vpop.f32.mrf.mxu3  ;;  %4618 = vst.msk [vmem:[#allocation2 + $0x48] sm:$0xf] %vm4598_vm9, %v8279_v54 }
 0x449   : > { %v3570_v21 = vadd.f32 %v3532_v24, %v12550_v53  ;;  %4619 = vst.msk [vmem:[#allocation2 + $0x4c] sm:$0xf] %vm4598_vm9, %v8279_v54 }
 0x44a   : > { %4621 = vst.msk [vmem:[#allocation2 + $0x54] sm:$0xf] %vm4598_vm9, %v8279_v54 }
 0x44b   : > { %v3706_v42 = vadd.f32 %v3668_v18, %v3570_v21  ;;  %v10224_v18 = vpop.f32.mrf.mxu2  ;;  %4622 = vst.msk [vmem:[#allocation2 + $0x58] sm:$0xf] %vm4598_vm9, %v8279_v54 }
 0x44c   : > { %12554 = vst [vmem:[#allocation9_spill] sm:$0xff] %v10224_v18 }
 0x44d   : > { %v3860_v3 = vadd.f32 %v3822_v47, %v3706_v42  ;;  %4624 = vst.msk [vmem:[#allocation2 + $0x60] sm:$0xf] %vm4598_vm9, %v8279_v54 }
 0x44e   : > { %v3673_v11 = vpop.f32.mrf.mxu0  ;;  %4625 = vst.msk [vmem:[#allocation2 + $0x64] sm:$0xf] %vm4598_vm9, %v8279_v54 }
 0x44f   : > { %v10215_v28 = vadd.f32 %v3964_v52, %v3860_v3  ;;  %v4322_v43 = vpop.f32.mrf.mxu1  ;;  %v12560_v3 = vld [vmem:[#allocation72_spill] sm:$0xff]  ;;  %4627 = vst.msk [vmem:[#allocation2 + $0x6c] sm:$0xf] %vm4598_vm9, %v8279_v54 }
 0x450   : > { %v3534_v19 = vpop.f32.mrf.mxu3  ;;  %4628 = vst.msk [vmem:[#allocation2 + $0x70] sm:$0xf] %vm4598_vm9, %v8279_v54 }
 0x451   : > { %12551 = vst [vmem:[#allocation55_spill] sm:$0xff] %v10215_v28  ;;  %v3571_v33 = vadd.f32 %v3534_v19, %v12552_v56  ;;  %7862 = vmatmul.msk.bf16.gmra.mxu0 %vm798_vm3, %v12553_v55  ;;  %v12561_v19 = vld [vmem:[#allocation33_spill] sm:$0xff]  ;;  %v12563_v55 = vld [vmem:[#allocation14_spill] sm:$0xff] }
 0x452   : > { %7880 = vmatmul.msk.bf16.gmra.mxu1 %vm798_vm3, %v12555_v0  ;;  %4630 = vst.msk [vmem:[#allocation2 + $0x78] sm:$0xf] %vm4598_vm9, %v8279_v54 }
 0x453   : > { %v3707_v47 = vadd.f32 %v3670_v16, %v3571_v33  ;;  %v3969_v24 = vpop.f32.mrf.mxu2  ;;  %v12562_v33 = vld [vmem:[#allocation79_spill] sm:$0xff]  ;;  %4631 = vst.msk [vmem:[#allocation2 + $0x7c] sm:$0xf] %vm4598_vm9, %v8279_v54 }
 0x454   : > { %4633 = vst.msk [vmem:[#allocation2 + $0x84] sm:$0xf] %vm4598_vm9, %v8279_v54 }
 0x455   : > { %7846 = vmatmul.msk.bf16.gmra.mxu3 %vm798_vm3, %v12556_v48  ;;  %v10236_v62 = vadd.f32 %v3824_v14, %v3707_v47  ;;  %4634 = vst.msk [vmem:[#allocation2 + $0x88] sm:$0xf] %vm4598_vm9, %v8279_v54 }
 0x456   : > { %v3675_v49 = vpop.f32.mrf.mxu0  ;;  %4636 = vst.msk [vmem:[#allocation2 + $0x90] sm:$0xf] %vm4598_vm9, %v8279_v54 }
 0x457   : > { %12557 = vst [vmem:[#allocation67_spill] sm:$0xff] %v10236_v62  ;;  %v10247_v16 = vpop.f32.mrf.mxu1 }
 0x458   : > { %v3537_v63 = vpop.f32.mrf.mxu3  ;;  %4637 = vst.msk [vmem:[#allocation2 + $0x94] sm:$0xf] %vm4598_vm9, %v8279_v54 }
 0x459   : > { %v3572_v36 = vadd.f32 %v3537_v63, %v12558_v12  ;;  %4639 = vst.msk [vmem:[#allocation2 + $0x9c] sm:$0xf] %vm4598_vm9, %v8279_v54  ;;  %v10301_v12 = vld [vmem:[#allocation2] sm:$0xf] }
 0x45a   : > { %4640 = vst.msk [vmem:[#allocation2 + $0xa0] sm:$0xf] %vm4598_vm9, %v8279_v54 }
 0x45b   : > { %v3708_v14 = vadd.f32 %v3673_v11, %v3572_v36  ;;  %4642 = vst.msk [vmem:[#allocation2 + $0xa8] sm:$0xf] %vm4598_vm9, %v8279_v54 }
 0x45c   : > { %4643 = vst.msk [vmem:[#allocation2 + $0xac] sm:$0xf] %vm4598_vm9, %v8279_v54 }
 0x45d   : > { %v3862_v52 = vadd.f32 %v3827_v38, %v3708_v14  ;;  %v10308_v14 = vld [vmem:[%s12210_s4] ss:$0 sm:$0xff]  ;;  %4645 = vst.msk [vmem:[#allocation2 + $0xb4] sm:$0xf] %vm4598_vm9, %v8279_v54 }
 0x45e   : > { %v4184_v53 = vpop.f32.mrf.mxu0  ;;  %4646 = vst.msk [vmem:[#allocation2 + $0xb8] sm:$0xf] %vm4598_vm9, %v8279_v54 }
 0x45f   : > { %v10261_v21 = vadd.f32 %v3969_v24, %v3862_v52  ;;  %v10270_v38 = vpop.f32.mrf.mxu1  ;;  %v10314_v52 = vld [vmem:[#allocation2 + $0x4] sm:$0xf]  ;;  %4648 = vst.msk [vmem:[#allocation2 + $0xc0] sm:$0xf] %vm4598_vm9, %v8279_v54 }
 0x460   : > { %v3539_v42 = vpop.f32.mrf.mxu3  ;;  %4649 = vst.msk [vmem:[#allocation2 + $0xc4] sm:$0xf] %vm4598_vm9, %v8279_v54 }
 0x461   : > { %12559 = vst [vmem:[#allocation64_spill] sm:$0xff] %v10261_v21  ;;  %v3573_v11 = vadd.f32 %v3539_v42, %v12560_v3  ;;  %7863 = vmatmul.msk.bf16.gmra.mxu0 %vm798_vm3, %v12561_v19  ;;  %v5191_v42 = vshrl.u32 %v10301_v12, 16 }
 0x462   : > { %7881 = vmatmul.msk.bf16.gmra.mxu1 %vm798_vm3, %v12562_v33  ;;  %v5204_v33 = vshrl.u32 %v10314_v52, 16  ;;  %4651 = vst.msk [vmem:[#allocation2 + $0xcc] sm:$0xf] %vm4598_vm9, %v8279_v54 }
 0x463   : > { %v3709_v56 = vadd.f32 %v3675_v49, %v3573_v11  ;;  %v12565_v49 = vld [vmem:[#allocation30_spill] sm:$0xff]  ;;  %v12566_v11 = vld [vmem:[#allocation15_spill] sm:$0xff]  ;;  %4652 = vst.msk [vmem:[#allocation2 + $0xd0] sm:$0xf] %vm4598_vm9, %v8279_v54 }
 0x464   : > { %4605 = vst.msk [vmem:[#allocation2 + $0x14] sm:$0x1] %vm4601_vm10, %v8279_v54 }
 0x465   : > { %7847 = vmatmul.msk.bf16.gmra.mxu3 %vm798_vm3, %v12563_v55  ;;  %v10284_v47 = vadd.f32 %v3829_v45, %v3709_v56  ;;  %v5200_v56 = vshll.u32 %v10314_v52, 16  ;;  %4602 = vst.msk [vmem:[#allocation2 + $0x8] sm:$0x1] %vm4601_vm10, %v8279_v54 }
 0x466   : > { %v4186_v0 = vpop.f32.mrf.mxu0  ;;  %4608 = vst.msk [vmem:[#allocation2 + $0x20] sm:$0x1] %vm4601_vm10, %v8279_v54 }
 0x467   : > { %12564 = vst [vmem:[#allocation57_spill] sm:$0xff] %v10284_v47  ;;  %v10297_v45 = vpop.f32.mrf.mxu1  ;;  %v12570_v47 = vld [vmem:[#allocation19_spill] sm:$0xff] }
 0x468   : > { %v4026_v48 = vpop.f32.mrf.mxu3  ;;  %4611 = vst.msk [vmem:[#allocation2 + $0x2c] sm:$0x1] %vm4601_vm10, %v8279_v54 }
 0x469   : > { %v4106_v63 = vadd.f32 %v4026_v48, %v12565_v49  ;;  %v12567_v48 = vld [vmem:[#allocation78_spill] sm:$0xff]  ;;  %4614 = vst.msk [vmem:[#allocation2 + $0x38] sm:$0x1] %vm4601_vm10, %v8279_v54 }
 0x46a   : > { %4617 = vst.msk [vmem:[#allocation2 + $0x44] sm:$0x1] %vm4601_vm10, %v8279_v54 }
 0x46b   : > { %v4264_v36 = vadd.f32 %v4184_v53, %v4106_v63  ;;  %v5194_v53 = vshll.u32 %v10301_v12, 16  ;;  %v12568_v63 = vld [vmem:[#allocation23_spill] sm:$0xff]  ;;  %4620 = vst.msk [vmem:[#allocation2 + $0x50] sm:$0x1] %vm4601_vm10, %v8279_v54 }
 0x46c   : > { %4623 = vst.msk [vmem:[#allocation2 + $0x5c] sm:$0x1] %vm4601_vm10, %v8279_v54 }
 0x46d   : > { %v4402_v24 = vadd.f32 %v4322_v43, %v4264_v36  ;;  %4626 = vst.msk [vmem:[#allocation2 + $0x68] sm:$0x1] %vm4601_vm10, %v8279_v54 }
 0x46e   : > { %v4189_v3 = vpop.f32.mrf.mxu0  ;;  %4629 = vst.msk [vmem:[#allocation2 + $0x74] sm:$0x1] %vm4601_vm10, %v8279_v54 }
 0x46f   : > { %v4434_v19 = vadd.f32 %v4402_v24, %v12566_v11  ;;  %v10333_v36 = vpop.f32.mrf.mxu1  ;;  %v5193_v24 = vrot.slane %v5191_v42, 4  ;;  %v5196_v11 = vrot.slane %v5194_v53, 5  ;;  %4632 = vst.msk [vmem:[#allocation2 + $0x80] sm:$0x1] %vm4601_vm10, %v8279_v54 }
 0x470   : > { %v4028_v43 = vpop.f32.mrf.mxu3  ;;  %4635 = vst.msk [vmem:[#allocation2 + $0x8c] sm:$0x1] %vm4601_vm10, %v8279_v54 }
 0x471   : > { %v4470_v55 = vadd.f32 %v10308_v14, %v4434_v19  ;;  %v4107_v49 = vadd.f32 %v4028_v43, %v12567_v48  ;;  %7864 = vmatmul.msk.bf16.gmra.mxu0 %vm798_vm3, %v12568_v63  ;;  %v12569_v43 = vld [vmem:[#allocation81_spill] sm:$0xff]  ;;  %v5202_v48 = vrot.slane %v5200_v56, 5  ;;  %v5206_v63 = vrot.slane %v5204_v33, 4  ;;  %4638 = vst.msk [vmem:[#allocation2 + $0x98] sm:$0x1] %vm4601_vm10, %v8279_v54 }
 0x472   : > { %7882 = vmatmul.msk.bf16.gmra.mxu1 %vm798_vm3, %v12569_v43  ;;  %v5197_v18 = vor.u32 %v5196_v11, %v5193_v24  ;;  %v12572_v24 = vld [vmem:[#allocation32_spill] sm:$0xff]  ;;  %4641 = vst.msk [vmem:[#allocation2 + $0xa4] sm:$0x1] %vm4601_vm10, %v8279_v54 }
 0x473   : > { %vm4502_vm11 = vcmp.ge.f32.partialorder %v4470_v55, 0.0  ;;  %v4534_v21 = vmul.f32 0.2, %v4470_v55  ;;  %v4265_v19 = vadd.f32 %v4186_v0, %v4107_v49  ;;  %v12571_v49 = vld [vmem:[#allocation17_spill] sm:$0xff]  ;;  %v5207_v33 = vor.u32 %v5206_v63, %v5202_v48  ;;  %4644 = vst.msk [vmem:[#allocation2 + $0xb0] sm:$0x1] %vm4601_vm10, %v8279_v54 }
 0x474   : > { %v5198_v43 = vrot.slane %v5197_v18, 4  ;;  %4647 = vst.msk [vmem:[#allocation2 + $0xbc] sm:$0x1] %vm4601_vm10, %v8279_v54 }
 0x475   : > { %v4566_v42 = vsel %vm4502_vm11, %v4470_v55, %v4534_v21  ;;  %v4403_v53 = vadd.f32 %v10247_v16, %v4265_v19  ;;  %7848 = vmatmul.msk.bf16.gmra.mxu3 %vm798_vm3, %v12570_v47  ;;  %v5181_v47 = vld [vmem:[%s12211_s5] sm:$0xf]  ;;  %4650 = vst.msk [vmem:[#allocation2 + $0xc8] sm:$0x1] %vm4601_vm10, %v8279_v54 }
 0x476   : > { %v4654_v62 = vpack.c.bf16 %v4566_v42, %v4566_v42  ;;  %v10350_v0 = vpop.f32.mrf.mxu0  ;;  %v5893_v42 = vsel %vm5671_vm8, %v5181_v47, 0  ;;  %v5203_v28 = vsel %vm8383_vm7, %v5198_v43, %v5202_v48  ;;  %v5185_v48 = vld [vmem:[%s12211_s5 + $0x10] sm:$0xf]  ;;  %4653 = vst.msk [vmem:[#allocation2 + $0xd4] sm:$0x1] %vm4601_vm10, %v8279_v54 }
 0x477   : > { %v4435_v56 = vadd.f32 %v4403_v53, %v12571_v49  ;;  %v10364_v19 = vpop.f32.mrf.mxu1  ;;  %5902 = vmatpush.bf16.msrb.mxu3 %v5893_v42 }
 0x478   : > { %v4690_v16 = vshrl.u32 %v4654_v62, 16  ;;  %v4031_v21 = vpop.f32.mrf.mxu3  ;;  %v4693_v49 = vshll.u32 %v4654_v62, 16  ;;  %v10380_v62 = vld [vmem:[#allocation2 + $0x8] sm:$0x1] }
 0x479   : > { %v4471_v55 = vadd.f32 %v10308_v14, %v4435_v56  ;;  %v4108_v11 = vadd.f32 %v4031_v21, %v12572_v24  ;;  %v5013_v56 = vld [vmem:[#allocation2 + $0xc] sm:$0xf]  ;;  %v5210_v37 = vshll.u32 %v10380_v62, 16 }
 0x47a   : > { %v10367_v53 = vrot.slane %v4690_v16, 7  ;;  %v5208_v16 = vrot.slane %v5207_v33, 4 }
 0x47b   : > { %vm4503_vm14 = vcmp.ge.f32.partialorder %v4471_v55, 0.0  ;;  %v4535_v21 = vmul.f32 0.2, %v4471_v55  ;;  %v4266_v24 = vadd.f32 %v4189_v3, %v4108_v11 }
 0x47c   : > { %v4695_v18 = vor.u32 %v4693_v49, %v10367_v53 }
 0x47d   : > { %v4567_v47 = vsel %vm4503_vm14, %v4471_v55, %v4535_v21  ;;  %v4404_v42 = vadd.f32 %v10270_v38, %v4266_v24  ;;  %v12575_v55 = vld [vmem:[#allocation34_spill] sm:$0xff]  ;;  %v5212_v38 = vrot.slane %v5210_v37, 5  ;;  %v5574_v21 = vunpack.c.l.b16 %v5203_v28  ;;  %v5183_v28 = vld [vmem:[%s12211_s5 + $0x8] sm:$0xf] }
 0x47e   : > { %v5014_v3 = vsel %vm10373_vm13, %v4695_v18, %v5013_v56  ;;  %v4655_v11 = vpack.c.bf16 %v4567_v47, %v4567_v47  ;;  %v10392_v33 = vpop.f32.mrf.mxu0  ;;  %v6495_v24 = vsel %vm5671_vm8, %v5185_v48, 0  ;;  %v5019_v18 = vld [vmem:[#allocation2 + $0x14] sm:$0x1] }
 0x47f   : > { %5015 = vst [vmem:[#allocation2 + $0xc] sm:$0xf] %v5014_v3  ;;  %v4436_v49 = vadd.f32 %v4404_v42, %v12575_v55  ;;  %v12576_v42 = vld [vmem:[#allocation80_spill] sm:$0xff]  ;;  %v5213_v3 = vsel %vm8383_vm7, %v5208_v16, %v5212_v38  ;;  %v10409_v32 = vpop.f32.mrf.mxu1  ;;  %6504 = vmatpush.bf16.msrb.mxu2 %v6495_v24  ;;  %v6209_v38 = vsel %vm5671_vm8, %v5183_v28, 0 }
 0x480   : > { %v4698_v43 = vshrl.u32 %v4655_v11, 16  ;;  %v4033_v56 = vpop.f32.mrf.mxu3  ;;  %v12577_v55 = vld [vmem:[#allocation28_spill] sm:$0xff]  ;;  %v5575_v16 = vunpack.c.l.b16 %v5213_v3  ;;  %6218 = vmatpush.bf16.msrb.mxu0 %v6209_v38 }
 0x481   : > { %v4472_v47 = vadd.f32 %v10308_v14, %v4436_v49  ;;  %v4109_v37 = vadd.f32 %v4033_v56, %v12576_v42  ;;  %7865 = vmatmul.msk.bf16.gmra.mxu0 %vm798_vm3, %v12577_v55  ;;  %v4701_v56 = vshll.u32 %v4655_v11, 16 }
 0x482   : > { %v4700_v49 = vrot.slane %v4698_v43, 7  ;;  %v4696_v43 = vrot.slane %v10367_v53, 4  ;;  %v5606_v28 = vpack.c.b16 %v5575_v16, %v5574_v21  ;;  %7883 = vmatmul.msk.bf16.gmra.mxu1 %vm798_vm3, %v10000_v27 }
 0x483   : > { %vm4504_vm5 = vcmp.ge.f32.partialorder %v4472_v47, 0.0  ;;  %v4536_v42 = vmul.f32 0.2, %v4472_v47  ;;  %v4267_v11 = vadd.f32 %v10350_v0, %v4109_v37  ;;  %v8257_v0 = vld [vmem:[%s9075_s21 + $0x90] sm:$0xff] }
 0x484   : > { %v4703_v3 = vor.u32 %v4701_v56, %v4700_v49  ;;  %v4705_v55 = vrot.slane %v4700_v49, 4  ;;  %7888 = vmatmul.msk.bf16.vlgmr.msra.gmra.mxu2 %vm5622_vm6, %v5606_v28 }
 0x485   : > { %v4568_v58 = vsel %vm4504_vm5, %v4472_v47, %v4536_v42  ;;  %v4405_v23 = vadd.f32 %v10297_v45, %v4267_v11  ;;  %7849 = vmatmul.msk.bf16.gmra.mxu3 %vm798_vm3, %v8257_v0  ;;  %v12582_v45 = vld [vmem:[#allocation25_spill] sm:$0xff] }
 0x486   : > { %v4704_v53 = vsel %vm10416_vm1, %v4696_v43, %v4703_v3  ;;  %v5020_v37 = vsel %vm10425_vm2, %v4705_v55, %v5019_v18  ;;  %v4656_v21 = vpack.c.bf16 %v4568_v58, %v4568_v58  ;;  %v4196_v27 = vpop.f32.mrf.mxu0  ;;  %v5130_v49 = vld [vmem:[#allocation2 + $0xc] sm:$0xf] }
 0x487   : > { %5016 = vst.msk [vmem:[#allocation2 + $0x10] sm:$0xf] %vm4598_vm9, %v4704_v53  ;;  %v4437_v47 = vadd.f32 %v4405_v23, %v12582_v45  ;;  %v5215_v56 = vshrl.u32 %v5130_v49, 16  ;;  %v5218_v16 = vshll.u32 %v5130_v49, 16  ;;  %v5184_v18 = vld [vmem:[%s12211_s5 + $0xc] sm:$0xf]  ;;  %v10458_v3 = vpop.f32.mrf.mxu1 }
 0x488   : > { %5021 = vst [vmem:[#allocation2 + $0x14] sm:$0x1] %v5020_v37  ;;  %v4707_v38 = vshrl.u32 %v4656_v21, 16  ;;  %v4036_v42 = vpop.f32.mrf.mxu3  ;;  %v12583_v11 = vld [vmem:[#allocation21_spill] sm:$0xff]  ;;  %v6341_v23 = vsel %vm5671_vm8, %v5184_v18, 0  ;;  %v4710_v0 = vshll.u32 %v4656_v21, 16 }
 0x489   : > { %v4473_v58 = vadd.f32 %v10308_v14, %v4437_v47  ;;  %v4110_v43 = vadd.f32 %v4036_v42, %v12583_v11  ;;  %v5217_v55 = vrot.slane %v5215_v56, 4  ;;  %6350 = vmatpush.bf16.msrb.mxu1 %v6341_v23  ;;  %v5220_v53 = vrot.slane %v5218_v16, 5  ;;  %v5022_v37 = vld [vmem:[#allocation2 + $0x18] sm:$0xf]  ;;  %v12584_v16 = vld [vmem:[#allocation18_spill] sm:$0xff] }
 0x48a   : > { %v4709_v28 = vrot.slane %v4707_v38, 7  ;;  %v7985_v38 = vrot.slane %v5130_v49, 9 }
 0x48b   : > { %vm4505_vm11 = vcmp.ge.f32.partialorder %v4473_v58, 0.0  ;;  %v4537_v45 = vmul.f32 0.2, %v4473_v58  ;;  %v4268_v30 = vadd.f32 %v10392_v33, %v4110_v43  ;;  %v5221_v54 = vor.u32 %v5220_v53, %v5217_v55 }
 0x48c   : > { %v4712_v10 = vor.u32 %v4710_v0, %v4709_v28  ;;  %v4713_v42 = vrot.slane %v4709_v28, 4  ;;  %v12585_v28 = vld [vmem:[#allocation16_spill] sm:$0xff] }
 0x48d   : > { %v4569_v46 = vsel %vm4505_vm11, %v4473_v58, %v4537_v45  ;;  %v4406_v47 = vadd.f32 %v10333_v36, %v4268_v30  ;;  %v5222_v58 = vrot.slane %v5221_v54, 4 }
 0x48e   : > { %v5023_v11 = vsel %vm10373_vm13, %v4712_v10, %v5022_v37  ;;  %v4657_v18 = vpack.c.bf16 %v4569_v46, %v4569_v46  ;;  %v10465_v56 = vpop.f32.mrf.mxu0  ;;  %v5131_v21 = vld [vmem:[#allocation2 + $0x10] sm:$0xf]  ;;  %v12586_v46 = vld [vmem:[#allocation20_spill] sm:$0xff] }
 0x48f   : > { %5024 = vst [vmem:[#allocation2 + $0x18] sm:$0xf] %v5023_v11  ;;  %v4438_v23 = vadd.f32 %v4406_v47, %v12584_v16  ;;  %v5132_v59 = vld [vmem:[#allocation2 + $0x14] sm:$0x1]  ;;  %v5224_v2 = vshll.u32 %v5131_v21, 16  ;;  %v5228_v33 = vshrl.u32 %v5131_v21, 16  ;;  %v10472_v53 = vpop.f32.mrf.mxu1 }
 0x490   : > { %v4715_v43 = vshrl.u32 %v4657_v18, 16  ;;  %v4038_v55 = vpop.f32.mrf.mxu3  ;;  %v5234_v0 = vshll.u32 %v5132_v59, 16  ;;  %v6009_v30 = vrot.slane %v5131_v21, 5  ;;  %v4718_v47 = vshll.u32 %v4657_v18, 16  ;;  %v5026_v16 = vld [vmem:[#allocation2 + $0x20] sm:$0x1] }
 0x491   : > { %v4474_v36 = vadd.f32 %v10308_v14, %v4438_v23  ;;  %v4111_v10 = vadd.f32 %v4038_v55, %v12585_v28  ;;  %7866 = vmatmul.msk.bf16.gmra.mxu0 %vm798_vm3, %v12586_v46  ;;  %v5226_v49 = vrot.slane %v5224_v2, 5  ;;  %v5230_v37 = vrot.slane %v5228_v33, 4 }
 0x492   : > { %v4717_v45 = vrot.slane %v4715_v43, 7  ;;  %v6010_v11 = vsel %vm8355_vm4, %v7985_v38, %v6009_v30  ;;  %v6011_v54 = vrot.slane %v6009_v30, 4  ;;  %7884 = vmatmul.msk.bf16.gmra.mxu1 %vm798_vm3, %v10035_v51  ;;  %v5236_v33 = vrot.slane %v5234_v0, 5 }
 0x493   : > { %vm4506_vm10 = vcmp.ge.f32.partialorder %v4474_v36, 0.0  ;;  %v4538_v21 = vmul.f32 0.2, %v4474_v36  ;;  %v4269_v23 = vadd.f32 %v4196_v27, %v4111_v10  ;;  %v5227_v55 = vsel %vm8383_vm7, %v5222_v58, %v5226_v49 }
 0x494   : > { %v4720_v28 = vor.u32 %v4718_v47, %v4717_v45  ;;  %v4722_v46 = vrot.slane %v4717_v45, 4  ;;  %v5231_v2 = vor.u32 %v5230_v37, %v5226_v49  ;;  %v5576_v38 = vunpack.c.l.b16 %v5227_v55  ;;  %v12588_v55 = vld [vmem:[#allocation11_spill] sm:$0xff] }
 0x495   : > { %v4570_v43 = vsel %vm4506_vm10, %v4474_v36, %v4538_v21  ;;  %v4407_v18 = vadd.f32 %v10364_v19, %v4269_v23  ;;  %7850 = vmatmul.msk.bf16.gmra.mxu3 %vm798_vm3, %v8258_v4  ;;  %v6012_v30 = vrot.slane %v5132_v59, 5  ;;  %v12587_v19 = vld [vmem:[#allocation22_spill] sm:$0xff] }
 0x496   : > { %v4721_v27 = vsel %vm10416_vm1, %v4713_v42, %v4720_v28  ;;  %v5027_v58 = vsel %vm10425_vm2, %v4722_v46, %v5026_v16  ;;  %v4658_v10 = vpack.c.bf16 %v4570_v43, %v4570_v43  ;;  %v10487_v45 = vpop.f32.mrf.mxu0  ;;  %v5232_v51 = vrot.slane %v5231_v2, 4  ;;  %v10489_v49 = vld [vmem:[#allocation2 + $0x18] sm:$0xf] }
 0x497   : > { %5025 = vst.msk [vmem:[#allocation2 + $0x1c] sm:$0xf] %vm4598_vm9, %v4721_v27  ;;  %v4439_v0 = vadd.f32 %v4407_v18, %v12587_v19  ;;  %v5239_v4 = vshrl.u32 %v10489_v49, 16  ;;  %v5242_v59 = vshll.u32 %v10489_v49, 16  ;;  %v6013_v42 = vsel %vm8355_vm4, %v6011_v54, %v6012_v30  ;;  %v10501_v2 = vpop.f32.mrf.mxu1 }
 0x498   : > { %5028 = vst [vmem:[#allocation2 + $0x20] sm:$0x1] %v5027_v58  ;;  %v4724_v36 = vshrl.u32 %v4658_v10, 16  ;;  %v4041_v37 = vpop.f32.mrf.mxu3  ;;  %v5237_v47 = vsel %vm8383_vm7, %v5232_v51, %v5236_v33  ;;  %v6114_v16 = vunpack.c.l.b16 %v6010_v11  ;;  %v6115_v21 = vunpack.c.l.b16 %v6013_v42  ;;  %v5029_v58 = vld [vmem:[#allocation2 + $0x24] sm:$0xf] }
 0x499   : > { %v4475_v23 = vadd.f32 %v10308_v14, %v4439_v0  ;;  %v4112_v28 = vadd.f32 %v4041_v37, %v12588_v55  ;;  %v5577_v46 = vunpack.c.l.b16 %v5237_v47  ;;  %v5241_v43 = vrot.slane %v5239_v4, 4  ;;  %v12591_v42 = vld [vmem:[#allocation8_spill] sm:$0xff] }
 0x49a   : > { %v10503_v18 = vrot.slane %v4724_v36, 7  ;;  %v4727_v27 = vshll.u32 %v4658_v10, 16  ;;  %v5244_v54 = vrot.slane %v5242_v59, 5  ;;  %v10505_v30 = vpack.c.b16 %v6115_v21, %v6114_v16 }
 0x49b   : > { %vm4507_vm12 = vcmp.ge.f32.partialorder %v4475_v23, 0.0  ;;  %v4539_v19 = vmul.f32 0.2, %v4475_v23  ;;  %v4270_v11 = vadd.f32 %v10465_v56, %v4112_v28  ;;  %v10508_v33 = vpack.c.b16 %v5577_v46, %v5576_v38 }
 0x49c   : > { %12589 = vst [vmem:[#allocation60_spill] sm:$0xff] %v10505_v30  ;;  %v4729_v51 = vor.u32 %v4727_v27, %v10503_v18  ;;  %v5245_v0 = vor.u32 %v5244_v54, %v5241_v43  ;;  %v10513_v37 = vadd.f32 %v12591_v42, %v10064_v22  ;;  %v10517_v10 = vadd.f32 %v10066_v57, %v10096_v8  ;;  %v12592_v8 = vld [vmem:[#allocation4_spill] sm:$0xff]  ;;  %v12594_v54 = vld [vmem:[#allocation38_spill] sm:$0xff] }
 0x49d   : > { %12590 = vst [vmem:[#allocation12_spill] sm:$0xff] %v10508_v33  ;;  %v4571_v4 = vsel %vm4507_vm12, %v4475_v23, %v4539_v19  ;;  %v4408_v59 = vadd.f32 %v10409_v32, %v4270_v11  ;;  %7889 = vmatmul.msk.bf16.gmra.mxu2 %vm5622_vm6, %v10508_v33  ;;  %v4730_v56 = vrot.slane %v10503_v18, 4  ;;  %v7986_v16 = vrot.slane %v10489_v49, 9  ;;  %v10569_v33 = vld [vmem:[%s9075_s21 + $0xd4] sm:$0x1] }
 0x49e   : > { %v5030_v38 = vsel %vm10373_vm13, %v4729_v51, %v5029_v58  ;;  %v4659_v36 = vpack.c.bf16 %v4571_v4, %v4571_v4  ;;  %v10525_v47 = vpop.f32.mrf.mxu0  ;;  %v10527_v22 = vld [vmem:[#allocation2 + $0x1c] sm:$0xf]  ;;  %v10532_v57 = vadd.f32 %v10098_v7, %v10114_v35  ;;  %v5246_v43 = vrot.slane %v5245_v0, 4  ;;  %v10548_v51 = vld [vmem:[%s9075_s21 + $0xd0] sm:$0xf] }
 0x49f   : > { %5031 = vst [vmem:[#allocation2 + $0x24] sm:$0xf] %v5030_v38  ;;  %v4440_v32 = vadd.f32 %v4408_v59, %v12592_v8  ;;  %v10535_v21 = vld [vmem:[#allocation2 + $0x20] sm:$0x1]  ;;  %v5248_v23 = vshll.u32 %v10527_v22, 16  ;;  %v5252_v55 = vshrl.u32 %v10527_v22, 16  ;;  %v10545_v58 = vpop.f32.mrf.mxu1 }
 0x4a0   : > { %v4732_v28 = vshrl.u32 %v4659_v36, 16  ;;  %v4043_v46 = vpop.f32.mrf.mxu3  ;;  %v5258_v18 = vshll.u32 %v10535_v21, 16  ;;  %v12276_v49 = vrot.slane %v10527_v22, 5  ;;  %v12593_v35 = vld [vmem:[#allocation27_spill] sm:$0xff]  ;;  %v4735_v0 = vshll.u32 %v4659_v36, 16 }
 0x4a1   : > { %v4476_v7 = vadd.f32 %v10308_v14, %v4440_v32  ;;  %v4113_v27 = vadd.f32 %v4043_v46, %v12593_v35  ;;  %7867 = vmatmul.msk.bf16.gmra.mxu0 %vm798_vm3, %v12594_v54  ;;  %v5250_v19 = vrot.slane %v5248_v23, 5  ;;  %v5254_v11 = vrot.slane %v5252_v55, 4  ;;  %v5033_v4 = vld [vmem:[#allocation2 + $0x2c] sm:$0x1] }
 0x4a2   : > { %v4734_v42 = vrot.slane %v4732_v28, 7  ;;  %v4299_v59 = vrot.slane %v10548_v51, 5  ;;  %v10555_v38 = vsel %vm8355_vm4, %v7986_v16, %v12276_v49  ;;  %v5260_v23 = vrot.slane %v5258_v18, 5  ;;  %v10559_v55 = vld [vmem:[%s9075_s21 + $0xcc] sm:$0xf]  ;;  %7885 = vmatmul.msk.bf16.gmra.mxu1 %vm798_vm3, %v10068_v5 }
 0x4a3   : > { %vm4508_vm14 = vcmp.ge.f32.partialorder %v4476_v7, 0.0  ;;  %v4540_v8 = vmul.f32 0.2, %v4476_v7  ;;  %v4271_v32 = vadd.f32 %v10487_v45, %v4113_v27  ;;  %v5251_v46 = vsel %vm8383_vm7, %v5246_v43, %v5250_v19  ;;  %v8259_v49 = vld [vmem:[%s9075_s21 + $0xa8] sm:$0xff] }
 0x4a4   : > { %v4737_v28 = vor.u32 %v4735_v0, %v4734_v42  ;;  %v4739_v36 = vrot.slane %v4734_v42, 4  ;;  %v5255_v35 = vor.u32 %v5254_v11, %v5250_v19  ;;  %v7871_v45 = vrot.slane %v10559_v55, 9 }
 0x4a5   : > { %v4572_v54 = vsel %vm4508_vm14, %v4476_v7, %v4540_v8  ;;  %v4409_v16 = vadd.f32 %v10458_v3, %v4271_v32  ;;  %7851 = vmatmul.msk.bf16.gmra.mxu3 %vm798_vm3, %v8259_v49  ;;  %v4301_v18 = vrot.slane %v4299_v59, 4  ;;  %v12595_v3 = vld [vmem:[#allocation5_spill] sm:$0xff]  ;;  %v5578_v11 = vunpack.c.l.b16 %v5251_v46 }
 0x4a6   : > { %v4738_v27 = vsel %vm10416_vm1, %v4730_v56, %v4737_v28  ;;  %v5034_v5 = vsel %vm10425_vm2, %v4739_v36, %v5033_v4  ;;  %v4660_v42 = vpack.c.bf16 %v4572_v54, %v4572_v54  ;;  %v10576_v43 = vpop.f32.mrf.mxu0  ;;  %v5256_v7 = vrot.slane %v5255_v35, 4  ;;  %v10578_v19 = vld [vmem:[#allocation2 + $0x24] sm:$0xf] }
 0x4a7   : > { %5032 = vst.msk [vmem:[#allocation2 + $0x28] sm:$0xf] %vm4598_vm9, %v4738_v27  ;;  %v4441_v49 = vadd.f32 %v4409_v16, %v12595_v3  ;;  %v5263_v0 = vshrl.u32 %v10578_v19, 16  ;;  %v5266_v8 = vshll.u32 %v10578_v19, 16  ;;  %v4300_v28 = vsel %vm8355_vm4, %v7871_v45, %v4299_v59  ;;  %v10591_v16 = vpop.f32.mrf.mxu1 }
 0x4a8   : > { %5035 = vst [vmem:[#allocation2 + $0x2c] sm:$0x1] %v5034_v5  ;;  %v4741_v56 = vshrl.u32 %v4660_v42, 16  ;;  %v4046_v32 = vpop.f32.mrf.mxu3  ;;  %v5261_v4 = vsel %vm8383_vm7, %v5256_v7, %v5260_v23  ;;  %v4302_v36 = vrot.slane %v10569_v33, 5  ;;  %v4744_v5 = vshll.u32 %v4660_v42, 16 }
 0x4a9   : > { %v4477_v35 = vadd.f32 %v10308_v14, %v4441_v49  ;;  %v4114_v54 = vadd.f32 %v4046_v32, %v10050_v1  ;;  %v5579_v46 = vunpack.c.l.b16 %v5261_v4  ;;  %v5265_v27 = vrot.slane %v5263_v0, 4  ;;  %v5036_v7 = vld [vmem:[#allocation2 + $0x30] sm:$0xf] }
 0x4aa   : > { %v10593_v3 = vrot.slane %v4741_v56, 7  ;;  %v5268_v31 = vrot.slane %v5266_v8, 5  ;;  %v4303_v23 = vsel %vm8355_vm4, %v4301_v18, %v4302_v36  ;;  %v10602_v1 = vadd.f32 %v10116_v6, %v10128_v25 }
 0x4ab   : > { %vm4509_vm15 = vcmp.ge.f32.partialorder %v4477_v35, 0.0  ;;  %v4541_v59 = vmul.f32 0.2, %v4477_v35  ;;  %v4272_v45 = vadd.f32 %v10525_v47, %v4114_v54  ;;  %v10598_v13 = vpack.c.b16 %v5579_v46, %v5578_v11 }
 0x4ac   : > { %v4746_v49 = vor.u32 %v4744_v5, %v10593_v3  ;;  %v5269_v0 = vor.u32 %v5268_v31, %v5265_v27  ;;  %v4304_v56 = vunpack.c.l.b16 %v4300_v28  ;;  %v4747_v42 = vrot.slane %v10593_v3, 4 }
 0x4ad   : > { %v4573_v8 = vsel %vm4509_vm15, %v4477_v35, %v4541_v59  ;;  %v4410_v18 = vadd.f32 %v10472_v53, %v4272_v45  ;;  %7890 = vmatmul.msk.bf16.gmra.mxu2 %vm5622_vm6, %v10598_v13  ;;  %v4139_v47 = vshrl.u32 %v10559_v55, 16  ;;  %v4305_v31 = vunpack.c.l.b16 %v4303_v23  ;;  %v12596_v53 = vld [vmem:[#allocation26_spill] sm:$0xff] }
 0x4ae   : > { %v5037_v11 = vsel %vm10373_vm13, %v4746_v49, %v5036_v7  ;;  %v4661_v32 = vpack.c.bf16 %v4573_v8, %v4573_v8  ;;  %v10612_v6 = vpop.f32.mrf.mxu0  ;;  %v10614_v25 = vld [vmem:[#allocation2 + $0x28] sm:$0xf]  ;;  %v4142_v4 = vshll.u32 %v10559_v55, 16  ;;  %v10619_v28 = vadd.f32 %v10130_v60, %v10142_v29 }
 0x4af   : > { %5038 = vst [vmem:[#allocation2 + $0x30] sm:$0xf] %v5037_v11  ;;  %v4442_v36 = vadd.f32 %v4410_v18, %v12596_v53  ;;  %v10622_v35 = vld [vmem:[#allocation2 + $0x2c] sm:$0x1]  ;;  %v5272_v54 = vshll.u32 %v10614_v25, 16  ;;  %v5276_v46 = vshrl.u32 %v10614_v25, 16  ;;  %v10631_v29 = vpop.f32.mrf.mxu1  ;;  %v10633_v18 = vpack.c.b16 %v4305_v31, %v4304_v56 }
 0x4b0   : > { %v4749_v27 = vshrl.u32 %v4661_v32, 16  ;;  %v4048_v3 = vpop.f32.mrf.mxu3  ;;  %v5270_v5 = vrot.slane %v5269_v0, 4  ;;  %v5282_v23 = vshll.u32 %v10622_v35, 16  ;;  %v4141_v7 = vrot.slane %v4139_v47, 4  ;;  %v5040_v11 = vld [vmem:[#allocation2 + $0x38] sm:$0x1] }
 0x4b1   : > { %v4478_v55 = vadd.f32 %v10308_v14, %v4442_v36  ;;  %v4115_v60 = vadd.f32 %v4048_v3, %v10513_v37  ;;  %7868 = vmatmul.msk.bf16.gmra.mxu0 %vm798_vm3, %v9594_v40  ;;  %v5274_v59 = vrot.slane %v5272_v54, 5  ;;  %v5278_v45 = vrot.slane %v5276_v46, 4  ;;  %v8260_v31 = vld [vmem:[%s9075_s21 + $0xb4] sm:$0xff] }
 0x4b2   : > { %v4751_v49 = vrot.slane %v4749_v27, 7  ;;  %v4752_v8 = vshll.u32 %v4661_v32, 16  ;;  %v4144_v0 = vrot.slane %v4142_v4, 5  ;;  %v4148_v37 = vshll.u32 %v10548_v51, 16  ;;  %7886 = vmatmul.msk.bf16.gmra.mxu1 %vm798_vm3, %v10100_v39 }
 0x4b3   : > { %vm4510_vm0 = vcmp.ge.f32.partialorder %v4478_v55, 0.0  ;;  %v4542_v47 = vmul.f32 0.2, %v4478_v55  ;;  %v4273_v53 = vadd.f32 %v10576_v43, %v4115_v60  ;;  %v5275_v40 = vsel %vm8383_vm7, %v5270_v5, %v5274_v59 }
 0x4b4   : > { %v4754_v36 = vor.u32 %v4752_v8, %v4751_v49  ;;  %v4756_v3 = vrot.slane %v4751_v49, 4  ;;  %v5279_v54 = vor.u32 %v5278_v45, %v5274_v59  ;;  %v5284_v4 = vrot.slane %v5282_v23, 5 }
 0x4b5   : > { %v4574_v32 = vsel %vm4510_vm0, %v4478_v55, %v4542_v47  ;;  %v4411_v56 = vadd.f32 %v10501_v2, %v4273_v53  ;;  %7852 = vmatmul.msk.bf16.gmra.mxu3 %vm798_vm3, %v8260_v31  ;;  %v4145_v46 = vor.u32 %v4144_v0, %v4141_v7  ;;  %v12597_v2 = vld [vmem:[#allocation37_spill] sm:$0xff]  ;;  %v5580_v59 = vunpack.c.l.b16 %v5275_v40 }
 0x4b6   : > { %v4755_v43 = vsel %vm10416_vm1, %v4747_v42, %v4754_v36  ;;  %v5041_v27 = vsel %vm10425_vm2, %v4756_v3, %v5040_v11  ;;  %v4662_v60 = vpack.c.bf16 %v4574_v32, %v4574_v32  ;;  %v10648_v39 = vpop.f32.mrf.mxu0  ;;  %v5280_v49 = vrot.slane %v5279_v54, 4  ;;  %v10650_v5 = vld [vmem:[#allocation2 + $0x30] sm:$0xf] }
 0x4b7   : > { %5039 = vst.msk [vmem:[#allocation2 + $0x34] sm:$0xf] %vm4598_vm9, %v4755_v43  ;;  %v4443_v55 = vadd.f32 %v4411_v56, %v12597_v2  ;;  %v5287_v23 = vshrl.u32 %v10650_v5, 16  ;;  %v5290_v7 = vshll.u32 %v10650_v5, 16  ;;  %v4146_v0 = vrot.slane %v4145_v46, 4  ;;  %v10660_v3 = vpop.f32.mrf.mxu1 }
 0x4b8   : > { %5042 = vst [vmem:[#allocation2 + $0x38] sm:$0x1] %v5041_v27  ;;  %v4758_v42 = vshrl.u32 %v4662_v60, 16  ;;  %v4051_v45 = vpop.f32.mrf.mxu3  ;;  %v5285_v8 = vsel %vm8383_vm7, %v5280_v49, %v5284_v4  ;;  %v4150_v11 = vrot.slane %v4148_v37, 5  ;;  %v4761_v32 = vshll.u32 %v4662_v60, 16 }
 0x4b9   : > { %v4479_v47 = vadd.f32 %v10308_v14, %v4443_v55  ;;  %v4116_v53 = vadd.f32 %v4051_v45, %v10080_v15  ;;  %v5581_v36 = vunpack.c.l.b16 %v5285_v8  ;;  %v5289_v40 = vrot.slane %v5287_v23, 4  ;;  %v5043_v43 = vld [vmem:[#allocation2 + $0x3c] sm:$0xf] }
 0x4ba   : > { %v10662_v54 = vrot.slane %v4758_v42, 7  ;;  %v5292_v56 = vrot.slane %v5290_v7, 5  ;;  %v4152_v31 = vshrl.u32 %v10548_v51, 16  ;;  %v4151_v49 = vsel %vm8383_vm7, %v4146_v0, %v4150_v11  ;;  %v12598_v0 = vld [vmem:[#allocation40_spill] sm:$0xff] }
 0x4bb   : > { %vm4511_vm5 = vcmp.ge.f32.partialorder %v4479_v47, 0.0  ;;  %v4543_v27 = vmul.f32 0.2, %v4479_v47  ;;  %v4274_v4 = vadd.f32 %v10612_v6, %v4116_v53  ;;  %v10666_v37 = vpack.c.b16 %v5581_v36, %v5580_v59 }
 0x4bc   : > { %v4763_v46 = vor.u32 %v4761_v32, %v10662_v54  ;;  %v5293_v15 = vor.u32 %v5292_v56, %v5289_v40  ;;  %v4154_v2 = vrot.slane %v4152_v31, 4  ;;  %v4764_v55 = vrot.slane %v10662_v54, 4 }
 0x4bd   : > { %v4575_v60 = vsel %vm4511_vm5, %v4479_v47, %v4543_v27  ;;  %v4412_v23 = vadd.f32 %v10545_v58, %v4274_v4  ;;  %7891 = vmatmul.msk.bf16.gmra.mxu2 %vm5622_vm6, %v10666_v37  ;;  %v6116_v51 = vunpack.c.l.b16 %v10555_v38  ;;  %v4158_v8 = vshll.u32 %v10569_v33, 16 }
 0x4be   : > { %v5044_v6 = vsel %vm10373_vm13, %v4763_v46, %v5043_v43  ;;  %v4663_v59 = vpack.c.bf16 %v4575_v60, %v4575_v60  ;;  %v10678_v7 = vpop.f32.mrf.mxu0  ;;  %v10680_v42 = vld [vmem:[#allocation2 + $0x34] sm:$0xf]  ;;  %v4155_v45 = vor.u32 %v4154_v2, %v4150_v11  ;;  %v10688_v40 = vunpack.c.l.b16 %v4151_v49 }
 0x4bf   : > { %5045 = vst [vmem:[#allocation2 + $0x3c] sm:$0xf] %v5044_v6  ;;  %v4444_v47 = vadd.f32 %v4412_v23, %v12598_v0  ;;  %v10684_v58 = vld [vmem:[#allocation2 + $0x38] sm:$0x1]  ;;  %v5296_v53 = vshll.u32 %v10680_v42, 16  ;;  %v5300_v36 = vshrl.u32 %v10680_v42, 16  ;;  %v10695_v27 = vpop.f32.mrf.mxu1 }
 0x4c0   : > { %v4766_v54 = vshrl.u32 %v4663_v59, 16  ;;  %v4053_v32 = vpop.f32.mrf.mxu3  ;;  %v5294_v56 = vrot.slane %v5293_v15, 4  ;;  %v5306_v31 = vshll.u32 %v10684_v58, 16  ;;  %v4156_v43 = vrot.slane %v4155_v45, 4  ;;  %v5047_v15 = vld [vmem:[#allocation2 + $0x44] sm:$0x1] }
 0x4c1   : > { %v4480_v11 = vadd.f32 %v10308_v14, %v4444_v47  ;;  %v4117_v33 = vadd.f32 %v4053_v32, %v10517_v10  ;;  %7869 = vmatmul.msk.bf16.gmra.mxu0 %vm798_vm3, %v10082_v34  ;;  %v5298_v4 = vrot.slane %v5296_v53, 5  ;;  %v5302_v46 = vrot.slane %v5300_v36, 4 }
 0x4c2   : > { %v4768_v2 = vrot.slane %v4766_v54, 7  ;;  %v4769_v49 = vshll.u32 %v4663_v59, 16  ;;  %v5308_v60 = vrot.slane %v5306_v31, 5  ;;  %v4160_v23 = vrot.slane %v4158_v8, 5  ;;  %7887 = vmatmul.msk.bf16.gmra.mxu1 %vm798_vm3, %v10633_v18  ;;  %v8261_v8 = vld [vmem:[%s9075_s21 + $0xc0] sm:$0xff] }
 0x4c3   : > { %vm4512_vm11 = vcmp.ge.f32.partialorder %v4480_v11, 0.0  ;;  %v4544_v6 = vmul.f32 0.2, %v4480_v11  ;;  %v4275_v45 = vadd.f32 %v10648_v39, %v4117_v33  ;;  %v7984_v0 = vrot.slane %v10301_v12, 9 }
 0x4c4   : > { %v4771_v10 = vor.u32 %v4769_v49, %v4768_v2  ;;  %v4773_v47 = vrot.slane %v4768_v2, 4  ;;  %v5299_v34 = vsel %vm8383_vm7, %v5294_v56, %v5298_v4  ;;  %v5303_v53 = vor.u32 %v5302_v46, %v5298_v4 }
 0x4c5   : > { %v4576_v36 = vsel %vm4512_vm11, %v4480_v11, %v4544_v6  ;;  %v4413_v59 = vadd.f32 %v10591_v16, %v4275_v45  ;;  %7853 = vmatmul.msk.bf16.gmra.mxu3 %vm798_vm3, %v8261_v8  ;;  %v4161_v39 = vsel %vm8383_vm7, %v4156_v43, %v4160_v23  ;;  %v6002_v12 = vrot.slane %v10314_v52, 5  ;;  %v12599_v16 = vld [vmem:[#allocation41_spill] sm:$0xff] }
 0x4c6   : > { %v4772_v54 = vsel %vm10416_vm1, %v4764_v55, %v4771_v10  ;;  %v5048_v18 = vsel %vm10425_vm2, %v4773_v47, %v5047_v15  ;;  %v4664_v32 = vpack.c.bf16 %v4576_v36, %v4576_v36  ;;  %v10713_v56 = vpop.f32.mrf.mxu0  ;;  %v5304_v31 = vrot.slane %v5303_v53, 4  ;;  %v10715_v11 = vld [vmem:[#allocation2 + $0x3c] sm:$0xf]  ;;  %v5050_v8 = vld [vmem:[#allocation2 + $0x48] sm:$0xf] }
 0x4c7   : > { %5046 = vst.msk [vmem:[#allocation2 + $0x40] sm:$0xf] %vm4598_vm9, %v4772_v54  ;;  %v4445_v33 = vadd.f32 %v4413_v59, %v12599_v16  ;;  %v5582_v4 = vunpack.c.l.b16 %v5299_v34  ;;  %v5311_v43 = vshrl.u32 %v10715_v11, 16  ;;  %v5314_v52 = vshll.u32 %v10715_v11, 16  ;;  %v10725_v10 = vpop.f32.mrf.mxu1 }
 0x4c8   : > { %5049 = vst [vmem:[#allocation2 + $0x44] sm:$0x1] %v5048_v18  ;;  %v4775_v55 = vshrl.u32 %v4664_v32, 16  ;;  %v4778_v46 = vshll.u32 %v4664_v32, 16  ;;  %v4056_v2 = vpop.f32.mrf.mxu3  ;;  %v5309_v49 = vsel %vm8383_vm7, %v5304_v31, %v5308_v60  ;;  %v4163_v23 = vunpack.c.l.b16 %v4161_v39 }
 0x4c9   : > { %v4481_v15 = vadd.f32 %v10308_v14, %v4445_v33  ;;  %v4118_v6 = vadd.f32 %v4056_v2, %v10106_v50  ;;  %v5583_v45 = vunpack.c.l.b16 %v5309_v49  ;;  %v10729_v47 = vsel %vm8355_vm4, %v7984_v0, %v6002_v12 }
 0x4ca   : > { %v10731_v34 = vrot.slane %v4775_v55, 7  ;;  %v5313_v53 = vrot.slane %v5311_v43, 4  ;;  %v5316_v36 = vrot.slane %v5314_v52, 5  ;;  %v6004_v59 = vrot.slane %v6002_v12, 4 }
 0x4cb   : > { %vm4513_vm10 = vcmp.ge.f32.partialorder %v4481_v15, 0.0  ;;  %v4545_v60 = vmul.f32 0.2, %v4481_v15  ;;  %v4276_v39 = vadd.f32 %v10678_v7, %v4118_v6  ;;  %v10734_v54 = vpack.c.b16 %v5583_v45, %v5582_v4 }
 0x4cc   : > { %v4780_v50 = vor.u32 %v4778_v46, %v10731_v34  ;;  %v4164_v18 = vpack.c.b16 %v4163_v23, %v10688_v40  ;;  %v5317_v32 = vor.u32 %v5316_v36, %v5313_v53  ;;  %v6005_v0 = vrot.slane %v10380_v62, 5 }
 0x4cd   : > { %v4781_v31 = vrot.slane %v10731_v34, 4  ;;  %v4577_v16 = vsel %vm4513_vm10, %v4481_v15, %v4545_v60  ;;  %v4414_v33 = vadd.f32 %v10631_v29, %v4276_v39  ;;  %7892 = vmatmul.msk.bf16.gmra.mxu2 %vm5622_vm6, %v10734_v54  ;;  %v12600_v12 = vrot.slane %v10527_v22, 5  ;;  %v12601_v29 = vld [vmem:[#allocation42_spill] sm:$0xff] }
 0x4ce   : > { %v5051_v4 = vsel %vm10373_vm13, %v4780_v50, %v5050_v8  ;;  %v4665_v43 = vpack.c.bf16 %v4577_v16, %v4577_v16  ;;  %v10747_v52 = vpop.f32.mrf.mxu0  ;;  %v10749_v40 = vld [vmem:[#allocation2 + $0x40] sm:$0xf]  ;;  %v5318_v62 = vrot.slane %v5317_v32, 4  ;;  %v10753_v55 = vsel %vm8355_vm4, %v6004_v59, %v6005_v0  ;;  %v8160_v8 = vld [vmem:[%s9075_s21 + $0xcc] sm:$0xff] }
 0x4cf   : > { %v6018_v7 = vrot.slane %v12600_v12, 4  ;;  %5052 = vst [vmem:[#allocation2 + $0x48] sm:$0xf] %v5051_v4  ;;  %v4446_v46 = vadd.f32 %v4414_v33, %v12601_v29  ;;  %v10756_v2 = vld [vmem:[#allocation2 + $0x44] sm:$0x1]  ;;  %v5320_v22 = vshll.u32 %v10749_v40, 16  ;;  %v6112_v23 = vunpack.c.l.b16 %v10729_v47  ;;  %v10768_v60 = vpop.f32.mrf.mxu1 }
 0x4d0   : > { %v5324_v49 = vshrl.u32 %v10749_v40, 16  ;;  %v4783_v15 = vshrl.u32 %v4665_v43, 16  ;;  %v4058_v6 = vpop.f32.mrf.mxu3  ;;  %v5330_v45 = vshll.u32 %v10756_v2, 16  ;;  %v6113_v34 = vunpack.c.l.b16 %v10753_v55  ;;  %v10770_v16 = vld [vmem:[#allocation2 + $0xc] sm:$0xff] }
 0x4d1   : > { %v6019_v53 = vrot.slane %v10535_v21, 5  ;;  %v4482_v36 = vadd.f32 %v10308_v14, %v4446_v46  ;;  %v4119_v59 = vadd.f32 %v4058_v6, %v10532_v57  ;;  %7870 = vmatmul.msk.bf16.gmra.mxu0 %vm798_vm3, %v4164_v18  ;;  %v5322_v39 = vrot.slane %v5320_v22, 5  ;;  %v5054_v21 = vld [vmem:[#allocation2 + $0x50] sm:$0x1] }
 0x4d2   : > { %v5326_v50 = vrot.slane %v5324_v49, 4  ;;  %v4785_v32 = vrot.slane %v4783_v15, 7  ;;  %v4786_v0 = vshll.u32 %v4665_v43, 16  ;;  %v5332_v33 = vrot.slane %v5330_v45, 5  ;;  %8020 = vmatmul.msk.bf16.vlgmr.msrb.gmra.mxu1 %vm5622_vm6, %v10770_v16 }
 0x4d3   : > { %v6020_v12 = vsel %vm8355_vm4, %v6018_v7, %v6019_v53  ;;  %vm4514_vm12 = vcmp.ge.f32.partialorder %v4482_v36, 0.0  ;;  %v4546_v14 = vmul.f32 0.2, %v4482_v36  ;;  %v4277_v57 = vadd.f32 %v10713_v56, %v4119_v59 }
 0x4d4   : > { %v5323_v18 = vsel %vm8383_vm7, %v5318_v62, %v5322_v39  ;;  %v4788_v4 = vor.u32 %v4786_v0, %v4785_v32  ;;  %v4790_v55 = vrot.slane %v4785_v32, 4  ;;  %v5327_v43 = vor.u32 %v5326_v50, %v5322_v39 }
 0x4d5   : > { %v5584_v29 = vunpack.c.l.b16 %v5323_v18  ;;  %v4578_v46 = vsel %vm4514_vm12, %v4482_v36, %v4546_v14  ;;  %v4415_v22 = vadd.f32 %v10660_v3, %v4277_v57  ;;  %7854 = vmatmul.msk.bf16.gmra.mxu3 %vm798_vm3, %v8160_v8  ;;  %v6117_v7 = vunpack.c.l.b16 %v6020_v12  ;;  %v12602_v3 = vld [vmem:[#allocation43_spill] sm:$0xff]  ;;  %v10804_v12 = vld [vmem:[%s12210_s4] ss:$0 sm:$0xff] }
 0x4d6   : > { %v7987_v49 = vrot.slane %v10578_v19, 9  ;;  %v4789_v56 = vsel %vm10416_vm1, %v4781_v31, %v4788_v4  ;;  %v5055_v62 = vsel %vm10425_vm2, %v4790_v55, %v5054_v21  ;;  %v4666_v15 = vpack.c.bf16 %v4578_v46, %v4578_v46  ;;  %v10786_v6 = vpop.f32.mrf.mxu0  ;;  %v10788_v53 = vld [vmem:[#allocation2 + $0x48] sm:$0xf]  ;;  %v5057_v55 = vld [vmem:[#allocation2 + $0x54] sm:$0xf] }
 0x4d7   : > { %v5328_v45 = vrot.slane %v5327_v43, 4  ;;  %5053 = vst.msk [vmem:[#allocation2 + $0x4c] sm:$0xf] %vm4598_vm9, %v4789_v56  ;;  %v4447_v36 = vadd.f32 %v4415_v22, %v12602_v3  ;;  %v5335_v59 = vshrl.u32 %v10788_v53, 16  ;;  %v5338_v19 = vshll.u32 %v10788_v53, 16  ;;  %v10808_v14 = vpop.f32.mrf.mxu1 }
 0x4d8   : > { %v10796_v31 = vpack.c.b16 %v6117_v7, %v6116_v51  ;;  %5056 = vst [vmem:[#allocation2 + $0x50] sm:$0x1] %v5055_v62  ;;  %v4792_v8 = vshrl.u32 %v4666_v15, 16  ;;  %v4795_v39 = vshll.u32 %v4666_v15, 16  ;;  %v4061_v50 = vpop.f32.mrf.mxu3  ;;  %v6023_v0 = vrot.slane %v10614_v25, 5 }
 0x4d9   : > { %v5333_v32 = vsel %vm8383_vm7, %v5328_v45, %v5332_v33  ;;  %v4483_v21 = vadd.f32 %v10804_v12, %v4447_v36  ;;  %v4120_v38 = vadd.f32 %v4061_v50, %v10119_v17  ;;  %v5337_v57 = vrot.slane %v5335_v59, 4 }
 0x4da   : > { %12603 = vst [vmem:[#allocation73_spill] sm:$0xff] %v10796_v31  ;;  %v5585_v51 = vunpack.c.l.b16 %v5333_v32  ;;  %v10810_v18 = vrot.slane %v4792_v8, 7  ;;  %v5340_v4 = vrot.slane %v5338_v19, 5  ;;  %v6024_v33 = vsel %vm8355_vm4, %v7987_v49, %v6023_v0 }
 0x4db   : > { %v6025_v25 = vrot.slane %v6023_v0, 4  ;;  %vm4515_vm14 = vcmp.ge.f32.partialorder %v4483_v21, 0.0  ;;  %v4547_v43 = vmul.f32 0.2, %v4483_v21  ;;  %v4278_v46 = vadd.f32 %v10747_v52, %v4120_v38 }
 0x4dc   : > { %v10815_v22 = vpack.c.b16 %v5585_v51, %v5584_v29  ;;  %v4797_v17 = vor.u32 %v4795_v39, %v10810_v18  ;;  %v6144_v7 = vpack.c.b16 %v6113_v34, %v6112_v23  ;;  %v5341_v56 = vor.u32 %v5340_v4, %v5337_v57  ;;  %v12604_v34 = vld [vmem:[#allocation44_spill] sm:$0xff] }
 0x4dd   : > { %v6026_v62 = vrot.slane %v10622_v35, 5  ;;  %v4798_v15 = vrot.slane %v10810_v18, 4  ;;  %v4579_v45 = vsel %vm4515_vm14, %v4483_v21, %v4547_v43  ;;  %v4416_v49 = vadd.f32 %v10695_v27, %v4278_v46  ;;  %v8161_v57 = vld [vmem:[#allocation2] sm:$0xff]  ;;  %v10846_v43 = vld [vmem:[#allocation2 + $0x18] sm:$0xff] }
 0x4de   : > { %7893 = vmatmul.msk.bf16.gmra.mxu2 %vm5622_vm6, %v10815_v22  ;;  %v6118_v3 = vunpack.c.l.b16 %v6024_v33  ;;  %v5058_v52 = vsel %vm10373_vm13, %v4797_v17, %v5057_v55  ;;  %v4667_v29 = vpack.c.bf16 %v4579_v45, %v4579_v45  ;;  %v10827_v36 = vpop.f32.mrf.mxu0  ;;  %v10829_v47 = vld [vmem:[#allocation2 + $0x4c] sm:$0xf]  ;;  %v7988_v23 = vrot.slane %v10650_v5, 9  ;;  %v5061_v17 = vld [vmem:[#allocation2 + $0x5c] sm:$0x1] }
 0x4df   : > { %v6027_v35 = vsel %vm8355_vm4, %v6025_v25, %v6026_v62  ;;  %5059 = vst [vmem:[#allocation2 + $0x54] sm:$0xf] %v5058_v52  ;;  %v4448_v27 = vadd.f32 %v4416_v49, %v12604_v34  ;;  %v10835_v59 = vld [vmem:[#allocation2 + $0x50] sm:$0x1]  ;;  %v5344_v19 = vshll.u32 %v10829_v47, 16  ;;  %v5348_v8 = vshrl.u32 %v10829_v47, 16  ;;  %v10844_v18 = vpop.f32.mrf.mxu1 }
 0x4e0   : > { %v6119_v39 = vunpack.c.l.b16 %v6027_v35  ;;  %v4800_v50 = vshrl.u32 %v4667_v29, 16  ;;  %v4063_v32 = vpop.f32.mrf.mxu3  ;;  %v5342_v0 = vrot.slane %v5341_v56, 4  ;;  %v5354_v21 = vshll.u32 %v10835_v59, 16 }
 0x4e1   : > { %v6030_v38 = vrot.slane %v10680_v42, 5  ;;  %v4484_v51 = vadd.f32 %v10804_v12, %v4448_v27  ;;  %v4121_v5 = vadd.f32 %v4063_v32, %v10602_v1  ;;  %8000 = vmatmul.msk.bf16.vlgmr.msrb.gmra.mxu0 %vm5622_vm6, %v6144_v7  ;;  %v5346_v4 = vrot.slane %v5344_v19, 5 }
 0x4e2   : > { %v5350_v33 = vrot.slane %v5348_v8, 4  ;;  %v4802_v25 = vrot.slane %v4800_v50, 7  ;;  %v4803_v55 = vshll.u32 %v4667_v29, 16  ;;  %v10848_v46 = vpack.c.b16 %v6119_v39, %v6118_v3  ;;  %8021 = vmatmul.msk.bf16.gmra.mxu1 %vm5622_vm6, %v10846_v43 }
 0x4e3   : > { %v6031_v42 = vsel %vm8355_vm4, %v7988_v23, %v6030_v38  ;;  %vm4516_vm15 = vcmp.ge.f32.partialorder %v4484_v51, 0.0  ;;  %v4548_v56 = vmul.f32 0.2, %v4484_v51  ;;  %v4279_v1 = vadd.f32 %v10786_v6, %v4121_v5 }
 0x4e4   : > { %12605 = vst [vmem:[#allocation70_spill] sm:$0xff] %v10848_v46  ;;  %v5356_v62 = vrot.slane %v5354_v21, 5  ;;  %v4805_v7 = vor.u32 %v4803_v55, %v4802_v25  ;;  %v4807_v45 = vrot.slane %v4802_v25, 4  ;;  %v5347_v49 = vsel %vm8383_vm7, %v5342_v0, %v5346_v4 }
 0x4e5   : > { %v5351_v52 = vor.u32 %v5350_v33, %v5346_v4  ;;  %v4580_v3 = vsel %vm4516_vm15, %v4484_v51, %v4548_v56  ;;  %v4417_v29 = vadd.f32 %v10725_v10, %v4279_v1  ;;  %7968 = vmatmul.msk.bf16.vlgmr.msrb.gmra.mxu3 %vm5622_vm6, %v8161_v57  ;;  %v6032_v35 = vrot.slane %v6030_v38, 4  ;;  %v12606_v10 = vld [vmem:[#allocation45_spill] sm:$0xff] }
 0x4e6   : > { %v6033_v23 = vrot.slane %v10684_v58, 5  ;;  %v4806_v6 = vsel %vm10416_vm1, %v4798_v15, %v4805_v7  ;;  %v5062_v34 = vsel %vm10425_vm2, %v4807_v45, %v5061_v17  ;;  %v4668_v27 = vpack.c.bf16 %v4580_v3, %v4580_v3  ;;  %v10864_v19 = vpop.f32.mrf.mxu0  ;;  %v10866_v39 = vld [vmem:[#allocation2 + $0x54] sm:$0xf]  ;;  %v5064_v45 = vld [vmem:[#allocation2 + $0x60] sm:$0xf] }
 0x4e7   : > { %v5352_v8 = vrot.slane %v5351_v52, 4  ;;  %5060 = vst.msk [vmem:[#allocation2 + $0x58] sm:$0xf] %vm4598_vm9, %v4806_v6  ;;  %v4449_v50 = vadd.f32 %v4417_v29, %v12606_v10  ;;  %v5359_v32 = vshrl.u32 %v10866_v39, 16  ;;  %v5362_v58 = vshll.u32 %v10866_v39, 16  ;;  %v10878_v25 = vpop.f32.mrf.mxu1 }
 0x4e8   : > { %v6034_v15 = vsel %vm8355_vm4, %v6032_v35, %v6033_v23  ;;  %5063 = vst [vmem:[#allocation2 + $0x5c] sm:$0x1] %v5062_v34  ;;  %v4809_v0 = vshrl.u32 %v4668_v27, 16  ;;  %v4812_v21 = vshll.u32 %v4668_v27, 16  ;;  %v4066_v38 = vpop.f32.mrf.mxu3  ;;  %v5586_v5 = vunpack.c.l.b16 %v5347_v49 }
 0x4e9   : > { %v5357_v51 = vsel %vm8383_vm7, %v5352_v8, %v5356_v62  ;;  %v4485_v57 = vadd.f32 %v10804_v12, %v4449_v50  ;;  %v4122_v4 = vadd.f32 %v4066_v38, %v10133_v61  ;;  %v5361_v55 = vrot.slane %v5359_v32, 4  ;;  %v12608_v32 = vld [vmem:[#allocation46_spill] sm:$0xff] }
 0x4ea   : > { %v5587_v33 = vunpack.c.l.b16 %v5357_v51  ;;  %v10880_v17 = vrot.slane %v4809_v0, 7  ;;  %v5364_v56 = vrot.slane %v5362_v58, 5  ;;  %v6120_v1 = vunpack.c.l.b16 %v6031_v42 }
 0x4eb   : > { %v6121_v7 = vunpack.c.l.b16 %v6034_v15  ;;  %vm4517_vm0 = vcmp.ge.f32.partialorder %v4485_v57, 0.0  ;;  %v4549_v52 = vmul.f32 0.2, %v4485_v57  ;;  %v4280_v3 = vadd.f32 %v10827_v36, %v4122_v4 }
 0x4ec   : > { %v10883_v62 = vpack.c.b16 %v5587_v33, %v5586_v5  ;;  %v4814_v49 = vor.u32 %v4812_v21, %v10880_v17  ;;  %v5365_v29 = vor.u32 %v5364_v56, %v5361_v55  ;;  %v7989_v35 = vrot.slane %v10715_v11, 9 }
 0x4ed   : > { %v10886_v61 = vpack.c.b16 %v6121_v7, %v6120_v1  ;;  %v4815_v23 = vrot.slane %v10880_v17, 4  ;;  %v4581_v6 = vsel %vm4517_vm0, %v4485_v57, %v4549_v52  ;;  %v4418_v42 = vadd.f32 %v10768_v60, %v4280_v3  ;;  %v10916_v7 = vld [vmem:[#allocation2 + $0x24] sm:$0xff] }
 0x4ee   : > { %7894 = vmatmul.msk.bf16.gmra.mxu2 %vm5622_vm6, %v10883_v62  ;;  %v6037_v34 = vrot.slane %v10749_v40, 5  ;;  %v5065_v36 = vsel %vm10373_vm13, %v4814_v49, %v5064_v45  ;;  %v4669_v27 = vpack.c.bf16 %v4581_v6, %v4581_v6  ;;  %v10896_v8 = vpop.f32.mrf.mxu0  ;;  %v10898_v10 = vld [vmem:[#allocation2 + $0x58] sm:$0xf]  ;;  %v5366_v50 = vrot.slane %v5365_v29, 4 }
 0x4ef   : > { %12607 = vst [vmem:[#allocation63_spill] sm:$0xff] %v10886_v61  ;;  %v6040_v11 = vrot.slane %v10756_v2, 5  ;;  %v4450_v58 = vadd.f32 %v4418_v42, %v12608_v32  ;;  %v10902_v60 = vld [vmem:[#allocation2 + $0x5c] sm:$0x1]  ;;  %v5368_v15 = vshll.u32 %v10898_v10, 16  ;;  %v5372_v40 = vshrl.u32 %v10898_v10, 16  ;;  %v10914_v33 = vpop.f32.mrf.mxu1 }
 0x4f0   : > { %5066 = vst [vmem:[#allocation2 + $0x60] sm:$0xf] %v5065_v36  ;;  %v6038_v0 = vsel %vm8355_vm4, %v7989_v35, %v6037_v34  ;;  %v4817_v21 = vshrl.u32 %v4669_v27, 16  ;;  %v4068_v38 = vpop.f32.mrf.mxu3  ;;  %v5378_v51 = vshll.u32 %v10902_v60, 16  ;;  %v6039_v5 = vrot.slane %v6037_v34, 4 }
 0x4f1   : > { %v7990_v57 = vrot.slane %v10788_v53, 9  ;;  %v4486_v2 = vadd.f32 %v10804_v12, %v4450_v58  ;;  %v4123_v4 = vadd.f32 %v4068_v38, %v10619_v28  ;;  %8001 = vmatmul.msk.bf16.gmra.mxu0 %vm5622_vm6, %v10505_v30  ;;  %v5370_v55 = vrot.slane %v5368_v15, 5  ;;  %v5068_v53 = vld [vmem:[#allocation2 + $0x68] sm:$0x1] }
 0x4f2   : > { %v5374_v17 = vrot.slane %v5372_v40, 4  ;;  %v4819_v56 = vrot.slane %v4817_v21, 7  ;;  %v4820_v1 = vshll.u32 %v4669_v27, 16  ;;  %v5380_v45 = vrot.slane %v5378_v51, 5  ;;  %8022 = vmatmul.msk.bf16.gmra.mxu1 %vm5622_vm6, %v10916_v7 }
 0x4f3   : > { %v6041_v52 = vsel %vm8355_vm4, %v6039_v5, %v6040_v11  ;;  %vm4518_vm5 = vcmp.ge.f32.partialorder %v4486_v2, 0.0  ;;  %v4550_v3 = vmul.f32 0.2, %v4486_v2  ;;  %v4281_v28 = vadd.f32 %v10864_v19, %v4123_v4 }
 0x4f4   : > { %v6122_v49 = vunpack.c.l.b16 %v6038_v0  ;;  %v4822_v29 = vor.u32 %v4820_v1, %v4819_v56  ;;  %v4824_v35 = vrot.slane %v4819_v56, 4  ;;  %v5371_v6 = vsel %vm8383_vm7, %v5366_v50, %v5370_v55  ;;  %v12609_v50 = vld [vmem:[#allocation47_spill] sm:$0xff] }
 0x4f5   : > { %v5375_v42 = vor.u32 %v5374_v17, %v5370_v55  ;;  %v4582_v34 = vsel %vm4518_vm5, %v4486_v2, %v4550_v3  ;;  %v4419_v36 = vadd.f32 %v10808_v14, %v4281_v28  ;;  %7969 = vmatmul.msk.bf16.gmra.mxu3 %vm5622_vm6, %v10770_v16  ;;  %v6123_v27 = vunpack.c.l.b16 %v6041_v52  ;;  %v5071_v52 = vld [vmem:[#allocation2 + $0x6c] sm:$0xf] }
 0x4f6   : > { %v6044_v11 = vrot.slane %v10829_v47, 5  ;;  %v4823_v19 = vsel %vm10416_vm1, %v4815_v23, %v4822_v29  ;;  %v5069_v32 = vsel %vm10425_vm2, %v4824_v35, %v5068_v53  ;;  %v4670_v58 = vpack.c.bf16 %v4582_v34, %v4582_v34  ;;  %v4231_v15 = vpop.f32.mrf.mxu0 }
 0x4f7   : > { %v5376_v40 = vrot.slane %v5375_v42, 4  ;;  %5067 = vst.msk [vmem:[#allocation2 + $0x64] sm:$0xf] %vm4598_vm9, %v4823_v19  ;;  %v4451_v0 = vadd.f32 %v4419_v36, %v12609_v50  ;;  %v10935_v14 = vpack.c.b16 %v6123_v27, %v6122_v49  ;;  %v6047_v51 = vrot.slane %v10835_v59, 5  ;;  %v10944_v17 = vpop.f32.mrf.mxu1  ;;  %v12613_v27 = vld [vmem:[#allocation48_spill] sm:$0xff] }
 0x4f8   : > { %v6045_v16 = vsel %vm8355_vm4, %v7990_v57, %v6044_v11  ;;  %v6046_v21 = vrot.slane %v6044_v11, 4  ;;  %5070 = vst [vmem:[#allocation2 + $0x68] sm:$0x1] %v5069_v32  ;;  %v4826_v47 = vshrl.u32 %v4670_v58, 16  ;;  %v4071_v38 = vpop.f32.mrf.mxu3  ;;  %v5588_v4 = vunpack.c.l.b16 %v5371_v6 }
 0x4f9   : > { %12610 = vst [vmem:[#allocation66_spill] sm:$0xff] %v10935_v14  ;;  %v5381_v23 = vsel %vm8383_vm7, %v5376_v40, %v5380_v45  ;;  %v4487_v5 = vadd.f32 %v10804_v12, %v4451_v0  ;;  %v4124_v2 = vadd.f32 %v4071_v38, %v10147_v9  ;;  %v4829_v1 = vshll.u32 %v4670_v58, 16 }
 0x4fa   : > { %v5589_v55 = vunpack.c.l.b16 %v5381_v23  ;;  %v4828_v56 = vrot.slane %v4826_v47, 7  ;;  %v6048_v57 = vsel %vm8355_vm4, %v6046_v21, %v6047_v51  ;;  %v6124_v28 = vunpack.c.l.b16 %v6045_v16 }
 0x4fb   : > { %vm4519_vm11 = vcmp.ge.f32.partialorder %v4487_v5, 0.0  ;;  %v4551_v53 = vmul.f32 0.2, %v4487_v5  ;;  %v4282_v45 = vadd.f32 %v10896_v8, %v4124_v2  ;;  %v6125_v49 = vunpack.c.l.b16 %v6048_v57 }
 0x4fc   : > { %v10949_v3 = vpack.c.b16 %v5589_v55, %v5588_v4  ;;  %v4831_v59 = vor.u32 %v4829_v1, %v4828_v56  ;;  %v7991_v8 = vrot.slane %v10866_v39, 9  ;;  %v3993_v36 = vadd.f32 %v10144_v20, %v10156_v26  ;;  %v10975_v26 = vld [vmem:[#allocation2 + $0x30] sm:$0xff] }
 0x4fd   : > { %v4583_v9 = vsel %vm4519_vm11, %v4487_v5, %v4551_v53  ;;  %v4420_v29 = vadd.f32 %v10844_v18, %v4282_v45  ;;  %v10958_v34 = vpack.c.b16 %v6125_v49, %v6124_v28  ;;  %v10964_v18 = vld [vmem:[#allocation2 + $0x60] sm:$0xf]  ;;  %v4832_v32 = vrot.slane %v4828_v56, 4  ;;  %v5075_v4 = vld [vmem:[#allocation2 + $0x74] sm:$0x1] }
 0x4fe   : > { %12611 = vst [vmem:[#allocation31_spill] sm:$0xff] %v10949_v3  ;;  %7895 = vmatmul.msk.bf16.gmra.mxu2 %vm5622_vm6, %v10949_v3  ;;  %v5072_v35 = vsel %vm10373_vm13, %v4831_v59, %v5071_v52  ;;  %v4671_v6 = vpack.c.bf16 %v4583_v9, %v4583_v9  ;;  %v10956_v42 = vpop.f32.mrf.mxu0  ;;  %v10966_v19 = vld [vmem:[#allocation2 + $0x64] sm:$0xf]  ;;  %v5383_v50 = vshrl.u32 %v10964_v18, 16  ;;  %v5386_v0 = vshll.u32 %v10964_v18, 16 }
 0x4ff   : > { %12612 = vst [vmem:[#allocation77_spill] sm:$0xff] %v10958_v34  ;;  %v4452_v11 = vadd.f32 %v4420_v29, %v12613_v27  ;;  %v10973_v20 = vpop.f32.mrf.mxu1  ;;  %v5392_v21 = vshll.u32 %v10966_v19, 16  ;;  %v5396_v47 = vshrl.u32 %v10966_v19, 16  ;;  %v10979_v51 = vld [vmem:[#allocation2 + $0x68] sm:$0x1]  ;;  %v6051_v9 = vrot.slane %v10898_v10, 5  ;;  %v10988_v29 = vpop.f32.mrf.mxu2 }
 0x500   : > { %5073 = vst [vmem:[#allocation2 + $0x6c] sm:$0xf] %v5072_v35  ;;  %v4834_v58 = vshrl.u32 %v4671_v6, 16  ;;  %v4073_v40 = vpop.f32.mrf.mxu3  ;;  %v4837_v23 = vshll.u32 %v4671_v6, 16  ;;  %v5385_v5 = vrot.slane %v5383_v50, 4  ;;  %v5388_v2 = vrot.slane %v5386_v0, 5 }
 0x501   : > { %v4488_v16 = vadd.f32 %v10804_v12, %v4452_v11  ;;  %v4125_v39 = vadd.f32 %v4073_v40, %v3993_v36  ;;  %8002 = vmatmul.msk.bf16.gmra.mxu0 %vm5622_vm6, %v10796_v31  ;;  %v5394_v1 = vrot.slane %v5392_v21, 5  ;;  %v5398_v45 = vrot.slane %v5396_v47, 4 }
 0x502   : > { %v4836_v38 = vrot.slane %v4834_v58, 7  ;;  %8023 = vmatmul.msk.bf16.gmra.mxu1 %vm5622_vm6, %v10975_v26  ;;  %v5389_v53 = vor.u32 %v5388_v2, %v5385_v5  ;;  %v5402_v49 = vshll.u32 %v10979_v51, 16  ;;  %v6052_v10 = vsel %vm8355_vm4, %v7991_v8, %v6051_v9 }
 0x503   : > { %vm4520_vm10 = vcmp.ge.f32.partialorder %v4488_v16, 0.0  ;;  %v4552_v55 = vmul.f32 0.2, %v4488_v16  ;;  %v4283_v56 = vadd.f32 %v4231_v15, %v4125_v39  ;;  %v5399_v11 = vor.u32 %v5398_v45, %v5394_v1  ;;  %v12615_v39 = vld [vmem:[#allocation36_spill] sm:$0xff] }
 0x504   : > { %v4839_v57 = vor.u32 %v4837_v23, %v4836_v38  ;;  %v4841_v52 = vrot.slane %v4836_v38, 4  ;;  %v5390_v27 = vrot.slane %v5389_v53, 4  ;;  %v6053_v58 = vrot.slane %v6051_v9, 4 }
 0x505   : > { %v4584_v59 = vsel %vm4520_vm10, %v4488_v16, %v4552_v55  ;;  %v4421_v28 = vadd.f32 %v10878_v25, %v4283_v56  ;;  %7970 = vmatmul.msk.bf16.gmra.mxu3 %vm5622_vm6, %v10846_v43  ;;  %v12614_v25 = vld [vmem:[#allocation49_spill] sm:$0xff]  ;;  %v6054_v0 = vrot.slane %v10902_v60, 5  ;;  %v5400_v47 = vrot.slane %v5399_v11, 4  ;;  %v5078_v55 = vld [vmem:[#allocation2 + $0x78] sm:$0xf] }
 0x506   : > { %v4840_v15 = vsel %vm10416_vm1, %v4832_v32, %v4839_v57  ;;  %v5076_v35 = vsel %vm10425_vm2, %v4841_v52, %v5075_v4  ;;  %v4672_v6 = vpack.c.bf16 %v4584_v59, %v4584_v59  ;;  %v10994_v36 = vpop.f32.mrf.mxu0  ;;  %v5395_v32 = vsel %vm8383_vm7, %v5390_v27, %v5394_v1 }
 0x507   : > { %5074 = vst.msk [vmem:[#allocation2 + $0x70] sm:$0xf] %vm4598_vm9, %v4840_v15  ;;  %v4453_v43 = vadd.f32 %v4421_v28, %v12614_v25  ;;  %v5404_v38 = vrot.slane %v5402_v49, 5  ;;  %v11005_v23 = vpop.f32.mrf.mxu1  ;;  %v5590_v8 = vunpack.c.l.b16 %v5395_v32  ;;  %v6055_v4 = vsel %vm8355_vm4, %v6053_v58, %v6054_v0  ;;  %v12618_v25 = vld [vmem:[#allocation35_spill] sm:$0xff]  ;;  %v11027_v58 = vld [vmem:[#allocation2 + $0x6c] sm:$0xf] }
 0x508   : > { %5077 = vst [vmem:[#allocation2 + $0x74] sm:$0x1] %v5076_v35  ;;  %v4843_v40 = vshrl.u32 %v4672_v6, 16  ;;  %v4076_v50 = vpop.f32.mrf.mxu3  ;;  %v4846_v2 = vshll.u32 %v4672_v6, 16  ;;  %v6126_v53 = vunpack.c.l.b16 %v6052_v10  ;;  %v6127_v45 = vunpack.c.l.b16 %v6055_v4  ;;  %v11016_v35 = vpop.f32.mrf.mxu2  ;;  %v12620_v10 = vld [vmem:[#allocation50_spill] sm:$0xff] }
 0x509   : > { %v4489_v16 = vadd.f32 %v10804_v12, %v4453_v43  ;;  %v4126_v21 = vadd.f32 %v4076_v50, %v12615_v39  ;;  %v5405_v60 = vsel %vm8383_vm7, %v5400_v47, %v5404_v38  ;;  %v7992_v49 = vrot.slane %v10964_v18, 9  ;;  %v12619_v43 = vld [vmem:[#allocation24_spill] sm:$0xff] }
 0x50a   : > { %v4845_v5 = vrot.slane %v4843_v40, 7  ;;  %v5591_v52 = vunpack.c.l.b16 %v5405_v60  ;;  %v11022_v27 = vpack.c.b16 %v6127_v45, %v6126_v53  ;;  %v3995_v11 = vadd.f32 %v12619_v43, %v12618_v25  ;;  %v11040_v38 = vld [vmem:[#allocation2 + $0x3c] sm:$0xff] }
 0x50b   : > { %vm4521_vm12 = vcmp.ge.f32.partialorder %v4489_v16, 0.0  ;;  %v4553_v56 = vmul.f32 0.2, %v4489_v16  ;;  %v4284_v1 = vadd.f32 %v10956_v42, %v4126_v21  ;;  %v5407_v0 = vshrl.u32 %v11027_v58, 16  ;;  %v5082_v60 = vld [vmem:[#allocation2 + $0x80] sm:$0x1] }
 0x50c   : > { %v4848_v57 = vor.u32 %v4846_v2, %v4845_v5  ;;  %v11018_v6 = vpack.c.b16 %v5591_v52, %v5590_v8  ;;  %12617 = vst [vmem:[#allocation69_spill] sm:$0xff] %v11022_v27  ;;  %v4849_v40 = vrot.slane %v4845_v5, 4 }
 0x50d   : > { %v4585_v59 = vsel %vm4521_vm12, %v4489_v16, %v4553_v56  ;;  %v4422_v28 = vadd.f32 %v10914_v33, %v4284_v1  ;;  %v5410_v16 = vshll.u32 %v11027_v58, 16  ;;  %v5409_v56 = vrot.slane %v5407_v0, 4 }
 0x50e   : > { %v5079_v9 = vsel %vm10373_vm13, %v4848_v57, %v5078_v55  ;;  %v4673_v15 = vpack.c.bf16 %v4585_v59, %v4585_v59  ;;  %12616 = vst [vmem:[#allocation75_spill] sm:$0xff] %v11018_v6  ;;  %v11020_v42 = vpop.f32.mrf.mxu0  ;;  %v11029_v18 = vld [vmem:[#allocation2 + $0x70] sm:$0xf]  ;;  %7896 = vmatmul.msk.bf16.gmra.mxu2 %vm5622_vm6, %v11018_v6 }
 0x50f   : > { %5080 = vst [vmem:[#allocation2 + $0x78] sm:$0xf] %v5079_v9  ;;  %v4454_v33 = vadd.f32 %v4422_v28, %v12620_v10  ;;  %v11038_v47 = vpop.f32.mrf.mxu1  ;;  %v5416_v5 = vshll.u32 %v11029_v18, 16  ;;  %v5420_v2 = vshrl.u32 %v11029_v18, 16  ;;  %v11044_v55 = vld [vmem:[#allocation2 + $0x74] sm:$0x1] }
 0x510   : > { %v4851_v50 = vshrl.u32 %v4673_v15, 16  ;;  %v4078_v32 = vpop.f32.mrf.mxu3  ;;  %v4854_v4 = vshll.u32 %v4673_v15, 16  ;;  %v5412_v1 = vrot.slane %v5410_v16, 5  ;;  %v5426_v43 = vshll.u32 %v11044_v55, 16 }
 0x511   : > { %v4490_v39 = vadd.f32 %v10804_v12, %v4454_v33  ;;  %v4127_v21 = vadd.f32 %v4078_v32, %v3995_v11  ;;  %8003 = vmatmul.msk.bf16.gmra.mxu0 %vm5622_vm6, %v10848_v46  ;;  %v5418_v53 = vrot.slane %v5416_v5, 5  ;;  %v5422_v9 = vrot.slane %v5420_v2, 4 }
 0x512   : > { %v4853_v8 = vrot.slane %v4851_v50, 7  ;;  %8024 = vmatmul.msk.bf16.gmra.mxu1 %vm5622_vm6, %v11040_v38  ;;  %v5413_v28 = vor.u32 %v5412_v1, %v5409_v56  ;;  %v6058_v11 = vrot.slane %v10966_v19, 5  ;;  %v6061_v2 = vrot.slane %v10979_v51, 5 }
 0x513   : > { %vm4522_vm14 = vcmp.ge.f32.partialorder %v4490_v39, 0.0  ;;  %v4554_v57 = vmul.f32 0.2, %v4490_v39  ;;  %v4285_v52 = vadd.f32 %v10994_v36, %v4127_v21  ;;  %v5423_v16 = vor.u32 %v5422_v9, %v5418_v53  ;;  %v11064_v21 = vpop.f32.mrf.mxu2 }
 0x514   : > { %v4856_v45 = vor.u32 %v4854_v4, %v4853_v8  ;;  %v4858_v59 = vrot.slane %v4853_v8, 4  ;;  %v5414_v32 = vrot.slane %v5413_v28, 4  ;;  %v12622_v4 = vld [vmem:[#allocation10_spill] sm:$0xff]  ;;  %v5085_v28 = vld [vmem:[#allocation2 + $0x84] sm:$0xf] }
 0x515   : > { %v4586_v25 = vsel %vm4522_vm14, %v4490_v39, %v4554_v57  ;;  %v4423_v15 = vadd.f32 %v10944_v17, %v4285_v52  ;;  %7971 = vmatmul.msk.bf16.gmra.mxu3 %vm5622_vm6, %v10916_v7  ;;  %v12621_v17 = vld [vmem:[#allocation51_spill] sm:$0xff]  ;;  %v6059_v7 = vsel %vm8355_vm4, %v7992_v49, %v6058_v11  ;;  %v6060_v39 = vrot.slane %v6058_v11, 4 }
 0x516   : > { %v4857_v36 = vsel %vm10416_vm1, %v4849_v40, %v4856_v45  ;;  %v5083_v10 = vsel %vm10425_vm2, %v4858_v59, %v5082_v60  ;;  %v4674_v33 = vpack.c.bf16 %v4586_v25, %v4586_v25  ;;  %v11058_v50 = vpop.f32.mrf.mxu0  ;;  %v5419_v5 = vsel %vm8383_vm7, %v5414_v32, %v5418_v53 }
 0x517   : > { %5081 = vst.msk [vmem:[#allocation2 + $0x7c] sm:$0xf] %vm4598_vm9, %v4857_v36  ;;  %v4455_v0 = vadd.f32 %v4423_v15, %v12621_v17  ;;  %v5424_v1 = vrot.slane %v5423_v16, 4  ;;  %v5428_v60 = vrot.slane %v5426_v43, 5  ;;  %v11071_v57 = vpop.f32.mrf.mxu1  ;;  %v5592_v45 = vunpack.c.l.b16 %v5419_v5 }
 0x518   : > { %5084 = vst [vmem:[#allocation2 + $0x80] sm:$0x1] %v5083_v10  ;;  %v4860_v19 = vshrl.u32 %v4674_v33, 16  ;;  %v4081_v40 = vpop.f32.mrf.mxu3  ;;  %v4863_v52 = vshll.u32 %v4674_v33, 16  ;;  %v6062_v59 = vsel %vm8355_vm4, %v6060_v39, %v6061_v2  ;;  %v6128_v11 = vunpack.c.l.b16 %v6059_v7  ;;  %v12625_v39 = vld [vmem:[#allocation39_spill] sm:$0xff]  ;;  %v12627_v7 = vld [vmem:[#allocation52_spill] sm:$0xff] }
 0x519   : > { %v4491_v8 = vadd.f32 %v10804_v12, %v4455_v0  ;;  %v4128_v56 = vadd.f32 %v4081_v40, %v12622_v4  ;;  %v5429_v51 = vsel %vm8383_vm7, %v5424_v1, %v5428_v60  ;;  %v6129_v43 = vunpack.c.l.b16 %v6062_v59  ;;  %v11091_v2 = vld [vmem:[#allocation2 + $0x78] sm:$0xf] }
 0x51a   : > { %v4862_v49 = vrot.slane %v4860_v19, 7  ;;  %v5593_v15 = vunpack.c.l.b16 %v5429_v51  ;;  %v7993_v33 = vrot.slane %v11027_v58, 9  ;;  %v12626_v19 = vld [vmem:[#allocation6_spill] sm:$0xff]  ;;  %v5431_v1 = vshrl.u32 %v11091_v2, 16 }
 0x51b   : > { %vm4523_vm15 = vcmp.ge.f32.partialorder %v4491_v8, 0.0  ;;  %v4555_v9 = vmul.f32 0.2, %v4491_v8  ;;  %v4286_v53 = vadd.f32 %v11020_v42, %v4128_v56  ;;  %v11086_v42 = vpack.c.b16 %v6129_v43, %v6128_v11  ;;  %v5089_v43 = vld [vmem:[#allocation2 + $0x8c] sm:$0x1] }
 0x51c   : > { %v4865_v25 = vor.u32 %v4863_v52, %v4862_v49  ;;  %v11082_v0 = vpack.c.b16 %v5593_v15, %v5592_v45  ;;  %v3997_v40 = vadd.f32 %v12626_v19, %v12625_v39  ;;  %v4866_v58 = vrot.slane %v4862_v49, 4  ;;  %v11106_v49 = vld [vmem:[#allocation2 + $0x48] sm:$0xff] }
 0x51d   : > { %v4587_v36 = vsel %vm4523_vm15, %v4491_v8, %v4555_v9  ;;  %v4424_v10 = vadd.f32 %v10973_v20, %v4286_v53  ;;  %12624 = vst [vmem:[#allocation33_spill] sm:$0xff] %v11086_v42  ;;  %v5434_v60 = vshll.u32 %v11091_v2, 16  ;;  %v5433_v15 = vrot.slane %v5431_v1, 4 }
 0x51e   : > { %v5086_v32 = vsel %vm10373_vm13, %v4865_v25, %v5085_v28  ;;  %v4675_v17 = vpack.c.bf16 %v4587_v36, %v4587_v36  ;;  %12623 = vst [vmem:[#allocation72_spill] sm:$0xff] %v11082_v0  ;;  %v11084_v16 = vpop.f32.mrf.mxu0  ;;  %v11093_v20 = vld [vmem:[#allocation2 + $0x7c] sm:$0xf]  ;;  %7897 = vmatmul.msk.bf16.gmra.mxu2 %vm5622_vm6, %v11082_v0 }
 0x51f   : > { %5087 = vst [vmem:[#allocation2 + $0x84] sm:$0xf] %v5086_v32  ;;  %v4456_v5 = vadd.f32 %v4424_v10, %v12627_v7  ;;  %v11104_v59 = vpop.f32.mrf.mxu1  ;;  %v5440_v28 = vshll.u32 %v11093_v20, 16  ;;  %v5444_v9 = vshrl.u32 %v11093_v20, 16  ;;  %v11110_v25 = vld [vmem:[#allocation2 + $0x80] sm:$0x1] }
 0x520   : > { %v4868_v8 = vshrl.u32 %v4675_v17, 16  ;;  %v11097_v4 = vpop.f32.mrf.mxu2  ;;  %v4083_v56 = vpop.f32.mrf.mxu3  ;;  %v4871_v51 = vshll.u32 %v4675_v17, 16  ;;  %v5436_v11 = vrot.slane %v5434_v60, 5 }
 0x521   : > { %v4492_v52 = vadd.f32 %v10804_v12, %v4456_v5  ;;  %v4129_v45 = vadd.f32 %v4083_v56, %v3997_v40  ;;  %8004 = vmatmul.msk.bf16.gmra.mxu0 %vm5622_vm6, %v10886_v61  ;;  %v5442_v32 = vrot.slane %v5440_v28, 5  ;;  %v5446_v7 = vrot.slane %v5444_v9, 4 }
 0x522   : > { %v4870_v53 = vrot.slane %v4868_v8, 7  ;;  %8025 = vmatmul.msk.bf16.gmra.mxu1 %vm5622_vm6, %v11106_v49  ;;  %v5437_v40 = vor.u32 %v5436_v11, %v5433_v15  ;;  %v5450_v8 = vshll.u32 %v11110_v25, 16  ;;  %v6065_v56 = vrot.slane %v11029_v18, 5 }
 0x523   : > { %vm4524_vm0 = vcmp.ge.f32.partialorder %v4492_v52, 0.0  ;;  %v4556_v36 = vmul.f32 0.2, %v4492_v52  ;;  %v4287_v10 = vadd.f32 %v11058_v50, %v4129_v45  ;;  %v5447_v9 = vor.u32 %v5446_v7, %v5442_v32 }
 0x524   : > { %v4873_v39 = vor.u32 %v4871_v51, %v4870_v53  ;;  %v4875_v19 = vrot.slane %v4870_v53, 4  ;;  %v5438_v28 = vrot.slane %v5437_v40, 4  ;;  %v6067_v53 = vrot.slane %v6065_v56, 4 }
 0x525   : > { %v4588_v5 = vsel %vm4524_vm0, %v4492_v52, %v4556_v36  ;;  %v4425_v17 = vadd.f32 %v11005_v23, %v4287_v10  ;;  %7972 = vmatmul.msk.bf16.gmra.mxu3 %vm5622_vm6, %v10975_v26  ;;  %v12628_v23 = vld [vmem:[#allocation54_spill] sm:$0xff]  ;;  %v6066_v26 = vsel %vm8355_vm4, %v7993_v33, %v6065_v56  ;;  %v6068_v11 = vrot.slane %v11044_v55, 5  ;;  %v12629_v36 = vld [vmem:[#allocation29_spill] sm:$0xff] }
 0x526   : > { %v4874_v50 = vsel %vm10416_vm1, %v4866_v58, %v4873_v39  ;;  %v5090_v1 = vsel %vm10425_vm2, %v4875_v19, %v5089_v43  ;;  %v4676_v60 = vpack.c.bf16 %v4588_v5, %v4588_v5  ;;  %v11124_v45 = vpop.f32.mrf.mxu0  ;;  %v5443_v15 = vsel %vm8383_vm7, %v5438_v28, %v5442_v32  ;;  %v5092_v56 = vld [vmem:[#allocation2 + $0x90] sm:$0xf] }
 0x527   : > { %5088 = vst.msk [vmem:[#allocation2 + $0x88] sm:$0xf] %vm4598_vm9, %v4874_v50  ;;  %v4457_v52 = vadd.f32 %v4425_v17, %v12628_v23  ;;  %v5448_v39 = vrot.slane %v5447_v9, 4  ;;  %v5452_v19 = vrot.slane %v5450_v8, 5  ;;  %v11137_v40 = vpop.f32.mrf.mxu1  ;;  %v5594_v5 = vunpack.c.l.b16 %v5443_v15 }
 0x528   : > { %5091 = vst [vmem:[#allocation2 + $0x8c] sm:$0x1] %v5090_v1  ;;  %v4877_v18 = vshrl.u32 %v4676_v60, 16  ;;  %v11130_v51 = vpop.f32.mrf.mxu2  ;;  %v4086_v58 = vpop.f32.mrf.mxu3  ;;  %v4880_v7 = vshll.u32 %v4676_v60, 16  ;;  %v6069_v17 = vsel %vm8355_vm4, %v6067_v53, %v6068_v11  ;;  %v6130_v23 = vunpack.c.l.b16 %v6066_v26  ;;  %v12631_v11 = vld [vmem:[#allocation7_spill] sm:$0xff]  ;;  %v12633_v26 = vld [vmem:[#allocation56_spill] sm:$0xff] }
 0x529   : > { %v4493_v43 = vadd.f32 %v10804_v12, %v4457_v52  ;;  %v4130_v10 = vadd.f32 %v4086_v58, %v12629_v36  ;;  %v5453_v55 = vsel %vm8383_vm7, %v5448_v39, %v5452_v19  ;;  %v6131_v8 = vunpack.c.l.b16 %v6069_v17  ;;  %v12632_v36 = vld [vmem:[#allocation13_spill] sm:$0xff]  ;;  %v11157_v39 = vld [vmem:[#allocation2 + $0x84] sm:$0xf] }
 0x52a   : > { %v4879_v33 = vrot.slane %v4877_v18, 7  ;;  %v5595_v28 = vunpack.c.l.b16 %v5453_v55  ;;  %v7994_v60 = vrot.slane %v11091_v2, 9  ;;  %v5455_v17 = vshrl.u32 %v11157_v39, 16 }
 0x52b   : > { %vm4525_vm5 = vcmp.ge.f32.partialorder %v4493_v43, 0.0  ;;  %v4557_v50 = vmul.f32 0.2, %v4493_v43  ;;  %v4288_v32 = vadd.f32 %v11084_v16, %v4130_v10  ;;  %v11152_v16 = vpack.c.b16 %v6131_v8, %v6130_v23 }
 0x52c   : > { %v4882_v1 = vor.u32 %v4880_v7, %v4879_v33  ;;  %v11148_v58 = vpack.c.b16 %v5595_v28, %v5594_v5  ;;  %v3999_v10 = vadd.f32 %v12632_v36, %v12631_v11  ;;  %v4883_v2 = vrot.slane %v4879_v33, 4  ;;  %v11172_v33 = vld [vmem:[#allocation2 + $0x54] sm:$0xff] }
 0x52d   : > { %v4589_v52 = vsel %vm4525_vm5, %v4493_v43, %v4557_v50  ;;  %v4426_v9 = vadd.f32 %v11038_v47, %v4288_v32  ;;  %v5096_v11 = vld [vmem:[#allocation2 + $0x98] sm:$0x1] }
 0x52e   : > { %v5093_v53 = vsel %vm10373_vm13, %v4882_v1, %v5092_v56  ;;  %v4677_v18 = vpack.c.bf16 %v4589_v52, %v4589_v52  ;;  %12630 = vst [vmem:[#allocation79_spill] sm:$0xff] %v11148_v58  ;;  %v11150_v15 = vpop.f32.mrf.mxu0  ;;  %v11159_v47 = vld [vmem:[#allocation2 + $0x88] sm:$0xf]  ;;  %7898 = vmatmul.msk.bf16.gmra.mxu2 %vm5622_vm6, %v11148_v58  ;;  %v5458_v56 = vshll.u32 %v11157_v39, 16 }
 0x52f   : > { %5094 = vst [vmem:[#allocation2 + $0x90] sm:$0xf] %v5093_v53  ;;  %v4458_v43 = vadd.f32 %v4426_v9, %v12633_v26  ;;  %v11170_v55 = vpop.f32.mrf.mxu1  ;;  %v5464_v1 = vshll.u32 %v11159_v47, 16  ;;  %v5468_v28 = vshrl.u32 %v11159_v47, 16  ;;  %v11176_v52 = vld [vmem:[#allocation2 + $0x8c] sm:$0x1] }
 0x530   : > { %v4885_v19 = vshrl.u32 %v4677_v18, 16  ;;  %v11163_v7 = vpop.f32.mrf.mxu2  ;;  %v4088_v5 = vpop.f32.mrf.mxu3  ;;  %v4888_v8 = vshll.u32 %v4677_v18, 16  ;;  %v5457_v9 = vrot.slane %v5455_v17, 4  ;;  %v5460_v53 = vrot.slane %v5458_v56, 5 }
 0x531   : > { %v4494_v50 = vadd.f32 %v10804_v12, %v4458_v43  ;;  %v4131_v32 = vadd.f32 %v4088_v5, %v3999_v10  ;;  %8005 = vmatmul.msk.bf16.gmra.mxu0 %vm5622_vm6, %v10935_v14  ;;  %v5466_v26 = vrot.slane %v5464_v1, 5  ;;  %v5470_v58 = vrot.slane %v5468_v28, 4 }
 0x532   : > { %v4887_v23 = vrot.slane %v4885_v19, 7  ;;  %8026 = vmatmul.msk.bf16.gmra.mxu1 %vm5622_vm6, %v11172_v33  ;;  %v5461_v14 = vor.u32 %v5460_v53, %v5457_v9  ;;  %v5474_v19 = vshll.u32 %v11176_v52, 16  ;;  %v6072_v17 = vrot.slane %v11093_v20, 5 }
 0x533   : > { %vm4526_vm11 = vcmp.ge.f32.partialorder %v4494_v50, 0.0  ;;  %v4558_v36 = vmul.f32 0.2, %v4494_v50  ;;  %v4289_v10 = vadd.f32 %v11124_v45, %v4131_v32  ;;  %v6075_v53 = vrot.slane %v11110_v25, 5 }
 0x534   : > { %v4890_v43 = vor.u32 %v4888_v8, %v4887_v23  ;;  %v4892_v5 = vrot.slane %v4887_v23, 4  ;;  %v5462_v28 = vrot.slane %v5461_v14, 4  ;;  %v5471_v23 = vor.u32 %v5470_v58, %v5466_v26 }
 0x535   : > { %v4590_v61 = vsel %vm4526_vm11, %v4494_v50, %v4558_v36  ;;  %v4427_v18 = vadd.f32 %v11071_v57, %v4289_v10  ;;  %7973 = vmatmul.msk.bf16.gmra.mxu3 %vm5622_vm6, %v11040_v38  ;;  %v12634_v57 = vld [vmem:[#allocation59_spill] sm:$0xff]  ;;  %v6073_v38 = vsel %vm8355_vm4, %v7994_v60, %v6072_v17  ;;  %v6074_v8 = vrot.slane %v6072_v17, 4 }
 0x536   : > { %v4891_v45 = vsel %vm10416_vm1, %v4883_v2, %v4890_v43  ;;  %v5097_v56 = vsel %vm10425_vm2, %v4892_v5, %v5096_v11  ;;  %v4678_v32 = vpack.c.bf16 %v4590_v61, %v4590_v61  ;;  %v11190_v1 = vpop.f32.mrf.mxu0  ;;  %v5467_v61 = vsel %vm8383_vm7, %v5462_v28, %v5466_v26  ;;  %v12635_v11 = vld [vmem:[#allocation58_spill] sm:$0xff] }
 0x537   : > { %5095 = vst.msk [vmem:[#allocation2 + $0x94] sm:$0xf] %vm4598_vm9, %v4891_v45  ;;  %v4459_v50 = vadd.f32 %v4427_v18, %v12634_v57  ;;  %v5472_v10 = vrot.slane %v5471_v23, 4  ;;  %v5476_v58 = vrot.slane %v5474_v19, 5  ;;  %v11203_v43 = vpop.f32.mrf.mxu1  ;;  %v5596_v18 = vunpack.c.l.b16 %v5467_v61  ;;  %v5099_v45 = vld [vmem:[#allocation2 + $0x9c] sm:$0xf] }
 0x538   : > { %5098 = vst [vmem:[#allocation2 + $0x98] sm:$0x1] %v5097_v56  ;;  %v4894_v20 = vshrl.u32 %v4678_v32, 16  ;;  %v11196_v9 = vpop.f32.mrf.mxu2  ;;  %v4091_v2 = vpop.f32.mrf.mxu3  ;;  %v4897_v5 = vshll.u32 %v4678_v32, 16  ;;  %v6076_v17 = vsel %vm8355_vm4, %v6074_v8, %v6075_v53  ;;  %v6132_v28 = vunpack.c.l.b16 %v6073_v38  ;;  %v12637_v53 = vld [vmem:[#allocation53_spill] sm:$0xff]  ;;  %v12639_v38 = vld [vmem:[#allocation62_spill] sm:$0xff] }
 0x539   : > { %v4495_v14 = vadd.f32 %v10804_v12, %v4459_v50  ;;  %v4132_v36 = vadd.f32 %v4091_v2, %v12635_v11  ;;  %v5477_v12 = vsel %vm8383_vm7, %v5472_v10, %v5476_v58  ;;  %v6133_v57 = vunpack.c.l.b16 %v6076_v17  ;;  %v12638_v11 = vld [vmem:[#allocation61_spill] sm:$0xff]  ;;  %v11226_v10 = vld [vmem:[#allocation2 + $0x90] sm:$0xf] }
 0x53a   : > { %v11205_v60 = vrot.slane %v4894_v20, 7  ;;  %v5597_v19 = vunpack.c.l.b16 %v5477_v12  ;;  %v7995_v23 = vrot.slane %v11157_v39, 9  ;;  %v5479_v17 = vshrl.u32 %v11226_v10, 16 }
 0x53b   : > { %vm4527_vm10 = vcmp.ge.f32.partialorder %v4495_v14, 0.0  ;;  %v4559_v26 = vmul.f32 0.2, %v4495_v14  ;;  %v4290_v25 = vadd.f32 %v11150_v15, %v4132_v36  ;;  %v11221_v61 = vpack.c.b16 %v6133_v57, %v6132_v28 }
 0x53c   : > { %v4899_v56 = vor.u32 %v4897_v5, %v11205_v60  ;;  %v11217_v2 = vpack.c.b16 %v5597_v19, %v5596_v18  ;;  %v4001_v36 = vadd.f32 %v12638_v11, %v12637_v53  ;;  %v4900_v39 = vrot.slane %v11205_v60, 4  ;;  %v5103_v11 = vld [vmem:[#allocation2 + $0xa4] sm:$0x1] }
 0x53d   : > { %v4591_v50 = vsel %vm4527_vm10, %v4495_v14, %v4559_v26  ;;  %v4428_v32 = vadd.f32 %v11104_v59, %v4290_v25  ;;  %v11240_v26 = vld [vmem:[%s12210_s4] ss:$0 sm:$0xff] }
 0x53e   : > { %v5100_v8 = vsel %vm10373_vm13, %v4899_v56, %v5099_v45  ;;  %v4679_v20 = vpack.c.bf16 %v4591_v50, %v4591_v50  ;;  %12636 = vst [vmem:[#allocation14_spill] sm:$0xff] %v11217_v2  ;;  %v11219_v15 = vpop.f32.mrf.mxu0  ;;  %v11228_v59 = vld [vmem:[#allocation2 + $0x94] sm:$0xf]  ;;  %7899 = vmatmul.msk.bf16.gmra.mxu2 %vm5622_vm6, %v11217_v2  ;;  %v5482_v45 = vshll.u32 %v11226_v10, 16  ;;  %v11247_v56 = vld [vmem:[#allocation2 + $0x60] sm:$0xff] }
 0x53f   : > { %5101 = vst [vmem:[#allocation2 + $0x9c] sm:$0xf] %v5100_v8  ;;  %v4460_v14 = vadd.f32 %v4428_v32, %v12639_v38  ;;  %v11245_v60 = vpop.f32.mrf.mxu1  ;;  %v5488_v19 = vshll.u32 %v11228_v59, 16  ;;  %v5492_v28 = vshrl.u32 %v11228_v59, 16  ;;  %v11251_v32 = vld [vmem:[#allocation2 + $0x98] sm:$0x1] }
 0x540   : > { %v4902_v58 = vshrl.u32 %v4679_v20, 16  ;;  %v11233_v5 = vpop.f32.mrf.mxu2  ;;  %v4093_v18 = vpop.f32.mrf.mxu3  ;;  %v4905_v50 = vshll.u32 %v4679_v20, 16  ;;  %v5481_v8 = vrot.slane %v5479_v17, 4  ;;  %v5484_v53 = vrot.slane %v5482_v45, 5 }
 0x541   : > { %v4496_v25 = vadd.f32 %v11240_v26, %v4460_v14  ;;  %v4133_v12 = vadd.f32 %v4093_v18, %v4001_v36  ;;  %8006 = vmatmul.msk.bf16.gmra.mxu0 %vm5622_vm6, %v10958_v34  ;;  %v5490_v14 = vrot.slane %v5488_v19, 5  ;;  %v5494_v0 = vrot.slane %v5492_v28, 4 }
 0x542   : > { %v4904_v57 = vrot.slane %v4902_v58, 7  ;;  %8027 = vmatmul.msk.bf16.gmra.mxu1 %vm5622_vm6, %v11247_v56  ;;  %v5485_v2 = vor.u32 %v5484_v53, %v5481_v8  ;;  %v5498_v58 = vshll.u32 %v11251_v32, 16  ;;  %v6079_v17 = vrot.slane %v11159_v47, 5  ;;  %v12641_v53 = vld [vmem:[#allocation55_spill] sm:$0xff] }
 0x543   : > { %vm4528_vm12 = vcmp.ge.f32.partialorder %v4496_v25, 0.0  ;;  %v4560_v36 = vmul.f32 0.2, %v4496_v25  ;;  %v4291_v38 = vadd.f32 %v11190_v1, %v4133_v12 }
 0x544   : > { %v4907_v18 = vor.u32 %v4905_v50, %v4904_v57  ;;  %v4909_v34 = vrot.slane %v4904_v57, 4  ;;  %v5486_v28 = vrot.slane %v5485_v2, 4  ;;  %v5495_v57 = vor.u32 %v5494_v0, %v5490_v14 }
 0x545   : > { %v4592_v46 = vsel %vm4528_vm12, %v4496_v25, %v4560_v36  ;;  %v4429_v20 = vadd.f32 %v11137_v40, %v4291_v38  ;;  %7974 = vmatmul.msk.bf16.gmra.mxu3 %vm5622_vm6, %v11106_v49  ;;  %v12640_v40 = vld [vmem:[#allocation65_spill] sm:$0xff]  ;;  %v6080_v49 = vsel %vm8355_vm4, %v7995_v23, %v6079_v17  ;;  %v6081_v50 = vrot.slane %v6079_v17, 4 }
 0x546   : > { %v4908_v1 = vsel %vm10416_vm1, %v4900_v39, %v4907_v18  ;;  %v5104_v45 = vsel %vm10425_vm2, %v4909_v34, %v5103_v11  ;;  %v4680_v12 = vpack.c.bf16 %v4592_v46, %v4592_v46  ;;  %v11265_v19 = vpop.f32.mrf.mxu0  ;;  %v5491_v46 = vsel %vm8383_vm7, %v5486_v28, %v5490_v14 }
 0x547   : > { %5102 = vst.msk [vmem:[#allocation2 + $0xa0] sm:$0xf] %vm4598_vm9, %v4908_v1  ;;  %v4461_v25 = vadd.f32 %v4429_v20, %v12640_v40  ;;  %v6082_v34 = vrot.slane %v11176_v52, 5  ;;  %v5496_v36 = vrot.slane %v5495_v57, 4  ;;  %v5500_v0 = vrot.slane %v5498_v58, 5  ;;  %v11278_v38 = vpop.f32.mrf.mxu1 }
 0x548   : > { %5105 = vst [vmem:[#allocation2 + $0xa4] sm:$0x1] %v5104_v45  ;;  %v4911_v47 = vshrl.u32 %v4680_v12, 16  ;;  %v11271_v8 = vpop.f32.mrf.mxu2  ;;  %v4096_v39 = vpop.f32.mrf.mxu3  ;;  %v4914_v18 = vshll.u32 %v4680_v12, 16  ;;  %v5598_v20 = vunpack.c.l.b16 %v5491_v46  ;;  %v5106_v1 = vld [vmem:[#allocation2 + $0xa8] sm:$0xf]  ;;  %v6134_v40 = vunpack.c.l.b16 %v6080_v49 }
 0x549   : > { %v4497_v2 = vadd.f32 %v11240_v26, %v4461_v25  ;;  %v4134_v11 = vadd.f32 %v4096_v39, %v12641_v53  ;;  %v6083_v17 = vsel %vm8355_vm4, %v6081_v50, %v6082_v34  ;;  %v5501_v45 = vsel %vm8383_vm7, %v5496_v36, %v5500_v0  ;;  %v12645_v49 = vld [vmem:[#allocation9_spill] sm:$0xff]  ;;  %v12646_v0 = vld [vmem:[#allocation68_spill] sm:$0xff] }
 0x54a   : > { %v11280_v23 = vrot.slane %v4911_v47, 7  ;;  %v5599_v58 = vunpack.c.l.b16 %v5501_v45  ;;  %v6135_v25 = vunpack.c.l.b16 %v6083_v17  ;;  %v7996_v50 = vrot.slane %v11226_v10, 9 }
 0x54b   : > { %vm4529_vm14 = vcmp.ge.f32.partialorder %v4497_v2, 0.0  ;;  %v4561_v14 = vmul.f32 0.2, %v4497_v2  ;;  %v4292_v52 = vadd.f32 %v11219_v15, %v4134_v11  ;;  %v12644_v11 = vld [vmem:[#allocation67_spill] sm:$0xff] }
 0x54c   : > { %v4916_v28 = vor.u32 %v4914_v18, %v11280_v23  ;;  %v4917_v57 = vrot.slane %v11280_v23, 4  ;;  %v11293_v15 = vpack.c.b16 %v5599_v58, %v5598_v20  ;;  %v11297_v53 = vpack.c.b16 %v6135_v25, %v6134_v40  ;;  %v11302_v23 = vld [vmem:[#allocation2 + $0x9c] sm:$0xf] }
 0x54d   : > { %v4593_v12 = vsel %vm4529_vm14, %v4497_v2, %v4561_v14  ;;  %v4430_v47 = vadd.f32 %v11170_v55, %v4292_v52  ;;  %v4003_v36 = vadd.f32 %v12645_v49, %v12644_v11  ;;  %v5503_v14 = vshrl.u32 %v11302_v23, 16  ;;  %v5110_v49 = vld [vmem:[#allocation2 + $0xb0] sm:$0x1] }
 0x54e   : > { %v5107_v39 = vsel %vm10373_vm13, %v4916_v28, %v5106_v1  ;;  %v4681_v46 = vpack.c.bf16 %v4593_v12, %v4593_v12  ;;  %12642 = vst [vmem:[#allocation30_spill] sm:$0xff] %v11293_v15  ;;  %v11295_v34 = vpop.f32.mrf.mxu0  ;;  %v11304_v55 = vld [vmem:[#allocation2 + $0xa0] sm:$0xf]  ;;  %7900 = vmatmul.msk.bf16.gmra.mxu2 %vm5622_vm6, %v11293_v15  ;;  %v5506_v52 = vshll.u32 %v11302_v23, 16 }
 0x54f   : > { %12643 = vst [vmem:[#allocation15_spill] sm:$0xff] %v11297_v53  ;;  %v4462_v2 = vadd.f32 %v4430_v47, %v12646_v0  ;;  %v11310_v1 = vld [vmem:[#allocation2 + $0xa4] sm:$0x1]  ;;  %v11317_v58 = vpop.f32.mrf.mxu1  ;;  %v5512_v40 = vshll.u32 %v11304_v55, 16  ;;  %v5516_v25 = vshrl.u32 %v11304_v55, 16  ;;  %v11321_v47 = vld [vmem:[#allocation2 + $0x6c] sm:$0xff] }
 0x550   : > { %5108 = vst [vmem:[#allocation2 + $0xa8] sm:$0xf] %v5107_v39  ;;  %v4919_v10 = vshrl.u32 %v4681_v46, 16  ;;  %v4922_v18 = vshll.u32 %v4681_v46, 16  ;;  %v11308_v20 = vpop.f32.mrf.mxu2  ;;  %v4098_v17 = vpop.f32.mrf.mxu3  ;;  %v5505_v39 = vrot.slane %v5503_v14, 4  ;;  %v5508_v46 = vrot.slane %v5506_v52, 5 }
 0x551   : > { %v4498_v45 = vadd.f32 %v11240_v26, %v4462_v2  ;;  %v4135_v28 = vadd.f32 %v4098_v17, %v4003_v36  ;;  %8007 = vmatmul.msk.bf16.gmra.mxu0 %vm5622_vm6, %v11022_v27  ;;  %v5522_v11 = vshll.u32 %v11310_v1, 16  ;;  %v5514_v2 = vrot.slane %v5512_v40, 5 }
 0x552   : > { %v4921_v12 = vrot.slane %v4919_v10, 7  ;;  %8028 = vmatmul.msk.bf16.gmra.mxu1 %vm5622_vm6, %v11321_v47  ;;  %v5509_v15 = vor.u32 %v5508_v46, %v5505_v39  ;;  %v5518_v6 = vrot.slane %v5516_v25, 4  ;;  %v6086_v52 = vrot.slane %v11228_v59, 5  ;;  %v12648_v59 = vld [vmem:[#allocation57_spill] sm:$0xff] }
 0x553   : > { %vm4530_vm15 = vcmp.ge.f32.partialorder %v4498_v45, 0.0  ;;  %v4562_v0 = vmul.f32 0.2, %v4498_v45  ;;  %v4293_v36 = vadd.f32 %v11265_v19, %v4135_v28  ;;  %v5524_v14 = vrot.slane %v5522_v11, 5 }
 0x554   : > { %v4924_v17 = vor.u32 %v4922_v18, %v4921_v12  ;;  %v4926_v27 = vrot.slane %v4921_v12, 4  ;;  %v5510_v12 = vrot.slane %v5509_v15, 4  ;;  %v5519_v25 = vor.u32 %v5518_v6, %v5514_v2  ;;  %v12649_v6 = vld [vmem:[#allocation64_spill] sm:$0xff] }
 0x555   : > { %v4594_v10 = vsel %vm4530_vm15, %v4498_v45, %v4562_v0  ;;  %v4431_v31 = vadd.f32 %v11203_v43, %v4293_v36  ;;  %7975 = vmatmul.msk.bf16.gmra.mxu3 %vm5622_vm6, %v11172_v33  ;;  %v12647_v45 = vld [vmem:[#allocation71_spill] sm:$0xff]  ;;  %v6087_v33 = vsel %vm8355_vm4, %v7996_v50, %v6086_v52  ;;  %v6088_v39 = vrot.slane %v6086_v52, 4 }
 0x556   : > { %v4925_v19 = vsel %vm10416_vm1, %v4917_v57, %v4924_v17  ;;  %v5111_v18 = vsel %vm10425_vm2, %v4926_v27, %v5110_v49  ;;  %v4682_v28 = vpack.c.bf16 %v4594_v10, %v4594_v10  ;;  %v11335_v40 = vpop.f32.mrf.mxu0  ;;  %v4005_v46 = vadd.f32 %v10988_v29, %v12648_v59 }
 0x557   : > { %5109 = vst.msk [vmem:[#allocation2 + $0xac] sm:$0xf] %vm4598_vm9, %v4925_v19  ;;  %v4463_v43 = vadd.f32 %v4431_v31, %v12647_v45  ;;  %v5515_v15 = vsel %vm8383_vm7, %v5510_v12, %v5514_v2  ;;  %v11347_v0 = vld [vmem:[#allocation2 + $0xa8] sm:$0xf]  ;;  %v5520_v50 = vrot.slane %v5519_v25, 4  ;;  %v11351_v17 = vpop.f32.mrf.mxu1  ;;  %v6136_v10 = vunpack.c.l.b16 %v6087_v33 }
 0x558   : > { %5112 = vst [vmem:[#allocation2 + $0xb0] sm:$0x1] %v5111_v18  ;;  %v4928_v57 = vshrl.u32 %v4682_v28, 16  ;;  %v4931_v11 = vshll.u32 %v4682_v28, 16  ;;  %v11343_v27 = vpop.f32.mrf.mxu2  ;;  %v4101_v49 = vpop.f32.mrf.mxu3  ;;  %v5527_v52 = vshrl.u32 %v11347_v0, 16  ;;  %v5530_v19 = vshll.u32 %v11347_v0, 16 }
 0x559   : > { %v4499_v31 = vadd.f32 %v11240_v26, %v4463_v43  ;;  %v4136_v36 = vadd.f32 %v4101_v49, %v12649_v6  ;;  %v6089_v18 = vrot.slane %v11251_v32, 5  ;;  %v5113_v28 = vld [vmem:[#allocation2 + $0xb4] sm:$0xf]  ;;  %v5525_v45 = vsel %vm8383_vm7, %v5520_v50, %v5524_v14 }
 0x55a   : > { %v11353_v29 = vrot.slane %v4928_v57, 7  ;;  %v5600_v25 = vunpack.c.l.b16 %v5515_v15  ;;  %v5601_v33 = vunpack.c.l.b16 %v5525_v45  ;;  %v5529_v59 = vrot.slane %v5527_v52, 4  ;;  %v12650_v15 = vld [vmem:[#allocation74_spill] sm:$0xff] }
 0x55b   : > { %vm4531_vm0 = vcmp.ge.f32.partialorder %v4499_v31, 0.0  ;;  %v4563_v2 = vmul.f32 0.2, %v4499_v31  ;;  %v4294_v12 = vadd.f32 %v11295_v34, %v4136_v36  ;;  %v5532_v6 = vrot.slane %v5530_v19, 5 }
 0x55c   : > { %v4933_v43 = vor.u32 %v4931_v11, %v11353_v29  ;;  %v6090_v32 = vsel %vm8355_vm4, %v6088_v39, %v6089_v18  ;;  %v11367_v34 = vpack.c.b16 %v5601_v33, %v5600_v25 }
 0x55d   : > { %v4595_v57 = vsel %vm4531_vm0, %v4499_v31, %v4563_v2  ;;  %v4432_v49 = vadd.f32 %v11245_v60, %v4294_v12  ;;  %v6137_v11 = vunpack.c.l.b16 %v6090_v32  ;;  %v5533_v60 = vor.u32 %v5532_v6, %v5529_v59 }
 0x55e   : > { %v5114_v3 = vsel %vm10373_vm13, %v4933_v43, %v5113_v28  ;;  %v4683_v30 = vpack.c.bf16 %v4595_v57, %v4595_v57  ;;  %v11369_v36 = vpop.f32.mrf.mxu0  ;;  %v11371_v14 = vld [vmem:[#allocation2 + $0xac] sm:$0xf]  ;;  %7901 = vmatmul.msk.bf16.gmra.mxu2 %vm5622_vm6, %v11367_v34 }
 0x55f   : > { %5115 = vst [vmem:[#allocation2 + $0xb4] sm:$0xf] %v5114_v3  ;;  %v4464_v31 = vadd.f32 %v4432_v49, %v12650_v15  ;;  %v11374_v50 = vld [vmem:[#allocation2 + $0xb0] sm:$0x1]  ;;  %v5536_v52 = vshll.u32 %v11371_v14, 16  ;;  %v5540_v39 = vshrl.u32 %v11371_v14, 16  ;;  %v11383_v12 = vpack.c.b16 %v6137_v11, %v6136_v10  ;;  %v11389_v25 = vpop.f32.mrf.mxu1 }
 0x560   : > { %v4936_v19 = vshrl.u32 %v4683_v30, 16  ;;  %v4103_v28 = vpop.f32.mrf.mxu3  ;;  %v5546_v2 = vshll.u32 %v11374_v50, 16  ;;  %v4934_v3 = vrot.slane %v11353_v29, 4  ;;  %v4939_v57 = vshll.u32 %v4683_v30, 16  ;;  %v11391_v49 = vld [vmem:[#allocation2 + $0x78] sm:$0xff] }
 0x561   : > { %v11380_v18 = vpop.f32.mrf.mxu2  ;;  %12651 = vst [vmem:[#allocation78_spill] sm:$0xff] %v11383_v12  ;;  %v4500_v45 = vadd.f32 %v11240_v26, %v4464_v31  ;;  %v4137_v43 = vadd.f32 %v4103_v28, %v4005_v46  ;;  %8008 = vmatmul.msk.bf16.gmra.mxu0 %vm5622_vm6, %v11086_v42  ;;  %v5538_v33 = vrot.slane %v5536_v52, 5  ;;  %v5534_v6 = vrot.slane %v5533_v60, 4  ;;  %v5117_v15 = vld [vmem:[#allocation2 + $0xbc] sm:$0x1] }
 0x562   : > { %v4938_v59 = vrot.slane %v4936_v19, 7  ;;  %v5542_v32 = vrot.slane %v5540_v39, 4  ;;  %v5548_v11 = vrot.slane %v5546_v2, 5  ;;  %8029 = vmatmul.msk.bf16.gmra.mxu1 %vm5622_vm6, %v11391_v49  ;;  %v7997_v52 = vrot.slane %v11302_v23, 9 }
 0x563   : > { %vm4532_vm5 = vcmp.ge.f32.partialorder %v4500_v45, 0.0  ;;  %v4564_v10 = vmul.f32 0.2, %v4500_v45  ;;  %v4295_v29 = vadd.f32 %v11335_v40, %v4137_v43  ;;  %v5539_v60 = vsel %vm8383_vm7, %v5534_v6, %v5538_v33  ;;  %v5186_v40 = vld [vmem:[%s12211_s5 + $0x14] sm:$0xf] }
 0x564   : > { %v4941_v31 = vor.u32 %v4939_v57, %v4938_v59  ;;  %v4943_v46 = vrot.slane %v4938_v59, 4  ;;  %v5543_v28 = vor.u32 %v5542_v32, %v5538_v33  ;;  %v6093_v39 = vrot.slane %v11304_v55, 5  ;;  %v12652_v33 = vld [vmem:[#allocation76_spill] sm:$0xff] }
 0x565   : > { %v4596_v19 = vsel %vm4532_vm5, %v4500_v45, %v4564_v10  ;;  %v4433_v30 = vadd.f32 %v11278_v38, %v4295_v29  ;;  %7976 = vmatmul.msk.bf16.gmra.mxu3 %vm5622_vm6, %v11247_v56  ;;  %v6633_v6 = vsel %vm5671_vm8, %v5186_v40, 0  ;;  %v5602_v29 = vunpack.c.l.b16 %v5539_v60 }
 0x566   : > { %v4942_v2 = vsel %vm10416_vm1, %v4934_v3, %v4941_v31  ;;  %v5118_v23 = vsel %vm10425_vm2, %v4943_v46, %v5117_v15  ;;  %v4684_v45 = vpack.c.bf16 %v4596_v19, %v4596_v19  ;;  %v11410_v38 = vpop.f32.mrf.mxu0  ;;  %v5544_v43 = vrot.slane %v5543_v28, 4  ;;  %v11412_v56 = vld [vmem:[#allocation2 + $0xb4] sm:$0xf]  ;;  %6642 = vmatpush.bf16.msra.mxu3 %v6633_v6 }
 0x567   : > { %5116 = vst.msk [vmem:[#allocation2 + $0xb8] sm:$0xf] %vm4598_vm9, %v4942_v2  ;;  %v4465_v59 = vadd.f32 %v4433_v30, %v12652_v33  ;;  %v5551_v57 = vshrl.u32 %v11412_v56, 16  ;;  %v5554_v55 = vshll.u32 %v11412_v56, 16  ;;  %v6094_v31 = vsel %vm8355_vm4, %v7997_v52, %v6093_v39  ;;  %v11427_v30 = vpop.f32.mrf.mxu1 }
 0x568   : > { %5119 = vst [vmem:[#allocation2 + $0xbc] sm:$0x1] %v5118_v23  ;;  %v4945_v3 = vshrl.u32 %v4684_v45, 16  ;;  %v5904_v15 = vpop.f32.mrf.mxu3  ;;  %v5549_v10 = vsel %vm8383_vm7, %v5544_v43, %v5548_v11  ;;  %v6096_v40 = vrot.slane %v11310_v1, 5  ;;  %v4948_v23 = vshll.u32 %v4684_v45, 16 }
 0x569   : > { %v11419_v32 = vpop.f32.mrf.mxu2  ;;  %v4501_v46 = vadd.f32 %v11240_v26, %v4465_v59  ;;  %v5905_v28 = vadd.f32 %v5904_v15, %v11016_v35  ;;  %v5603_v19 = vunpack.c.l.b16 %v5549_v10  ;;  %v5553_v33 = vrot.slane %v5551_v57, 4  ;;  %v5120_v11 = vld [vmem:[#allocation2 + $0xc0] sm:$0xf] }
 0x56a   : > { %v11430_v2 = vrot.slane %v4945_v3, 7  ;;  %v6095_v42 = vrot.slane %v6093_v39, 4  ;;  %v5556_v52 = vrot.slane %v5554_v55, 5  ;;  %v6138_v6 = vunpack.c.l.b16 %v6094_v31 }
 0x56b   : > { %vm4533_vm11 = vcmp.ge.f32.partialorder %v4501_v46, 0.0  ;;  %v4565_v60 = vmul.f32 0.2, %v4501_v46  ;;  %v11433_v43 = vadd.f32 %v11369_v36, %v5905_v28  ;;  %v11436_v35 = vpack.c.b16 %v5603_v19, %v5602_v29 }
 0x56c   : > { %v4950_v26 = vor.u32 %v4948_v23, %v11430_v2  ;;  %v6097_v59 = vsel %vm8355_vm4, %v6095_v42, %v6096_v40  ;;  %v5557_v55 = vor.u32 %v5556_v52, %v5553_v33  ;;  %v4951_v31 = vrot.slane %v11430_v2, 4  ;;  %v5189_v40 = vld [vmem:[%s12211_s5 + $0x20] sm:$0xf]  ;;  %v5187_v52 = vld [vmem:[%s12211_s5 + $0x18] sm:$0xf] }
 0x56d   : > { %v4597_v1 = vsel %vm4533_vm11, %v4501_v46, %v4565_v60  ;;  %v6139_v3 = vunpack.c.l.b16 %v6097_v59  ;;  %v7057_v60 = vsel %vm5671_vm8, %v5189_v40, 0 }
 0x56e   : > { %v5121_v39 = vsel %vm10373_vm13, %v4950_v26, %v5120_v11  ;;  %v4685_v45 = vpack.c.bf16 %v4597_v1, %v4597_v1  ;;  %v11442_v57 = vpop.f32.mrf.mxu0  ;;  %v11444_v15 = vld [vmem:[#allocation2 + $0xb8] sm:$0xf]  ;;  %7902 = vmatmul.msk.bf16.gmra.mxu2 %vm5622_vm6, %v11436_v35  ;;  %v11470_v1 = vld [vmem:[#allocation2 + $0x84] sm:$0xff] }
 0x56f   : > { %5122 = vst [vmem:[#allocation2 + $0xc0] sm:$0xf] %v5121_v39  ;;  %v11446_v36 = vld [vmem:[#allocation2 + $0xbc] sm:$0x1]  ;;  %v5560_v10 = vshll.u32 %v11444_v15, 16  ;;  %v5564_v29 = vshrl.u32 %v11444_v15, 16  ;;  %v11450_v42 = vpack.c.b16 %v6139_v3, %v6138_v6  ;;  %v11464_v33 = vpop.f32.mrf.mxu1  ;;  %7066 = vmatpush.bf16.msra.mxu2 %v7057_v60 }
 0x570   : > { %v4953_v46 = vshrl.u32 %v4685_v45, 16  ;;  %v5906_v28 = vpop.f32.mrf.mxu3  ;;  %v5570_v19 = vshll.u32 %v11446_v36, 16  ;;  %v4956_v59 = vshll.u32 %v4685_v45, 16  ;;  %v6100_v6 = vrot.slane %v11371_v14, 5  ;;  %v5124_v3 = vld [vmem:[#allocation2 + $0xc8] sm:$0x1] }
 0x571   : > { %12653 = vst [vmem:[#allocation23_spill] sm:$0xff] %v11450_v42  ;;  %v11455_v63 = vpop.f32.mrf.mxu2  ;;  %v5907_v23 = vadd.f32 %v5906_v28, %v11064_v21  ;;  %8009 = vmatmul.msk.bf16.gmra.mxu0 %vm5622_vm6, %v11152_v16  ;;  %v5562_v2 = vrot.slane %v5560_v10, 5  ;;  %v5566_v11 = vrot.slane %v5564_v29, 4  ;;  %v6765_v21 = vsel %vm5671_vm8, %v5187_v52, 0  ;;  %v5188_v28 = vld [vmem:[%s12211_s5 + $0x1c] sm:$0xf] }
 0x572   : > { %v4955_v26 = vrot.slane %v4953_v46, 7  ;;  %v5558_v10 = vrot.slane %v5557_v55, 4  ;;  %6774 = vmatpush.bf16.msra.mxu0 %v6765_v21  ;;  %v7998_v46 = vrot.slane %v11347_v0, 9  ;;  %8030 = vmatmul.msk.bf16.gmra.mxu1 %vm5622_vm6, %v11470_v1  ;;  %v5572_v60 = vrot.slane %v5570_v19, 5 }
 0x573   : > { %v6301_v39 = vadd.f32 %v11410_v38, %v5907_v23  ;;  %v5567_v29 = vor.u32 %v5566_v11, %v5562_v2  ;;  %v6919_v14 = vsel %vm5671_vm8, %v5188_v28, 0  ;;  %v6102_v23 = vrot.slane %v6100_v6, 4 }
 0x574   : > { %v4958_v45 = vor.u32 %v4956_v59, %v4955_v26  ;;  %v4960_v40 = vrot.slane %v4955_v26, 4  ;;  %6928 = vmatpush.bf16.msra.mxu1 %v6919_v14  ;;  %v6101_v55 = vsel %vm8355_vm4, %v7998_v46, %v6100_v6  ;;  %v6103_v11 = vrot.slane %v11374_v50, 5 }
 0x575   : > { %7977 = vmatmul.msk.bf16.gmra.mxu3 %vm5622_vm6, %v11321_v47  ;;  %v5568_v38 = vrot.slane %v5567_v29, 4  ;;  %v5563_v26 = vsel %vm8383_vm7, %v5558_v10, %v5562_v2  ;;  %v6140_v6 = vunpack.c.l.b16 %v6101_v55  ;;  %v7999_v14 = vrot.slane %v11412_v56, 9 }
 0x576   : > { %v4959_v0 = vsel %vm10416_vm1, %v4951_v31, %v4958_v45  ;;  %v5125_v52 = vsel %vm10425_vm2, %v4960_v40, %v5124_v3  ;;  %v6227_v19 = vpop.f32.mrf.mxu0  ;;  %v6104_v21 = vsel %vm8355_vm4, %v6102_v23, %v6103_v11  ;;  %v5604_v28 = vunpack.c.l.b16 %v5563_v26  ;;  %v11523_v23 = vld [vmem:[#allocation2 + $0x90] sm:$0xff] }
 0x577   : > { %5123 = vst.msk [vmem:[#allocation2 + $0xc4] sm:$0xf] %vm4598_vm9, %v4959_v0  ;;  %v5573_v59 = vsel %vm8383_vm7, %v5568_v38, %v5572_v60  ;;  %v6141_v24 = vunpack.c.l.b16 %v6104_v21  ;;  %v11501_v29 = vpop.f32.mrf.mxu1  ;;  %v11510_v40 = vadd.f32 %v11317_v58, %v11433_v43  ;;  %v6107_v38 = vrot.slane %v11444_v15, 5 }
 0x578   : > { %5126 = vst [vmem:[#allocation2 + $0xc8] sm:$0x1] %v5125_v52  ;;  %v5909_v48 = vpop.f32.mrf.mxu3  ;;  %v5605_v31 = vunpack.c.l.b16 %v5573_v59  ;;  %v6110_v11 = vrot.slane %v11446_v36, 5  ;;  %v11535_v26 = vadd.f32 %v11351_v17, %v6301_v39  ;;  %v12656_v17 = vld [vmem:[#allocation12_spill] sm:$0xff] }
 0x579   : > { %v11498_v50 = vpop.f32.mrf.mxu2  ;;  %v5910_v3 = vadd.f32 %v5909_v48, %v11097_v4  ;;  %v11503_v46 = vpack.c.b16 %v6141_v24, %v6140_v6  ;;  %v6108_v58 = vsel %vm8355_vm4, %v7999_v14, %v6107_v38  ;;  %v6109_v43 = vrot.slane %v6107_v38, 4  ;;  %v11544_v6 = vld [vmem:[#allocation2 + $0xc0] sm:$0xf] }
 0x57a   : > { %v11506_v10 = vpack.c.b16 %v5605_v31, %v5604_v28  ;;  %v6142_v56 = vunpack.c.l.b16 %v6108_v58  ;;  %v8052_v14 = vrot.slane %v11544_v6, 9 }
 0x57b   : > { %12654 = vst [vmem:[#allocation81_spill] sm:$0xff] %v11503_v46  ;;  %v6302_v2 = vadd.f32 %v11442_v57, %v5910_v3 }
 0x57d   : > { %v11547_v3 = vadd.f32 %v11389_v25, %v6302_v2  ;;  %v11560_v25 = vld [vmem:[#allocation2 + $0x9c] sm:$0xff] }
 0x57e   : > { %v6230_v45 = vpop.f32.mrf.mxu0  ;;  %7903 = vmatmul.msk.bf16.gmra.mxu2 %vm5622_vm6, %v11506_v10  ;;  %v11549_v28 = vld [vmem:[#allocation2 + $0xc4] sm:$0xf]  ;;  %12657 = vst [vmem:[#allocation17_spill] sm:$0xff] %v11560_v25 }
 0x57f   : > { %v11521_v57 = vpop.f32.mrf.mxu1 }
 0x580   : > { %v5911_v4 = vpop.f32.mrf.mxu3 }
 0x581   : > { %v11514_v60 = vpop.f32.mrf.mxu2  ;;  %v5912_v55 = vadd.f32 %v5911_v4, %v11130_v51  ;;  %8010 = vmatmul.msk.bf16.gmra.mxu0 %vm5622_vm6, %v11221_v61  ;;  %v6111_v51 = vsel %vm8355_vm4, %v6109_v43, %v6110_v11  ;;  %v11553_v4 = vld [vmem:[#allocation2 + $0xc8] sm:$0x1] }
 0x582   : > { %8031 = vmatmul.msk.bf16.gmra.mxu1 %vm5622_vm6, %v11523_v23  ;;  %v6143_v15 = vunpack.c.l.b16 %v6111_v51  ;;  %v6624_v11 = vrot.slane %v11553_v4, 5 }
 0x583   : > { %v6303_v0 = vadd.f32 %v6227_v19, %v5912_v55 }
 0x584   : > { %v11537_v59 = vpack.c.b16 %v6143_v15, %v6142_v56 }
 0x585   : > { %7978 = vmatmul.msk.bf16.gmra.mxu3 %vm5622_vm6, %v11391_v49  ;;  %v11574_v56 = vadd.f32 %v11427_v30, %v6303_v0 }
 0x586   : > { %v6232_v52 = vpop.f32.mrf.mxu0  ;;  %12655 = vst [vmem:[#allocation19_spill] sm:$0xff] %v11537_v59 }
 0x587   : > { %v11542_v48 = vpop.f32.mrf.mxu1 }
 0x588   : > { %v5914_v21 = vpop.f32.mrf.mxu3 }
 0x589   : > { %v11539_v36 = vpop.f32.mrf.mxu2  ;;  %v5915_v19 = vadd.f32 %v5914_v21, %v11163_v7  ;;  %v6621_v7 = vrot.slane %v11549_v28, 5 }
 0x58b   : > { %v6304_v31 = vadd.f32 %v6230_v45, %v5915_v19  ;;  %v6622_v2 = vsel %vm8355_vm4, %v8052_v14, %v6621_v7  ;;  %v6623_v43 = vrot.slane %v6621_v7, 4 }
 0x58c   : > { %v6626_v15 = vunpack.c.l.b16 %v6622_v2 }
 0x58e   : > { %v6235_v24 = vpop.f32.mrf.mxu0  ;;  %8036 = vmatmul.msk.bf16.vlgmr.msrb.gmra.mxu2 %vm5622_vm6, %v12656_v17 }
 0x58f   : > { %v6372_v38 = vpop.f32.mrf.mxu1 }
 0x590   : > { %v5916_v39 = vpop.f32.mrf.mxu3 }
 0x591   : > { %v5917_v45 = vadd.f32 %v5916_v39, %v11196_v9  ;;  %8011 = vmatmul.msk.bf16.gmra.mxu0 %vm5622_vm6, %v11297_v53  ;;  %v11564_v55 = vpop.f32.mrf.mxu2  ;;  %v6625_v9 = vsel %vm8355_vm4, %v6623_v43, %v6624_v11  ;;  %v11582_v53 = vadd.f32 %v11464_v33, %v6304_v31  ;;  %v11589_v43 = vld [vmem:[#allocation2 + $0xa8] sm:$0xff] }
 0x592   : > { %8032 = vmatmul.msk.bf16.gmra.mxu1 %vm5622_vm6, %v11560_v25  ;;  %v6627_v21 = vunpack.c.l.b16 %v6625_v9  ;;  %12659 = vst [vmem:[#allocation34_spill] sm:$0xff] %v11589_v43 }
 0x593   : > { %v6305_v58 = vadd.f32 %v6232_v52, %v5917_v45 }
 0x594   : > { %v11576_v52 = vpack.c.b16 %v6627_v21, %v6626_v15 }
 0x595   : > { %7979 = vmatmul.msk.bf16.gmra.mxu3 %vm5622_vm6, %v11470_v1  ;;  %v11598_v31 = vadd.f32 %v11501_v29, %v6305_v58  ;;  %v11611_v58 = vld [vmem:[#allocation2 + $0xb4] sm:$0xff] }
 0x596   : > { %v6237_v51 = vpop.f32.mrf.mxu0  ;;  %12658 = vst [vmem:[#allocation32_spill] sm:$0xff] %v11576_v52 }
 0x597   : > { %v6374_v39 = vpop.f32.mrf.mxu1  ;;  %12660 = vst [vmem:[#allocation80_spill] sm:$0xff] %v11611_v58 }
 0x598   : > { %v5919_v19 = vpop.f32.mrf.mxu3 }
 0x599   : > { %v5920_v17 = vadd.f32 %v5919_v19, %v11233_v5  ;;  %v11579_v14 = vpop.f32.mrf.mxu2 }
 0x59b   : > { %v6306_v7 = vadd.f32 %v6235_v24, %v5920_v17 }
 0x59e   : > { %v6240_v45 = vpop.f32.mrf.mxu0  ;;  %8037 = vmatmul.msk.bf16.gmra.mxu2 %vm5622_vm6, %v10598_v13 }
 0x59f   : > { %v6377_v2 = vpop.f32.mrf.mxu1 }
 0x5a0   : > { %v5921_v30 = vpop.f32.mrf.mxu3 }
 0x5a1   : > { %v5922_v0 = vadd.f32 %v5921_v30, %v11271_v8  ;;  %8012 = vmatmul.msk.bf16.gmra.mxu0 %vm5622_vm6, %v11383_v12  ;;  %v11591_v5 = vpop.f32.mrf.mxu2 }
 0x5a2   : > { %8033 = vmatmul.msk.bf16.gmra.mxu1 %vm5622_vm6, %v11589_v43 }
 0x5a3   : > { %v6307_v11 = vadd.f32 %v6237_v51, %v5922_v0  ;;  %v11604_v51 = vadd.f32 %v11521_v57, %v6306_v7 }
 0x5a5   : > { %7980 = vmatmul.msk.bf16.gmra.mxu3 %vm5622_vm6, %v11523_v23  ;;  %v11620_v7 = vadd.f32 %v11542_v48, %v6307_v11  ;;  %v11632_v11 = vld [vmem:[#allocation2 + $0xc0] sm:$0xff] }
 0x5a6   : > { %v6242_v33 = vpop.f32.mrf.mxu0  ;;  %12661 = vst [vmem:[#allocation28_spill] sm:$0xff] %v11632_v11 }
 0x5a7   : > { %v6379_v9 = vpop.f32.mrf.mxu1 }
 0x5a8   : > { %v5924_v8 = vpop.f32.mrf.mxu3 }
 0x5a9   : > { %v5925_v24 = vadd.f32 %v5924_v8, %v11308_v20  ;;  %v11601_v15 = vpop.f32.mrf.mxu2 }
 0x5ab   : > { %v6308_v21 = vadd.f32 %v6240_v45, %v5925_v24 }
 0x5ad   : > { %v11625_v52 = vadd.f32 %v6372_v38, %v6308_v21 }
 0x5ae   : > { %v6245_v19 = vpop.f32.mrf.mxu0  ;;  %8038 = vmatmul.msk.bf16.gmra.mxu2 %vm5622_vm6, %v10666_v37 }
 0x5af   : > { %v6382_v29 = vpop.f32.mrf.mxu1 }
 0x5b0   : > { %v5926_v17 = vpop.f32.mrf.mxu3 }
 0x5b1   : > { %v5927_v30 = vadd.f32 %v5926_v17, %v11343_v27  ;;  %8013 = vmatmul.msk.bf16.gmra.mxu0 %vm5622_vm6, %v11450_v42  ;;  %v11613_v20 = vpop.f32.mrf.mxu2 }
 0x5b2   : > { %8034 = vmatmul.msk.bf16.gmra.mxu1 %vm5622_vm6, %v11611_v58 }
 0x5b3   : > { %v6309_v0 = vadd.f32 %v6242_v33, %v5927_v30 }
 0x5b5   : > { %7981 = vmatmul.msk.bf16.gmra.mxu3 %vm5622_vm6, %v11560_v25  ;;  %v11640_v21 = vadd.f32 %v6374_v39, %v6309_v0 }
 0x5b6   : > { %v6247_v57 = vpop.f32.mrf.mxu0 }
 0x5b7   : > { %v6384_v8 = vpop.f32.mrf.mxu1 }
 0x5b8   : > { %v5929_v27 = vpop.f32.mrf.mxu3 }
 0x5b9   : > { %v5930_v45 = vadd.f32 %v5929_v27, %v11380_v18  ;;  %v11623_v24 = vpop.f32.mrf.mxu2 }
 0x5bb   : > { %v6310_v17 = vadd.f32 %v6245_v19, %v5930_v45 }
 0x5bd   : > { %v11645_v12 = vadd.f32 %v6377_v2, %v6310_v17 }
 0x5be   : > { %v6250_v44 = vpop.f32.mrf.mxu0  ;;  %8039 = vmatmul.msk.bf16.gmra.mxu2 %vm5622_vm6, %v10734_v54 }
 0x5bf   : > { %v6387_v48 = vpop.f32.mrf.mxu1 }
 0x5c0   : > { %v5931_v33 = vpop.f32.mrf.mxu3 }
 0x5c1   : > { %v5932_v30 = vadd.f32 %v5931_v33, %v11419_v32  ;;  %8014 = vmatmul.msk.bf16.gmra.mxu0 %vm5622_vm6, %v11503_v46  ;;  %v11634_v18 = vpop.f32.mrf.mxu2 }
 0x5c2   : > { %8035 = vmatmul.msk.bf16.gmra.mxu1 %vm5622_vm6, %v11632_v11 }
 0x5c3   : > { %v6311_v27 = vadd.f32 %v6247_v57, %v5932_v30 }
 0x5c5   : > { %7982 = vmatmul.msk.bf16.gmra.mxu3 %vm5622_vm6, %v11589_v43  ;;  %v11658_v2 = vadd.f32 %v6379_v9, %v6311_v27  ;;  %v8265_v43 = vld [vmem:[#allocation2 + $0x24] sm:$0xff] }
 0x5c6   : > { %v6252_v38 = vpop.f32.mrf.mxu0 }
 0x5c7   : > { %v6389_v45 = vpop.f32.mrf.mxu1 }
 0x5c8   : > { %v5934_v19 = vpop.f32.mrf.mxu3 }
 0x5c9   : > { %v5935_v32 = vadd.f32 %v5934_v19, %v11455_v63  ;;  %v11643_v33 = vpop.f32.mrf.mxu2 }
 0x5cb   : > { %v6312_v46 = vadd.f32 %v6250_v44, %v5935_v32 }
 0x5cd   : > { %v11663_v11 = vadd.f32 %v6382_v29, %v6312_v46 }
 0x5ce   : > { %v6255_v42 = vpop.f32.mrf.mxu0  ;;  %8040 = vmatmul.msk.bf16.gmra.mxu2 %vm5622_vm6, %v10815_v22 }
 0x5cf   : > { %v6392_v39 = vpop.f32.mrf.mxu1 }
 0x5d0   : > { %v5936_v57 = vpop.f32.mrf.mxu3 }
 0x5d1   : > { %v5937_v30 = vadd.f32 %v5936_v57, %v11498_v50  ;;  %8015 = vmatmul.msk.bf16.gmra.mxu0 %vm5622_vm6, %v11537_v59  ;;  %v11652_v0 = vpop.f32.mrf.mxu2 }
 0x5d2   : > { %8089 = vmatmul.msk.bf16.vlgmr.msra.gmra.mxu1 %vm5622_vm6, %v10598_v13 }
 0x5d3   : > { %v6313_v63 = vadd.f32 %v6252_v38, %v5937_v30  ;;  %v8264_v30 = vld [vmem:[#allocation2 + $0x18] sm:$0xff] }
 0x5d5   : > { %7983 = vmatmul.msk.bf16.gmra.mxu3 %vm5622_vm6, %v11611_v58  ;;  %v11675_v29 = vadd.f32 %v6384_v8, %v6313_v63 }
 0x5d6   : > { %v6257_v44 = vpop.f32.mrf.mxu0 }
 0x5d7   : > { %v6394_v57 = vpop.f32.mrf.mxu1 }
 0x5d8   : > { %v5939_v17 = vpop.f32.mrf.mxu3 }
 0x5d9   : > { %v5940_v19 = vadd.f32 %v5939_v17, %v11514_v60  ;;  %v11661_v50 = vpop.f32.mrf.mxu2 }
 0x5db   : > { %v6314_v32 = vadd.f32 %v6255_v42, %v5940_v19  ;;  %v12662_v42 = vld [vmem:[#allocation60_spill] sm:$0xff] }
 0x5dd   : > { %v11680_v58 = vadd.f32 %v6387_v48, %v6314_v32 }
 0x5de   : > { %v6260_v59 = vpop.f32.mrf.mxu0  ;;  %8041 = vmatmul.msk.bf16.gmra.mxu2 %vm5622_vm6, %v10883_v62 }
 0x5df   : > { %v6397_v46 = vpop.f32.mrf.mxu1 }
 0x5e0   : > { %v5941_v13 = vpop.f32.mrf.mxu3 }
 0x5e1   : > { %v5942_v38 = vadd.f32 %v5941_v13, %v11539_v36  ;;  %8073 = vmatmul.msk.bf16.vlgmr.msra.gmra.mxu0 %vm5622_vm6, %v8264_v30  ;;  %v11669_v9 = vpop.f32.mrf.mxu2 }
 0x5e2   : > { %8090 = vmatmul.msk.bf16.gmra.mxu1 %vm5622_vm6, %v10666_v37 }
 0x5e3   : > { %v6315_v27 = vadd.f32 %v6257_v44, %v5942_v38  ;;  %v12663_v38 = vld [vmem:[#allocation31_spill] sm:$0xff] }
 0x5e5   : > { %8053 = vmatmul.msk.bf16.vlgmr.msra.gmra.mxu3 %vm5622_vm6, %v12662_v42  ;;  %v11692_v48 = vadd.f32 %v6389_v45, %v6315_v27 }
 0x5e6   : > { %v6262_v60 = vpop.f32.mrf.mxu0 }
 0x5e7   : > { %v6399_v44 = vpop.f32.mrf.mxu1  ;;  %12665 = vst [vmem:[#allocation25_spill] sm:$0xff] %v11692_v48 }
 0x5e8   : > { %v5944_v17 = vpop.f32.mrf.mxu3 }
 0x5e9   : > { %v5945_v19 = vadd.f32 %v5944_v17, %v11564_v55  ;;  %v11678_v36 = vpop.f32.mrf.mxu2 }
 0x5eb   : > { %v6316_v13 = vadd.f32 %v6260_v59, %v5945_v19  ;;  %v12664_v59 = vld [vmem:[#allocation73_spill] sm:$0xff] }
 0x5ed   : > { %v11697_v25 = vadd.f32 %v6392_v39, %v6316_v13 }
 0x5ee   : > { %v6265_v30 = vpop.f32.mrf.mxu0  ;;  %8042 = vmatmul.msk.bf16.gmra.mxu2 %vm5622_vm6, %v12663_v38 }
 0x5ef   : > { %v6402_v17 = vpop.f32.mrf.mxu1  ;;  %12666 = vst [vmem:[#allocation21_spill] sm:$0xff] %v11697_v25 }
 0x5f0   : > { %v5946_v37 = vpop.f32.mrf.mxu3 }
 0x5f1   : > { %v5947_v42 = vadd.f32 %v5946_v37, %v11579_v14  ;;  %8074 = vmatmul.msk.bf16.gmra.mxu0 %vm5622_vm6, %v8265_v43  ;;  %v11686_v8 = vpop.f32.mrf.mxu2 }
 0x5f2   : > { %8091 = vmatmul.msk.bf16.gmra.mxu1 %vm5622_vm6, %v10734_v54 }
 0x5f3   : > { %v6317_v63 = vadd.f32 %v6262_v60, %v5947_v42  ;;  %v12667_v60 = vld [vmem:[#allocation75_spill] sm:$0xff] }
 0x5f5   : > { %8054 = vmatmul.msk.bf16.gmra.mxu3 %vm5622_vm6, %v12664_v59  ;;  %v8266_v59 = vld [vmem:[#allocation2 + $0x30] sm:$0xff]  ;;  %v11709_v13 = vadd.f32 %v6394_v57, %v6317_v63 }
 0x5f6   : > { %v6267_v55 = vpop.f32.mrf.mxu0 }
 0x5f7   : > { %v6404_v27 = vpop.f32.mrf.mxu1 }
 0x5f8   : > { %v5949_v32 = vpop.f32.mrf.mxu3 }
 0x5f9   : > { %v5950_v19 = vadd.f32 %v5949_v32, %v11591_v5  ;;  %v11695_v14 = vpop.f32.mrf.mxu2  ;;  %v12668_v5 = vld [vmem:[#allocation70_spill] sm:$0xff] }
 0x5fb   : > { %v6318_v37 = vadd.f32 %v6265_v30, %v5950_v19 }
 0x5fd   : > { %v11714_v25 = vadd.f32 %v6397_v46, %v6318_v37 }
 0x5fe   : > { %v6270_v43 = vpop.f32.mrf.mxu0  ;;  %8043 = vmatmul.msk.bf16.gmra.mxu2 %vm5622_vm6, %v12667_v60 }
 0x600   : > { %v5951_v54 = vpop.f32.mrf.mxu3 }
 0x601   : > { %v5952_v42 = vadd.f32 %v5951_v54, %v11601_v15  ;;  %8075 = vmatmul.msk.bf16.gmra.mxu0 %vm5622_vm6, %v8266_v59  ;;  %v11703_v45 = vpop.f32.mrf.mxu2  ;;  %v6407_v59 = vpop.f32.mrf.mxu1 }
 0x602   : > { %8092 = vmatmul.msk.bf16.gmra.mxu1 %vm5622_vm6, %v10815_v22 }
 0x603   : > { %v6319_v48 = vadd.f32 %v6267_v55, %v5952_v42  ;;  %v12669_v55 = vld [vmem:[#allocation72_spill] sm:$0xff] }
 0x605   : > { %8055 = vmatmul.msk.bf16.gmra.mxu3 %vm5622_vm6, %v12668_v5  ;;  %v8267_v5 = vld [vmem:[#allocation2 + $0x3c] sm:$0xff]  ;;  %v11727_v37 = vadd.f32 %v6399_v44, %v6319_v48  ;;  %v8268_v48 = vld [vmem:[#allocation2 + $0x48] sm:$0xff] }
 0x606   : > { %v6272_v39 = vpop.f32.mrf.mxu0 }
 0x607   : > { %12671 = vst [vmem:[#allocation18_spill] sm:$0xff] %v11727_v37 }
 0x608   : > { %v5954_v30 = vpop.f32.mrf.mxu3 }
 0x609   : > { %v5955_v32 = vadd.f32 %v5954_v30, %v11613_v20  ;;  %v11712_v15 = vpop.f32.mrf.mxu2  ;;  %v6409_v30 = vpop.f32.mrf.mxu1 }
 0x60b   : > { %v6320_v19 = vadd.f32 %v6270_v43, %v5955_v32  ;;  %v12670_v43 = vld [vmem:[#allocation63_spill] sm:$0xff] }
 0x60e   : > { %v6275_v54 = vpop.f32.mrf.mxu0  ;;  %8044 = vmatmul.msk.bf16.gmra.mxu2 %vm5622_vm6, %v12669_v55 }
 0x610   : > { %v5956_v22 = vpop.f32.mrf.mxu3 }
 0x611   : > { %v5957_v42 = vadd.f32 %v5956_v22, %v11623_v24  ;;  %8076 = vmatmul.msk.bf16.gmra.mxu0 %vm5622_vm6, %v8267_v5  ;;  %v6506_v57 = vpop.f32.mrf.mxu2 }
 0x612   : > { %v11721_v20 = vadd.f32 %v6506_v57, %v11510_v40  ;;  %8093 = vmatmul.msk.bf16.gmra.mxu1 %vm5622_vm6, %v10883_v62  ;;  %v12672_v57 = vld [vmem:[#allocation79_spill] sm:$0xff] }
 0x613   : > { %v6321_v63 = vadd.f32 %v6272_v39, %v5957_v42  ;;  %v11733_v42 = vadd.f32 %v6402_v17, %v6320_v19 }
 0x615   : > { %8056 = vmatmul.msk.bf16.gmra.mxu3 %vm5622_vm6, %v12670_v43  ;;  %v6412_v43 = vpop.f32.mrf.mxu1  ;;  %v11746_v19 = vadd.f32 %v6404_v27, %v6321_v63  ;;  %v8269_v27 = vld [vmem:[#allocation2 + $0x54] sm:$0xff] }
 0x616   : > { %v6277_v46 = vpop.f32.mrf.mxu0 }
 0x618   : > { %v5959_v32 = vpop.f32.mrf.mxu3 }
 0x619   : > { %v5960_v24 = vadd.f32 %v5959_v32, %v11634_v18  ;;  %v6508_v22 = vpop.f32.mrf.mxu2 }
 0x61a   : > { %v11731_v39 = vadd.f32 %v6508_v22, %v11535_v26  ;;  %v12673_v26 = vld [vmem:[#allocation66_spill] sm:$0xff] }
 0x61b   : > { %v6322_v5 = vadd.f32 %v6275_v54, %v5960_v24 }
 0x61d   : > { %v6414_v24 = vpop.f32.mrf.mxu1 }
 0x61e   : > { %v6280_v40 = vpop.f32.mrf.mxu0  ;;  %8045 = vmatmul.msk.bf16.gmra.mxu2 %vm5622_vm6, %v12672_v57 }
 0x620   : > { %v5961_v62 = vpop.f32.mrf.mxu3 }
 0x621   : > { %v5962_v44 = vadd.f32 %v5961_v62, %v11643_v33  ;;  %8077 = vmatmul.msk.bf16.gmra.mxu0 %vm5622_vm6, %v8268_v48  ;;  %v6511_v37 = vpop.f32.mrf.mxu2 }
 0x622   : > { %v11740_v54 = vadd.f32 %v6511_v37, %v11547_v3  ;;  %8094 = vmatmul.msk.bf16.gmra.mxu1 %vm5622_vm6, %v12663_v38  ;;  %v11752_v37 = vadd.f32 %v6407_v59, %v6322_v5  ;;  %v12675_v59 = vld [vmem:[#allocation77_spill] sm:$0xff] }
 0x623   : > { %v6323_v18 = vadd.f32 %v6277_v46, %v5962_v44  ;;  %v12674_v44 = vld [vmem:[#allocation14_spill] sm:$0xff] }
 0x625   : > { %8057 = vmatmul.msk.bf16.gmra.mxu3 %vm5622_vm6, %v12673_v26 }
 0x626   : > { %v6282_v17 = vpop.f32.mrf.mxu0 }
 0x628   : > { %v5964_v32 = vpop.f32.mrf.mxu3 }
 0x629   : > { %v5965_v33 = vadd.f32 %v5964_v32, %v11652_v0  ;;  %v6513_v22 = vpop.f32.mrf.mxu2 }
 0x62a   : > { %v11750_v46 = vadd.f32 %v6513_v22, %v11574_v56  ;;  %v6417_v56 = vpop.f32.mrf.mxu1 }
 0x62b   : > { %v6324_v62 = vadd.f32 %v6280_v40, %v5965_v33  ;;  %v11765_v40 = vadd.f32 %v6409_v30, %v6323_v18  ;;  %v8270_v30 = vld [vmem:[#allocation2 + $0x60] sm:$0xff] }
 0x62e   : > { %v6285_v3 = vpop.f32.mrf.mxu0  ;;  %8046 = vmatmul.msk.bf16.gmra.mxu2 %vm5622_vm6, %v12674_v44 }
 0x630   : > { %v5966_v38 = vpop.f32.mrf.mxu3 }
 0x631   : > { %v5967_v48 = vadd.f32 %v5966_v38, %v11661_v50  ;;  %8078 = vmatmul.msk.bf16.gmra.mxu0 %vm5622_vm6, %v8269_v27  ;;  %v6516_v63 = vpop.f32.mrf.mxu2 }
 0x632   : > { %v11759_v32 = vadd.f32 %v6516_v63, %v11582_v53  ;;  %8095 = vmatmul.msk.bf16.gmra.mxu1 %vm5622_vm6, %v12667_v60  ;;  %v6419_v27 = vpop.f32.mrf.mxu1  ;;  %v12676_v60 = vld [vmem:[#allocation30_spill] sm:$0xff] }
 0x633   : > { %v6325_v0 = vadd.f32 %v6282_v17, %v5967_v48  ;;  %v11771_v48 = vadd.f32 %v6412_v43, %v6324_v62 }
 0x635   : > { %8058 = vmatmul.msk.bf16.gmra.mxu3 %vm5622_vm6, %v12675_v59  ;;  %v11784_v62 = vadd.f32 %v6414_v24, %v6325_v0 }
 0x636   : > { %v6287_v5 = vpop.f32.mrf.mxu0 }
 0x638   : > { %v5969_v33 = vpop.f32.mrf.mxu3 }
 0x639   : > { %v5970_v50 = vadd.f32 %v5969_v33, %v11669_v9  ;;  %v6518_v22 = vpop.f32.mrf.mxu2 }
 0x63a   : > { %v11769_v17 = vadd.f32 %v6518_v22, %v11598_v31  ;;  %v12677_v31 = vld [vmem:[#allocation69_spill] sm:$0xff] }
 0x63b   : > { %v6326_v38 = vadd.f32 %v6285_v3, %v5970_v50  ;;  %v6422_v50 = vpop.f32.mrf.mxu1 }
 0x63e   : > { %v6290_v53 = vpop.f32.mrf.mxu0  ;;  %8047 = vmatmul.msk.bf16.gmra.mxu2 %vm5622_vm6, %v12676_v60 }
 0x640   : > { %v5971_v63 = vpop.f32.mrf.mxu3 }
 0x641   : > { %v5972_v59 = vadd.f32 %v5971_v63, %v11678_v36  ;;  %8079 = vmatmul.msk.bf16.gmra.mxu0 %vm5622_vm6, %v8270_v30  ;;  %v6521_v18 = vpop.f32.mrf.mxu2 }
 0x642   : > { %v11778_v3 = vadd.f32 %v6521_v18, %v11604_v51  ;;  %8096 = vmatmul.msk.bf16.gmra.mxu1 %vm5622_vm6, %v12669_v55 }
 0x643   : > { %v6327_v9 = vadd.f32 %v6287_v5, %v5972_v59  ;;  %v11790_v5 = vadd.f32 %v6417_v56, %v6326_v38  ;;  %v6424_v24 = vpop.f32.mrf.mxu1 }
 0x645   : > { %8059 = vmatmul.msk.bf16.gmra.mxu3 %vm5622_vm6, %v12677_v31  ;;  %v11804_v38 = vadd.f32 %v6419_v27, %v6327_v9 }
 0x646   : > { %v6292_v43 = vpop.f32.mrf.mxu0 }
 0x648   : > { %v5974_v33 = vpop.f32.mrf.mxu3 }
 0x649   : > { %v5975_v36 = vadd.f32 %v5974_v33, %v11686_v8  ;;  %v6523_v22 = vpop.f32.mrf.mxu2 }
 0x64a   : > { %v11788_v59 = vadd.f32 %v6523_v22, %v11620_v7  ;;  %v12678_v7 = vld [vmem:[#allocation33_spill] sm:$0xff] }
 0x64b   : > { %v6328_v63 = vadd.f32 %v6290_v53, %v5975_v36 }
 0x64d   : > { %v11810_v22 = vadd.f32 %v6422_v50, %v6328_v63 }
 0x64e   : > { %v6295_v51 = vpop.f32.mrf.mxu0  ;;  %8048 = vmatmul.msk.bf16.gmra.mxu2 %vm5622_vm6, %v11367_v34 }
 0x650   : > { %v5976_v55 = vpop.f32.mrf.mxu3 }
 0x651   : > { %v5977_v30 = vadd.f32 %v5976_v55, %v11695_v14  ;;  %8080 = vmatmul.msk.bf16.gmra.mxu0 %vm5622_vm6, %v11321_v47  ;;  %v6526_v0 = vpop.f32.mrf.mxu2 }
 0x652   : > { %v11798_v53 = vadd.f32 %v6526_v0, %v11625_v52  ;;  %8097 = vmatmul.msk.bf16.gmra.mxu1 %vm5622_vm6, %v12672_v57 }
 0x653   : > { %v6329_v8 = vadd.f32 %v6292_v43, %v5977_v30  ;;  %v6427_v43 = vpop.f32.mrf.mxu1 }
 0x655   : > { %8060 = vmatmul.msk.bf16.gmra.mxu3 %vm5622_vm6, %v12678_v7  ;;  %v11824_v50 = vadd.f32 %v6424_v24, %v6329_v8 }
 0x656   : > { %v6297_v56 = vpop.f32.mrf.mxu0 }
 0x658   : > { %v5979_v18 = vpop.f32.mrf.mxu3 }
 0x659   : > { %v5980_v14 = vadd.f32 %v5979_v18, %v11703_v45  ;;  %v6528_v33 = vpop.f32.mrf.mxu2 }
 0x65a   : > { %v11808_v36 = vadd.f32 %v6528_v33, %v11640_v21 }
 0x65b   : > { %v6330_v47 = vadd.f32 %v6295_v51, %v5980_v14  ;;  %v6429_v63 = vpop.f32.mrf.mxu1  ;;  %v6478_v51 = vshrl.u32 %v11549_v28, 16 }
 0x65d   : > { %v6480_v14 = vrot.slane %v6478_v51, 4  ;;  %v11834_v24 = vadd.f32 %v6427_v43, %v6330_v47 }
 0x65e   : > { %v6776_v52 = vpop.f32.mrf.mxu0  ;;  %8049 = vmatmul.msk.bf16.gmra.mxu2 %vm5622_vm6, %v11436_v35 }
 0x660   : > { %v5981_v57 = vpop.f32.mrf.mxu3 }
 0x661   : > { %v5982_v55 = vadd.f32 %v5981_v57, %v11712_v15  ;;  %8081 = vmatmul.msk.bf16.gmra.mxu0 %vm5622_vm6, %v11391_v49  ;;  %v6531_v27 = vpop.f32.mrf.mxu2  ;;  %v6474_v15 = vshll.u32 %v11549_v28, 16 }
 0x662   : > { %v11818_v9 = vadd.f32 %v6531_v27, %v11645_v12  ;;  %8098 = vmatmul.msk.bf16.gmra.mxu1 %vm5622_vm6, %v12674_v44  ;;  %v6465_v12 = vshrl.u32 %v11544_v6, 16  ;;  %v6468_v44 = vshll.u32 %v11544_v6, 16  ;;  %v6484_v6 = vshll.u32 %v11553_v4, 16 }
 0x663   : > { %v6331_v45 = vadd.f32 %v6297_v56, %v5982_v55  ;;  %v6476_v18 = vrot.slane %v6474_v15, 5  ;;  %v6930_v27 = vpop.f32.mrf.mxu1 }
 0x664   : > { %v6467_v8 = vrot.slane %v6465_v12, 4  ;;  %v6470_v57 = vrot.slane %v6468_v44, 5 }
 0x665   : > { %8061 = vmatmul.msk.bf16.gmra.mxu3 %vm5622_vm6, %v11152_v16  ;;  %v6481_v55 = vor.u32 %v6480_v14, %v6476_v18 }
 0x666   : > { %v6778_v21 = vpop.f32.mrf.mxu0  ;;  %v6471_v47 = vor.u32 %v6470_v57, %v6467_v8 }
 0x667   : > { %v6482_v43 = vrot.slane %v6481_v55, 4 }
 0x668   : > { %v6644_v49 = vpop.f32.mrf.mxu3 }
 0x669   : > { %v6724_v30 = vadd.f32 %v6644_v49, %v11721_v20  ;;  %v6533_v0 = vpop.f32.mrf.mxu2  ;;  %v6486_v49 = vrot.slane %v6484_v6, 5 }
 0x66a   : > { %v11832_v33 = vadd.f32 %v6533_v0, %v11658_v2 }
 0x66b   : > { %v6856_v56 = vadd.f32 %v6776_v52, %v6724_v30  ;;  %v6472_v30 = vrot.slane %v6471_v47, 4  ;;  %v6932_v44 = vpop.f32.mrf.mxu1  ;;  %v12680_v47 = vld [vmem:[#allocation25_spill] sm:$0xff] }
 0x66d   : > { %v11859_v57 = vadd.f32 %v6930_v27, %v6856_v56  ;;  %v12679_v56 = vld [vmem:[#allocation15_spill] sm:$0xff] }
 0x66e   : > { %8050 = vmatmul.msk.bf16.gmra.mxu2 %vm5622_vm6, %v11506_v10  ;;  %v6781_v20 = vpop.f32.mrf.mxu0 }
 0x670   : > { %v6646_v28 = vpop.f32.mrf.mxu3 }
 0x671   : > { %v6725_v52 = vadd.f32 %v6646_v28, %v11731_v39  ;;  %8082 = vmatmul.msk.bf16.gmra.mxu0 %vm5622_vm6, %v11470_v1  ;;  %v6536_v2 = vpop.f32.mrf.mxu2  ;;  %v11849_v39 = vadd.f32 %v6429_v63, %v6331_v45  ;;  %v6487_v1 = vsel %vm8383_vm7, %v6482_v43, %v6486_v49 }
 0x672   : > { %v11843_v51 = vadd.f32 %v6536_v2, %v11663_v11  ;;  %8099 = vmatmul.msk.bf16.gmra.mxu1 %vm5622_vm6, %v12676_v60  ;;  %v6477_v11 = vsel %vm8383_vm7, %v6472_v30, %v6476_v18  ;;  %v6489_v0 = vunpack.c.l.b16 %v6487_v1  ;;  %v12681_v1 = vld [vmem:[#allocation73_spill] sm:$0xff] }
 0x673   : > { %v6857_v15 = vadd.f32 %v6778_v21, %v6725_v52  ;;  %v6488_v45 = vunpack.c.l.b16 %v6477_v11  ;;  %v12683_v11 = vld [vmem:[#allocation21_spill] sm:$0xff] }
 0x675   : > { %8062 = vmatmul.msk.bf16.gmra.mxu3 %vm5622_vm6, %v11221_v61  ;;  %v6490_v63 = vpack.c.b16 %v6489_v0, %v6488_v45  ;;  %v11872_v27 = vadd.f32 %v6932_v44, %v6857_v15  ;;  %v12682_v15 = vld [vmem:[#allocation17_spill] sm:$0xff]  ;;  %v12684_v0 = vld [vmem:[#allocation78_spill] sm:$0xff] }
 0x676   : > { %v6783_v12 = vpop.f32.mrf.mxu0 }
 0x678   : > { %v6649_v4 = vpop.f32.mrf.mxu3 }
 0x679   : > { %v6726_v21 = vadd.f32 %v6649_v4, %v11740_v54  ;;  %v6538_v60 = vpop.f32.mrf.mxu2 }
 0x67a   : > { %v11857_v8 = vadd.f32 %v6538_v60, %v11675_v29  ;;  %v6935_v29 = vpop.f32.mrf.mxu1 }
 0x67b   : > { %v6858_v14 = vadd.f32 %v6781_v20, %v6726_v21 }
 0x67d   : > { %v11878_v49 = vadd.f32 %v6935_v29, %v6858_v14  ;;  %v12685_v29 = vld [vmem:[#allocation70_spill] sm:$0xff] }
 0x67e   : > { %8051 = vmatmul.msk.bf16.gmra.mxu2 %vm5622_vm6, %v6490_v63  ;;  %v6786_v20 = vpop.f32.mrf.mxu0 }
 0x680   : > { %v6651_v55 = vpop.f32.mrf.mxu3 }
 0x681   : > { %v6727_v54 = vadd.f32 %v6651_v55, %v11750_v46  ;;  %8083 = vmatmul.msk.bf16.gmra.mxu0 %vm5622_vm6, %v11523_v23  ;;  %v6541_v18 = vpop.f32.mrf.mxu2 }
 0x682   : > { %v11866_v52 = vadd.f32 %v6541_v18, %v11680_v58  ;;  %8100 = vmatmul.msk.bf16.gmra.mxu1 %vm5622_vm6, %v11367_v34  ;;  %v6937_v30 = vpop.f32.mrf.mxu1 }
 0x683   : > { %v6859_v28 = vadd.f32 %v6783_v12, %v6727_v54 }
 0x685   : > { %8063 = vmatmul.msk.bf16.gmra.mxu3 %vm5622_vm6, %v12679_v56  ;;  %v11892_v44 = vadd.f32 %v6937_v30, %v6859_v28  ;;  %v12686_v28 = vld [vmem:[#allocation34_spill] sm:$0xff] }
 0x686   : > { %v6788_v58 = vpop.f32.mrf.mxu0  ;;  %v12688_v30 = vld [vmem:[#allocation18_spill] sm:$0xff] }
 0x688   : > { %v6654_v6 = vpop.f32.mrf.mxu3 }
 0x689   : > { %v6728_v46 = vadd.f32 %v6654_v6, %v11759_v32  ;;  %v6543_v2 = vpop.f32.mrf.mxu2 }
 0x68a   : > { %v11876_v43 = vadd.f32 %v6543_v2, %v12680_v47  ;;  %v6940_v45 = vpop.f32.mrf.mxu1 }
 0x68b   : > { %v6860_v23 = vadd.f32 %v6786_v20, %v6728_v46 }
 0x68d   : > { %v11898_v20 = vadd.f32 %v6940_v45, %v6860_v23 }
 0x68e   : > { %8106 = vmatmul.msk.bf16.vlgmr.msra.gmra.mxu2 %vm5622_vm6, %v12681_v1  ;;  %v6791_v60 = vpop.f32.mrf.mxu0 }
 0x690   : > { %v6656_v34 = vpop.f32.mrf.mxu3 }
 0x691   : > { %v6729_v4 = vadd.f32 %v6656_v34, %v11769_v17  ;;  %8084 = vmatmul.msk.bf16.gmra.mxu0 %vm5622_vm6, %v12682_v15  ;;  %v6546_v21 = vpop.f32.mrf.mxu2  ;;  %v12689_v15 = vld [vmem:[#allocation63_spill] sm:$0xff] }
 0x692   : > { %v11886_v12 = vadd.f32 %v6546_v21, %v12683_v11  ;;  %8101 = vmatmul.msk.bf16.gmra.mxu1 %vm5622_vm6, %v11436_v35  ;;  %v6942_v2 = vpop.f32.mrf.mxu1 }
 0x693   : > { %v6861_v32 = vadd.f32 %v6788_v58, %v6729_v4 }
 0x695   : > { %8064 = vmatmul.msk.bf16.gmra.mxu3 %vm5622_vm6, %v12684_v0  ;;  %v11914_v23 = vadd.f32 %v6942_v2, %v6861_v32  ;;  %v12691_v32 = vld [vmem:[#allocation81_spill] sm:$0xff] }
 0x696   : > { %v6793_v46 = vpop.f32.mrf.mxu0 }
 0x698   : > { %v6659_v14 = vpop.f32.mrf.mxu3 }
 0x699   : > { %v6730_v17 = vadd.f32 %v6659_v14, %v11778_v3  ;;  %v6548_v55 = vpop.f32.mrf.mxu2  ;;  %v12692_v14 = vld [vmem:[#allocation28_spill] sm:$0xff] }
 0x69a   : > { %v11896_v18 = vadd.f32 %v6548_v55, %v11709_v13  ;;  %v12687_v13 = vld [vmem:[#allocation23_spill] sm:$0xff]  ;;  %v6945_v34 = vpop.f32.mrf.mxu1  ;;  %v11945_v55 = vld [vmem:[#allocation2 + $0xd4] sm:$0x1] }
 0x69b   : > { %v6862_v54 = vadd.f32 %v6791_v60, %v6730_v17 }
 0x69d   : > { %v11919_v4 = vadd.f32 %v6945_v34, %v6862_v54  ;;  %v12693_v54 = vld [vmem:[#allocation19_spill] sm:$0xff] }
 0x69e   : > { %8107 = vmatmul.msk.bf16.gmra.mxu2 %vm5622_vm6, %v12685_v29 }
 0x6a0   : > { %v6661_v35 = vpop.f32.mrf.mxu3 }
 0x6a1   : > { %v6731_v6 = vadd.f32 %v6661_v35, %v11788_v59  ;;  %8085 = vmatmul.msk.bf16.gmra.mxu0 %vm5622_vm6, %v12686_v28  ;;  %v6551_v47 = vpop.f32.mrf.mxu2 }
 0x6a2   : > { %v11908_v58 = vadd.f32 %v6551_v47, %v11714_v25  ;;  %8102 = vmatmul.msk.bf16.gmra.mxu1 %vm5622_vm6, %v11506_v10  ;;  %v12690_v25 = vld [vmem:[#allocation80_spill] sm:$0xff] }
 0x6a3   : > { %v11905_v3 = vadd.f32 %v6793_v46, %v6731_v6 }
 0x6a5   : > { %8065 = vmatmul.msk.bf16.gmra.mxu3 %vm5622_vm6, %v12687_v13 }
 0x6a9   : > { %v6553_v59 = vpop.f32.mrf.mxu2 }
 0x6aa   : > { %v11917_v1 = vadd.f32 %v6553_v59, %v12688_v30 }
 0x6ae   : > { %8108 = vmatmul.msk.bf16.gmra.mxu2 %vm5622_vm6, %v12689_v15 }
 0x6b1   : > { %8086 = vmatmul.msk.bf16.gmra.mxu0 %vm5622_vm6, %v12690_v25  ;;  %v6556_v21 = vpop.f32.mrf.mxu2 }
 0x6b2   : > { %v11926_v10 = vadd.f32 %v6556_v21, %v11733_v42  ;;  %8103 = vmatmul.msk.bf16.gmra.mxu1 %vm5622_vm6, %v6490_v63  ;;  %v11941_v42 = vld [vmem:[#allocation2 + $0xcc] sm:$0xf]  ;;  %v11943_v63 = vld [vmem:[#allocation2 + $0xd0] sm:$0xf] }
 0x6b3   : > { %v6898_v29 = vshll.u32 %v11943_v63, 16  ;;  %v6902_v35 = vshrl.u32 %v11943_v63, 16 }
 0x6b5   : > { %8066 = vmatmul.msk.bf16.gmra.mxu3 %vm5622_vm6, %v12691_v32  ;;  %v6900_v46 = vrot.slane %v6898_v29, 5  ;;  %v6904_v2 = vrot.slane %v6902_v35, 4  ;;  %v12694_v29 = vld [vmem:[#allocation77_spill] sm:$0xff] }
 0x6b7   : > { %v6905_v59 = vor.u32 %v6904_v2, %v6900_v46 }
 0x6b9   : > { %v6558_v11 = vpop.f32.mrf.mxu2  ;;  %v6906_v25 = vrot.slane %v6905_v59, 4 }
 0x6ba   : > { %v11932_v60 = vadd.f32 %v6558_v11, %v11746_v19  ;;  %v6889_v19 = vshrl.u32 %v11941_v42, 16  ;;  %v8178_v11 = vld [vmem:[#allocation2 + $0xcc] sm:$0xff] }
 0x6bc   : > { %v6891_v6 = vrot.slane %v6889_v19, 4 }
 0x6be   : > { %8109 = vmatmul.msk.bf16.gmra.mxu2 %vm5622_vm6, %v12673_v26  ;;  %v6892_v26 = vshll.u32 %v11941_v42, 16 }
 0x6c0   : > { %v6894_v28 = vrot.slane %v6892_v26, 5 }
 0x6c1   : > { %8087 = vmatmul.msk.bf16.gmra.mxu0 %vm5622_vm6, %v12692_v14  ;;  %v6561_v45 = vpop.f32.mrf.mxu2 }
 0x6c2   : > { %v11939_v17 = vadd.f32 %v6561_v45, %v11752_v37  ;;  %v6908_v37 = vshll.u32 %v11945_v55, 16  ;;  %v6895_v47 = vor.u32 %v6894_v28, %v6891_v6  ;;  %v12695_v28 = vld [vmem:[#allocation32_spill] sm:$0xff] }
 0x6c4   : > { %v6910_v30 = vrot.slane %v6908_v37, 5  ;;  %v6896_v15 = vrot.slane %v6895_v47, 4  ;;  %v11964_v37 = vpop.f32.mrf.mxu1 }
 0x6c5   : > { %8067 = vmatmul.msk.bf16.gmra.mxu3 %vm5622_vm6, %v12693_v54 }
 0x6c6   : > { %v6901_v14 = vsel %vm8383_vm7, %v6896_v15, %v6900_v46  ;;  %v6911_v45 = vsel %vm8383_vm7, %v6906_v25, %v6910_v30 }
 0x6c7   : > { %v6912_v19 = vunpack.c.l.b16 %v6901_v14  ;;  %v6913_v26 = vunpack.c.l.b16 %v6911_v45  ;;  %v6796_v45 = vpop.f32.mrf.mxu0 }
 0x6c9   : > { %v6563_v34 = vpop.f32.mrf.mxu2  ;;  %v6914_v35 = vpack.c.b16 %v6913_v26, %v6912_v19 }
 0x6ca   : > { %v11955_v21 = vadd.f32 %v6563_v34, %v11765_v40 }
 0x6cb   : > { %8104 = vmatmul.msk.bf16.gmra.mxu1 %vm5622_vm6, %v6914_v35 }
 0x6cc   : > { %v12020_v26 = vpop.f32.mrf.mxu1 }
 0x6ce   : > { %8110 = vmatmul.msk.bf16.gmra.mxu2 %vm5622_vm6, %v12694_v29 }
 0x6d1   : > { %8088 = vmatmul.msk.bf16.gmra.mxu0 %vm5622_vm6, %v8178_v11  ;;  %v6566_v40 = vpop.f32.mrf.mxu2 }
 0x6d2   : > { %v11968_v6 = vadd.f32 %v6566_v40, %v11771_v48 }
 0x6d5   : > { %8068 = vmatmul.msk.bf16.gmra.mxu3 %vm5622_vm6, %v12695_v28 }
 0x6d9   : > { %v6568_v41 = vpop.f32.mrf.mxu2 }
 0x6da   : > { %v11973_v46 = vadd.f32 %v6568_v41, %v11784_v62 }
 0x6de   : > { %8111 = vmatmul.msk.bf16.gmra.mxu2 %vm5622_vm6, %v12677_v31 }
 0x6e1   : > { %v6571_v2 = vpop.f32.mrf.mxu2 }
 0x6e2   : > { %v11978_v47 = vadd.f32 %v6571_v2, %v11790_v5 }
 0x6e9   : > { %v6573_v59 = vpop.f32.mrf.mxu2 }
 0x6ea   : > { %v11981_v30 = vadd.f32 %v6573_v59, %v11804_v38  ;;  %v6798_v59 = vpop.f32.mrf.mxu0 }
 0x6ee   : > { %8112 = vmatmul.msk.bf16.gmra.mxu2 %vm5622_vm6, %v12678_v7  ;;  %v12004_v7 = vld [vmem:[%s12212_s6] ss:$0 sm:$0xff] }
 0x6f1   : > { %v6576_v48 = vpop.f32.mrf.mxu2 }
 0x6f2   : > { %v11986_v34 = vadd.f32 %v6576_v48, %v11810_v22 }
 0x6f9   : > { %v6578_v62 = vpop.f32.mrf.mxu2 }
 0x6fa   : > { %v11989_v15 = vadd.f32 %v6578_v62, %v11824_v50 }
 0x6fe   : > { %8113 = vmatmul.msk.bf16.gmra.mxu2 %vm5622_vm6, %v11152_v16 }
 0x701   : > { %v6581_v31 = vpop.f32.mrf.mxu2 }
 0x702   : > { %v11994_v5 = vadd.f32 %v6581_v31, %v11834_v24  ;;  %v6664_v24 = vpop.f32.mrf.mxu3 }
 0x709   : > { %v6583_v38 = vpop.f32.mrf.mxu2 }
 0x70a   : > { %v11997_v25 = vadd.f32 %v6583_v38, %v11849_v39  ;;  %v6666_v35 = vpop.f32.mrf.mxu3 }
 0x70e   : > { %8114 = vmatmul.msk.bf16.gmra.mxu2 %vm5622_vm6, %v11221_v61 }
 0x711   : > { %v7068_v22 = vpop.f32.mrf.mxu2 }
 0x712   : > { %v7148_v50 = vadd.f32 %v7068_v22, %v11859_v57  ;;  %v6669_v38 = vpop.f32.mrf.mxu3 }
 0x714   : > { %v7184_v16 = vadd.f32 %v12004_v7, %v7148_v50 }
 0x716   : > { %vm7216_vm7 = vcmp.ge.f32.partialorder %v7184_v16, 0.0  ;;  %v7248_v61 = vmul.f32 0.2, %v7184_v16 }
 0x718   : > { %v7280_v39 = vsel %vm7216_vm7, %v7184_v16, %v7248_v61  ;;  %v6801_v16 = vpop.f32.mrf.mxu0 }
 0x719   : > { %7312 = vst.msk [vmem:[%s12012_s17] sm:$0xff] %vm798_vm3, %v7280_v39  ;;  %v7070_v11 = vpop.f32.mrf.mxu2 }
 0x71a   : > { %v7149_v14 = vadd.f32 %v7070_v11, %v11872_v27 }
 0x71c   : > { %v7185_v57 = vadd.f32 %v12004_v7, %v7149_v14  ;;  %v6671_v14 = vpop.f32.mrf.mxu3 }
 0x71e   : > { %vm7217_vm8 = vcmp.ge.f32.partialorder %v7185_v57, 0.0  ;;  %v7249_v19 = vmul.f32 0.2, %v7185_v57  ;;  %8115 = vmatmul.msk.bf16.gmra.mxu2 %vm5622_vm6, %v12679_v56  ;;  %v12028_v56 = vpop.f32.mrf.mxu1 }
 0x720   : > { %v7281_v29 = vsel %vm7217_vm8, %v7185_v57, %v7249_v19 }
 0x721   : > { %7313 = vst.msk [vmem:[%s12012_s17 + $0x8] sm:$0xff] %vm798_vm3, %v7281_v29  ;;  %v7073_v40 = vpop.f32.mrf.mxu2 }
 0x722   : > { %v7150_v41 = vadd.f32 %v7073_v40, %v11878_v49  ;;  %v6803_v40 = vpop.f32.mrf.mxu0 }
 0x724   : > { %v7186_v27 = vadd.f32 %v12004_v7, %v7150_v41 }
 0x726   : > { %vm7218_vm9 = vcmp.ge.f32.partialorder %v7186_v27, 0.0  ;;  %v7250_v2 = vmul.f32 0.2, %v7186_v27  ;;  %v12037_v11 = vpop.f32.mrf.mxu1 }
 0x728   : > { %v7282_v48 = vsel %vm7218_vm9, %v7186_v27, %v7250_v2  ;;  %v6674_v2 = vpop.f32.mrf.mxu3 }
 0x729   : > { %7314 = vst.msk [vmem:[%s12012_s17 + $0x10] sm:$0xff] %vm798_vm3, %v7282_v48  ;;  %v7075_v62 = vpop.f32.mrf.mxu2 }
 0x72a   : > { %v7151_v31 = vadd.f32 %v7075_v62, %v11892_v44 }
 0x72c   : > { %v7187_v22 = vadd.f32 %v12004_v7, %v7151_v31 }
 0x72e   : > { %vm7219_vm13 = vcmp.ge.f32.partialorder %v7187_v22, 0.0  ;;  %v7251_v49 = vmul.f32 0.2, %v7187_v22  ;;  %8116 = vmatmul.msk.bf16.gmra.mxu2 %vm5622_vm6, %v12684_v0  ;;  %v12044_v27 = vpop.f32.mrf.mxu1 }
 0x730   : > { %v7283_v50 = vsel %vm7219_vm13, %v7187_v22, %v7251_v49  ;;  %v12052_v22 = vpop.f32.mrf.mxu0 }
 0x731   : > { %7315 = vst.msk [vmem:[%s12012_s17 + $0x18] sm:$0xff] %vm798_vm3, %v7283_v50  ;;  %v7078_v61 = vpop.f32.mrf.mxu2  ;;  %v6732_v50 = vadd.f32 %v6664_v24, %v11798_v53  ;;  %v6733_v24 = vadd.f32 %v6666_v35, %v11808_v36 }
 0x732   : > { %v7152_v39 = vadd.f32 %v7078_v61, %v11898_v20 }
 0x734   : > { %v7188_v44 = vadd.f32 %v12004_v7, %v7152_v39 }
 0x736   : > { %vm7220_vm1 = vcmp.ge.f32.partialorder %v7188_v44, 0.0  ;;  %v7252_v57 = vmul.f32 0.2, %v7188_v44  ;;  %v12055_v61 = vpop.f32.mrf.mxu1 }
 0x738   : > { %v7284_v19 = vsel %vm7220_vm1, %v7188_v44, %v7252_v57  ;;  %v12059_v44 = vpop.f32.mrf.mxu3  ;;  %v12066_v53 = vpop.f32.mrf.mxu0 }
 0x739   : > { %7316 = vst.msk [vmem:[%s12012_s17 + $0x20] sm:$0xff] %vm798_vm3, %v7284_v19  ;;  %v7080_v29 = vpop.f32.mrf.mxu2  ;;  %v6864_v19 = vadd.f32 %v6796_v45, %v6732_v50 }
 0x73a   : > { %v7153_v0 = vadd.f32 %v7080_v29, %v11914_v23 }
 0x73c   : > { %v7189_v41 = vadd.f32 %v12004_v7, %v7153_v0 }
 0x73e   : > { %vm7221_vm2 = vcmp.ge.f32.partialorder %v7189_v41, 0.0  ;;  %v7253_v20 = vmul.f32 0.2, %v7189_v41  ;;  %8117 = vmatmul.msk.bf16.gmra.mxu2 %vm5622_vm6, %v12687_v13  ;;  %v7017_v13 = vadd.f32 %v11964_v37, %v11905_v3  ;;  %v7018_v37 = vadd.f32 %v12020_v26, %v6864_v19 }
 0x740   : > { %v7285_v48 = vsel %vm7221_vm2, %v7189_v41, %v7253_v20  ;;  %v12072_v20 = vpop.f32.mrf.mxu1  ;;  %v12079_v26 = vpop.f32.mrf.mxu0 }
 0x741   : > { %7317 = vst.msk [vmem:[%s12012_s17 + $0x28] sm:$0xff] %vm798_vm3, %v7285_v48  ;;  %v7083_v62 = vpop.f32.mrf.mxu2  ;;  %v12074_v48 = vpop.f32.mrf.mxu3 }
 0x742   : > { %v7154_v31 = vadd.f32 %v7083_v62, %v11919_v4  ;;  %v6865_v62 = vadd.f32 %v6798_v59, %v6733_v24 }
 0x744   : > { %v7190_v23 = vadd.f32 %v12004_v7, %v7154_v31  ;;  %v7019_v35 = vadd.f32 %v12028_v56, %v6865_v62  ;;  %v7045_v62 = vrot.slane %v11943_v63, 5 }
 0x746   : > { %vm7222_vm10 = vcmp.ge.f32.partialorder %v7190_v23, 0.0  ;;  %v7254_v49 = vmul.f32 0.2, %v7190_v23 }
 0x748   : > { %v7286_v39 = vsel %vm7222_vm10, %v7190_v23, %v7254_v49  ;;  %v6734_v23 = vadd.f32 %v6669_v38, %v11818_v9  ;;  %v6735_v9 = vadd.f32 %v6671_v14, %v11832_v33 }
 0x749   : > { %7318 = vst.msk [vmem:[%s12012_s17 + $0x30] sm:$0xff] %vm798_vm3, %v7286_v39  ;;  %v7085_v4 = vpop.f32.mrf.mxu2 }
 0x74a   : > { %v7155_v57 = vadd.f32 %v7085_v4, %v7017_v13  ;;  %v6866_v39 = vadd.f32 %v6801_v16, %v6734_v23  ;;  %v12083_v13 = vpop.f32.mrf.mxu1  ;;  %v12086_v4 = vpop.f32.mrf.mxu3 }
 0x74c   : > { %v7191_v29 = vadd.f32 %v12004_v7, %v7155_v57  ;;  %v7020_v38 = vadd.f32 %v12037_v11, %v6866_v39 }
 0x74e   : > { %vm7223_vm12 = vcmp.ge.f32.partialorder %v7191_v29, 0.0  ;;  %v7255_v0 = vmul.f32 0.2, %v7191_v29  ;;  %8118 = vmatmul.msk.bf16.gmra.mxu2 %vm5622_vm6, %v12691_v32 }
 0x750   : > { %v7287_v3 = vsel %vm7223_vm12, %v7191_v29, %v7255_v0  ;;  %v6813_v29 = vpop.f32.mrf.mxu0  ;;  %v6867_v0 = vadd.f32 %v6803_v40, %v6735_v9 }
 0x751   : > { %7319 = vst.msk [vmem:[%s12012_s17 + $0x38] sm:$0xff] %vm798_vm3, %v7287_v3  ;;  %v7088_v41 = vpop.f32.mrf.mxu2 }
 0x752   : > { %v7156_v45 = vadd.f32 %v7088_v41, %v7018_v37  ;;  %v12095_v3 = vpop.f32.mrf.mxu1  ;;  %v6684_v41 = vpop.f32.mrf.mxu3  ;;  %v7021_v14 = vadd.f32 %v12044_v27, %v6867_v0  ;;  %v7047_v27 = vrot.slane %v7045_v62, 4 }
 0x754   : > { %v7192_v31 = vadd.f32 %v12004_v7, %v7156_v45 }
 0x756   : > { %vm7224_vm14 = vcmp.ge.f32.partialorder %v7192_v31, 0.0  ;;  %v7256_v32 = vmul.f32 0.2, %v7192_v31 }
 0x758   : > { %v7288_v36 = vsel %vm7224_vm14, %v7192_v31, %v7256_v32  ;;  %v6816_v32 = vpop.f32.mrf.mxu0 }
 0x759   : > { %7320 = vst.msk [vmem:[%s12012_s17 + $0x40] sm:$0xff] %vm798_vm3, %v7288_v36  ;;  %v7090_v49 = vpop.f32.mrf.mxu2  ;;  %v6737_v36 = vadd.f32 %v12059_v44, %v11857_v8 }
 0x75a   : > { %v7157_v50 = vadd.f32 %v7090_v49, %v7019_v35  ;;  %v6970_v35 = vpop.f32.mrf.mxu1  ;;  %v6686_v49 = vpop.f32.mrf.mxu3 }
 0x75c   : > { %v7193_v59 = vadd.f32 %v12004_v7, %v7157_v50 }
 0x75e   : > { %vm7225_vm15 = vcmp.ge.f32.partialorder %v7193_v59, 0.0  ;;  %v7257_v57 = vmul.f32 0.2, %v7193_v59  ;;  %8119 = vmatmul.msk.bf16.gmra.mxu2 %vm5622_vm6, %v12693_v54  ;;  %v6736_v54 = vadd.f32 %v6674_v2, %v11843_v51  ;;  %v8105_v51 = vrot.slane %v11941_v42, 9 }
 0x75f   : > { %v7048_v2 = vrot.slane %v11945_v55, 5  ;;  %v6869_v55 = vadd.f32 %v12066_v53, %v6737_v36 }
 0x760   : > { %v7289_v56 = vsel %vm7225_vm15, %v7193_v59, %v7257_v57  ;;  %v6868_v40 = vadd.f32 %v12052_v22, %v6736_v54  ;;  %v6818_v9 = vpop.f32.mrf.mxu0  ;;  %v6741_v59 = vadd.f32 %v6686_v49, %v11896_v18 }
 0x761   : > { %7321 = vst.msk [vmem:[%s12012_s17 + $0x48] sm:$0xff] %vm798_vm3, %v7289_v56  ;;  %v7093_v16 = vpop.f32.mrf.mxu2  ;;  %v7049_v42 = vsel %vm8355_vm4, %v7047_v27, %v7048_v2  ;;  %v6738_v56 = vadd.f32 %v12074_v48, %v11866_v52  ;;  %v6739_v52 = vadd.f32 %v12086_v4, %v11876_v43  ;;  %v6740_v27 = vadd.f32 %v6684_v41, %v11886_v12 }
 0x762   : > { %v7158_v19 = vadd.f32 %v7093_v16, %v7020_v38  ;;  %v7022_v22 = vadd.f32 %v12055_v61, %v6868_v40  ;;  %v7051_v61 = vunpack.c.l.b16 %v7049_v42  ;;  %v7023_v16 = vadd.f32 %v12072_v20, %v6869_v55  ;;  %v6972_v0 = vpop.f32.mrf.mxu1 }
 0x763   : > { %v6870_v54 = vadd.f32 %v12079_v26, %v6738_v56  ;;  %v6871_v40 = vadd.f32 %v6813_v29, %v6739_v52  ;;  %v6873_v42 = vadd.f32 %v6818_v9, %v6741_v59 }
 0x764   : > { %v7194_v24 = vadd.f32 %v12004_v7, %v7158_v19 }
 0x765   : > { %v7024_v48 = vadd.f32 %v12083_v13, %v6870_v54  ;;  %v7025_v4 = vadd.f32 %v12095_v3, %v6871_v40  ;;  %v7027_v56 = vadd.f32 %v6972_v0, %v6873_v42 }
 0x766   : > { %vm7226_vm0 = vcmp.ge.f32.partialorder %v7194_v24, 0.0  ;;  %v7258_v37 = vmul.f32 0.2, %v7194_v24 }
 0x768   : > { %v7290_v33 = vsel %vm7226_vm0, %v7194_v24, %v7258_v37  ;;  %v6689_v37 = vpop.f32.mrf.mxu3 }
 0x769   : > { %7322 = vst.msk [vmem:[%s12012_s17 + $0x50] sm:$0xff] %vm798_vm3, %v7290_v33  ;;  %v7095_v11 = vpop.f32.mrf.mxu2 }
 0x76a   : > { %v7159_v45 = vadd.f32 %v7095_v11, %v7021_v14  ;;  %v6821_v11 = vpop.f32.mrf.mxu0  ;;  %v6975_v26 = vpop.f32.mrf.mxu1 }
 0x76c   : > { %v7195_v31 = vadd.f32 %v12004_v7, %v7159_v45 }
 0x76e   : > { %vm7227_vm5 = vcmp.ge.f32.partialorder %v7195_v31, 0.0  ;;  %v7259_v23 = vmul.f32 0.2, %v7195_v31  ;;  %8120 = vmatmul.msk.bf16.gmra.mxu2 %vm5622_vm6, %v12695_v28  ;;  %v7046_v28 = vsel %vm8355_vm4, %v8105_v51, %v7045_v62 }
 0x76f   : > { %v7050_v57 = vunpack.c.l.b16 %v7046_v28 }
 0x770   : > { %v7291_v63 = vsel %vm7227_vm5, %v7195_v31, %v7259_v23  ;;  %v6691_v23 = vpop.f32.mrf.mxu3 }
 0x771   : > { %7323 = vst.msk [vmem:[%s12012_s17 + $0x58] sm:$0xff] %vm798_vm3, %v7291_v63  ;;  %v7098_v50 = vpop.f32.mrf.mxu2  ;;  %v7052_v53 = vpack.c.b16 %v7051_v61, %v7050_v57  ;;  %v6872_v63 = vadd.f32 %v6816_v32, %v6740_v27  ;;  %v6742_v57 = vadd.f32 %v6689_v37, %v11908_v58 }
 0x772   : > { %v7160_v39 = vadd.f32 %v7098_v50, %v7022_v22  ;;  %v6823_v36 = vpop.f32.mrf.mxu0  ;;  %v6977_v22 = vpop.f32.mrf.mxu1 }
 0x773   : > { %v7026_v41 = vadd.f32 %v6970_v35, %v6872_v63 }
 0x774   : > { %v7196_v8 = vadd.f32 %v12004_v7, %v7160_v39 }
 0x776   : > { %vm7228_vm11 = vcmp.ge.f32.partialorder %v7196_v8, 0.0  ;;  %v7260_v44 = vmul.f32 0.2, %v7196_v8 }
 0x778   : > { %v7292_v38 = vsel %vm7228_vm11, %v7196_v8, %v7260_v44  ;;  %v6694_v39 = vpop.f32.mrf.mxu3 }
 0x779   : > { %7324 = vst.msk [vmem:[%s12012_s17 + $0x60] sm:$0xff] %vm798_vm3, %v7292_v38  ;;  %v7100_v19 = vpop.f32.mrf.mxu2  ;;  %v6874_v38 = vadd.f32 %v6821_v11, %v6742_v57 }
 0x77a   : > { %v7161_v24 = vadd.f32 %v7100_v19, %v7023_v16  ;;  %v6826_v8 = vpop.f32.mrf.mxu0  ;;  %v6980_v44 = vpop.f32.mrf.mxu1 }
 0x77b   : > { %v7028_v54 = vadd.f32 %v6975_v26, %v6874_v38 }
 0x77c   : > { %v7197_v33 = vadd.f32 %v12004_v7, %v7161_v24  ;;  %v6743_v24 = vadd.f32 %v6691_v23, %v11917_v1 }
 0x77e   : > { %vm7229_vm4 = vcmp.ge.f32.partialorder %v7197_v33, 0.0  ;;  %v7261_v14 = vmul.f32 0.2, %v7197_v33  ;;  %8121 = vmatmul.msk.bf16.gmra.mxu2 %vm5622_vm6, %v7052_v53 }
 0x780   : > { %v7293_v20 = vsel %vm7229_vm4, %v7197_v33, %v7261_v14  ;;  %v6696_v18 = vpop.f32.mrf.mxu3  ;;  %v6875_v14 = vadd.f32 %v6823_v36, %v6743_v24 }
 0x781   : > { %7325 = vst.msk [vmem:[%s12012_s17 + $0x68] sm:$0xff] %vm798_vm3, %v7293_v20  ;;  %v7103_v45 = vpop.f32.mrf.mxu2 }
 0x782   : > { %v7162_v62 = vadd.f32 %v7103_v45, %v7024_v48  ;;  %v6828_v19 = vpop.f32.mrf.mxu0  ;;  %v6982_v0 = vpop.f32.mrf.mxu1  ;;  %v6744_v48 = vadd.f32 %v6694_v39, %v11926_v10  ;;  %v7029_v45 = vadd.f32 %v6977_v22, %v6875_v14 }
 0x784   : > { %v7198_v31 = vadd.f32 %v12004_v7, %v7162_v62 }
 0x786   : > { %vm7230_vm7 = vcmp.ge.f32.partialorder %v7198_v31, 0.0  ;;  %v7262_v51 = vmul.f32 0.2, %v7198_v31 }
 0x788   : > { %v7294_v43 = vsel %vm7230_vm7, %v7198_v31, %v7262_v51  ;;  %v6699_v33 = vpop.f32.mrf.mxu3  ;;  %v6876_v31 = vadd.f32 %v6826_v8, %v6744_v48 }
 0x789   : > { %7326 = vst.msk [vmem:[%s12012_s17 + $0x70] sm:$0xff] %vm798_vm3, %v7294_v43  ;;  %v7105_v13 = vpop.f32.mrf.mxu2  ;;  %v6745_v43 = vadd.f32 %v6696_v18, %v11932_v60  ;;  %v6746_v59 = vadd.f32 %v6699_v33, %v11939_v17 }
 0x78a   : > { %v7163_v2 = vadd.f32 %v7105_v13, %v7025_v4  ;;  %v6831_v1 = vpop.f32.mrf.mxu0  ;;  %v6985_v26 = vpop.f32.mrf.mxu1  ;;  %v7030_v10 = vadd.f32 %v6980_v44, %v6876_v31 }
 0x78b   : > { %v6877_v63 = vadd.f32 %v6828_v19, %v6745_v43 }
 0x78c   : > { %v7199_v29 = vadd.f32 %v12004_v7, %v7163_v2 }
 0x78d   : > { %v7031_v60 = vadd.f32 %v6982_v0, %v6877_v63 }
 0x78e   : > { %vm7231_vm6 = vcmp.ge.f32.partialorder %v7199_v29, 0.0  ;;  %v7263_v50 = vmul.f32 0.2, %v7199_v29 }
 0x790   : > { %v7295_v12 = vsel %vm7231_vm6, %v7199_v29, %v7263_v50  ;;  %v6701_v51 = vpop.f32.mrf.mxu3 }
 0x791   : > { %7327 = vst.msk [vmem:[%s12012_s17 + $0x78] sm:$0xff] %vm798_vm3, %v7295_v12  ;;  %v7108_v3 = vpop.f32.mrf.mxu2  ;;  %v6747_v44 = vadd.f32 %v6701_v51, %v11955_v21 }
 0x792   : > { %v7164_v28 = vadd.f32 %v7108_v3, %v7026_v41  ;;  %v6833_v36 = vpop.f32.mrf.mxu0  ;;  %v6987_v22 = vpop.f32.mrf.mxu1 }
 0x794   : > { %v7200_v55 = vadd.f32 %v12004_v7, %v7164_v28  ;;  %v6878_v28 = vadd.f32 %v6831_v1, %v6746_v59 }
 0x796   : > { %vm7232_vm8 = vcmp.ge.f32.partialorder %v7200_v55, 0.0  ;;  %v7264_v32 = vmul.f32 0.2, %v7200_v55 }
 0x798   : > { %v7296_v61 = vsel %vm7232_vm8, %v7200_v55, %v7264_v32  ;;  %v6704_v39 = vpop.f32.mrf.mxu3 }
 0x799   : > { %7328 = vst.msk [vmem:[%s12012_s17 + $0x80] sm:$0xff] %vm798_vm3, %v7296_v61  ;;  %v7110_v35 = vpop.f32.mrf.mxu2  ;;  %v7032_v61 = vadd.f32 %v6985_v26, %v6878_v28 }
 0x79a   : > { %v7165_v49 = vadd.f32 %v7110_v35, %v7027_v56  ;;  %v6836_v55 = vpop.f32.mrf.mxu0  ;;  %v6990_v32 = vpop.f32.mrf.mxu1  ;;  %v6879_v35 = vadd.f32 %v6833_v36, %v6747_v44 }
 0x79c   : > { %v7201_v16 = vadd.f32 %v12004_v7, %v7165_v49  ;;  %v7033_v24 = vadd.f32 %v6987_v22, %v6879_v35 }
 0x79e   : > { %vm7233_vm9 = vcmp.ge.f32.partialorder %v7201_v16, 0.0  ;;  %v7265_v9 = vmul.f32 0.2, %v7201_v16 }
 0x7a0   : > { %v7297_v53 = vsel %vm7233_vm9, %v7201_v16, %v7265_v9  ;;  %v6706_v17 = vpop.f32.mrf.mxu3  ;;  %v6748_v9 = vadd.f32 %v6704_v39, %v11968_v6 }
 0x7a1   : > { %7329 = vst.msk [vmem:[%s12012_s17 + $0x88] sm:$0xff] %vm798_vm3, %v7297_v53  ;;  %v7113_v58 = vpop.f32.mrf.mxu2  ;;  %v6749_v14 = vadd.f32 %v6706_v17, %v11973_v46 }
 0x7a2   : > { %v7166_v37 = vadd.f32 %v7113_v58, %v7028_v54  ;;  %v6838_v16 = vpop.f32.mrf.mxu0  ;;  %v6992_v53 = vpop.f32.mrf.mxu1  ;;  %v6880_v0 = vadd.f32 %v6836_v55, %v6748_v9 }
 0x7a3   : > { %v6881_v1 = vadd.f32 %v6838_v16, %v6749_v14 }
 0x7a4   : > { %v7202_v52 = vadd.f32 %v12004_v7, %v7166_v37 }
 0x7a5   : > { %v7035_v46 = vadd.f32 %v6992_v53, %v6881_v1 }
 0x7a6   : > { %vm7234_vm13 = vcmp.ge.f32.partialorder %v7202_v52, 0.0  ;;  %v7266_v20 = vmul.f32 0.2, %v7202_v52 }
 0x7a8   : > { %v7298_v11 = vsel %vm7234_vm13, %v7202_v52, %v7266_v20  ;;  %v6709_v58 = vpop.f32.mrf.mxu3  ;;  %v7034_v20 = vadd.f32 %v6990_v32, %v6880_v0 }
 0x7a9   : > { %7330 = vst.msk [vmem:[%s12012_s17 + $0x90] sm:$0xff] %vm798_vm3, %v7298_v11  ;;  %v7115_v62 = vpop.f32.mrf.mxu2  ;;  %v6750_v31 = vadd.f32 %v6709_v58, %v11978_v47 }
 0x7aa   : > { %v7167_v40 = vadd.f32 %v7115_v62, %v7029_v45  ;;  %v6841_v6 = vpop.f32.mrf.mxu0  ;;  %v6995_v45 = vpop.f32.mrf.mxu1 }
 0x7ac   : > { %v7203_v23 = vadd.f32 %v12004_v7, %v7167_v40 }
 0x7ae   : > { %vm7235_vm1 = vcmp.ge.f32.partialorder %v7203_v23, 0.0  ;;  %v7267_v27 = vmul.f32 0.2, %v7203_v23 }
 0x7b0   : > { %v7299_v4 = vsel %vm7235_vm1, %v7203_v23, %v7267_v27  ;;  %v6711_v40 = vpop.f32.mrf.mxu3 }
 0x7b1   : > { %7331 = vst.msk [vmem:[%s12012_s17 + $0x98] sm:$0xff] %vm798_vm3, %v7299_v4  ;;  %v7118_v13 = vpop.f32.mrf.mxu2  ;;  %v6882_v4 = vadd.f32 %v6841_v6, %v6750_v31  ;;  %v6751_v63 = vadd.f32 %v6711_v40, %v11981_v30 }
 0x7b2   : > { %v7168_v2 = vadd.f32 %v7118_v13, %v7030_v10  ;;  %v6843_v43 = vpop.f32.mrf.mxu0  ;;  %v6997_v13 = vpop.f32.mrf.mxu1 }
 0x7b3   : > { %v7036_v47 = vadd.f32 %v6995_v45, %v6882_v4  ;;  %v6883_v39 = vadd.f32 %v6843_v43, %v6751_v63 }
 0x7b4   : > { %v7204_v29 = vadd.f32 %v12004_v7, %v7168_v2 }
 0x7b6   : > { %vm7236_vm2 = vcmp.ge.f32.partialorder %v7204_v29, 0.0  ;;  %v7268_v50 = vmul.f32 0.2, %v7204_v29 }
 0x7b8   : > { %v7300_v12 = vsel %vm7236_vm2, %v7204_v29, %v7268_v50  ;;  %v6714_v36 = vpop.f32.mrf.mxu3 }
 0x7b9   : > { %7332 = vst.msk [vmem:[%s12012_s17 + $0xa0] sm:$0xff] %vm798_vm3, %v7300_v12  ;;  %v7120_v41 = vpop.f32.mrf.mxu2 }
 0x7ba   : > { %v7169_v3 = vadd.f32 %v7120_v41, %v7031_v60  ;;  %v6846_v12 = vpop.f32.mrf.mxu0  ;;  %v7000_v41 = vpop.f32.mrf.mxu1 }
 0x7bc   : > { %v7205_v42 = vadd.f32 %v12004_v7, %v7169_v3  ;;  %v6752_v3 = vadd.f32 %v6714_v36, %v11986_v34 }
 0x7be   : > { %vm7237_vm10 = vcmp.ge.f32.partialorder %v7205_v42, 0.0  ;;  %v7269_v8 = vmul.f32 0.2, %v7205_v42  ;;  %v6884_v32 = vadd.f32 %v6846_v12, %v6752_v3 }
 0x7c0   : > { %v7301_v57 = vsel %vm7237_vm10, %v7205_v42, %v7269_v8  ;;  %v7037_v42 = vadd.f32 %v6997_v13, %v6883_v39  ;;  %v6716_v30 = vpop.f32.mrf.mxu3 }
 0x7c1   : > { %7333 = vst.msk [vmem:[%s12012_s17 + $0xa8] sm:$0xff] %vm798_vm3, %v7301_v57  ;;  %v7123_v56 = vpop.f32.mrf.mxu2  ;;  %v6753_v17 = vadd.f32 %v6716_v30, %v11989_v15 }
 0x7c2   : > { %v7170_v18 = vadd.f32 %v7123_v56, %v7032_v61  ;;  %v6848_v61 = vpop.f32.mrf.mxu0 }
 0x7c3   : > { %v6885_v16 = vadd.f32 %v6848_v61, %v6753_v17 }
 0x7c4   : > { %v7206_v49 = vadd.f32 %v12004_v7, %v7170_v18  ;;  %v7038_v18 = vadd.f32 %v7000_v41, %v6884_v32 }
 0x7c6   : > { %vm7238_vm12 = vcmp.ge.f32.partialorder %v7206_v49, 0.0  ;;  %v7270_v38 = vmul.f32 0.2, %v7206_v49 }
 0x7c8   : > { %v7302_v19 = vsel %vm7238_vm12, %v7206_v49, %v7270_v38  ;;  %v7002_v49 = vpop.f32.mrf.mxu1  ;;  %v6719_v38 = vpop.f32.mrf.mxu3 }
 0x7c9   : > { %7334 = vst.msk [vmem:[%s12012_s17 + $0xb0] sm:$0xff] %vm798_vm3, %v7302_v19  ;;  %v7125_v21 = vpop.f32.mrf.mxu2  ;;  %v7039_v15 = vadd.f32 %v7002_v49, %v6885_v16 }
 0x7ca   : > { %v7171_v54 = vadd.f32 %v7125_v21, %v7033_v24  ;;  %v6851_v24 = vpop.f32.mrf.mxu0  ;;  %v6754_v21 = vadd.f32 %v6719_v38, %v11994_v5 }
 0x7cc   : > { %v7207_v37 = vadd.f32 %v12004_v7, %v7171_v54 }
 0x7ce   : > { %vm7239_vm14 = vcmp.ge.f32.partialorder %v7207_v37, 0.0  ;;  %v7271_v33 = vmul.f32 0.2, %v7207_v37 }
 0x7d0   : > { %v7303_v52 = vsel %vm7239_vm14, %v7207_v37, %v7271_v33  ;;  %v7005_v0 = vpop.f32.mrf.mxu1  ;;  %v6886_v37 = vadd.f32 %v6851_v24, %v6754_v21  ;;  %v6721_v14 = vpop.f32.mrf.mxu3 }
 0x7d1   : > { %7335 = vst.msk [vmem:[%s12012_s17 + $0xb8] sm:$0xff] %vm798_vm3, %v7303_v52  ;;  %v7128_v48 = vpop.f32.mrf.mxu2  ;;  %v6755_v6 = vadd.f32 %v6721_v14, %v11997_v25 }
 0x7d2   : > { %v7172_v11 = vadd.f32 %v7128_v48, %v7034_v20  ;;  %v7040_v20 = vadd.f32 %v7005_v0, %v6886_v37  ;;  %v6853_v5 = vpop.f32.mrf.mxu0 }
 0x7d3   : > { %v6887_v1 = vadd.f32 %v6853_v5, %v6755_v6 }
 0x7d4   : > { %v7208_v62 = vadd.f32 %v12004_v7, %v7172_v11 }
 0x7d6   : > { %vm7240_vm15 = vcmp.ge.f32.partialorder %v7208_v62, 0.0  ;;  %v7272_v26 = vmul.f32 0.2, %v7208_v62 }
 0x7d8   : > { %v7304_v23 = vsel %vm7240_vm15, %v7208_v62, %v7272_v26  ;;  %v7007_v40 = vpop.f32.mrf.mxu1 }
 0x7d9   : > { %7336 = vst.msk [vmem:[%s12012_s17 + $0xc0] sm:$0xff] %vm798_vm3, %v7304_v23  ;;  %v7130_v51 = vpop.f32.mrf.mxu2  ;;  %v7041_v31 = vadd.f32 %v7007_v40, %v6887_v1 }
 0x7da   : > { %v7173_v27 = vadd.f32 %v7130_v51, %v7035_v46 }
 0x7dc   : > { %v7209_v10 = vadd.f32 %v12004_v7, %v7173_v27 }
 0x7de   : > { %vm7241_vm0 = vcmp.ge.f32.partialorder %v7209_v10, 0.0  ;;  %v7273_v2 = vmul.f32 0.2, %v7209_v10 }
 0x7e0   : > { %v7305_v29 = vsel %vm7241_vm0, %v7209_v10, %v7273_v2 }
 0x7e1   : > { %7337 = vst.msk [vmem:[%s12012_s17 + $0xc8] sm:$0xff] %vm798_vm3, %v7305_v29  ;;  %v7133_v22 = vpop.f32.mrf.mxu2 }
 0x7e2   : > { %v7174_v50 = vadd.f32 %v7133_v22, %v7036_v47 }
 0x7e4   : > { %v7210_v59 = vadd.f32 %v12004_v7, %v7174_v50 }
 0x7e6   : > { %vm7242_vm5 = vcmp.ge.f32.partialorder %v7210_v59, 0.0  ;;  %v7274_v60 = vmul.f32 0.2, %v7210_v59 }
 0x7e8   : > { %v7306_v28 = vsel %vm7242_vm5, %v7210_v59, %v7274_v60 }
 0x7e9   : > { %7338 = vst.msk [vmem:[%s12012_s17 + $0xd0] sm:$0xff] %vm798_vm3, %v7306_v28  ;;  %v7135_v55 = vpop.f32.mrf.mxu2 }
 0x7ea   : > { %v7175_v8 = vadd.f32 %v7135_v55, %v7037_v42 }
 0x7ec   : > { %v7211_v44 = vadd.f32 %v12004_v7, %v7175_v8 }
 0x7ee   : > { %vm7243_vm11 = vcmp.ge.f32.partialorder %v7211_v44, 0.0  ;;  %v7275_v57 = vmul.f32 0.2, %v7211_v44 }
 0x7f0   : > { %v7307_v56 = vsel %vm7243_vm11, %v7211_v44, %v7275_v57 }
 0x7f1   : > { %7339 = vst.msk [vmem:[%s12012_s17 + $0xd8] sm:$0xff] %vm798_vm3, %v7307_v56  ;;  %v7138_v34 = vpop.f32.mrf.mxu2 }
 0x7f2   : > { %v7176_v35 = vadd.f32 %v7138_v34, %v7038_v18 }
 0x7f4   : > { %v7212_v9 = vadd.f32 %v12004_v7, %v7176_v35 }
 0x7f6   : > { %vm7244_vm4 = vcmp.ge.f32.partialorder %v7212_v9, 0.0  ;;  %v7276_v19 = vmul.f32 0.2, %v7212_v9 }
 0x7f8   : > { %v7308_v53 = vsel %vm7244_vm4, %v7212_v9, %v7276_v19 }
 0x7f9   : > { %7340 = vst.msk [vmem:[%s12012_s17 + $0xe0] sm:$0xff] %vm798_vm3, %v7308_v53  ;;  %v7140_v54 = vpop.f32.mrf.mxu2 }
 0x7fa   : > { %v7177_v58 = vadd.f32 %v7140_v54, %v7039_v15 }
 0x7fc   : > { %v7213_v33 = vadd.f32 %v12004_v7, %v7177_v58 }
 0x7fe   : > { %vm7245_vm7 = vcmp.ge.f32.partialorder %v7213_v33, 0.0  ;;  %v7277_v52 = vmul.f32 0.2, %v7213_v33 }
 0x800   : > { %v7309_v48 = vsel %vm7245_vm7, %v7213_v33, %v7277_v52 }
 0x801   : > { %7341 = vst.msk [vmem:[%s12012_s17 + $0xe8] sm:$0xff] %vm798_vm3, %v7309_v48  ;;  %v7143_v11 = vpop.f32.mrf.mxu2 }
 0x802   : > { %v7178_v45 = vadd.f32 %v7143_v11, %v7040_v20 }
 0x804   : > { %v7214_v62 = vadd.f32 %v12004_v7, %v7178_v45 }
 0x806   : > { %vm7246_vm6 = vcmp.ge.f32.partialorder %v7214_v62, 0.0  ;;  %v7278_v26 = vmul.f32 0.2, %v7214_v62 }
 0x808   : > { %v7310_v23 = vsel %vm7246_vm6, %v7214_v62, %v7278_v26 }
 0x809   : > { %7342 = vst.msk [vmem:[%s12012_s17 + $0xf0] sm:$0xff] %vm798_vm3, %v7310_v23  ;;  %v7145_v46 = vpop.f32.mrf.mxu2 }
 0x80a   : > { %v7179_v51 = vadd.f32 %v7145_v46, %v7041_v31 }
 0x80c   : > { %v7215_v25 = vadd.f32 %v12004_v7, %v7179_v51 }
 0x80e   : > { %vm7247_vm8 = vcmp.ge.f32.partialorder %v7215_v25, 0.0  ;;  %v7279_v27 = vmul.f32 0.2, %v7215_v25 }
 0x810   : > { %v7311_v43 = vsel %vm7247_vm8, %v7215_v25, %v7279_v27 }
 0x811   : > { %7343 = vst.msk [vmem:[%s12012_s17 + $0xf8] sm:$0xff] %vm798_vm3, %v7311_v43 }
 0x812 PF: > { %s17_s24 = sadd.s32 1, %s8277_s24  }
 0x813   : > { %p14_p4 = scmp.ge.s32.totalorder %s17_s24, 4  }
 0x815   :  { %16 = sbr.rel (!%p14_p4) target bundleno = 1 (0x1), region = 82 }

</bundles_post_ra>
